<compile_context>
chip_gen: v7x
topology: tpu7x:2x2x1
jax: 0.10.0
libtpu: 0.0.40
codegen_flags: <defaults>
</compile_context>

<pallas_src>
import jax
import jax.numpy as jnp
from jax.experimental import pallas as pl
from jax.experimental.pallas import tpu as pltpu

# ---------------------------------------------------------------------------
# Small-scale "bert-base" style config (synthetic weights, deterministic init)
# ---------------------------------------------------------------------------
VOCAB = 128
MAX_POS = 128
TYPE_VOCAB = 2
HIDDEN = 128         # bert-base is 768; kept a multiple of 128 for lane density
NUM_HEADS = 4
HEAD_DIM = HIDDEN // NUM_HEADS
INTERMEDIATE = 256   # bert-base is 3072; scaled down, multiple of HIDDEN
NUM_LAYERS = 2
SEQ = 64             # tokenizer in the reference uses max_length=100
BATCH = 2
LN_EPS = 1e-12
SCALE = 1.0 / (HEAD_DIM ** 0.5)

assert INTERMEDIATE % HIDDEN == 0
SEQ_LOG2 = SEQ.bit_length() - 1
assert SEQ == (1 << SEQ_LOG2), "in-kernel sequence-id shift assumes power-of-2 SEQ"

# Rows of the stacked per-layer "small vector" tensor (L, N_VEC, H):
#   0 bq (pre-scaled by 1/sqrt(head_dim)), 1 bk, 2 bv, 3 bo,
#   4 ln1_gamma, 5 ln1_beta, 6 b2, 7 ln2_gamma, 8 ln2_beta,
#   9.. b1 split into H-wide chunks (INTERMEDIATE // HIDDEN of them).
N_VEC = 9 + INTERMEDIATE // HIDDEN
_SQRT_HALF = 0.7071067811865476

# Row-block packing: whole sequences packed into ~128-row blocks (one full MXU
# M tile).  Blocks are independent -> "parallel" grid axis (v7x dual-TC).
SEQS_PER_BLOCK = min(BATCH, max(1, 128 // SEQ)) if SEQ <= 128 else 1
assert BATCH % SEQS_PER_BLOCK == 0
ROWS_PER_BLOCK = SEQS_PER_BLOCK * SEQ
NUM_BLOCKS = BATCH // SEQS_PER_BLOCK
assert ROWS_PER_BLOCK % 8 == 0


def _layernorm(x, gamma, beta):
    mean = jnp.mean(x, axis=-1, keepdims=True)
    var = jnp.mean(jnp.square(x - mean), axis=-1, keepdims=True)
    return (x - mean) * jax.lax.rsqrt(var + LN_EPS) * gamma + beta


def _erf(x):
    # Abramowitz & Stegun 7.1.26, max abs error ~1.5e-7 (documented tolerance
    # vs jax/torch erf).  Built only from abs/where/exp/mul/add/div.
    a1, a2, a3, a4, a5 = 0.254829592, -0.284496736, 1.421413741, -1.453152027, 1.061405429
    p = 0.3275911
    ax = jnp.abs(x)
    t = 1.0 / (1.0 + p * ax)
    poly = ((((a5 * t + a4) * t + a3) * t + a2) * t + a1) * t
    y = 1.0 - poly * jnp.exp(-ax * ax)
    return jnp.where(x >= 0, y, -y)


def _gelu_erf(x):
    # Exact erf-GELU (HuggingFace BERT uses erf, not the tanh approximation).
    return 0.5 * x * (1.0 + _erf(x * _SQRT_HALF))


# ---------------------------------------------------------------------------
# Fused encoder kernel: embedding LayerNorm (at l==0) + all encoder layers.
# grid = (NUM_BLOCKS, NUM_LAYERS); the (rows, H) activation lives in the
# VMEM-resident output block across layer iterations (constant out index along
# the layer axis).  Per-layer weights are stacked on a leading L axis and
# pipelined by BlockSpec (layer l+1 weights prefetch while layer l computes).
# ---------------------------------------------------------------------------
def bert_encoder_kernel(emb_ref, embln_ref, keybias_ref,
                        wqkv_ref, wo_ref, w1_ref, w2_ref, vec_ref,
                        out_ref):
    H = HIDDEN
    M = out_ref.shape[0]
    l = pl.program_id(1)

    # Layer 0: embedding-sum LayerNorm seeds the resident activation.
    @pl.when(l == 0)
    def _():
        out_ref[...] = _layernorm(emb_ref[...], embln_ref[0:1, :], embln_ref[1:2, :])

    x = out_ref[...]                       # (M, H) f32, carried across layers
    xb = x.astype(jnp.bfloat16)

    # Fused QKV projection: one bf16 MXU matmul (M, H) @ (H, 3H) -> f32.
    # The 1/sqrt(head_dim) attention scale is pre-folded into W_q / b_q.
    qkv = jnp.dot(xb, wqkv_ref[...], preferred_element_type=jnp.float32)
    q = qkv[:, 0:H] + vec_ref[0:1, :]
    k = qkv[:, H:2 * H] + vec_ref[1:2, :]
    v = qkv[:, 2 * H:3 * H] + vec_ref[2:3, :]

    # In-kernel additive attention bias: block-diagonal over the sequences
    # packed into this row block (iota >> log2(SEQ) gives the local sequence
    # id) plus -10000 on padded keys (HF-BERT convention; exp(-10000) == 0).
    row_seq = jnp.right_shift(
        jax.lax.broadcasted_iota(jnp.int32, (M, M), 0), SEQ_LOG2)
    col_seq = jnp.right_shift(
        jax.lax.broadcasted_iota(jnp.int32, (M, M), 1), SEQ_LOG2)
    bias = jnp.where(row_seq == col_seq, keybias_ref[...], -10000.0)

    # Multi-head attention.  Static unroll over heads; scores use the 'nt'
    # dot_general form (contract on the minor dim -> no XLU transpose).  The
    # per-head context stays in registers and is immediately projected with
    # the matching HEAD_DIM-row slice of Wo and accumulated -- mathematically
    # identical to concat(ctx_h) @ Wo, but with zero VMEM stores/reloads.
    # NOTE: at realistic head shapes (12 heads, HEAD_DIM=64) switch to a
    # head-batched dot_general once its Mosaic lowering is verified.
    wo = wo_ref[...]                       # (H, H) bf16
    attn = None
    for h in range(NUM_HEADS):
        sl = slice(h * HEAD_DIM, (h + 1) * HEAD_DIM)
        s = jax.lax.dot_general(q[:, sl], k[:, sl],
                                (((1,), (1,)), ((), ())),
                                preferred_element_type=jnp.float32) + bias
        s = s - jnp.max(s, axis=-1, keepdims=True)
        e = jnp.exp(s)
        # Exact reciprocal (approx=False) for closer HF numerics; negligible cost.
        p = e * pl.reciprocal(jnp.sum(e, axis=-1, keepdims=True), approx=False)
        ctx_h = jnp.dot(p, v[:, sl], preferred_element_type=jnp.float32)
        contrib = jnp.dot(ctx_h.astype(jnp.bfloat16), wo[sl, :],
                          preferred_element_type=jnp.float32)
        attn = contrib if attn is None else attn + contrib
    attn = attn + vec_ref[3:4, :]
    h1 = _layernorm(x + attn, vec_ref[4:5, :], vec_ref[5:6, :])

    # FFN: bf16 MXU matmuls, f32 accumulate, exact erf GELU.  b1 is stored as
    # H-wide rows 9.. of the stacked vector tensor; re-assemble along lanes
    # (128-aligned concat, vreg-granular).
    b1 = jnp.concatenate(
        [vec_ref[9 + j:10 + j, :] for j in range(INTERMEDIATE // HIDDEN)], axis=-1)
    inter = jnp.dot(h1.astype(jnp.bfloat16), w1_ref[...],
                    preferred_element_type=jnp.float32) + b1
    inter = _gelu_erf(inter)
    ffn = jnp.dot(inter.astype(jnp.bfloat16), w2_ref[...],
                  preferred_element_type=jnp.float32) + vec_ref[6:7, :]

    out_ref[...] = _layernorm(h1 + ffn, vec_ref[7:8, :], vec_ref[8:9, :])


def bert_encoder(params, emb_flat, key_bias):
    BS, H = emb_flat.shape
    I = INTERMEDIATE
    L = NUM_LAYERS
    M = ROWS_PER_BLOCK
    NB = NUM_BLOCKS
    return pl.pallas_call(
        bert_encoder_kernel,
        out_shape=jax.ShapeDtypeStruct((BS, H), jnp.float32),
        grid=(NB, L),
        in_specs=[
            pl.BlockSpec((M, H), lambda nb, l: (nb, 0)),           # embeddings (per block)
            pl.BlockSpec((2, H), lambda nb, l: (0, 0)),            # emb LN gamma/beta
            pl.BlockSpec((1, M), lambda nb, l: (0, nb)),           # per-key additive bias
            pl.BlockSpec((None, H, 3 * H), lambda nb, l: (l, 0, 0)),  # Wqkv (bf16, Q pre-scaled)
            pl.BlockSpec((None, H, H), lambda nb, l: (l, 0, 0)),      # Wo   (bf16)
            pl.BlockSpec((None, H, I), lambda nb, l: (l, 0, 0)),      # W1   (bf16)
            pl.BlockSpec((None, I, H), lambda nb, l: (l, 0, 0)),      # W2   (bf16)
            pl.BlockSpec((None, N_VEC, H), lambda nb, l: (l, 0, 0)),  # biases/LN params (+b1)
        ],
        out_specs=pl.BlockSpec((M, H), lambda nb, l: (nb, 0)),     # layer-resident activation
        compiler_params=pltpu.CompilerParams(
            # row blocks are independent -> parallel (v7x dual-TC); layer axis
            # is a sequential carry on the resident output block -> arbitrary.
            dimension_semantics=("parallel", "arbitrary"),
            vmem_limit_bytes=32 * 1024 * 1024),
    )(emb_flat, params["emb_ln"], key_bias,
      params["wqkv"], params["wo"], params["w1"], params["w2"], params["vec"])


# ---------------------------------------------------------------------------
# Parameter init (deterministic, synthetic), stacked per-layer layout.
# ---------------------------------------------------------------------------
def init_params(key):
    keys = iter(jax.random.split(key, 8))

    def nrm(shape):
        return 0.02 * jax.random.normal(next(keys), shape, dtype=jnp.float32)

    L, H, I = NUM_LAYERS, HIDDEN, INTERMEDIATE

    vec = jnp.zeros((L, N_VEC, H), jnp.float32)
    vec = vec.at[:, 4, :].set(1.0)   # ln1 gamma
    vec = vec.at[:, 7, :].set(1.0)   # ln2 gamma
    # bq (row 0) must carry the same folded attention scale as W_q; it is zero
    # here, the multiply keeps the invariant explicit for nonzero checkpoints.
    vec = vec.at[:, 0, :].multiply(SCALE)

    wqkv = nrm((L, H, 3 * H))
    wqkv = wqkv.at[:, :, 0:H].multiply(SCALE)   # fold 1/sqrt(head_dim) into W_q

    return {
        "word_emb": nrm((VOCAB, H)),
        "pos_emb": nrm((MAX_POS, H)),
        "tok_emb": nrm((TYPE_VOCAB, H)),
        "emb_ln": jnp.stack([jnp.ones((H,), jnp.float32),
                             jnp.zeros((H,), jnp.float32)]),
        "wqkv": wqkv.astype(jnp.bfloat16),
        "wo": nrm((L, H, H)).astype(jnp.bfloat16),
        "w1": nrm((L, H, I)).astype(jnp.bfloat16),
        "w2": nrm((L, I, H)).astype(jnp.bfloat16),
        "vec": vec,
    }


# ---------------------------------------------------------------------------
# Full forward (mirrors BERT.forward after tokenization)
# ---------------------------------------------------------------------------
def bert_forward(params, input_ids, attention_mask):
    B, S = input_ids.shape
    H = HIDDEN

    # Glue (plain JAX): embedding gathers + sum.  token_type_ids default to 0
    # in the reference module (never passed), so the type-0 embedding is used.
    word_gathered = params["word_emb"][input_ids]                       # (B, S, H)
    emb = (word_gathered
           + params["pos_emb"][:S][None, :, :]
           + params["tok_emb"][0][None, None, :])
    emb_flat = emb.reshape(B * S, H)

    # Per-key additive bias lane vector only (0 on valid keys, -10000 on
    # padding, HF-BERT convention).  The cross-sequence block-diagonal part of
    # the mask is generated in-kernel from iota sequence ids, so nothing
    # O((B*S)^2) is built on the host or DMA'd.
    key_bias = jnp.where(attention_mask.reshape(1, -1) > 0,
                         0.0, -10000.0).astype(jnp.float32)             # (1, B*S)

    hidden = bert_encoder(params, emb_flat, key_bias).reshape(B, S, H)

    return {
        "input_ids": input_ids,
        "attention_mask": attention_mask,
        "encoded_tokens": hidden,            # bert_output[0]
        "input_embeddings": word_gathered,   # self.embeddings[input_ids]
    }


if __name__ == "__main__":
    key = jax.random.PRNGKey(0)
    pkey, dkey = jax.random.split(key)
    params = init_params(pkey)

    # Pre-tokenized synthetic batch (tokenizer is host-side, not a kernel).
    input_ids = jax.random.randint(dkey, (BATCH, SEQ), 0, VOCAB, dtype=jnp.int32)
    attention_mask = jnp.stack([
        jnp.ones((SEQ,), jnp.int32),
        (jnp.arange(SEQ) < SEQ - 5).astype(jnp.int32),   # second sequence padded
    ])

    fwd = jax.jit(bert_forward)
    out = fwd(params, input_ids, attention_mask)
    jax.block_until_ready(out["encoded_tokens"])
    jax.block_until_ready(out["input_embeddings"])

    assert out["encoded_tokens"].shape == (BATCH, SEQ, HIDDEN)
    assert out["input_embeddings"].shape == (BATCH, SEQ, HIDDEN)
    assert bool(jnp.all(jnp.isfinite(out["encoded_tokens"])))
    print("KERNEL_OK")
</pallas_src>

<mosaic_0001>
module attributes {stable_mosaic.version = 11 : i64} {
  func.func @bert_encoder_kernel(%arg0: i32, %arg1: i32, %arg2: memref<128x128xf32, #tpu.memory_space<vmem>>, %arg3: memref<2x128xf32, #tpu.memory_space<vmem>>, %arg4: memref<1x128xf32, #tpu.memory_space<vmem>>, %arg5: memref<1x128x384xbf16, #tpu.memory_space<vmem>>, %arg6: memref<1x128x128xbf16, #tpu.memory_space<vmem>>, %arg7: memref<1x128x256xbf16, #tpu.memory_space<vmem>>, %arg8: memref<1x256x128xbf16, #tpu.memory_space<vmem>>, %arg9: memref<1x11x128xf32, #tpu.memory_space<vmem>>, %arg10: memref<128x128xf32, #tpu.memory_space<vmem>>) attributes {dimension_semantics = [#tpu.dimension_semantics<parallel>, #tpu.dimension_semantics<arbitrary>], iteration_bounds = array<i64: 1, 2>, scalar_prefetch = 0 : i64, scratch_operands = 0 : i64, tpu.core_type = #tpu.core_type<tc>, window_params = [{transform_indices = @transform_0, window_bounds = array<i64: 128, 128>}, {pipeline_mode = #tpu.pipeline_mode<synchronous>, transform_indices = @transform_1, window_bounds = array<i64: 2, 128>}, {transform_indices = @transform_2, window_bounds = array<i64: 1, 128>}, {transform_indices = @transform_3, window_bounds = array<i64: 1, 128, 384>}, {transform_indices = @transform_4, window_bounds = array<i64: 1, 128, 128>}, {transform_indices = @transform_5, window_bounds = array<i64: 1, 128, 256>}, {transform_indices = @transform_6, window_bounds = array<i64: 1, 256, 128>}, {transform_indices = @transform_7, window_bounds = array<i64: 1, 11, 128>}, {transform_indices = @transform_8, window_bounds = array<i64: 128, 128>}]} {
    %c0_i32 = arith.constant 0 : i32
    %0 = arith.cmpi eq, %arg1, %c0_i32 : i32
    %1 = arith.extui %0 : i1 to i32
    %c0_i32_0 = arith.constant 0 : i32
    %2 = arith.cmpi ne, %1, %c0_i32_0 : i32
    scf.if %2 {
      %c0_90 = arith.constant 0 : index
      %c0_91 = arith.constant 0 : index
      %234 = vector.load %arg2[%c0_90, %c0_91] : memref<128x128xf32, #tpu.memory_space<vmem>>, vector<128x128xf32>
      %c0_92 = arith.constant 0 : index
      %c0_93 = arith.constant 0 : index
      %235 = vector.load %arg3[%c0_92, %c0_93] : memref<2x128xf32, #tpu.memory_space<vmem>>, vector<1x128xf32>
      %c1_94 = arith.constant 1 : index
      %c0_95 = arith.constant 0 : index
      %236 = vector.load %arg3[%c1_94, %c0_95] : memref<2x128xf32, #tpu.memory_space<vmem>>, vector<1x128xf32>
      %cst_96 = arith.constant dense<0.000000e+00> : vector<128xf32>
      %237 = vector.multi_reduction <add>, %234, %cst_96 [1] : vector<128x128xf32> to vector<128xf32>
      %238 = vector.shape_cast %237 : vector<128xf32> to vector<128x1xf32>
      %cst_97 = arith.constant 1.280000e+02 : f32
      %239 = vector.broadcast %cst_97 : f32 to vector<128x1xf32>
      %240 = arith.divf %238, %239 : vector<128x1xf32>
      %241 = vector.broadcast %240 : vector<128x1xf32> to vector<128x128xf32>
      %242 = arith.subf %234, %241 : vector<128x128xf32>
      %243 = arith.mulf %242, %242 : vector<128x128xf32>
      %cst_98 = arith.constant dense<0.000000e+00> : vector<128xf32>
      %244 = vector.multi_reduction <add>, %243, %cst_98 [1] : vector<128x128xf32> to vector<128xf32>
      %245 = vector.shape_cast %244 : vector<128xf32> to vector<128x1xf32>
      %cst_99 = arith.constant 1.280000e+02 : f32
      %246 = vector.broadcast %cst_99 : f32 to vector<128x1xf32>
      %247 = arith.divf %245, %246 : vector<128x1xf32>
      %248 = vector.broadcast %240 : vector<128x1xf32> to vector<128x128xf32>
      %249 = arith.subf %234, %248 : vector<128x128xf32>
      %cst_100 = arith.constant 9.99999996E-13 : f32
      %250 = vector.broadcast %cst_100 : f32 to vector<128x1xf32>
      %251 = arith.addf %247, %250 : vector<128x1xf32>
      %252 = math.rsqrt %251 : vector<128x1xf32>
      %253 = vector.broadcast %252 : vector<128x1xf32> to vector<128x128xf32>
      %254 = arith.mulf %249, %253 : vector<128x128xf32>
      %255 = vector.broadcast %235 : vector<1x128xf32> to vector<128x128xf32>
      %256 = arith.mulf %254, %255 : vector<128x128xf32>
      %257 = vector.broadcast %236 : vector<1x128xf32> to vector<128x128xf32>
      %258 = arith.addf %256, %257 : vector<128x128xf32>
      %c0_101 = arith.constant 0 : index
      %c0_102 = arith.constant 0 : index
      %259 = vector.load %arg10[%c0_101, %c0_102] : memref<128x128xf32, #tpu.memory_space<vmem>>, vector<128x128xf32>
      tpu.vector_store %arg10[%c0_101, %c0_102], %258 {strides = array<i32>} : memref<128x128xf32, #tpu.memory_space<vmem>>, vector<128x128xf32>,
    } else {
    }
    %c0 = arith.constant 0 : index
    %c0_1 = arith.constant 0 : index
    %3 = vector.load %arg10[%c0, %c0_1] : memref<128x128xf32, #tpu.memory_space<vmem>>, vector<128x128xf32>
    %4 = arith.truncf %3 : vector<128x128xf32> to vector<128x128xbf16>
    %c0_2 = arith.constant 0 : index
    %c0_3 = arith.constant 0 : index
    %c0_4 = arith.constant 0 : index
    %5 = vector.load %arg5[%c0_2, %c0_3, %c0_4] : memref<1x128x384xbf16, #tpu.memory_space<vmem>>, vector<1x128x384xbf16>
    %6 = vector.shape_cast %5 : vector<1x128x384xbf16> to vector<128x384xbf16>
    %cst = arith.constant dense<0.000000e+00> : vector<128x384xf32>
    %7 = tpu.matmul %4, %6, %cst {dimension_numbers = #tpu.dot_dimension_numbers<[1], [0], [0], [1], [0, 0, 1, 1], [], []>} : vector<128x128xbf16>, vector<128x384xbf16>, vector<128x384xf32> -> vector<128x384xf32>
    %8 = vector.extract_strided_slice %7 {offsets = [0, 0], sizes = [128, 128], strides = [1, 1]} : vector<128x384xf32> to vector<128x128xf32>
    %c0_5 = arith.constant 0 : index
    %c0_6 = arith.constant 0 : index
    %c0_7 = arith.constant 0 : index
    %9 = vector.load %arg9[%c0_5, %c0_6, %c0_7] : memref<1x11x128xf32, #tpu.memory_space<vmem>>, vector<1x1x128xf32>
    %10 = vector.shape_cast %9 : vector<1x1x128xf32> to vector<1x128xf32>
    %11 = vector.broadcast %10 : vector<1x128xf32> to vector<128x128xf32>
    %12 = arith.addf %8, %11 : vector<128x128xf32>
    %13 = vector.extract_strided_slice %7 {offsets = [0, 128], sizes = [128, 128], strides = [1, 1]} : vector<128x384xf32> to vector<128x128xf32>
    %c0_8 = arith.constant 0 : index
    %c1 = arith.constant 1 : index
    %c0_9 = arith.constant 0 : index
    %14 = vector.load %arg9[%c0_8, %c1, %c0_9] : memref<1x11x128xf32, #tpu.memory_space<vmem>>, vector<1x1x128xf32>
    %15 = vector.shape_cast %14 : vector<1x1x128xf32> to vector<1x128xf32>
    %16 = vector.broadcast %15 : vector<1x128xf32> to vector<128x128xf32>
    %17 = arith.addf %13, %16 : vector<128x128xf32>
    %18 = vector.extract_strided_slice %7 {offsets = [0, 256], sizes = [128, 128], strides = [1, 1]} : vector<128x384xf32> to vector<128x128xf32>
    %c0_10 = arith.constant 0 : index
    %c2 = arith.constant 2 : index
    %c0_11 = arith.constant 0 : index
    %19 = vector.load %arg9[%c0_10, %c2, %c0_11] : memref<1x11x128xf32, #tpu.memory_space<vmem>>, vector<1x1x128xf32>
    %20 = vector.shape_cast %19 : vector<1x1x128xf32> to vector<1x128xf32>
    %21 = vector.broadcast %20 : vector<1x128xf32> to vector<128x128xf32>
    %22 = arith.addf %18, %21 : vector<128x128xf32>
    %23 = tpu.iota {dimensions = array<i32: 0>} : vector<128x128xi32>
    %c6_i32 = arith.constant 6 : i32
    %24 = vector.broadcast %c6_i32 : i32 to vector<128x128xi32>
    %25 = arith.shrsi %23, %24 : vector<128x128xi32>
    %26 = tpu.iota {dimensions = array<i32: 1>} : vector<128x128xi32>
    %c6_i32_12 = arith.constant 6 : i32
    %27 = vector.broadcast %c6_i32_12 : i32 to vector<128x128xi32>
    %28 = arith.shrsi %26, %27 : vector<128x128xi32>
    %29 = arith.cmpi eq, %25, %28 : vector<128x128xi32>
    %c0_13 = arith.constant 0 : index
    %c0_14 = arith.constant 0 : index
    %30 = vector.load %arg4[%c0_13, %c0_14] : memref<1x128xf32, #tpu.memory_space<vmem>>, vector<1x128xf32>
    %cst_15 = arith.constant -1.000000e+04 : f32
    %31 = vector.shape_cast %30 : vector<1x128xf32> to vector<1x128xf32>
    %32 = vector.broadcast %31 : vector<1x128xf32> to vector<128x128xf32>
    %33 = vector.broadcast %cst_15 : f32 to vector<128x128xf32>
    %34 = arith.select %29, %32, %33 : vector<128x128xi1>, vector<128x128xf32>
    %c0_16 = arith.constant 0 : index
    %c0_17 = arith.constant 0 : index
    %c0_18 = arith.constant 0 : index
    %35 = vector.load %arg6[%c0_16, %c0_17, %c0_18] : memref<1x128x128xbf16, #tpu.memory_space<vmem>>, vector<1x128x128xbf16>
    %36 = vector.shape_cast %35 : vector<1x128x128xbf16> to vector<128x128xbf16>
    %37 = vector.extract_strided_slice %12 {offsets = [0, 0], sizes = [128, 32], strides = [1, 1]} : vector<128x128xf32> to vector<128x32xf32>
    %38 = vector.extract_strided_slice %17 {offsets = [0, 0], sizes = [128, 32], strides = [1, 1]} : vector<128x128xf32> to vector<128x32xf32>
    %cst_19 = arith.constant dense<0.000000e+00> : vector<128x128xf32>
    %39 = tpu.matmul %37, %38, %cst_19 {dimension_numbers = #tpu.dot_dimension_numbers<[1], [1], [0], [0], [0, 0, 1, 0], [], []>} : vector<128x32xf32>, vector<128x32xf32>, vector<128x128xf32> -> vector<128x128xf32>
    %40 = arith.addf %39, %34 : vector<128x128xf32>
    %cst_20 = arith.constant dense<0xFF800000> : vector<128xf32>
    %41 = vector.multi_reduction <maximumf>, %40, %cst_20 [1] : vector<128x128xf32> to vector<128xf32>
    %42 = vector.shape_cast %41 : vector<128xf32> to vector<128x1xf32>
    %43 = vector.broadcast %42 : vector<128x1xf32> to vector<128x128xf32>
    %44 = arith.subf %40, %43 : vector<128x128xf32>
    %45 = math.exp %44 : vector<128x128xf32>
    %cst_21 = arith.constant dense<0.000000e+00> : vector<128xf32>
    %46 = vector.multi_reduction <add>, %45, %cst_21 [1] : vector<128x128xf32> to vector<128xf32>
    %47 = vector.shape_cast %46 : vector<128xf32> to vector<128x1xf32>
    %48 = tpu.reciprocal %47 : vector<128x1xf32> -> vector<128x1xf32>
    %49 = vector.broadcast %48 : vector<128x1xf32> to vector<128x128xf32>
    %50 = arith.mulf %45, %49 : vector<128x128xf32>
    %51 = vector.extract_strided_slice %22 {offsets = [0, 0], sizes = [128, 32], strides = [1, 1]} : vector<128x128xf32> to vector<128x32xf32>
    %cst_22 = arith.constant dense<0.000000e+00> : vector<128x32xf32>
    %52 = tpu.matmul %50, %51, %cst_22 {dimension_numbers = #tpu.dot_dimension_numbers<[1], [0], [0], [1], [0, 0, 1, 1], [], []>} : vector<128x128xf32>, vector<128x32xf32>, vector<128x32xf32> -> vector<128x32xf32>
    %53 = arith.truncf %52 : vector<128x32xf32> to vector<128x32xbf16>
    %54 = vector.extract_strided_slice %36 {offsets = [0, 0], sizes = [32, 128], strides = [1, 1]} : vector<128x128xbf16> to vector<32x128xbf16>
    %cst_23 = arith.constant dense<0.000000e+00> : vector<128x128xf32>
    %55 = tpu.matmul %53, %54, %cst_23 {dimension_numbers = #tpu.dot_dimension_numbers<[1], [0], [0], [1], [0, 0, 1, 1], [], []>} : vector<128x32xbf16>, vector<32x128xbf16>, vector<128x128xf32> -> vector<128x128xf32>
    %56 = vector.extract_strided_slice %12 {offsets = [0, 32], sizes = [128, 32], strides = [1, 1]} : vector<128x128xf32> to vector<128x32xf32>
    %57 = vector.extract_strided_slice %17 {offsets = [0, 32], sizes = [128, 32], strides = [1, 1]} : vector<128x128xf32> to vector<128x32xf32>
    %cst_24 = arith.constant dense<0.000000e+00> : vector<128x128xf32>
    %58 = tpu.matmul %56, %57, %cst_24 {dimension_numbers = #tpu.dot_dimension_numbers<[1], [1], [0], [0], [0, 0, 1, 0], [], []>} : vector<128x32xf32>, vector<128x32xf32>, vector<128x128xf32> -> vector<128x128xf32>
    %59 = arith.addf %58, %34 : vector<128x128xf32>
    %cst_25 = arith.constant dense<0xFF800000> : vector<128xf32>
    %60 = vector.multi_reduction <maximumf>, %59, %cst_25 [1] : vector<128x128xf32> to vector<128xf32>
    %61 = vector.shape_cast %60 : vector<128xf32> to vector<128x1xf32>
    %62 = vector.broadcast %61 : vector<128x1xf32> to vector<128x128xf32>
    %63 = arith.subf %59, %62 : vector<128x128xf32>
    %64 = math.exp %63 : vector<128x128xf32>
    %cst_26 = arith.constant dense<0.000000e+00> : vector<128xf32>
    %65 = vector.multi_reduction <add>, %64, %cst_26 [1] : vector<128x128xf32> to vector<128xf32>
    %66 = vector.shape_cast %65 : vector<128xf32> to vector<128x1xf32>
    %67 = tpu.reciprocal %66 : vector<128x1xf32> -> vector<128x1xf32>
    %68 = vector.broadcast %67 : vector<128x1xf32> to vector<128x128xf32>
    %69 = arith.mulf %64, %68 : vector<128x128xf32>
    %70 = vector.extract_strided_slice %22 {offsets = [0, 32], sizes = [128, 32], strides = [1, 1]} : vector<128x128xf32> to vector<128x32xf32>
    %cst_27 = arith.constant dense<0.000000e+00> : vector<128x32xf32>
    %71 = tpu.matmul %69, %70, %cst_27 {dimension_numbers = #tpu.dot_dimension_numbers<[1], [0], [0], [1], [0, 0, 1, 1], [], []>} : vector<128x128xf32>, vector<128x32xf32>, vector<128x32xf32> -> vector<128x32xf32>
    %72 = arith.truncf %71 : vector<128x32xf32> to vector<128x32xbf16>
    %73 = vector.extract_strided_slice %36 {offsets = [32, 0], sizes = [32, 128], strides = [1, 1]} : vector<128x128xbf16> to vector<32x128xbf16>
    %cst_28 = arith.constant dense<0.000000e+00> : vector<128x128xf32>
    %74 = tpu.matmul %72, %73, %cst_28 {dimension_numbers = #tpu.dot_dimension_numbers<[1], [0], [0], [1], [0, 0, 1, 1], [], []>} : vector<128x32xbf16>, vector<32x128xbf16>, vector<128x128xf32> -> vector<128x128xf32>
    %75 = arith.addf %55, %74 : vector<128x128xf32>
    %76 = vector.extract_strided_slice %12 {offsets = [0, 64], sizes = [128, 32], strides = [1, 1]} : vector<128x128xf32> to vector<128x32xf32>
    %77 = vector.extract_strided_slice %17 {offsets = [0, 64], sizes = [128, 32], strides = [1, 1]} : vector<128x128xf32> to vector<128x32xf32>
    %cst_29 = arith.constant dense<0.000000e+00> : vector<128x128xf32>
    %78 = tpu.matmul %76, %77, %cst_29 {dimension_numbers = #tpu.dot_dimension_numbers<[1], [1], [0], [0], [0, 0, 1, 0], [], []>} : vector<128x32xf32>, vector<128x32xf32>, vector<128x128xf32> -> vector<128x128xf32>
    %79 = arith.addf %78, %34 : vector<128x128xf32>
    %cst_30 = arith.constant dense<0xFF800000> : vector<128xf32>
    %80 = vector.multi_reduction <maximumf>, %79, %cst_30 [1] : vector<128x128xf32> to vector<128xf32>
    %81 = vector.shape_cast %80 : vector<128xf32> to vector<128x1xf32>
    %82 = vector.broadcast %81 : vector<128x1xf32> to vector<128x128xf32>
    %83 = arith.subf %79, %82 : vector<128x128xf32>
    %84 = math.exp %83 : vector<128x128xf32>
    %cst_31 = arith.constant dense<0.000000e+00> : vector<128xf32>
    %85 = vector.multi_reduction <add>, %84, %cst_31 [1] : vector<128x128xf32> to vector<128xf32>
    %86 = vector.shape_cast %85 : vector<128xf32> to vector<128x1xf32>
    %87 = tpu.reciprocal %86 : vector<128x1xf32> -> vector<128x1xf32>
    %88 = vector.broadcast %87 : vector<128x1xf32> to vector<128x128xf32>
    %89 = arith.mulf %84, %88 : vector<128x128xf32>
    %90 = vector.extract_strided_slice %22 {offsets = [0, 64], sizes = [128, 32], strides = [1, 1]} : vector<128x128xf32> to vector<128x32xf32>
    %cst_32 = arith.constant dense<0.000000e+00> : vector<128x32xf32>
    %91 = tpu.matmul %89, %90, %cst_32 {dimension_numbers = #tpu.dot_dimension_numbers<[1], [0], [0], [1], [0, 0, 1, 1], [], []>} : vector<128x128xf32>, vector<128x32xf32>, vector<128x32xf32> -> vector<128x32xf32>
    %92 = arith.truncf %91 : vector<128x32xf32> to vector<128x32xbf16>
    %93 = vector.extract_strided_slice %36 {offsets = [64, 0], sizes = [32, 128], strides = [1, 1]} : vector<128x128xbf16> to vector<32x128xbf16>
    %cst_33 = arith.constant dense<0.000000e+00> : vector<128x128xf32>
    %94 = tpu.matmul %92, %93, %cst_33 {dimension_numbers = #tpu.dot_dimension_numbers<[1], [0], [0], [1], [0, 0, 1, 1], [], []>} : vector<128x32xbf16>, vector<32x128xbf16>, vector<128x128xf32> -> vector<128x128xf32>
    %95 = arith.addf %75, %94 : vector<128x128xf32>
    %96 = vector.extract_strided_slice %12 {offsets = [0, 96], sizes = [128, 32], strides = [1, 1]} : vector<128x128xf32> to vector<128x32xf32>
    %97 = vector.extract_strided_slice %17 {offsets = [0, 96], sizes = [128, 32], strides = [1, 1]} : vector<128x128xf32> to vector<128x32xf32>
    %cst_34 = arith.constant dense<0.000000e+00> : vector<128x128xf32>
    %98 = tpu.matmul %96, %97, %cst_34 {dimension_numbers = #tpu.dot_dimension_numbers<[1], [1], [0], [0], [0, 0, 1, 0], [], []>} : vector<128x32xf32>, vector<128x32xf32>, vector<128x128xf32> -> vector<128x128xf32>
    %99 = arith.addf %98, %34 : vector<128x128xf32>
    %cst_35 = arith.constant dense<0xFF800000> : vector<128xf32>
    %100 = vector.multi_reduction <maximumf>, %99, %cst_35 [1] : vector<128x128xf32> to vector<128xf32>
    %101 = vector.shape_cast %100 : vector<128xf32> to vector<128x1xf32>
    %102 = vector.broadcast %101 : vector<128x1xf32> to vector<128x128xf32>
    %103 = arith.subf %99, %102 : vector<128x128xf32>
    %104 = math.exp %103 : vector<128x128xf32>
    %cst_36 = arith.constant dense<0.000000e+00> : vector<128xf32>
    %105 = vector.multi_reduction <add>, %104, %cst_36 [1] : vector<128x128xf32> to vector<128xf32>
    %106 = vector.shape_cast %105 : vector<128xf32> to vector<128x1xf32>
    %107 = tpu.reciprocal %106 : vector<128x1xf32> -> vector<128x1xf32>
    %108 = vector.broadcast %107 : vector<128x1xf32> to vector<128x128xf32>
    %109 = arith.mulf %104, %108 : vector<128x128xf32>
    %110 = vector.extract_strided_slice %22 {offsets = [0, 96], sizes = [128, 32], strides = [1, 1]} : vector<128x128xf32> to vector<128x32xf32>
    %cst_37 = arith.constant dense<0.000000e+00> : vector<128x32xf32>
    %111 = tpu.matmul %109, %110, %cst_37 {dimension_numbers = #tpu.dot_dimension_numbers<[1], [0], [0], [1], [0, 0, 1, 1], [], []>} : vector<128x128xf32>, vector<128x32xf32>, vector<128x32xf32> -> vector<128x32xf32>
    %112 = arith.truncf %111 : vector<128x32xf32> to vector<128x32xbf16>
    %113 = vector.extract_strided_slice %36 {offsets = [96, 0], sizes = [32, 128], strides = [1, 1]} : vector<128x128xbf16> to vector<32x128xbf16>
    %cst_38 = arith.constant dense<0.000000e+00> : vector<128x128xf32>
    %114 = tpu.matmul %112, %113, %cst_38 {dimension_numbers = #tpu.dot_dimension_numbers<[1], [0], [0], [1], [0, 0, 1, 1], [], []>} : vector<128x32xbf16>, vector<32x128xbf16>, vector<128x128xf32> -> vector<128x128xf32>
    %115 = arith.addf %95, %114 : vector<128x128xf32>
    %c0_39 = arith.constant 0 : index
    %c3 = arith.constant 3 : index
    %c0_40 = arith.constant 0 : index
    %116 = vector.load %arg9[%c0_39, %c3, %c0_40] : memref<1x11x128xf32, #tpu.memory_space<vmem>>, vector<1x1x128xf32>
    %117 = vector.shape_cast %116 : vector<1x1x128xf32> to vector<1x128xf32>
    %118 = vector.broadcast %117 : vector<1x128xf32> to vector<128x128xf32>
    %119 = arith.addf %115, %118 : vector<128x128xf32>
    %120 = arith.addf %3, %119 : vector<128x128xf32>
    %c0_41 = arith.constant 0 : index
    %c4 = arith.constant 4 : index
    %c0_42 = arith.constant 0 : index
    %121 = vector.load %arg9[%c0_41, %c4, %c0_42] : memref<1x11x128xf32, #tpu.memory_space<vmem>>, vector<1x1x128xf32>
    %122 = vector.shape_cast %121 : vector<1x1x128xf32> to vector<1x128xf32>
    %c0_43 = arith.constant 0 : index
    %c5 = arith.constant 5 : index
    %c0_44 = arith.constant 0 : index
    %123 = vector.load %arg9[%c0_43, %c5, %c0_44] : memref<1x11x128xf32, #tpu.memory_space<vmem>>, vector<1x1x128xf32>
    %124 = vector.shape_cast %123 : vector<1x1x128xf32> to vector<1x128xf32>
    %cst_45 = arith.constant dense<0.000000e+00> : vector<128xf32>
    %125 = vector.multi_reduction <add>, %120, %cst_45 [1] : vector<128x128xf32> to vector<128xf32>
    %126 = vector.shape_cast %125 : vector<128xf32> to vector<128x1xf32>
    %cst_46 = arith.constant 1.280000e+02 : f32
    %127 = vector.broadcast %cst_46 : f32 to vector<128x1xf32>
    %128 = arith.divf %126, %127 : vector<128x1xf32>
    %129 = vector.broadcast %128 : vector<128x1xf32> to vector<128x128xf32>
    %130 = arith.subf %120, %129 : vector<128x128xf32>
    %131 = arith.mulf %130, %130 : vector<128x128xf32>
    %cst_47 = arith.constant dense<0.000000e+00> : vector<128xf32>
    %132 = vector.multi_reduction <add>, %131, %cst_47 [1] : vector<128x128xf32> to vector<128xf32>
    %133 = vector.shape_cast %132 : vector<128xf32> to vector<128x1xf32>
    %cst_48 = arith.constant 1.280000e+02 : f32
    %134 = vector.broadcast %cst_48 : f32 to vector<128x1xf32>
    %135 = arith.divf %133, %134 : vector<128x1xf32>
    %136 = vector.broadcast %128 : vector<128x1xf32> to vector<128x128xf32>
    %137 = arith.subf %120, %136 : vector<128x128xf32>
    %cst_49 = arith.constant 9.99999996E-13 : f32
    %138 = vector.broadcast %cst_49 : f32 to vector<128x1xf32>
    %139 = arith.addf %135, %138 : vector<128x1xf32>
    %140 = math.rsqrt %139 : vector<128x1xf32>
    %141 = vector.broadcast %140 : vector<128x1xf32> to vector<128x128xf32>
    %142 = arith.mulf %137, %141 : vector<128x128xf32>
    %143 = vector.broadcast %122 : vector<1x128xf32> to vector<128x128xf32>
    %144 = arith.mulf %142, %143 : vector<128x128xf32>
    %145 = vector.broadcast %124 : vector<1x128xf32> to vector<128x128xf32>
    %146 = arith.addf %144, %145 : vector<128x128xf32>
    %c0_50 = arith.constant 0 : index
    %c9 = arith.constant 9 : index
    %c0_51 = arith.constant 0 : index
    %147 = vector.load %arg9[%c0_50, %c9, %c0_51] : memref<1x11x128xf32, #tpu.memory_space<vmem>>, vector<1x1x128xf32>
    %148 = vector.shape_cast %147 : vector<1x1x128xf32> to vector<1x128xf32>
    %c0_52 = arith.constant 0 : index
    %c10 = arith.constant 10 : index
    %c0_53 = arith.constant 0 : index
    %149 = vector.load %arg9[%c0_52, %c10, %c0_53] : memref<1x11x128xf32, #tpu.memory_space<vmem>>, vector<1x1x128xf32>
    %150 = vector.shape_cast %149 : vector<1x1x128xf32> to vector<1x128xf32>
    %151 = tpu.concatenate %148, %150 in 1 : vector<1x128xf32>, vector<1x128xf32> -> vector<1x256xf32>
    %152 = arith.truncf %146 : vector<128x128xf32> to vector<128x128xbf16>
    %c0_54 = arith.constant 0 : index
    %c0_55 = arith.constant 0 : index
    %c0_56 = arith.constant 0 : index
    %153 = vector.load %arg7[%c0_54, %c0_55, %c0_56] : memref<1x128x256xbf16, #tpu.memory_space<vmem>>, vector<1x128x256xbf16>
    %154 = vector.shape_cast %153 : vector<1x128x256xbf16> to vector<128x256xbf16>
    %cst_57 = arith.constant dense<0.000000e+00> : vector<128x256xf32>
    %155 = tpu.matmul %152, %154, %cst_57 {dimension_numbers = #tpu.dot_dimension_numbers<[1], [0], [0], [1], [0, 0, 1, 1], [], []>} : vector<128x128xbf16>, vector<128x256xbf16>, vector<128x256xf32> -> vector<128x256xf32>
    %156 = vector.broadcast %151 : vector<1x256xf32> to vector<128x256xf32>
    %157 = arith.addf %155, %156 : vector<128x256xf32>
    %cst_58 = arith.constant 5.000000e-01 : f32
    %158 = vector.broadcast %cst_58 : f32 to vector<128x256xf32>
    %159 = arith.mulf %158, %157 : vector<128x256xf32>
    %cst_59 = arith.constant 0.707106769 : f32
    %160 = vector.broadcast %cst_59 : f32 to vector<128x256xf32>
    %161 = arith.mulf %157, %160 : vector<128x256xf32>
    %162 = math.absf %161 : vector<128x256xf32>
    %cst_60 = arith.constant 0.327591091 : f32
    %163 = vector.broadcast %cst_60 : f32 to vector<128x256xf32>
    %164 = arith.mulf %163, %162 : vector<128x256xf32>
    %cst_61 = arith.constant 1.000000e+00 : f32
    %165 = vector.broadcast %cst_61 : f32 to vector<128x256xf32>
    %166 = arith.addf %165, %164 : vector<128x256xf32>
    %cst_62 = arith.constant 1.000000e+00 : f32
    %167 = vector.broadcast %cst_62 : f32 to vector<128x256xf32>
    %168 = arith.divf %167, %166 : vector<128x256xf32>
    %cst_63 = arith.constant 1.06140542 : f32
    %169 = vector.broadcast %cst_63 : f32 to vector<128x256xf32>
    %170 = arith.mulf %169, %168 : vector<128x256xf32>
    %cst_64 = arith.constant -1.45315206 : f32
    %171 = vector.broadcast %cst_64 : f32 to vector<128x256xf32>
    %172 = arith.addf %170, %171 : vector<128x256xf32>
    %173 = arith.mulf %172, %168 : vector<128x256xf32>
    %cst_65 = arith.constant 1.42141378 : f32
    %174 = vector.broadcast %cst_65 : f32 to vector<128x256xf32>
    %175 = arith.addf %173, %174 : vector<128x256xf32>
    %176 = arith.mulf %175, %168 : vector<128x256xf32>
    %cst_66 = arith.constant -0.284496725 : f32
    %177 = vector.broadcast %cst_66 : f32 to vector<128x256xf32>
    %178 = arith.addf %176, %177 : vector<128x256xf32>
    %179 = arith.mulf %178, %168 : vector<128x256xf32>
    %cst_67 = arith.constant 0.254829586 : f32
    %180 = vector.broadcast %cst_67 : f32 to vector<128x256xf32>
    %181 = arith.addf %179, %180 : vector<128x256xf32>
    %182 = arith.mulf %181, %168 : vector<128x256xf32>
    %cst_68 = arith.constant 0.000000e+00 : f32
    %183 = vector.broadcast %cst_68 : f32 to vector<128x256xf32>
    %184 = arith.subf %183, %162 : vector<128x256xf32>
    %185 = arith.mulf %184, %162 : vector<128x256xf32>
    %186 = math.exp %185 : vector<128x256xf32>
    %187 = arith.mulf %182, %186 : vector<128x256xf32>
    %cst_69 = arith.constant 1.000000e+00 : f32
    %188 = vector.broadcast %cst_69 : f32 to vector<128x256xf32>
    %189 = arith.subf %188, %187 : vector<128x256xf32>
    %cst_70 = arith.constant 0.000000e+00 : f32
    %190 = vector.broadcast %cst_70 : f32 to vector<128x256xf32>
    %191 = arith.cmpf oge, %161, %190 : vector<128x256xf32>
    %cst_71 = arith.constant 0.000000e+00 : f32
    %192 = vector.broadcast %cst_71 : f32 to vector<128x256xf32>
    %193 = arith.subf %192, %189 : vector<128x256xf32>
    %194 = arith.select %191, %189, %193 : vector<128x256xi1>, vector<128x256xf32>
    %cst_72 = arith.constant 1.000000e+00 : f32
    %195 = vector.broadcast %cst_72 : f32 to vector<128x256xf32>
    %196 = arith.addf %195, %194 : vector<128x256xf32>
    %197 = arith.mulf %159, %196 : vector<128x256xf32>
    %198 = arith.truncf %197 : vector<128x256xf32> to vector<128x256xbf16>
    %c0_73 = arith.constant 0 : index
    %c0_74 = arith.constant 0 : index
    %c0_75 = arith.constant 0 : index
    %199 = vector.load %arg8[%c0_73, %c0_74, %c0_75] : memref<1x256x128xbf16, #tpu.memory_space<vmem>>, vector<1x256x128xbf16>
    %200 = vector.shape_cast %199 : vector<1x256x128xbf16> to vector<256x128xbf16>
    %cst_76 = arith.constant dense<0.000000e+00> : vector<128x128xf32>
    %201 = tpu.matmul %198, %200, %cst_76 {dimension_numbers = #tpu.dot_dimension_numbers<[1], [0], [0], [1], [0, 0, 1, 1], [], []>} : vector<128x256xbf16>, vector<256x128xbf16>, vector<128x128xf32> -> vector<128x128xf32>
    %c0_77 = arith.constant 0 : index
    %c6 = arith.constant 6 : index
    %c0_78 = arith.constant 0 : index
    %202 = vector.load %arg9[%c0_77, %c6, %c0_78] : memref<1x11x128xf32, #tpu.memory_space<vmem>>, vector<1x1x128xf32>
    %203 = vector.shape_cast %202 : vector<1x1x128xf32> to vector<1x128xf32>
    %204 = vector.broadcast %203 : vector<1x128xf32> to vector<128x128xf32>
    %205 = arith.addf %201, %204 : vector<128x128xf32>
    %206 = arith.addf %146, %205 : vector<128x128xf32>
    %c0_79 = arith.constant 0 : index
    %c7 = arith.constant 7 : index
    %c0_80 = arith.constant 0 : index
    %207 = vector.load %arg9[%c0_79, %c7, %c0_80] : memref<1x11x128xf32, #tpu.memory_space<vmem>>, vector<1x1x128xf32>
    %208 = vector.shape_cast %207 : vector<1x1x128xf32> to vector<1x128xf32>
    %c0_81 = arith.constant 0 : index
    %c8 = arith.constant 8 : index
    %c0_82 = arith.constant 0 : index
    %209 = vector.load %arg9[%c0_81, %c8, %c0_82] : memref<1x11x128xf32, #tpu.memory_space<vmem>>, vector<1x1x128xf32>
    %210 = vector.shape_cast %209 : vector<1x1x128xf32> to vector<1x128xf32>
    %cst_83 = arith.constant dense<0.000000e+00> : vector<128xf32>
    %211 = vector.multi_reduction <add>, %206, %cst_83 [1] : vector<128x128xf32> to vector<128xf32>
    %212 = vector.shape_cast %211 : vector<128xf32> to vector<128x1xf32>
    %cst_84 = arith.constant 1.280000e+02 : f32
    %213 = vector.broadcast %cst_84 : f32 to vector<128x1xf32>
    %214 = arith.divf %212, %213 : vector<128x1xf32>
    %215 = vector.broadcast %214 : vector<128x1xf32> to vector<128x128xf32>
    %216 = arith.subf %206, %215 : vector<128x128xf32>
    %217 = arith.mulf %216, %216 : vector<128x128xf32>
    %cst_85 = arith.constant dense<0.000000e+00> : vector<128xf32>
    %218 = vector.multi_reduction <add>, %217, %cst_85 [1] : vector<128x128xf32> to vector<128xf32>
    %219 = vector.shape_cast %218 : vector<128xf32> to vector<128x1xf32>
    %cst_86 = arith.constant 1.280000e+02 : f32
    %220 = vector.broadcast %cst_86 : f32 to vector<128x1xf32>
    %221 = arith.divf %219, %220 : vector<128x1xf32>
    %222 = vector.broadcast %214 : vector<128x1xf32> to vector<128x128xf32>
    %223 = arith.subf %206, %222 : vector<128x128xf32>
    %cst_87 = arith.constant 9.99999996E-13 : f32
    %224 = vector.broadcast %cst_87 : f32 to vector<128x1xf32>
    %225 = arith.addf %221, %224 : vector<128x1xf32>
    %226 = math.rsqrt %225 : vector<128x1xf32>
    %227 = vector.broadcast %226 : vector<128x1xf32> to vector<128x128xf32>
    %228 = arith.mulf %223, %227 : vector<128x128xf32>
    %229 = vector.broadcast %208 : vector<1x128xf32> to vector<128x128xf32>
    %230 = arith.mulf %228, %229 : vector<128x128xf32>
    %231 = vector.broadcast %210 : vector<1x128xf32> to vector<128x128xf32>
    %232 = arith.addf %230, %231 : vector<128x128xf32>
    %c0_88 = arith.constant 0 : index
    %c0_89 = arith.constant 0 : index
    %233 = vector.load %arg10[%c0_88, %c0_89] : memref<128x128xf32, #tpu.memory_space<vmem>>, vector<128x128xf32>
    tpu.vector_store %arg10[%c0_88, %c0_89], %232 {strides = array<i32>} : memref<128x128xf32, #tpu.memory_space<vmem>>, vector<128x128xf32>,
    return
  }
  func.func @transform_0(%arg0: i32, %arg1: i32) -> (i32, i32) {
    %c0_i32 = arith.constant 0 : i32
    %c0_i32_0 = arith.constant 0 : i32
    return %arg0, %c0_i32 : i32, i32
  }
  func.func @transform_1(%arg0: i32, %arg1: i32) -> (i32, i32) {
    %c0_i32 = arith.constant 0 : i32
    %c0_i32_0 = arith.constant 0 : i32
    %c0_i32_1 = arith.constant 0 : i32
    return %c0_i32, %c0_i32_0 : i32, i32
  }
  func.func @transform_2(%arg0: i32, %arg1: i32) -> (i32, i32) {
    %c0_i32 = arith.constant 0 : i32
    %c0_i32_0 = arith.constant 0 : i32
    return %c0_i32, %arg0 : i32, i32
  }
  func.func @transform_3(%arg0: i32, %arg1: i32) -> (i32, i32, i32) {
    %c0_i32 = arith.constant 0 : i32
    %c0_i32_0 = arith.constant 0 : i32
    %c0_i32_1 = arith.constant 0 : i32
    return %arg1, %c0_i32, %c0_i32_0 : i32, i32, i32
  }
  func.func @transform_4(%arg0: i32, %arg1: i32) -> (i32, i32, i32) {
    %c0_i32 = arith.constant 0 : i32
    %c0_i32_0 = arith.constant 0 : i32
    %c0_i32_1 = arith.constant 0 : i32
    return %arg1, %c0_i32, %c0_i32_0 : i32, i32, i32
  }
  func.func @transform_5(%arg0: i32, %arg1: i32) -> (i32, i32, i32) {
    %c0_i32 = arith.constant 0 : i32
    %c0_i32_0 = arith.constant 0 : i32
    %c0_i32_1 = arith.constant 0 : i32
    return %arg1, %c0_i32, %c0_i32_0 : i32, i32, i32
  }
  func.func @transform_6(%arg0: i32, %arg1: i32) -> (i32, i32, i32) {
    %c0_i32 = arith.constant 0 : i32
    %c0_i32_0 = arith.constant 0 : i32
    %c0_i32_1 = arith.constant 0 : i32
    return %arg1, %c0_i32, %c0_i32_0 : i32, i32, i32
  }
  func.func @transform_7(%arg0: i32, %arg1: i32) -> (i32, i32, i32) {
    %c0_i32 = arith.constant 0 : i32
    %c0_i32_0 = arith.constant 0 : i32
    %c0_i32_1 = arith.constant 0 : i32
    return %arg1, %c0_i32, %c0_i32_0 : i32, i32, i32
  }
  func.func @transform_8(%arg0: i32, %arg1: i32) -> (i32, i32) {
    %c0_i32 = arith.constant 0 : i32
    %c0_i32_0 = arith.constant 0 : i32
    return %arg0, %c0_i32 : i32, i32
  }
}

</mosaic_0001>

<bundles_post_ra>
// kernel: bert_forward.1
= control target key start
LH: loop header
LB: loop body
LE: loop exit
PB: predicated region body
PF: predicated region fallthrough
CT: control target
= control target key end

     0   :  { %13 = vsyncpa [#allocation3], 0  ;;  %s8711_s27 = smov 0   ;;  %s8713_s28 = smov 0   ;;  %s11907_s0 = inlined_call_operand.vmem [shape: f32[128,128], index: 0, kind: input, shape index: {}]   ;;  %s11908_s1 = inlined_call_operand.vmem [shape: f32[2,128], index: 1, kind: input, shape index: {}]   ;;  %s11909_s2 = inlined_call_operand.vmem [shape: f32[1,128], index: 2, kind: input, shape index: {}]   ;;  %s11910_s3 = inlined_call_operand.vmem [shape: bf16[2,128,384], index: 3, kind: input, shape index: {}]   ;;  %s11911_s4 = inlined_call_operand.vmem [shape: bf16[2,128,128], index: 4, kind: input, shape index: {}]   ;;  %s11912_s5 = inlined_call_operand.vmem [shape: bf16[2,128,256], index: 5, kind: input, shape index: {}]   ;;  %s11913_s6 = inlined_call_operand.vmem [shape: bf16[2,256,128], index: 6, kind: input, shape index: {}]   ;;  %s11914_s7 = inlined_call_operand.vmem [shape: f32[2,11,128], index: 7, kind: input, shape index: {}]   ;;  %s11915_s8 = inlined_call_operand.hbm [shape: f32[128,128], index: 8, kind: output, shape index: {}]  }
   0x1   :  { %s8715_s29 = smov 0  }
   0x2 LB: > { %s6183_s30 = sadd.s32 4294967295, %s8657_s29   ;;  %s28_s9 = sadd.s32 1, %s8653_s28  ;;  %s8657_s29 = sphi %s8715_s29, %s19_s29   ;;  %s8653_s28 = sphi %s8713_s28, %s12239_s28   ;;  %s8649_s27 = sphi %s8711_s27, %s12238_s27  }
   0x3   : > { %p29_p0 = scmp.ge.s32.totalorder %s28_s9, 2  ;;  %p6188_p1 = scmp.ge.s32.totalorder %s8657_s29, 1 }
   0x4   : > { %p334_p2 = scmp.lt.s32.totalorder %s8657_s29, 3 }
   0x5   : > { %s12241_s9 = smov (%p29_p0, %s28_s9), 0 }
   0x6   : > { %p335_p3 = pnand %p6188_p1, %p334_p2 }
   0x8   : > { %338 = sbr.rel (%p335_p3) target bundleno = 4500 (0x1194), region = 52 }
   0xf   : > { %p400_p4 = scmp.lt.s32.totalorder %s8649_s27, 1  ;;  %p6198_p5 = scmp.ne.s32.totalorder %s8649_s27, 0 }
  0x10   : > { %v431_v0 = vld [vmem:[%s11907_s0] sm:$0xff] (!%p6198_p5)  ;;  %v433_v1 = vld [vmem:[%s11907_s0 + $0x10] sm:$0xff] (!%p6198_p5)  ;;  %v432_v2 = vld [vmem:[%s11907_s0 + $0x8] sm:$0xff] (!%p6198_p5) }
  0x11   : > { %s401_s10 = scalar_select %p400_p4, %s8649_s27, 1 }
  0x12   : > { %430 = sbr.rel (%p6198_p5) target bundleno = 362 (0x16a), region = 56  ;;  %449 = vadd.xlane.f32.xlu0 (!%p6198_p5), %v431_v0  ;;  %453 = vadd.xlane.f32.xlu1 (!%p6198_p5), %v433_v1  ;;  %v434_v3 = vld [vmem:[%s11907_s0 + $0x18] sm:$0xff] (!%p6198_p5)  ;;  %v435_v4 = vld [vmem:[%s11907_s0 + $0x20] sm:$0xff] (!%p6198_p5)  ;;  %v436_v5 = vld [vmem:[%s11907_s0 + $0x28] sm:$0xff] (!%p6198_p5) }
  0x13   : > { %s7749_s11 = smul.u32 192, %s401_s10  ;;  %s6441_s12 = sshll.u32 %s401_s10, 6  ;;  %v437_v6 = vld [vmem:[%s11907_s0 + $0x30] sm:$0xff] (!%p6198_p5)  ;;  %v438_v7 = vld [vmem:[%s11907_s0 + $0x38] sm:$0xff] (!%p6198_p5)  ;;  %v439_v8 = vld [vmem:[%s11907_s0 + $0x40] sm:$0xff] (!%p6198_p5) }
  0x14   : > { %s8733_s15 = scalar_lea.vmem %s11911_s4, %s6441_s12  ;;  %s6442_s16 = sshll.u32 %s401_s10, 7  ;;  %v440_v9 = vld [vmem:[%s11907_s0 + $0x48] sm:$0xff] (!%p6198_p5)  ;;  %v441_v10 = vld [vmem:[%s11907_s0 + $0x50] sm:$0xff] (!%p6198_p5)  ;;  %v8791_v11 = vld [vmem:[%s11907_s0 + $0x58] sm:$0xff] (!%p6198_p5) }
  0x15   : > { %s8738_s19 = scalar_lea.vmem %s11910_s3, %s7749_s11  ;;  %s8743_s22 = scalar_lea.vmem %s11912_s5, %s6442_s16  ;;  %v8797_v12 = vld [vmem:[%s11907_s0 + $0x60] sm:$0xff] (!%p6198_p5)  ;;  %v8802_v13 = vld [vmem:[%s11907_s0 + $0x68] sm:$0xff] (!%p6198_p5)  ;;  %v8809_v14 = vld [vmem:[%s11907_s0 + $0x70] sm:$0xff] (!%p6198_p5) }
  0x16   : > { %s8748_s25 = scalar_lea.vmem %s11913_s6, %s6442_s16  ;;  %s6444_s26 = sshll.u32 %s401_s10, 4  ;;  %451 = vadd.xlane.f32.xlu0 (!%p6198_p5), %v432_v2  ;;  %455 = vadd.xlane.f32.xlu1 (!%p6198_p5), %v434_v3  ;;  %v8814_v15 = vld [vmem:[%s11907_s0 + $0x78] sm:$0xff] (!%p6198_p5) }
  0x17   : > { %s8753_s14 = scalar_lea.vmem %s11914_s7, %s6444_s26 }
  0x1a   : > { %457 = vadd.xlane.f32.xlu0 %v435_v4  ;;  %459 = vadd.xlane.f32.xlu1 %v436_v5 }
  0x1e   : > { %461 = vadd.xlane.f32.xlu0 %v437_v6  ;;  %463 = vadd.xlane.f32.xlu1 %v438_v7 }
  0x22   : > { %465 = vadd.xlane.f32.xlu0 %v439_v8  ;;  %467 = vadd.xlane.f32.xlu1 %v440_v9 }
  0x26   : > { %469 = vadd.xlane.f32.xlu0 %v441_v10  ;;  %471 = vadd.xlane.f32.xlu1 %v8791_v11 }
  0x2a   : > { %473 = vadd.xlane.f32.xlu0 %v8797_v12  ;;  %475 = vadd.xlane.f32.xlu1 %v8802_v13 }
  0x2e   : > { %477 = vadd.xlane.f32.xlu0 %v8809_v14  ;;  %479 = vadd.xlane.f32.xlu1 %v8814_v15 }
  0x9f   : > { %v450_v16 = vpop.xlane.xlu0 %449  ;;  %v454_v17 = vpop.xlane.xlu1 %453 }
  0xa0   : > { %v482_v18 = vmul.f32 0.0078125, %v450_v16  ;;  %v484_v19 = vmul.f32 0.0078125, %v454_v17 }
  0xa2   : > { %v8818_v20 = vsub.f32 %v431_v0, %v482_v18  ;;  %v8820_v21 = vsub.f32 %v433_v1, %v484_v19 }
  0xa3   : > { %v452_v22 = vpop.xlane.xlu0 %451  ;;  %v456_v23 = vpop.xlane.xlu1 %455 }
  0xa4   : > { %v483_v24 = vmul.f32 0.0078125, %v452_v22  ;;  %v514_v25 = vmul.f32 %v8818_v20, %v8818_v20  ;;  %v485_v26 = vmul.f32 0.0078125, %v456_v23  ;;  %v516_v29 = vmul.f32 %v8820_v21, %v8820_v21 }
  0xa6   : > { %v8824_v27 = vsub.f32 %v432_v2, %v483_v24  ;;  %530 = vadd.xlane.f32.xlu0 %v514_v25  ;;  %v8826_v28 = vsub.f32 %v434_v3, %v485_v26 }
  0xa7   : > { %v458_v30 = vpop.xlane.xlu0 %457  ;;  %v460_v31 = vpop.xlane.xlu1 %459 }
  0xa8   : > { %v486_v32 = vmul.f32 0.0078125, %v458_v30  ;;  %v515_v33 = vmul.f32 %v8824_v27, %v8824_v27  ;;  %v487_v34 = vmul.f32 0.0078125, %v460_v31  ;;  %v517_v37 = vmul.f32 %v8826_v28, %v8826_v28 }
  0xaa   : > { %v8832_v35 = vsub.f32 %v435_v4, %v486_v32  ;;  %534 = vadd.xlane.f32.xlu0 %v516_v29  ;;  %532 = vadd.xlane.f32.xlu1 %v515_v33  ;;  %v8834_v36 = vsub.f32 %v436_v5, %v487_v34 }
  0xab   : > { %v462_v38 = vpop.xlane.xlu0 %461  ;;  %v464_v39 = vpop.xlane.xlu1 %463 }
  0xac   : > { %v488_v40 = vmul.f32 0.0078125, %v462_v38  ;;  %v518_v41 = vmul.f32 %v8832_v35, %v8832_v35  ;;  %v489_v42 = vmul.f32 0.0078125, %v464_v39  ;;  %v519_v45 = vmul.f32 %v8834_v36, %v8834_v36 }
  0xae   : > { %v8840_v43 = vsub.f32 %v437_v6, %v488_v40  ;;  %536 = vadd.xlane.f32.xlu1 %v517_v37  ;;  %538 = vadd.xlane.f32.xlu0 %v518_v41  ;;  %v8842_v44 = vsub.f32 %v438_v7, %v489_v42  ;;  %v8890_v42 = vld [vmem:[%s11908_s1] ss:$0 sm:$0xff] }
  0xaf   : > { %v466_v46 = vpop.xlane.xlu0 %465  ;;  %v468_v47 = vpop.xlane.xlu1 %467 }
  0xb0   : > { %v490_v48 = vmul.f32 0.0078125, %v466_v46  ;;  %v520_v49 = vmul.f32 %v8840_v43, %v8840_v43  ;;  %v491_v50 = vmul.f32 0.0078125, %v468_v47  ;;  %v521_v53 = vmul.f32 %v8842_v44, %v8842_v44 }
  0xb2   : > { %v8848_v51 = vsub.f32 %v439_v8, %v490_v48  ;;  %540 = vadd.xlane.f32.xlu1 %v519_v45  ;;  %542 = vadd.xlane.f32.xlu0 %v520_v49  ;;  %v8850_v52 = vsub.f32 %v440_v9, %v491_v50  ;;  %v8896_v50 = vld [vmem:[%s11908_s1 + $0x1] ss:$0 sm:$0xff] }
  0xb3   : > { %v470_v54 = vpop.xlane.xlu0 %469  ;;  %v472_v55 = vpop.xlane.xlu1 %471 }
  0xb4   : > { %v492_v56 = vmul.f32 0.0078125, %v470_v54  ;;  %v522_v57 = vmul.f32 %v8848_v51, %v8848_v51  ;;  %v493_v58 = vmul.f32 0.0078125, %v472_v55  ;;  %v523_v61 = vmul.f32 %v8850_v52, %v8850_v52 }
  0xb6   : > { %v8856_v59 = vsub.f32 %v441_v10, %v492_v56  ;;  %544 = vadd.xlane.f32.xlu1 %v521_v53  ;;  %546 = vadd.xlane.f32.xlu0 %v522_v57  ;;  %v8859_v60 = vsub.f32 %v8791_v11, %v493_v58 }
  0xb7   : > { %v474_v62 = vpop.xlane.xlu0 %473  ;;  %v476_v63 = vpop.xlane.xlu1 %475 }
  0xb8   : > { %v494_v0 = vmul.f32 0.0078125, %v474_v62  ;;  %v524_v1 = vmul.f32 %v8856_v59, %v8856_v59  ;;  %v495_v2 = vmul.f32 0.0078125, %v476_v63  ;;  %v525_v5 = vmul.f32 %v8859_v60, %v8859_v60 }
  0xba   : > { %v8866_v3 = vsub.f32 %v8797_v12, %v494_v0  ;;  %548 = vadd.xlane.f32.xlu1 %v523_v61  ;;  %550 = vadd.xlane.f32.xlu0 %v524_v1  ;;  %v8869_v4 = vsub.f32 %v8802_v13, %v495_v2 }
  0xbb   : > { %v478_v6 = vpop.xlane.xlu0 %477  ;;  %v480_v7 = vpop.xlane.xlu1 %479 }
  0xbc   : > { %v496_v8 = vmul.f32 0.0078125, %v478_v6  ;;  %v526_v9 = vmul.f32 %v8866_v3, %v8866_v3  ;;  %v497_v10 = vmul.f32 0.0078125, %v480_v7  ;;  %v527_v13 = vmul.f32 %v8869_v4, %v8869_v4 }
  0xbe   : > { %v8876_v11 = vsub.f32 %v8809_v14, %v496_v8  ;;  %552 = vadd.xlane.f32.xlu1 %v525_v5  ;;  %554 = vadd.xlane.f32.xlu0 %v526_v9  ;;  %v8879_v12 = vsub.f32 %v8814_v15, %v497_v10 }
  0xc0   : > { %v528_v16 = vmul.f32 %v8876_v11, %v8876_v11  ;;  %v529_v17 = vmul.f32 %v8879_v12, %v8879_v12 }
  0xc2   : > { %556 = vadd.xlane.f32.xlu1 %v527_v13  ;;  %558 = vadd.xlane.f32.xlu0 %v528_v16 }
  0xc6   : > { %560 = vadd.xlane.f32.xlu1 %v529_v17 }
 0x133   : > { %v531_v18 = vpop.xlane.xlu0 %530 }
 0x134   : > { %v562_v14 = vmul.f32 0.0078125, %v531_v18 }
 0x136   : > { %v578_v19 = vadd.f32 1e-12, %v562_v14 }
 0x137   : > { %v533_v22 = vpop.xlane.xlu1 %532  ;;  %v535_v23 = vpop.xlane.xlu0 %534 }
 0x138   : > { %7787 = vrsqrt.f32 %v578_v19  ;;  %v563_v15 = vmul.f32 0.0078125, %v533_v22  ;;  %v564_v24 = vmul.f32 0.0078125, %v535_v23 }
 0x13a   : > { %v579_v25 = vadd.f32 1e-12, %v563_v15  ;;  %v580_v26 = vadd.f32 1e-12, %v564_v24 }
 0x13b   : > { %v537_v29 = vpop.xlane.xlu1 %536  ;;  %v539_v30 = vpop.xlane.xlu0 %538 }
 0x13c   : > { %7789 = vrsqrt.f32 %v579_v25  ;;  %v565_v31 = vmul.f32 0.0078125, %v537_v29  ;;  %v566_v32 = vmul.f32 0.0078125, %v539_v30 }
 0x13d   : > { %7791 = vrsqrt.f32 %v580_v26 }
 0x13e   : > { %v581_v33 = vadd.f32 1e-12, %v565_v31  ;;  %v582_v34 = vadd.f32 1e-12, %v566_v32 }
 0x13f   : > { %v541_v37 = vpop.xlane.xlu1 %540  ;;  %v543_v38 = vpop.xlane.xlu0 %542 }
 0x140   : > { %7793 = vrsqrt.f32 %v581_v33  ;;  %v567_v39 = vmul.f32 0.0078125, %v541_v37  ;;  %v568_v40 = vmul.f32 0.0078125, %v543_v38 }
 0x141   : > { %7795 = vrsqrt.f32 %v582_v34 }
 0x142   : > { %v7788_v41 = vpop.eup %7787  ;;  %v583_v45 = vadd.f32 1e-12, %v567_v39  ;;  %v584_v46 = vadd.f32 1e-12, %v568_v40 }
 0x143   : > { %v610_v47 = vmul.f32 %v7788_v41, %v8818_v20  ;;  %v545_v48 = vpop.xlane.xlu1 %544  ;;  %v547_v49 = vpop.xlane.xlu0 %546 }
 0x144   : > { %7797 = vrsqrt.f32 %v583_v45  ;;  %v569_v53 = vmul.f32 0.0078125, %v545_v48  ;;  %v570_v54 = vmul.f32 0.0078125, %v547_v49 }
 0x145   : > { %v630_v55 = vmul.f32 %v8890_v42, %v610_v47  ;;  %7799 = vrsqrt.f32 %v584_v46 }
 0x146   : > { %v7790_v56 = vpop.eup %7789  ;;  %v585_v57 = vadd.f32 1e-12, %v569_v53  ;;  %v586_v58 = vadd.f32 1e-12, %v570_v54 }
 0x147   : > { %v7792_v61 = vpop.eup %7791  ;;  %v650_v62 = vadd.f32 %v8896_v50, %v630_v55  ;;  %v611_v20 = vmul.f32 %v7790_v56, %v8824_v27  ;;  %v549_v63 = vpop.xlane.xlu1 %548 }
 0x148   : > { %v551_v0 = vpop.xlane.xlu0 %550  ;;  %v612_v1 = vmul.f32 %v7792_v61, %v8820_v21  ;;  %7801 = vrsqrt.f32 %v585_v57  ;;  %v571_v2 = vmul.f32 0.0078125, %v549_v63 }
 0x149   : > { %v572_v5 = vmul.f32 0.0078125, %v551_v0  ;;  %666 = vst [vmem:[#allocation2] sm:$0xff] %v650_v62  ;;  %v631_v6 = vmul.f32 %v8890_v42, %v611_v20  ;;  %7803 = vrsqrt.f32 %v586_v58 }
 0x14a   : > { %v7794_v7 = vpop.eup %7793  ;;  %v632_v8 = vmul.f32 %v8890_v42, %v612_v1  ;;  %v587_v9 = vadd.f32 1e-12, %v571_v2 }
 0x14b   : > { %v588_v10 = vadd.f32 1e-12, %v572_v5  ;;  %v7796_v13 = vpop.eup %7795  ;;  %v651_v16 = vadd.f32 %v8896_v50, %v631_v6  ;;  %v613_v27 = vmul.f32 %v7794_v7, %v8826_v28  ;;  %v553_v17 = vpop.xlane.xlu1 %552 }
 0x14c   : > { %v555_v18 = vpop.xlane.xlu0 %554  ;;  %v652_v21 = vadd.f32 %v8896_v50, %v632_v8  ;;  %v614_v14 = vmul.f32 %v7796_v13, %v8832_v35  ;;  %7805 = vrsqrt.f32 %v587_v9  ;;  %v573_v19 = vmul.f32 0.0078125, %v553_v17 }
 0x14d   : > { %667 = vst [vmem:[#allocation2 + $0x8] sm:$0xff] %v651_v16  ;;  %v633_v22 = vmul.f32 %v8890_v42, %v613_v27  ;;  %7807 = vrsqrt.f32 %v588_v10  ;;  %v574_v23 = vmul.f32 0.0078125, %v555_v18 }
 0x14e   : > { %v7798_v15 = vpop.eup %7797  ;;  %668 = vst [vmem:[#allocation2 + $0x10] sm:$0xff] %v652_v21  ;;  %v634_v24 = vmul.f32 %v8890_v42, %v614_v14  ;;  %v589_v25 = vadd.f32 1e-12, %v573_v19 }
 0x14f   : > { %v7800_v26 = vpop.eup %7799  ;;  %v653_v28 = vadd.f32 %v8896_v50, %v633_v22  ;;  %v615_v29 = vmul.f32 %v7798_v15, %v8834_v36  ;;  %v590_v30 = vadd.f32 1e-12, %v574_v23  ;;  %v557_v31 = vpop.xlane.xlu1 %556 }
 0x150   : > { %v559_v35 = vpop.xlane.xlu0 %558  ;;  %v654_v32 = vadd.f32 %v8896_v50, %v634_v24  ;;  %v616_v33 = vmul.f32 %v7800_v26, %v8840_v43  ;;  %7809 = vrsqrt.f32 %v589_v25  ;;  %v575_v34 = vmul.f32 0.0078125, %v557_v31 }
 0x151   : > { %669 = vst [vmem:[#allocation2 + $0x18] sm:$0xff] %v653_v28  ;;  %v635_v37 = vmul.f32 %v8890_v42, %v615_v29  ;;  %7811 = vrsqrt.f32 %v590_v30  ;;  %v576_v38 = vmul.f32 0.0078125, %v559_v35 }
 0x152   : > { %v7802_v39 = vpop.eup %7801  ;;  %670 = vst [vmem:[#allocation2 + $0x20] sm:$0xff] %v654_v32  ;;  %v636_v40 = vmul.f32 %v8890_v42, %v616_v33  ;;  %v591_v41 = vadd.f32 1e-12, %v575_v34 }
 0x153   : > { %v7804_v36 = vpop.eup %7803  ;;  %v655_v45 = vadd.f32 %v8896_v50, %v635_v37  ;;  %v617_v46 = vmul.f32 %v7802_v39, %v8842_v44  ;;  %v592_v47 = vadd.f32 1e-12, %v576_v38  ;;  %v561_v48 = vpop.xlane.xlu1 %560 }
 0x154   : > { %v656_v43 = vadd.f32 %v8896_v50, %v636_v40  ;;  %v618_v49 = vmul.f32 %v7804_v36, %v8848_v51  ;;  %7813 = vrsqrt.f32 %v591_v41  ;;  %v577_v53 = vmul.f32 0.0078125, %v561_v48 }
 0x155   : > { %671 = vst [vmem:[#allocation2 + $0x28] sm:$0xff] %v655_v45  ;;  %v637_v54 = vmul.f32 %v8890_v42, %v617_v46  ;;  %7815 = vrsqrt.f32 %v592_v47 }
 0x156   : > { %v7806_v55 = vpop.eup %7805  ;;  %672 = vst [vmem:[#allocation2 + $0x30] sm:$0xff] %v656_v43  ;;  %v638_v56 = vmul.f32 %v8890_v42, %v618_v49  ;;  %v593_v57 = vadd.f32 1e-12, %v577_v53 }
 0x157   : > { %v7808_v58 = vpop.eup %7807  ;;  %v657_v44 = vadd.f32 %v8896_v50, %v637_v54  ;;  %v619_v61 = vmul.f32 %v7806_v55, %v8850_v52 }
 0x158   : > { %v658_v62 = vadd.f32 %v8896_v50, %v638_v56  ;;  %v620_v51 = vmul.f32 %v7808_v58, %v8856_v59  ;;  %7817 = vrsqrt.f32 %v593_v57 }
 0x159   : > { %673 = vst [vmem:[#allocation2 + $0x38] sm:$0xff] %v657_v44  ;;  %v639_v20 = vmul.f32 %v8890_v42, %v619_v61 }
 0x15a   : > { %v7810_v63 = vpop.eup %7809  ;;  %674 = vst [vmem:[#allocation2 + $0x40] sm:$0xff] %v658_v62  ;;  %v640_v0 = vmul.f32 %v8890_v42, %v620_v51 }
 0x15b   : > { %v7812_v1 = vpop.eup %7811  ;;  %v659_v2 = vadd.f32 %v8896_v50, %v639_v20  ;;  %v621_v5 = vmul.f32 %v7810_v63, %v8859_v60 }
 0x15c   : > { %v660_v6 = vadd.f32 %v8896_v50, %v640_v0  ;;  %v622_v52 = vmul.f32 %v7812_v1, %v8866_v3 }
 0x15d   : > { %675 = vst [vmem:[#allocation2 + $0x48] sm:$0xff] %v659_v2  ;;  %v641_v59 = vmul.f32 %v8890_v42, %v621_v5 }
 0x15e   : > { %v7814_v7 = vpop.eup %7813  ;;  %676 = vst [vmem:[#allocation2 + $0x50] sm:$0xff] %v660_v6  ;;  %v642_v8 = vmul.f32 %v8890_v42, %v622_v52 }
 0x15f   : > { %v7816_v9 = vpop.eup %7815  ;;  %v661_v10 = vadd.f32 %v8896_v50, %v641_v59  ;;  %v623_v13 = vmul.f32 %v7814_v7, %v8869_v4 }
 0x160   : > { %v662_v16 = vadd.f32 %v8896_v50, %v642_v8  ;;  %v624_v60 = vmul.f32 %v7816_v9, %v8876_v11 }
 0x161   : > { %677 = vst [vmem:[#allocation2 + $0x58] sm:$0xff] %v661_v10  ;;  %v643_v27 = vmul.f32 %v8890_v42, %v623_v13 }
 0x162   : > { %v7818_v3 = vpop.eup %7817  ;;  %678 = vst [vmem:[#allocation2 + $0x60] sm:$0xff] %v662_v16  ;;  %v644_v17 = vmul.f32 %v8890_v42, %v624_v60 }
 0x163   : > { %v663_v18 = vadd.f32 %v8896_v50, %v643_v27  ;;  %v625_v21 = vmul.f32 %v7818_v3, %v8879_v12 }
 0x164   : > { %v664_v14 = vadd.f32 %v8896_v50, %v644_v17 }
 0x165   : > { %679 = vst [vmem:[#allocation2 + $0x68] sm:$0xff] %v663_v18  ;;  %v645_v4 = vmul.f32 %v8890_v42, %v625_v21 }
 0x166   : > { %680 = vst [vmem:[#allocation2 + $0x70] sm:$0xff] %v664_v14 }
 0x167   : > { %v665_v19 = vadd.f32 %v8896_v50, %v645_v4 }
 0x169   : > { %681 = vst [vmem:[#allocation2 + $0x78] sm:$0xff] %v665_v19 }
 0x16a PF: > { %v8059_v11 = vld [vmem:[%s8738_s19 + $0x4] ss:$12 sps:$4 sm:$0xff]   ;;  %v8061_v12 = vld [vmem:[%s8738_s19] ss:$12 sps:$4 sm:$0xff]   ;;  %v11916_v22 = vmov 0   ;;  %v685_v48 = vld [vmem:[#allocation2 + $0x18] sm:$0xff] }
 0x16b   : > { %898 = vmatprep.mubr.bf16.mxu0 %v11916_v22  ;;  %866 = vmatprep.subr.bf16.mxu0 %v8059_v11  ;;  %v8062_v42 = vld [vmem:[%s8738_s19 + $0x1c] ss:$12 sps:$4 sm:$0xff]   ;;  %v8064_v50 = vld [vmem:[%s8738_s19 + $0x18] ss:$12 sps:$4 sm:$0xff]   ;;  %v8065_v23 = vld [vmem:[%s8738_s19 + $0x34] ss:$12 sps:$4 sm:$0xff]  }
 0x16c   : > { %867 = vmatpush1.bf16.msra.mxu0 %v8061_v12  ;;  %v8067_v15 = vld [vmem:[%s8738_s19 + $0x30] ss:$12 sps:$4 sm:$0xff]   ;;  %v8068_v24 = vld [vmem:[%s8738_s19 + $0x4c] ss:$12 sps:$4 sm:$0xff]   ;;  %v682_v25 = vld [vmem:[#allocation2] sm:$0xff]  ;;  %vm1230_vm0 = vcmask 261120  }
 0x16d   : > { %868 = vmatprep.subr.bf16.mxu0 %v8062_v42  ;;  %v8070_v26 = vld [vmem:[%s8738_s19 + $0x48] ss:$12 sps:$4 sm:$0xff]   ;;  %v8071_v29 = vld [vmem:[%s8738_s19 + $0x64] ss:$12 sps:$4 sm:$0xff]   ;;  %v8073_v31 = vld [vmem:[%s8738_s19 + $0x60] ss:$12 sps:$4 sm:$0xff]  }
 0x16e   : > { %v683_v28 = vld [vmem:[#allocation2 + $0x8] sm:$0xff]  ;;  %v8076_v34 = vld [vmem:[%s8738_s19 + $0x78] ss:$12 sps:$4 sm:$0xff]   ;;  %v8077_v37 = vld [vmem:[%s8738_s19 + $0x94] ss:$12 sps:$4 sm:$0xff]   ;;  %v12024_v18 = vmov 0 }
 0x16f   : > { %v698_v30 = vpack.c.bf16 %v683_v28, %v682_v25  ;;  %v8074_v35 = vld [vmem:[%s8738_s19 + $0x7c] ss:$12 sps:$4 sm:$0xff]   ;;  %v8084_v33 = vld [vmem:[%s8738_s19 + $0x20] ss:$12 sps:$4 sm:$0xff]   ;;  %v8085_v38 = vld [vmem:[%s8738_s19 + $0x38] ss:$12 sps:$4 sm:$0xff]  }
 0x170   : > { %869 = vmatpush1.bf16.msra.mxu0 %v8064_v50  ;;  %v8083_v32 = vld [vmem:[%s8738_s19 + $0x8] ss:$12 sps:$4 sm:$0xff]   ;;  %v8079_v39 = vld [vmem:[%s8738_s19 + $0x90] ss:$12 sps:$4 sm:$0xff]   ;;  %v8080_v40 = vld [vmem:[%s8738_s19 + $0xac] ss:$12 sps:$4 sm:$0xff]  }
 0x171   : > { %870 = vmatprep.subr.bf16.mxu0 %v8065_v23  ;;  %6837 = vmatprep.mubr.bf16.mxu1 %v698_v30  ;;  %v8086_v41 = vld [vmem:[%s8738_s19 + $0x50] ss:$12 sps:$4 sm:$0xff]   ;;  %v8082_v36 = vld [vmem:[%s8738_s19 + $0xa8] ss:$12 sps:$4 sm:$0xff]   ;;  %v8088_v46 = vld [vmem:[%s8738_s19 + $0x80] ss:$12 sps:$4 sm:$0xff]  }
 0x172   : > { %6821 = vmatprep.subr.bf16.mxu1 %v8083_v32  ;;  %v8087_v45 = vld [vmem:[%s8738_s19 + $0x68] ss:$12 sps:$4 sm:$0xff]   ;;  %v8089_v43 = vld [vmem:[%s8738_s19 + $0x98] ss:$12 sps:$4 sm:$0xff]   ;;  %v8090_v53 = vld [vmem:[%s8738_s19 + $0xb0] ss:$12 sps:$4 sm:$0xff]  }
 0x173   : > { %6822 = vmatpush3.bf16.msra.mxu1 %v8083_v32  ;;  %v684_v47 = vld [vmem:[#allocation2 + $0x10] sm:$0xff]  ;;  %v686_v54 = vld [vmem:[#allocation2 + $0x20] sm:$0xff]  ;;  %v687_v55 = vld [vmem:[#allocation2 + $0x28] sm:$0xff]  ;;  %s8660_s19 = smov 96   ;;  %s8661_s12 = smov 64  }
 0x174   : > { %871 = vmatpush1.bf16.msra.mxu0 %v8067_v15  ;;  %6823 = vmatprep.subr.bf16.mxu1 %v8084_v33  ;;  %v699_v49 = vpack.c.bf16 %v685_v48, %v684_v47  ;;  %v700_v56 = vpack.c.bf16 %v687_v55, %v686_v54  ;;  %v688_v57 = vld [vmem:[#allocation2 + $0x30] sm:$0xff]  ;;  %v689_v58 = vld [vmem:[#allocation2 + $0x38] sm:$0xff]  ;;  %v690_v61 = vld [vmem:[#allocation2 + $0x40] sm:$0xff]  ;;  %s8662_s11 = smov 32   ;;  %p11871_p6 = scmp.eq.s32.totalorder %s6183_s30, 1 }
 0x175   : > { %872 = vmatprep.subr.bf16.mxu0 %v8068_v24  ;;  %v701_v44 = vpack.c.bf16 %v689_v58, %v688_v57  ;;  %v691_v62 = vld [vmem:[#allocation2 + $0x48] sm:$0xff]  ;;  %v692_v20 = vld [vmem:[#allocation2 + $0x50] sm:$0xff]  ;;  %v693_v63 = vld [vmem:[#allocation2 + $0x58] sm:$0xff] }
 0x176   : > { %v702_v51 = vpack.c.bf16 %v691_v62, %v690_v61  ;;  %v694_v0 = vld [vmem:[#allocation2 + $0x60] sm:$0xff]  ;;  %v695_v1 = vld [vmem:[#allocation2 + $0x68] sm:$0xff]  ;;  %v703_v2 = vpack.c.bf16 %v693_v63, %v692_v20  ;;  %v696_v6 = vld [vmem:[#allocation2 + $0x70] sm:$0xff] }
 0x177   : > { %6824 = vmatpush3.bf16.msra.mxu1 %v8084_v33  ;;  %v704_v5 = vpack.c.bf16 %v695_v1, %v694_v0  ;;  %v697_v52 = vld [vmem:[#allocation2 + $0x78] sm:$0xff]  ;;  %v8978_v7 = vld [vmem:[%s8753_s14] ss:$0 sm:$0xff]  ;;  %v8984_v13 = vld [vmem:[%s8753_s14 + $0x1] ss:$0 sm:$0xff] }
 0x178   : > { %873 = vmatpush1.bf16.msra.mxu0 %v8070_v26  ;;  %6825 = vmatprep.subr.bf16.mxu1 %v8085_v38  ;;  %v705_v59 = vpack.c.bf16 %v697_v52, %v696_v6  ;;  %vm8995_vm1 = vmpackc.low %vm1230_vm0, %vm1230_vm0  ;;  %v9018_v26 = vld [vmem:[%s8753_s14 + $0x2] ss:$0 sm:$0xff] }
 0x179   : > { %874 = vmatprep.subr.bf16.mxu0 %v8071_v29  ;;  %v12025_v18 = vsel %vm8995_vm1, 4294967295, %v12024_v18 }
 0x17a   : > { %12026 = vst [vmem:[#allocation5_spill] sm:$0xff] %v12025_v18 }
 0x17b   : > { %6826 = vmatpush3.bf16.msra.mxu1 %v8085_v38 }
 0x17c   : > { %875 = vmatpush1.bf16.msra.mxu0 %v8073_v31  ;;  %6827 = vmatprep.subr.bf16.mxu1 %v8086_v41 }
 0x17d   : > { %876 = vmatprep.subr.bf16.mxu0 %v8074_v35 }
 0x17f   : > { %6828 = vmatpush3.bf16.msra.mxu1 %v8086_v41 }
 0x180   : > { %877 = vmatpush1.bf16.msra.mxu0 %v8076_v34  ;;  %6829 = vmatprep.subr.bf16.mxu1 %v8087_v45 }
 0x181   : > { %878 = vmatprep.subr.bf16.mxu0 %v8077_v37 }
 0x183   : > { %6830 = vmatpush3.bf16.msra.mxu1 %v8087_v45 }
 0x184   : > { %879 = vmatpush1.bf16.msra.mxu0 %v8079_v39  ;;  %6831 = vmatprep.subr.bf16.mxu1 %v8088_v46 }
 0x185   : > { %880 = vmatprep.subr.bf16.mxu0 %v8080_v40 }
 0x187   : > { %6832 = vmatpush3.bf16.msra.mxu1 %v8088_v46 }
 0x188   : > { %881 = vmatpush1.bf16.msra.mxu0 %v8082_v36  ;;  %6833 = vmatprep.subr.bf16.mxu1 %v8089_v43 }
 0x18b   : > { %899 = vmatmul.mubr.bf16.vlgmr.msra.gmra.mrb[0].mxu0 %v698_v30  ;;  %6834 = vmatpush3.bf16.msra.mxu1 %v8089_v43 }
 0x18c   : > { %908 = vmatprep.mubr.bf16.mxu0 %v11916_v22  ;;  %6835 = vmatprep.subr.bf16.mxu1 %v8090_v53 }
 0x18f   : > { %6836 = vmatpush3.bf16.msra.mxu1 %v8090_v53 }
 0x192   : > { %6838 = vmatmul.mubr.bf16.vlgmr.msra.gmra.mrb[0].mxu1 %v699_v49 }
 0x193   : > { %909 = vmatmul.mubr.bf16.gmra.mrb[4].mxu0 %v699_v49  ;;  %6841 = vmatprep.mubr.bf16.mxu1 %v700_v56 }
 0x194   : > { %918 = vmatprep.mubr.bf16.mxu0 %v11916_v22 }
 0x19a   : > { %6842 = vmatmul.mubr.bf16.gmra.mrb[4].mxu1 %v701_v44 }
 0x19b   : > { %919 = vmatmul.mubr.bf16.gmra.mrb[8].mxu0 %v700_v56  ;;  %6845 = vmatprep.mubr.bf16.mxu1 %v702_v51 }
 0x19c   : > { %928 = vmatprep.mubr.bf16.mxu0 %v11916_v22 }
 0x1a2   : > { %6846 = vmatmul.mubr.bf16.gmra.mrb[8].mxu1 %v703_v2 }
 0x1a3   : > { %929 = vmatmul.mubr.bf16.gmra.mrb[12].mxu0 %v701_v44  ;;  %6849 = vmatprep.mubr.bf16.mxu1 %v704_v5 }
 0x1a4   : > { %938 = vmatprep.mubr.bf16.mxu0 %v11916_v22 }
 0x1aa   : > { %6850 = vmatmul.mubr.bf16.gmra.mrb[12].mxu1 %v705_v59 }
 0x1ab   : > { %939 = vmatmul.mubr.bf16.gmra.mrb[16].mxu0 %v702_v51 }
 0x1ac   : > { %948 = vmatprep.mubr.bf16.mxu0 %v11916_v22 }
 0x1b3   : > { %949 = vmatmul.mubr.bf16.gmra.mrb[20].mxu0 %v703_v2 }
 0x1b4   : > { %958 = vmatprep.mubr.bf16.mxu0 %v11916_v22 }
 0x1bb   : > { %959 = vmatmul.mubr.bf16.gmra.mrb[24].mxu0 %v704_v5 }
 0x1bc   : > { %968 = vmatprep.mubr.bf16.mxu0 %v11916_v22 }
 0x1c3   : > { %969 = vmatmul.mubr.bf16.gmra.mrb[28].mxu0 %v705_v59 }
 0x25e   : > { %v900_v8 = vpop.f32.mrb[0].mxu0 }
 0x25f   : > { %v8981_v9 = vadd.f32 %v8978_v7, %v900_v8  ;;  %v902_v10 = vpop.f32.mrb[1].mxu0 }
 0x260   : > { %v904_v16 = vpop.f32.mrb[2].mxu0  ;;  %v1102_v3 = vadd.f32 %v8984_v13, %v902_v10 }
 0x261   : > { %v8987_v60 = vadd.f32 %v8978_v7, %v904_v16  ;;  %v906_v27 = vpop.f32.mrb[3].mxu0  ;;  %6885 = vmatprep.mubr.msk.f32.mxu0 %vm1230_vm0, %v8981_v9 }
 0x262   : > { %v1103_v17 = vadd.f32 %v8984_v13, %v906_v27 }
 0x264   : > { %v8999_v21 = vpack.i.bf16 %v1103_v17, %v1102_v3  ;;  %v7381_v14 = vpack.c.bf16 %v1103_v17, %v1102_v3 }
 0x265   : > { %v6839_v29 = vpop.f32.mrb[0].mxu1 }
 0x266   : > { %12027 = vst [vmem:[#allocation6_spill] sm:$0xff] %v8999_v21  ;;  %7820 = vrot.lane.b32.xlu0 %v8999_v21, %s8660_s19  ;;  %v910_v4 = vpop.f32.mrb[4].mxu0  ;;  %7383 = vmatprep.subr.msk.bf16.mxu0 %vm8995_vm1, %v7381_v14  ;;  %v1013_v35 = vpop.f32.mrb[1].mxu1  ;;  %v9036_v39 = vadd.f32 %v6839_v29, %v9018_v26 }
 0x267   : > { %v9006_v19 = vadd.f32 %v8978_v7, %v910_v4  ;;  %v912_v11 = vpop.f32.mrb[5].mxu0  ;;  %7386 = vmatpush3.bf16.xpose.msk.msra.mxu0 %vm8995_vm1, %v7381_v14  ;;  %v9030_v33 = vadd.f32 %v9018_v26, %v1013_v35  ;;  %v6840_v34 = vpop.f32.mrb[2].mxu1 }
 0x268   : > { %v914_v12 = vpop.f32.mrb[6].mxu0  ;;  %v1104_v23 = vadd.f32 %v8984_v13, %v912_v11  ;;  %v9039_v40 = vadd.f32 %v6840_v34, %v9018_v26  ;;  %v1016_v41 = vpop.f32.mrb[3].mxu1 }
 0x269   : > { %v9011_v42 = vadd.f32 %v8978_v7, %v914_v12  ;;  %v916_v50 = vpop.f32.mrb[7].mxu0  ;;  %v9044_v46 = vadd.f32 %v9018_v26, %v1016_v41 }
 0x26a   : > { %v1105_v15 = vadd.f32 %v8984_v13, %v916_v50  ;;  %v7433_v49 = vpack.c.bf16 %v9039_v40, %v9036_v39 }
 0x26b   : > { %v7429_v43 = vpack.c.bf16 %v9044_v46, %v9030_v33 }
 0x26c   : > { %v9015_v24 = vpack.i.bf16 %v1105_v15, %v1104_v23  ;;  %v7387_v25 = vpack.c.bf16 %v1105_v15, %v1104_v23 }
 0x26d   : > { %v6843_v54 = vpop.f32.mrb[4].mxu1  ;;  %7430 = vmatprep.subr.bf16.mxu1 %v7429_v43 }
 0x26e   : > { %12028 = vst [vmem:[#allocation7_spill] sm:$0xff] %v9015_v24  ;;  %7825 = vrot.lane.b32.xlu1 %v9015_v24, %s8660_s19  ;;  %v920_v28 = vpop.f32.mrb[8].mxu0  ;;  %7389 = vmatprep.subr.msk.bf16.mxu0 %vm8995_vm1, %v7387_v25  ;;  %v1029_v57 = vpop.f32.mrb[5].mxu1  ;;  %v9068_v20 = vadd.f32 %v6843_v54, %v9018_v26 }
 0x26f   : > { %v9025_v30 = vadd.f32 %v8978_v7, %v920_v28  ;;  %v922_v31 = vpop.f32.mrb[9].mxu0  ;;  %7392 = vmatpush3.bf16.xpose.msk.msra.mxu0 %vm8995_vm1, %v7387_v25  ;;  %v9062_v44 = vadd.f32 %v9018_v26, %v1029_v57  ;;  %7432 = vmatpush3.bf16.msra.mxu1 %v7429_v43  ;;  %v6844_v61 = vpop.f32.mrb[6].mxu1 }
 0x270   : > { %v924_v32 = vpop.f32.mrb[10].mxu0  ;;  %v1106_v36 = vadd.f32 %v8984_v13, %v922_v31  ;;  %v9071_v63 = vadd.f32 %v6844_v61, %v9018_v26  ;;  %v1032_v0 = vpop.f32.mrb[7].mxu1  ;;  %7434 = vmatprep.subr.bf16.mxu1 %v7433_v49 }
 0x271   : > { %v9033_v37 = vadd.f32 %v8978_v7, %v924_v32  ;;  %v926_v38 = vpop.f32.mrb[11].mxu0  ;;  %v9076_v5 = vadd.f32 %v9018_v26, %v1032_v0 }
 0x272   : > { %v1107_v45 = vadd.f32 %v8984_v13, %v926_v38  ;;  %v7441_v8 = vpack.c.bf16 %v9071_v63, %v9068_v20 }
 0x273   : > { %7436 = vmatpush3.bf16.msra.mxu1 %v7433_v49  ;;  %v7437_v59 = vpack.c.bf16 %v9076_v5, %v9062_v44 }
 0x274   : > { %v9046_v47 = vpack.i.bf16 %v1107_v45, %v1106_v36  ;;  %v7393_v48 = vpack.c.bf16 %v1107_v45, %v1106_v36 }
 0x275   : > { %v6847_v16 = vpop.f32.mrb[8].mxu1  ;;  %7438 = vmatprep.subr.bf16.mxu1 %v7437_v59 }
 0x276   : > { %12029 = vst [vmem:[#allocation8_spill] sm:$0xff] %v9046_v47  ;;  %7830 = vrot.lane.b32.xlu0 %v9046_v47, %s8660_s19  ;;  %v930_v53 = vpop.f32.mrb[12].mxu0  ;;  %7395 = vmatprep.subr.msk.bf16.mxu0 %vm8995_vm1, %v7393_v48  ;;  %v1045_v17 = vpop.f32.mrb[9].mxu1  ;;  %v9100_v23 = vadd.f32 %v6847_v16, %v9018_v26 }
 0x277   : > { %v9057_v55 = vadd.f32 %v8978_v7, %v930_v53  ;;  %v932_v56 = vpop.f32.mrb[13].mxu0  ;;  %7398 = vmatpush3.bf16.xpose.msk.msra.mxu0 %vm8995_vm1, %v7393_v48  ;;  %v9094_v4 = vadd.f32 %v9018_v26, %v1045_v17  ;;  %7440 = vmatpush3.bf16.msra.mxu1 %v7437_v59  ;;  %v6848_v11 = vpop.f32.mrb[10].mxu1 }
 0x278   : > { %v934_v58 = vpop.f32.mrb[14].mxu0  ;;  %v1108_v1 = vadd.f32 %v8984_v13, %v932_v56  ;;  %v9103_v15 = vadd.f32 %v6848_v11, %v9018_v26  ;;  %v1048_v25 = vpop.f32.mrb[11].mxu1  ;;  %7442 = vmatprep.subr.bf16.mxu1 %v7441_v8 }
 0x279   : > { %v9065_v62 = vadd.f32 %v8978_v7, %v934_v58  ;;  %v936_v51 = vpop.f32.mrb[15].mxu0  ;;  %v9108_v31 = vadd.f32 %v9018_v26, %v1048_v25 }
 0x27a   : > { %v1109_v2 = vadd.f32 %v8984_v13, %v936_v51  ;;  %v7449_v38 = vpack.c.bf16 %v9103_v15, %v9100_v23 }
 0x27b   : > { %7444 = vmatpush3.bf16.msra.mxu1 %v7441_v8  ;;  %v7445_v32 = vpack.c.bf16 %v9108_v31, %v9094_v4 }
 0x27c   : > { %v9078_v6 = vpack.i.bf16 %v1109_v2, %v1108_v1  ;;  %v7399_v52 = vpack.c.bf16 %v1109_v2, %v1108_v1 }
 0x27d   : > { %v6851_v36 = vpop.f32.mrb[12].mxu1  ;;  %7446 = vmatprep.subr.bf16.mxu1 %v7445_v32 }
 0x27e   : > { %12030 = vst [vmem:[#allocation9_spill] sm:$0xff] %v9078_v6  ;;  %7835 = vrot.lane.b32.xlu1 %v9078_v6, %s8660_s19  ;;  %v940_v10 = vpop.f32.mrb[16].mxu0  ;;  %7401 = vmatprep.subr.msk.bf16.mxu0 %vm8995_vm1, %v7399_v52  ;;  %v1061_v43 = vpop.f32.mrb[13].mxu1  ;;  %v9130_v58 = vadd.f32 %v6851_v36, %v9018_v26 }
 0x27f   : > { %v9089_v27 = vadd.f32 %v8978_v7, %v940_v10  ;;  %v942_v3 = vpop.f32.mrb[17].mxu0  ;;  %7404 = vmatpush3.bf16.xpose.msk.msra.mxu0 %vm8995_vm1, %v7399_v52  ;;  %v9124_v53 = vadd.f32 %v9018_v26, %v1061_v43  ;;  %7448 = vmatpush3.bf16.msra.mxu1 %v7445_v32  ;;  %v6852_v54 = vpop.f32.mrb[14].mxu1 }
 0x280   : > { %v944_v14 = vpop.f32.mrb[18].mxu0  ;;  %v1110_v28 = vadd.f32 %v8984_v13, %v942_v3  ;;  %12032 = vst [vmem:[#allocation11_spill] sm:$0xff] %v9130_v58  ;;  %v9133_v61 = vadd.f32 %v6852_v54, %v9018_v26  ;;  %v1064_v51 = vpop.f32.mrb[15].mxu1  ;;  %7450 = vmatprep.subr.bf16.mxu1 %v7449_v38 }
 0x281   : > { %v9097_v12 = vadd.f32 %v8978_v7, %v944_v14  ;;  %v946_v50 = vpop.f32.mrb[19].mxu0  ;;  %v9138_v2 = vadd.f32 %v9018_v26, %v1064_v51 }
 0x282   : > { %v1111_v29 = vadd.f32 %v8984_v13, %v946_v50  ;;  %12033 = vst [vmem:[#allocation12_spill] sm:$0xff] %v9133_v61  ;;  %v7457_v10 = vpack.c.bf16 %v9133_v61, %v9130_v58 }
 0x283   : > { %7452 = vmatpush3.bf16.msra.mxu1 %v7449_v38  ;;  %v7453_v59 = vpack.c.bf16 %v9138_v2, %v9124_v53 }
 0x284   : > { %v7405_v35 = vpack.c.bf16 %v1111_v29, %v1110_v28  ;;  %v9112_v34 = vpack.i.bf16 %v1111_v29, %v1110_v28 }
 0x285   : > { %7454 = vmatprep.subr.bf16.mxu1 %v7453_v59 }
 0x286   : > { %12031 = vst [vmem:[#allocation10_spill] sm:$0xff] %v9112_v34  ;;  %v950_v41 = vpop.f32.mrb[20].mxu0  ;;  %7407 = vmatprep.subr.msk.bf16.mxu0 %vm8995_vm1, %v7405_v35 }
 0x287   : > { %v9119_v45 = vadd.f32 %v8978_v7, %v950_v41  ;;  %v952_v48 = vpop.f32.mrb[21].mxu0  ;;  %7410 = vmatpush3.bf16.xpose.msk.msra.mxu0 %vm8995_vm1, %v7405_v35  ;;  %7456 = vmatpush3.bf16.msra.mxu1 %v7453_v59 }
 0x288   : > { %v954_v49 = vpop.f32.mrb[22].mxu0  ;;  %v1112_v0 = vadd.f32 %v8984_v13, %v952_v48  ;;  %7458 = vmatprep.subr.bf16.mxu1 %v7457_v10 }
 0x289   : > { %v9127_v56 = vadd.f32 %v8978_v7, %v954_v49  ;;  %v956_v57 = vpop.f32.mrb[23].mxu0 }
 0x28a   : > { %v1113_v1 = vadd.f32 %v8984_v13, %v956_v57 }
 0x28b   : > { %7460 = vmatpush3.bf16.msra.mxu1 %v7457_v10 }
 0x28c   : > { %v7411_v52 = vpack.c.bf16 %v1113_v1, %v1112_v0  ;;  %v9142_v8 = vpack.i.bf16 %v1113_v1, %v1112_v0  ;;  %v1139_v1 = vlaneseq }
 0x28e   : > { %12034 = vst [vmem:[#allocation13_spill] sm:$0xff] %v9142_v8  ;;  %v960_v16 = vpop.f32.mrb[24].mxu0  ;;  %7413 = vmatprep.subr.msk.bf16.mxu0 %vm8995_vm1, %v7411_v52  ;;  %v1173_v10 = vand.u32 127, %v1139_v1 }
 0x28f   : > { %v9149_v3 = vadd.f32 %v8978_v7, %v960_v16  ;;  %v962_v26 = vpop.f32.mrb[25].mxu0  ;;  %7416 = vmatpush3.bf16.xpose.msk.msra.mxu0 %vm8995_vm1, %v7411_v52  ;;  %v9213_v52 = vshrl.u32 %v1139_v1, 7 }
 0x290   : > { %v964_v17 = vpop.f32.mrb[26].mxu0  ;;  %v1114_v50 = vadd.f32 %v8984_v13, %v962_v26  ;;  %v9216_v26 = vshra.s32 %v1173_v10, 6 }
 0x291   : > { %v9154_v14 = vadd.f32 %v8978_v7, %v964_v17  ;;  %v966_v11 = vpop.f32.mrb[27].mxu0  ;;  %v1141_v59 = vadd.s32 8, %v9213_v52  ;;  %v1143_v17 = vadd.s32 24, %v9213_v52  ;;  %v1147_v10 = vadd.s32 56, %v9213_v52 }
 0x292   : > { %v1115_v25 = vadd.f32 %v8984_v13, %v966_v11  ;;  %v9223_v11 = vld [vmem:[%s11909_s2] ss:$0 sm:$0xff] }
 0x293   : > { %v1157_v16 = vshra.s32 %v1141_v59, 6 }
 0x294   : > { %v7417_v28 = vpack.c.bf16 %v1115_v25, %v1114_v50  ;;  %v9158_v29 = vpack.i.bf16 %v1115_v25, %v1114_v50  ;;  %v1156_v50 = vshra.s32 %v9213_v52, 6  ;;  %v1159_v25 = vshra.s32 %v1143_v17, 6 }
 0x295   : > { %vm1176_vm2 = vcmp.eq.s32.totalorder %v1157_v16, %v9216_v26 }
 0x296   : > { %12035 = vst [vmem:[#allocation14_spill] sm:$0xff] %v9158_v29  ;;  %v970_v35 = vpop.f32.mrb[28].mxu0  ;;  %7419 = vmatprep.subr.msk.bf16.mxu0 %vm8995_vm1, %v7417_v28  ;;  %vm1175_vm3 = vcmp.eq.s32.totalorder %v1156_v50, %v9216_v26  ;;  %vm1178_vm4 = vcmp.eq.s32.totalorder %v1159_v25, %v9216_v26  ;;  %v1148_v50 = vadd.s32 64, %v9213_v52 }
 0x297   : > { %v9163_v32 = vadd.f32 %v8978_v7, %v970_v35  ;;  %v972_v38 = vpop.f32.mrb[29].mxu0  ;;  %7422 = vmatpush3.bf16.xpose.msk.msra.mxu0 %vm8995_vm1, %v7417_v28  ;;  %v1142_v28 = vadd.s32 16, %v9213_v52  ;;  %v1144_v35 = vadd.s32 32, %v9213_v52  ;;  %v9242_v1 = vsel %vm1178_vm4, %v9223_v11, -10000.0 }
 0x298   : > { %v974_v41 = vpop.f32.mrb[30].mxu0  ;;  %v1116_v43 = vadd.f32 %v8984_v13, %v972_v38  ;;  %v9229_v38 = vsel %vm1176_vm2, %v9223_v11, -10000.0  ;;  %12039 = vst [vmem:[#allocation18_spill] sm:$0xff] %v9242_v1 }
 0x299   : > { %v9168_v36 = vadd.f32 %v8978_v7, %v974_v41  ;;  %v976_v48 = vpop.f32.mrb[31].mxu0  ;;  %12037 = vst [vmem:[#allocation16_spill] sm:$0xff] %v9229_v38  ;;  %v1158_v41 = vshra.s32 %v1142_v28, 6 }
 0x29a   : > { %v1117_v49 = vadd.f32 %v8984_v13, %v976_v48  ;;  %v1145_v48 = vadd.s32 40, %v9213_v52 }
 0x29b   : > { %vm1177_vm5 = vcmp.eq.s32.totalorder %v1158_v41, %v9216_v26 }
 0x29c   : > { %v7423_v54 = vpack.c.bf16 %v1117_v49, %v1116_v43  ;;  %v9172_v57 = vpack.i.bf16 %v1117_v49, %v1116_v43  ;;  %v1160_v49 = vshra.s32 %v1144_v35, 6  ;;  %v1161_v59 = vshra.s32 %v1145_v48, 6 }
 0x29d   : > { %v1163_v48 = vshra.s32 %v1147_v10, 6 }
 0x29e   : > { %7425 = vmatprep.subr.msk.bf16.mxu0 %vm8995_vm1, %v7423_v54  ;;  %vm1179_vm6 = vcmp.eq.s32.totalorder %v1160_v49, %v9216_v26  ;;  %vm1180_vm7 = vcmp.eq.s32.totalorder %v1161_v59, %v9216_v26  ;;  %v1149_v49 = vadd.s32 72, %v9213_v52 }
 0x29f   : > { %7428 = vmatpush3.bf16.xpose.msk.msra.mxu0 %vm8995_vm1, %v7423_v54  ;;  %v1146_v54 = vadd.s32 48, %v9213_v52  ;;  %v9262_v41 = vsel %vm1179_vm6, %v9223_v11, -10000.0  ;;  %vm1182_vm9 = vcmp.eq.s32.totalorder %v1163_v48, %v9216_v26 }
 0x2a0   : > { %12041 = vst [vmem:[#allocation20_spill] sm:$0xff] %v9262_v41  ;;  %v9289_v48 = vsel %vm1182_vm9, %v9223_v11, -10000.0 }
 0x2a1   : > { %v1162_v17 = vshra.s32 %v1146_v54, 6  ;;  %12044 = vst [vmem:[#allocation23_spill] sm:$0xff] %v9289_v48 }
 0x2a3   : > { %vm1181_vm8 = vcmp.eq.s32.totalorder %v1162_v17, %v9216_v26  ;;  %v1165_v17 = vshra.s32 %v1149_v49, 6 }
 0x2a4   : > { %v9279_v10 = vsel %vm1181_vm8, %v9223_v11, -10000.0 }
 0x2a5   : > { %12043 = vst [vmem:[#allocation22_spill] sm:$0xff] %v9279_v10  ;;  %vm1184_vm11 = vcmp.eq.s32.totalorder %v1165_v17, %v9216_v26 }
 0x2a6   : > { %6886 = vmatmul.mubr.msk.f32.vlgmr.msra.gmra.mrb[32].mxu0 %vm1230_vm0, %v8987_v60  ;;  %v9307_v17 = vsel %vm1184_vm11, %v9223_v11, -10000.0 }
 0x2a7   : > { %6888 = vmatprep.mubr.msk.f32.mxu0 %vm1230_vm0, %v9006_v19  ;;  %12046 = vst [vmem:[#allocation25_spill] sm:$0xff] %v9307_v17 }
 0x2aa   : > { %6889 = vmatmul.mubr.msk.f32.gmra.mrb[34].mxu0 %vm1230_vm0, %v9011_v42 }
 0x2ab   : > { %6891 = vmatprep.mubr.msk.f32.mxu0 %vm1230_vm0, %v9025_v30 }
 0x2ae   : > { %6892 = vmatmul.mubr.msk.f32.gmra.mrb[36].mxu0 %vm1230_vm0, %v9033_v37 }
 0x2af   : > { %6894 = vmatprep.mubr.msk.f32.mxu0 %vm1230_vm0, %v9057_v55 }
 0x2b2   : > { %6895 = vmatmul.mubr.msk.f32.gmra.mrb[38].mxu0 %vm1230_vm0, %v9065_v62 }
 0x2b3   : > { %6897 = vmatprep.mubr.msk.f32.mxu0 %vm1230_vm0, %v9089_v27 }
 0x2b6   : > { %6898 = vmatmul.mubr.msk.f32.gmra.mrb[40].mxu0 %vm1230_vm0, %v9097_v12 }
 0x2b7   : > { %6900 = vmatprep.mubr.msk.f32.mxu0 %vm1230_vm0, %v9119_v45 }
 0x2ba   : > { %6901 = vmatmul.mubr.msk.f32.gmra.mrb[42].mxu0 %vm1230_vm0, %v9127_v56 }
 0x2bb   : > { %6903 = vmatprep.mubr.msk.f32.mxu0 %vm1230_vm0, %v9149_v3 }
 0x2be   : > { %6904 = vmatmul.mubr.msk.f32.gmra.mrb[44].mxu0 %vm1230_vm0, %v9154_v14 }
 0x2bf   : > { %6906 = vmatprep.mubr.msk.f32.mxu0 %vm1230_vm0, %v9163_v32 }
 0x2c2   : > { %6907 = vmatmul.mubr.msk.f32.gmra.mrb[46].mxu0 %vm1230_vm0, %v9168_v36 }
 0x2d8   : > { %v7821_v7 = vpop.permute.xlu0 %7820 }
 0x2d9   : > { %v7823_v13 = vunpack.i.h.bf16 %v7821_v7  ;;  %v7822_v51 = vunpack.i.l.bf16 %v7821_v7 }
 0x2db   : > { %v9208_v0 = vpack.c.bf16 %v7823_v13, %v7822_v51  ;;  %v9239_v51 = vsel %vm1175_vm3, %v9223_v11, -10000.0 }
 0x2dc   : > { %12038 = vst [vmem:[#allocation17_spill] sm:$0xff] %v9239_v51 }
 0x2dd   : > { %12036 = vst [vmem:[#allocation15_spill] sm:$0xff] %v9208_v0  ;;  %7463 = vmatprep.subr.msk.bf16.mxu1 %vm8995_vm1, %v9208_v0 }
 0x379   : > { %v6887_v43 = vpop.f32.mrb[32].mxu0 }
 0x37a   : > { %v9236_v7 = vadd.f32 %v6887_v43, %v9229_v38  ;;  %v1393_v13 = vpop.f32.mrb[33].mxu0  ;;  %v9256_v43 = vsel %vm1177_vm5, %v9223_v11, -10000.0 }
 0x37b   : > { %v9250_v25 = vadd.f32 %v1393_v13, %v9239_v51  ;;  %12040 = vst [vmem:[#allocation19_spill] sm:$0xff] %v9256_v43  ;;  %v1164_v13 = vshra.s32 %v1148_v50, 6  ;;  %v9271_v51 = vsel %vm1180_vm7, %v9223_v11, -10000.0  ;;  %v1151_v50 = vadd.s32 88, %v9213_v52 }
 0x37c   : > { %1474 = vmax.xlane.f32.xlu0 %v9236_v7  ;;  %12042 = vst [vmem:[#allocation21_spill] sm:$0xff] %v9271_v51 }
 0x37d   : > { %v6890_v16 = vpop.f32.mrb[34].mxu0  ;;  %vm1183_vm10 = vcmp.eq.s32.totalorder %v1164_v13, %v9216_v26  ;;  %v1167_v13 = vshra.s32 %v1151_v50, 6 }
 0x37e   : > { %v9253_v28 = vadd.f32 %v6890_v16, %v9242_v1  ;;  %v1403_v35 = vpop.f32.mrb[35].mxu0  ;;  %v1150_v16 = vadd.s32 80, %v9213_v52  ;;  %v9297_v49 = vsel %vm1183_vm10, %v9223_v11, -10000.0 }
 0x37f   : > { %v9268_v22 = vadd.f32 %v1403_v35, %v9256_v43  ;;  %v1152_v43 = vadd.s32 96, %v9213_v52  ;;  %12045 = vst [vmem:[#allocation24_spill] sm:$0xff] %v9297_v49  ;;  %vm1186_vm13 = vcmp.eq.s32.totalorder %v1167_v13, %v9216_v26 }
 0x380   : > { %1478 = vmax.xlane.f32.xlu1 %v9253_v28  ;;  %1472 = vmax.xlane.f32.xlu0 %v9250_v25  ;;  %v1166_v35 = vshra.s32 %v1150_v16, 6  ;;  %v1153_v16 = vadd.s32 104, %v9213_v52 }
 0x381   : > { %v6893_v54 = vpop.f32.mrb[36].mxu0 }
 0x382   : > { %v1413_v1 = vpop.f32.mrb[37].mxu0  ;;  %vm1185_vm12 = vcmp.eq.s32.totalorder %v1166_v35, %v9216_v26  ;;  %v1155_v35 = vadd.s32 120, %v9213_v52 }
 0x383   : > { %v9274_v59 = vadd.f32 %v1413_v1, %v9262_v41  ;;  %v9286_v1 = vadd.f32 %v6893_v54, %v9271_v51  ;;  %v1168_v54 = vshra.s32 %v1152_v43, 6  ;;  %v1154_v51 = vadd.s32 112, %v9213_v52 }
 0x384   : > { %1476 = vmax.xlane.f32.xlu1 %v9268_v22  ;;  %v9315_v50 = vsel %vm1185_vm12, %v9223_v11, -10000.0  ;;  %v1169_v43 = vshra.s32 %v1153_v16, 6  ;;  %v1171_v16 = vshra.s32 %v1155_v35, 6 }
 0x385   : > { %v6896_v38 = vpop.f32.mrb[38].mxu0  ;;  %1480 = vmax.xlane.f32.xlu0 %v9274_v59  ;;  %12047 = vst [vmem:[#allocation26_spill] sm:$0xff] %v9315_v50  ;;  %vm1187_vm14 = vcmp.eq.s32.totalorder %v1168_v54, %v9216_v26 }
 0x386   : > { %v1423_v41 = vpop.f32.mrb[39].mxu0  ;;  %vm1188_vm15 = vcmp.eq.s32.totalorder %v1169_v43, %v9216_v26  ;;  %v9332_v52 = vsel %vm1187_vm14, %v9223_v11, -10000.0  ;;  %vm1190_vm3 = vcmp.eq.s32.totalorder %v1171_v16, %v9216_v26  ;;  %v9368_v16 = vpop.permute.xlu0 %7830 }
 0x387   : > { %v9292_v18 = vadd.f32 %v1423_v41, %v9279_v10  ;;  %v9304_v41 = vadd.f32 %v6896_v38, %v9289_v48  ;;  %v1170_v38 = vshra.s32 %v1154_v51, 6  ;;  %12049 = vst [vmem:[#allocation28_spill] sm:$0xff] %v9332_v52  ;;  %12053 = vst [vmem:[#allocation32_spill] sm:$0xff] %v9368_v16 }
 0x388   : > { %1482 = vmax.xlane.f32.xlu1 %v9286_v1 }
 0x389   : > { %v6899_v0 = vpop.f32.mrb[40].mxu0  ;;  %1484 = vmax.xlane.f32.xlu0 %v9292_v18  ;;  %vm1189_vm2 = vcmp.eq.s32.totalorder %v1170_v38, %v9216_v26 }
 0x38a   : > { %v1433_v10 = vpop.f32.mrb[41].mxu0  ;;  %v9321_v48 = vadd.f32 %v6899_v0, %v9307_v17  ;;  %v9348_v43 = vsel %vm1189_vm2, %v9223_v11, -10000.0 }
 0x38b   : > { %v9310_v6 = vadd.f32 %v1433_v10, %v9297_v49  ;;  %v9324_v49 = vsel %vm1186_vm13, %v9223_v11, -10000.0  ;;  %12051 = vst [vmem:[#allocation30_spill] sm:$0xff] %v9348_v43 }
 0x38c   : > { %1486 = vmax.xlane.f32.xlu1 %v9304_v41  ;;  %12048 = vst [vmem:[#allocation27_spill] sm:$0xff] %v9324_v49 }
 0x38d   : > { %v6902_v24 = vpop.f32.mrb[42].mxu0  ;;  %1488 = vmax.xlane.f32.xlu0 %v9310_v6 }
 0x38e   : > { %v1443_v10 = vpop.f32.mrb[43].mxu0  ;;  %v9337_v0 = vadd.f32 %v6902_v24, %v9324_v49  ;;  %v9355_v49 = vsel %vm1190_vm3, %v9223_v11, -10000.0 }
 0x38f   : > { %v9327_v13 = vadd.f32 %v1443_v10, %v9315_v50  ;;  %v9340_v10 = vsel %vm1188_vm15, %v9223_v11, -10000.0  ;;  %12052 = vst [vmem:[#allocation31_spill] sm:$0xff] %v9355_v49 }
 0x390   : > { %1490 = vmax.xlane.f32.xlu1 %v9321_v48  ;;  %12050 = vst [vmem:[#allocation29_spill] sm:$0xff] %v9340_v10 }
 0x391   : > { %v6905_v54 = vpop.f32.mrb[44].mxu0  ;;  %1492 = vmax.xlane.f32.xlu0 %v9327_v13 }
 0x392   : > { %v1453_v51 = vpop.f32.mrb[45].mxu0  ;;  %v9352_v24 = vadd.f32 %v6905_v54, %v9340_v10 }
 0x393   : > { %v9343_v50 = vadd.f32 %v1453_v51, %v9332_v52 }
 0x394   : > { %1494 = vmax.xlane.f32.xlu1 %v9337_v0 }
 0x395   : > { %v6908_v35 = vpop.f32.mrb[46].mxu0  ;;  %1496 = vmax.xlane.f32.xlu0 %v9343_v50 }
 0x396   : > { %v1463_v38 = vpop.f32.mrb[47].mxu0  ;;  %v9363_v26 = vadd.f32 %v6908_v35, %v9355_v49  ;;  %v9377_v49 = vpop.permute.xlu1 %7825 }
 0x397   : > { %v9358_v51 = vadd.f32 %v1463_v38, %v9348_v43  ;;  %12056 = vst [vmem:[#allocation35_spill] sm:$0xff] %v9377_v49 }
 0x398   : > { %1498 = vmax.xlane.f32.xlu1 %v9352_v24 }
 0x399   : > { %1500 = vmax.xlane.f32.xlu0 %v9358_v51 }
 0x39c   : > { %1502 = vmax.xlane.f32.xlu1 %v9363_v26 }
 0x3af   : > { %7840 = vrot.lane.b32.xlu0 %v9112_v34, %s8660_s19  ;;  %v9380_v34 = vpop.permute.xlu1 %7835 }
 0x3b0   : > { %12057 = vst [vmem:[#allocation36_spill] sm:$0xff] %v9380_v34 }
 0x409   : > { %v1475_v54 = vpop.xlane.xlu0 %1474 }
 0x40a   : > { %v1505_v11 = vsub.f32 %v9236_v7, %v1475_v54 }
 0x40c   : > { %v1522_v52 = vmul.f32 1.442695, %v1505_v11 }
 0x40d   : > { %v1473_v38 = vpop.xlane.xlu0 %1472  ;;  %v1479_v7 = vpop.xlane.xlu1 %1478 }
 0x40e   : > { %8139 = vpow2.f32 %v1522_v52  ;;  %v1504_v43 = vsub.f32 %v9250_v25, %v1473_v38  ;;  %v1507_v34 = vsub.f32 %v9253_v28, %v1479_v7 }
 0x410   : > { %v1520_v10 = vmul.f32 1.442695, %v1504_v43  ;;  %v1526_v61 = vmul.f32 1.442695, %v1507_v34 }
 0x411   : > { %v1477_v52 = vpop.xlane.xlu1 %1476 }
 0x412   : > { %8141 = vpow2.f32 %v1520_v10  ;;  %v1481_v43 = vpop.xlane.xlu0 %1480  ;;  %v1506_v11 = vsub.f32 %v9268_v22, %v1477_v52 }
 0x413   : > { %v1508_v58 = vsub.f32 %v9274_v59, %v1481_v43 }
 0x414   : > { %v1524_v16 = vmul.f32 1.442695, %v1506_v11 }
 0x415   : > { %v1483_v25 = vpop.xlane.xlu1 %1482  ;;  %v1528_v52 = vmul.f32 1.442695, %v1508_v58 }
 0x416   : > { %v1485_v54 = vpop.xlane.xlu0 %1484  ;;  %8143 = vpow2.f32 %v1524_v16 }
 0x417   : > { %v1510_v21 = vsub.f32 %v9292_v18, %v1485_v54 }
 0x418   : > { %v9372_v17 = vpop.eup %8139 }
 0x419   : > { %12054 = vst [vmem:[#allocation33_spill] sm:$0xff] %v9372_v17  ;;  %1554 = vadd.xlane.f32.xlu1 %v9372_v17  ;;  %v1487_v10 = vpop.xlane.xlu1 %1486  ;;  %v1509_v17 = vsub.f32 %v9286_v1, %v1483_v25  ;;  %v1532_v11 = vmul.f32 1.442695, %v1510_v21 }
 0x41b   : > { %v1530_v49 = vmul.f32 1.442695, %v1509_v17 }
 0x41c   : > { %v9375_v35 = vpop.eup %8141 }
 0x41d   : > { %12055 = vst [vmem:[#allocation34_spill] sm:$0xff] %v9375_v35  ;;  %1552 = vadd.xlane.f32.xlu0 %v9375_v35  ;;  %v1491_v38 = vpop.xlane.xlu1 %1490  ;;  %v1489_v35 = vpop.xlane.xlu0 %1488  ;;  %8145 = vpow2.f32 %v1530_v49 }
 0x41e   : > { %8147 = vpow2.f32 %v1526_v61  ;;  %v1513_v28 = vsub.f32 %v9321_v48, %v1491_v38  ;;  %v1512_v18 = vsub.f32 %v9310_v6, %v1489_v35 }
 0x420   : > { %v9395_v17 = vpop.eup %8143  ;;  %v1538_v58 = vmul.f32 1.442695, %v1513_v28  ;;  %v1536_v48 = vmul.f32 1.442695, %v1512_v18  ;;  %v9482_v28 = vpack.i.bf16 %v9039_v40, %v9036_v39  ;;  %v9500_v39 = vpack.i.bf16 %v9108_v31, %v9094_v4  ;;  %v12066_v4 = vld [vmem:[#allocation11_spill] sm:$0xff]  ;;  %v12069_v31 = vld [vmem:[#allocation8_spill] sm:$0xff] }
 0x421   : > { %v1495_v47 = vpop.xlane.xlu1 %1494  ;;  %v9506_v40 = vpack.i.bf16 %v9103_v15, %v9100_v23  ;;  %v12067_v23 = vld [vmem:[#allocation12_spill] sm:$0xff] }
 0x422   : > { %v1515_v49 = vsub.f32 %v9337_v0, %v1495_v47  ;;  %12059 = vst [vmem:[#allocation38_spill] sm:$0xff] %v9482_v28  ;;  %12062 = vst [vmem:[#allocation41_spill] sm:$0xff] %v9500_v39  ;;  %v9522_v15 = vpack.i.bf16 %v12067_v23, %v12066_v4 }
 0x423   : > { %12063 = vst [vmem:[#allocation42_spill] sm:$0xff] %v9506_v40 }
 0x425   : > { %v1499_v25 = vpop.xlane.xlu1 %1498 }
 0x426   : > { %v1517_v34 = vsub.f32 %v9352_v24, %v1499_v25 }
 0x428   : > { %v1546_v21 = vmul.f32 1.442695, %v1517_v34 }
 0x429   : > { %v1503_v6 = vpop.xlane.xlu1 %1502 }
 0x42a   : > { %7845 = vrot.lane.b32.xlu1 %v9142_v8, %s8660_s19  ;;  %v1511_v8 = vsub.f32 %v9304_v41, %v1487_v10  ;;  %v1519_v35 = vsub.f32 %v9363_v26, %v1503_v6 }
 0x42c   : > { %v1534_v22 = vmul.f32 1.442695, %v1511_v8  ;;  %v9400_v8 = vpop.eup %8145  ;;  %v1550_v10 = vmul.f32 1.442695, %v1519_v35 }
 0x42e   : > { %8149 = vpow2.f32 %v1534_v22 }
 0x42f   : > { %8151 = vpow2.f32 %v1528_v52 }
 0x430   : > { %8153 = vpow2.f32 %v1532_v11  ;;  %v9476_v11 = vpack.i.bf16 %v9044_v46, %v9030_v33  ;;  %v9494_v33 = vpack.i.bf16 %v9076_v5, %v9062_v44  ;;  %v9514_v44 = vpack.i.bf16 %v9138_v2, %v9124_v53  ;;  %v12070_v53 = vld [vmem:[#allocation7_spill] sm:$0xff] }
 0x432   : > { %12058 = vst [vmem:[#allocation37_spill] sm:$0xff] %v9476_v11  ;;  %12061 = vst [vmem:[#allocation40_spill] sm:$0xff] %v9494_v33 }
 0x433   : > { %7850 = vrot.lane.b32.xlu0 %v9158_v29, %s8660_s19  ;;  %v1493_v29 = vpop.xlane.xlu0 %1492  ;;  %12064 = vst [vmem:[#allocation43_spill] sm:$0xff] %v9514_v44 }
 0x434   : > { %v1514_v1 = vsub.f32 %v9327_v13, %v1493_v29  ;;  %v9402_v29 = vpop.eup %8147 }
 0x436   : > { %v1540_v41 = vmul.f32 1.442695, %v1514_v1 }
 0x437   : > { %v1497_v59 = vpop.xlane.xlu0 %1496 }
 0x438   : > { %8155 = vpow2.f32 %v1540_v41  ;;  %v1516_v61 = vsub.f32 %v9343_v50, %v1497_v59  ;;  %v9407_v24 = vpop.eup %8149  ;;  %v1542_v50 = vmul.f32 1.442695, %v1515_v49  ;;  %v9488_v41 = vpack.i.bf16 %v9071_v63, %v9068_v20  ;;  %v12065_v63 = vld [vmem:[#allocation6_spill] sm:$0xff]  ;;  %v12071_v59 = vld [vmem:[#allocation35_spill] sm:$0xff]  ;;  %v12074_v49 = vld [vmem:[#allocation33_spill] sm:$0xff] }
 0x439   : > { %8157 = vpow2.f32 %v1538_v58  ;;  %v9409_v16 = vpop.eup %8151  ;;  %12068 = vst [vmem:[#allocation6_spill] sm:$0xff] %v9522_v15  ;;  %v7828_v18 = vunpack.i.h.bf16 %v12071_v59  ;;  %v7827_v58 = vunpack.i.l.bf16 %v12071_v59 }
 0x43a   : > { %v1544_v13 = vmul.f32 1.442695, %v1516_v61  ;;  %8159 = vpow2.f32 %v1546_v21  ;;  %v9414_v47 = vpop.eup %8153  ;;  %12060 = vst [vmem:[#allocation39_spill] sm:$0xff] %v9488_v41  ;;  %v12072_v61 = vld [vmem:[#allocation9_spill] sm:$0xff]  ;;  %v12073_v21 = vld [vmem:[#allocation34_spill] sm:$0xff] }
 0x43b   : > { %8161 = vpow2.f32 %v1536_v48  ;;  %v1501_v7 = vpop.xlane.xlu0 %1500  ;;  %v7467_v6 = vpack.c.bf16 %v7828_v18, %v7827_v58 }
 0x43c   : > { %8163 = vpow2.f32 %v1544_v13  ;;  %v1518_v43 = vsub.f32 %v9358_v51, %v1501_v7  ;;  %v12077_v7 = vld [vmem:[#allocation32_spill] sm:$0xff] }
 0x43d   : > { %8165 = vpow2.f32 %v1542_v50  ;;  %v12075_v50 = vld [vmem:[#allocation15_spill] sm:$0xff] }
 0x43e   : > { %v1548_v26 = vmul.f32 1.442695, %v1518_v43  ;;  %8167 = vpow2.f32 %v1550_v10  ;;  %v7833_v43 = vunpack.i.h.bf16 %v12077_v7  ;;  %v7832_v10 = vunpack.i.l.bf16 %v12077_v7 }
 0x43f   : > { %v7841_v46 = vpop.permute.xlu0 %7840 }
 0x440   : > { %8169 = vpow2.f32 %v1548_v26  ;;  %v7473_v26 = vpack.c.bf16 %v7833_v43, %v7832_v10 }
 0x442   : > { %v9416_v0 = vpop.eup %8155 }
 0x443   : > { %v9421_v54 = vpop.eup %8157 }
 0x444   : > { %v9423_v38 = vpop.eup %8159 }
 0x445   : > { %v9427_v22 = vpop.eup %8161 }
 0x446   : > { %v9429_v52 = vpop.eup %8163 }
 0x447   : > { %v9433_v51 = vpop.eup %8165 }
 0x448   : > { %v9436_v1 = vpop.eup %8167 }
 0x44a   : > { %v9439_v25 = vpop.eup %8169 }
 0x44e   : > { %1556 = vadd.xlane.f32.xlu1 %v9395_v17 }
 0x452   : > { %1562 = vadd.xlane.f32.xlu1 %v9400_v8  ;;  %1558 = vadd.xlane.f32.xlu0 %v9402_v29 }
 0x456   : > { %1566 = vadd.xlane.f32.xlu1 %v9407_v24  ;;  %1560 = vadd.xlane.f32.xlu0 %v9409_v16 }
 0x45a   : > { %1564 = vadd.xlane.f32.xlu1 %v9414_v47  ;;  %1572 = vadd.xlane.f32.xlu0 %v9416_v0 }
 0x45e   : > { %1570 = vadd.xlane.f32.xlu1 %v9421_v54  ;;  %1578 = vadd.xlane.f32.xlu0 %v9423_v38 }
 0x462   : > { %1568 = vadd.xlane.f32.xlu1 %v9427_v22  ;;  %1576 = vadd.xlane.f32.xlu0 %v9429_v52 }
 0x466   : > { %1574 = vadd.xlane.f32.xlu1 %v9433_v51 }
 0x46a   : > { %1582 = vadd.xlane.f32.xlu1 %v9436_v1 }
 0x46e   : > { %1580 = vadd.xlane.f32.xlu1 %v9439_v25 }
 0x478   : > { %7855 = vrot.lane.b32.xlu0 %v9172_v57, %s8660_s19 }
 0x47c   : > { %1769 = vrot.lane.b32.xlu0 %v8981_v9, %s8660_s19 }
 0x47f   : > { %1771 = vrot.lane.b32.xlu1 %v8987_v60, %s8660_s19 }
 0x480   : > { %1773 = vrot.lane.b32.xlu0 %v9006_v19, %s8660_s19 }
 0x483   : > { %1775 = vrot.lane.b32.xlu1 %v9011_v42, %s8660_s19 }
 0x484   : > { %1777 = vrot.lane.b32.xlu0 %v9025_v30, %s8660_s19 }
 0x487   : > { %1779 = vrot.lane.b32.xlu1 %v9033_v37, %s8660_s19 }
 0x488   : > { %1781 = vrot.lane.b32.xlu0 %v9057_v55, %s8660_s19 }
 0x48b   : > { %1783 = vrot.lane.b32.xlu1 %v9065_v62, %s8660_s19 }
 0x48c   : > { %1785 = vrot.lane.b32.xlu0 %v9089_v27, %s8660_s19 }
 0x48f   : > { %1787 = vrot.lane.b32.xlu1 %v9097_v12, %s8660_s19 }
 0x490   : > { %1789 = vrot.lane.b32.xlu0 %v9119_v45, %s8660_s19 }
 0x493   : > { %1791 = vrot.lane.b32.xlu1 %v9127_v56, %s8660_s19 }
 0x494   : > { %1793 = vrot.lane.b32.xlu0 %v9149_v3, %s8660_s19 }
 0x497   : > { %1795 = vrot.lane.b32.xlu1 %v9154_v14, %s8660_s19 }
 0x498   : > { %1797 = vrot.lane.b32.xlu0 %v9163_v32, %s8660_s19 }
 0x49b   : > { %1799 = vrot.lane.b32.xlu1 %v9168_v36, %s8660_s19 }
 0x49c   : > { %7860 = vrot.lane.b32.xlu0 %v9476_v11, %s8660_s19 }
 0x49f   : > { %7865 = vrot.lane.b32.xlu1 %v9482_v28, %s8660_s19 }
 0x4a0   : > { %7875 = vrot.lane.b32.xlu0 %v9488_v41, %s8660_s19 }
 0x4a3   : > { %7870 = vrot.lane.b32.xlu1 %v9494_v33, %s8660_s19 }
 0x4a4   : > { %7880 = vrot.lane.b32.xlu0 %v9500_v39, %s8660_s19 }
 0x4a6   : > { %v1555_v20 = vpop.xlane.xlu1 %1554 }
 0x4a7   : > { %7885 = vrot.lane.b32.xlu1 %v9506_v40, %s8660_s19  ;;  %8171 = vrcp.f32 %v1555_v20  ;;  %v12078_v20 = vld [vmem:[#allocation36_spill] sm:$0xff] }
 0x4a8   : > { %7900 = vrot.lane.b32.xlu0 %v12065_v63, %s8661_s12  ;;  %v7837_v4 = vunpack.i.l.bf16 %v12078_v20  ;;  %v12101_v40 = vld [vmem:[#allocation20_spill] sm:$0xff] }
 0x4aa   : > { %v1553_v5 = vpop.xlane.xlu0 %1552  ;;  %v7846_v18 = vpop.permute.xlu1 %7845 }
 0x4ab   : > { %7890 = vrot.lane.b32.xlu1 %v9514_v44, %s8660_s19  ;;  %8173 = vrcp.f32 %v1553_v5  ;;  %v7838_v5 = vunpack.i.h.bf16 %v12078_v20  ;;  %v7848_v58 = vunpack.i.h.bf16 %v7846_v18 }
 0x4ac   : > { %7910 = vrot.lane.b32.xlu0 %v12069_v31, %s8661_s12 }
 0x4ad   : > { %v7479_v23 = vpack.c.bf16 %v7838_v5, %v7837_v4 }
 0x4af   : > { %7895 = vrot.lane.b32.xlu1 %v9522_v15, %s8660_s19 }
 0x4b1   : > { %v8172_v2 = vpop.eup %8171 }
 0x4b2   : > { %v1601_v13 = vmul.f32 %v8172_v2, %v12074_v49  ;;  %v7843_v2 = vunpack.i.h.bf16 %v7841_v46  ;;  %v7851_v49 = vpop.permute.xlu0 %7850 }
 0x4b3   : > { %7905 = vrot.lane.b32.xlu1 %v12070_v53, %s8661_s12 }
 0x4b5   : > { %v8174_v34 = vpop.eup %8173 }
 0x4b6   : > { %v1600_v48 = vmul.f32 %v8174_v34, %v12073_v21  ;;  %v7842_v34 = vunpack.i.l.bf16 %v7841_v46  ;;  %v7847_v21 = vunpack.i.l.bf16 %v7846_v18  ;;  %v7853_v46 = vunpack.i.h.bf16 %v7851_v49 }
 0x4b7   : > { %7915 = vrot.lane.b32.xlu1 %v12072_v61, %s8661_s12 }
 0x4b8   : > { %6941 = vmatprep.mubr.f32.mxu1 %v1600_v48  ;;  %v7485_v59 = vpack.c.bf16 %v7843_v2, %v7842_v34  ;;  %v7491_v48 = vpack.c.bf16 %v7848_v58, %v7847_v21 }
 0x4b9   : > { %6942 = vmatmul.mubr.f32.vlgmr.msra.gmra.mrb[16].mxu1 %v1601_v13 }
 0x4ba   : > { %7466 = vmatpush3.bf16.xpose.msk.msra.mxu1 %vm8995_vm1, %v12075_v50 }
 0x4bb   : > { %7469 = vmatprep.subr.msk.bf16.mxu1 %vm8995_vm1, %v7467_v6 }
 0x4c2   : > { %7472 = vmatpush3.bf16.xpose.msk.msra.mxu1 %vm8995_vm1, %v7467_v6  ;;  %v7852_v6 = vunpack.i.l.bf16 %v7851_v49 }
 0x4c3   : > { %7475 = vmatprep.subr.msk.bf16.mxu1 %vm8995_vm1, %v7473_v26 }
 0x4c4   : > { %v7497_v43 = vpack.c.bf16 %v7853_v46, %v7852_v6 }
 0x4ca   : > { %7478 = vmatpush3.bf16.xpose.msk.msra.mxu1 %vm8995_vm1, %v7473_v26 }
 0x4cb   : > { %7481 = vmatprep.subr.msk.bf16.mxu1 %vm8995_vm1, %v7479_v23 }
 0x4d2   : > { %7484 = vmatpush3.bf16.xpose.msk.msra.mxu1 %vm8995_vm1, %v7479_v23 }
 0x4d3   : > { %7487 = vmatprep.subr.msk.bf16.mxu1 %vm8995_vm1, %v7485_v59 }
 0x4da   : > { %7490 = vmatpush3.bf16.xpose.msk.msra.mxu1 %vm8995_vm1, %v7485_v59 }
 0x4db   : > { %v1557_v13 = vpop.xlane.xlu1 %1556  ;;  %7493 = vmatprep.subr.msk.bf16.mxu1 %vm8995_vm1, %v7491_v48 }
 0x4dc   : > { %8175 = vrcp.f32 %v1557_v13 }
 0x4df   : > { %v1563_v50 = vpop.xlane.xlu1 %1562  ;;  %v1559_v7 = vpop.xlane.xlu0 %1558 }
 0x4e0   : > { %8177 = vrcp.f32 %v1559_v7 }
 0x4e1   : > { %8179 = vrcp.f32 %v1563_v50 }
 0x4e2   : > { %7496 = vmatpush3.bf16.xpose.msk.msra.mxu1 %vm8995_vm1, %v7491_v48 }
 0x4e3   : > { %v1567_v10 = vpop.xlane.xlu1 %1566  ;;  %7499 = vmatprep.subr.msk.bf16.mxu1 %vm8995_vm1, %v7497_v43  ;;  %v1561_v26 = vpop.xlane.xlu0 %1560 }
 0x4e4   : > { %8181 = vrcp.f32 %v1561_v26 }
 0x4e5   : > { %8183 = vrcp.f32 %v1567_v10 }
 0x4e6   : > { %v8176_v20 = vpop.eup %8175 }
 0x4e7   : > { %v1565_v5 = vpop.xlane.xlu1 %1564  ;;  %v1602_v4 = vmul.f32 %v8176_v20, %v9395_v17  ;;  %v1573_v23 = vpop.xlane.xlu0 %1572 }
 0x4e8   : > { %8185 = vrcp.f32 %v1565_v5 }
 0x4e9   : > { %6944 = vmatprep.mubr.f32.mxu1 %v1602_v4  ;;  %8187 = vrcp.f32 %v1573_v23 }
 0x4ea   : > { %v8178_v2 = vpop.eup %8177  ;;  %7502 = vmatpush3.bf16.xpose.msk.msra.mxu1 %vm8995_vm1, %v7497_v43 }
 0x4eb   : > { %v1571_v34 = vpop.xlane.xlu1 %1570  ;;  %v1579_v59 = vpop.xlane.xlu0 %1578  ;;  %v1603_v18 = vmul.f32 %v8178_v2, %v9402_v29 }
 0x4ec   : > { %v8180_v58 = vpop.eup %8179  ;;  %8189 = vrcp.f32 %v1571_v34 }
 0x4ed   : > { %6945 = vmatmul.mubr.f32.gmra.mrb[18].mxu1 %v1603_v18  ;;  %v1605_v46 = vmul.f32 %v8180_v58, %v9400_v8 }
 0x4ee   : > { %v8182_v21 = vpop.eup %8181 }
 0x4ef   : > { %v1569_v48 = vpop.xlane.xlu1 %1568  ;;  %v1577_v49 = vpop.xlane.xlu0 %1576  ;;  %v1604_v17 = vmul.f32 %v8182_v21, %v9409_v16 }
 0x4f0   : > { %8191 = vrcp.f32 %v1569_v48  ;;  %v8184_v13 = vpop.eup %8183 }
 0x4f1   : > { %6947 = vmatprep.mubr.f32.mxu1 %v1604_v17  ;;  %8193 = vrcp.f32 %v1577_v49  ;;  %v1607_v26 = vmul.f32 %v8184_v13, %v9407_v24 }
 0x4f2   : > { %v8186_v6 = vpop.eup %8185  ;;  %6948 = vmatmul.mubr.f32.gmra.mrb[20].mxu1 %v1605_v46 }
 0x4f3   : > { %v1575_v50 = vpop.xlane.xlu1 %1574  ;;  %v1606_v29 = vmul.f32 %v8186_v6, %v9414_v47  ;;  %v7856_v7 = vpop.permute.xlu0 %7855 }
 0x4f4   : > { %8195 = vrcp.f32 %v1575_v50  ;;  %v7858_v43 = vunpack.i.h.bf16 %v7856_v7  ;;  %v7857_v10 = vunpack.i.l.bf16 %v7856_v7  ;;  %v8188_v5 = vpop.eup %8187 }
 0x4f5   : > { %6950 = vmatprep.mubr.f32.mxu1 %v1606_v29  ;;  %8197 = vrcp.f32 %v1579_v59  ;;  %v1610_v18 = vmul.f32 %v8188_v5, %v9416_v0 }
 0x4f6   : > { %v7503_v20 = vpack.c.bf16 %v7858_v43, %v7857_v10  ;;  %6951 = vmatmul.mubr.f32.gmra.mrb[22].mxu1 %v1607_v26  ;;  %v8190_v4 = vpop.eup %8189 }
 0x4f7   : > { %v1583_v16 = vpop.xlane.xlu1 %1582  ;;  %v1770_v8 = vpop.permute.xlu0 %1769  ;;  %v1609_v34 = vmul.f32 %v8190_v4, %v9421_v54 }
 0x4f8   : > { %7505 = vmatprep.subr.msk.bf16.mxu1 %vm8995_vm1, %v7503_v20  ;;  %8199 = vrcp.f32 %v1583_v16 }
 0x4f9   : > { %7508 = vmatpush3.bf16.xpose.msk.msra.mxu1 %vm8995_vm1, %v7503_v20 }
 0x4fa   : > { %v8192_v23 = vpop.eup %8191 }
 0x4fb   : > { %v1581_v47 = vpop.xlane.xlu1 %1580  ;;  %v1608_v2 = vmul.f32 %v8192_v23, %v9427_v22  ;;  %v1774_v24 = vpop.permute.xlu0 %1773 }
 0x4fc   : > { %8201 = vrcp.f32 %v1581_v47  ;;  %v8194_v59 = vpop.eup %8193 }
 0x4fd   : > { %6953 = vmatprep.mubr.f32.mxu1 %v1608_v2  ;;  %v1612_v13 = vmul.f32 %v8194_v59, %v9429_v52 }
 0x4fe   : > { %v8196_v58 = vpop.eup %8195  ;;  %6954 = vmatmul.mubr.f32.gmra.mrb[24].mxu1 %v1609_v34 }
 0x4ff   : > { %v1772_v21 = vpop.permute.xlu1 %1771  ;;  %6956 = vmatprep.mubr.f32.mxu1 %v1610_v18  ;;  %v1611_v48 = vmul.f32 %v8196_v58, %v9433_v51  ;;  %v1778_v49 = vpop.permute.xlu0 %1777 }
 0x500   : > { %v8198_v17 = vpop.eup %8197 }
 0x501   : > { %v1613_v54 = vmul.f32 %v8198_v17, %v9423_v38 }
 0x502   : > { %6957 = vmatmul.mubr.f32.gmra.mrb[26].mxu1 %v1611_v48  ;;  %v8200_v6 = vpop.eup %8199 }
 0x503   : > { %v1776_v22 = vpop.permute.xlu1 %1775  ;;  %6959 = vmatprep.mubr.f32.mxu1 %v1612_v13  ;;  %v1782_v46 = vpop.permute.xlu0 %1781  ;;  %v1615_v43 = vmul.f32 %v8200_v6, %v9436_v1 }
 0x506   : > { %v8202_v50 = vpop.eup %8201  ;;  %6960 = vmatmul.mubr.f32.gmra.mrb[28].mxu1 %v1613_v54 }
 0x507   : > { %v1780_v0 = vpop.permute.xlu1 %1779  ;;  %v1614_v29 = vmul.f32 %v8202_v50, %v9439_v25  ;;  %v1786_v7 = vpop.permute.xlu0 %1785 }
 0x509   : > { %6962 = vmatprep.mubr.f32.mxu1 %v1614_v29 }
 0x50a   : > { %6963 = vmatmul.mubr.f32.gmra.mrb[30].mxu1 %v1615_v43 }
 0x50b   : > { %v1784_v51 = vpop.permute.xlu1 %1783  ;;  %6997 = vmatprep.mubr.msk.f32.mxu1 %vm1230_vm0, %v1770_v8  ;;  %v1790_v52 = vpop.permute.xlu0 %1789 }
 0x50e   : > { %6998 = vmatmul.mubr.msk.f32.vlgmr.msra.gmra.mrb[32].mxu1 %vm1230_vm0, %v1772_v21 }
 0x50f   : > { %v1788_v10 = vpop.permute.xlu1 %1787  ;;  %7000 = vmatprep.mubr.msk.f32.mxu1 %vm1230_vm0, %v1774_v24  ;;  %v1794_v38 = vpop.permute.xlu0 %1793 }
 0x512   : > { %7001 = vmatmul.mubr.msk.f32.gmra.mrb[34].mxu1 %vm1230_vm0, %v1776_v22 }
 0x513   : > { %v1792_v26 = vpop.permute.xlu1 %1791  ;;  %7003 = vmatprep.mubr.msk.f32.mxu1 %vm1230_vm0, %v1778_v49  ;;  %v1798_v25 = vpop.permute.xlu0 %1797 }
 0x516   : > { %7004 = vmatmul.mubr.msk.f32.gmra.mrb[36].mxu1 %vm1230_vm0, %v1780_v0 }
 0x517   : > { %v1796_v1 = vpop.permute.xlu1 %1795  ;;  %7006 = vmatprep.mubr.msk.f32.mxu1 %vm1230_vm0, %v1782_v46  ;;  %v7861_v20 = vpop.permute.xlu0 %7860 }
 0x518   : > { %v7863_v16 = vunpack.i.h.bf16 %v7861_v20  ;;  %v7862_v5 = vunpack.i.l.bf16 %v7861_v20 }
 0x51a   : > { %7007 = vmatmul.mubr.msk.f32.gmra.mrb[38].mxu1 %vm1230_vm0, %v1784_v51  ;;  %v7509_v4 = vpack.c.bf16 %v7863_v16, %v7862_v5 }
 0x51b   : > { %v1800_v8 = vpop.permute.xlu1 %1799  ;;  %7009 = vmatprep.mubr.msk.f32.mxu1 %vm1230_vm0, %v1786_v7  ;;  %v7876_v23 = vpop.permute.xlu0 %7875 }
 0x51c   : > { %7510 = vmatprep.subr.bf16.mxu1 %v7509_v4  ;;  %v7878_v18 = vunpack.i.h.bf16 %v7876_v23  ;;  %v7877_v58 = vunpack.i.l.bf16 %v7876_v23 }
 0x51d   : > { %7512 = vmatpush3.bf16.msra.mxu1 %v7509_v4 }
 0x51e   : > { %7010 = vmatmul.mubr.msk.f32.gmra.mrb[40].mxu1 %vm1230_vm0, %v1788_v10  ;;  %v7521_v54 = vpack.c.bf16 %v7878_v18, %v7877_v58 }
 0x51f   : > { %v7866_v47 = vpop.permute.xlu1 %7865  ;;  %7012 = vmatprep.mubr.msk.f32.mxu1 %vm1230_vm0, %v1790_v52  ;;  %v7881_v49 = vpop.permute.xlu0 %7880 }
 0x520   : > { %v7868_v2 = vunpack.i.h.bf16 %v7866_v47  ;;  %v7867_v24 = vunpack.i.l.bf16 %v7866_v47  ;;  %v7883_v17 = vunpack.i.h.bf16 %v7881_v49  ;;  %v7882_v13 = vunpack.i.l.bf16 %v7881_v49 }
 0x522   : > { %7013 = vmatmul.mubr.msk.f32.gmra.mrb[42].mxu1 %vm1230_vm0, %v1792_v26  ;;  %v7513_v34 = vpack.c.bf16 %v7868_v2, %v7867_v24  ;;  %v7525_v6 = vpack.c.bf16 %v7883_v17, %v7882_v13  ;;  %v12098_v13 = vld [vmem:[#allocation21_spill] sm:$0xff]  ;;  %v12099_v24 = vld [vmem:[#allocation19_spill] sm:$0xff] }
 0x523   : > { %v7871_v59 = vpop.permute.xlu1 %7870  ;;  %7015 = vmatprep.mubr.msk.f32.mxu1 %vm1230_vm0, %v1794_v38 }
 0x524   : > { %v7873_v21 = vunpack.i.h.bf16 %v7871_v59  ;;  %v7872_v48 = vunpack.i.l.bf16 %v7871_v59  ;;  %7514 = vmatprep.subr.bf16.mxu1 %v7513_v34 }
 0x525   : > { %7516 = vmatpush3.bf16.msra.mxu1 %v7513_v34 }
 0x526   : > { %7016 = vmatmul.mubr.msk.f32.gmra.mrb[44].mxu1 %vm1230_vm0, %v1796_v1  ;;  %v7517_v22 = vpack.c.bf16 %v7873_v21, %v7872_v48 }
 0x527   : > { %v7886_v46 = vpop.permute.xlu1 %7885  ;;  %7018 = vmatprep.mubr.msk.f32.mxu1 %vm1230_vm0, %v1798_v25  ;;  %v7901_v25 = vpop.permute.xlu0 %7900 }
 0x528   : > { %7518 = vmatprep.subr.bf16.mxu1 %v7517_v22  ;;  %v7888_v0 = vunpack.i.h.bf16 %v7886_v46  ;;  %v7887_v29 = vunpack.i.l.bf16 %v7886_v46  ;;  %v7903_v1 = vunpack.i.h.bf16 %v7901_v25  ;;  %v7902_v20 = vunpack.i.l.bf16 %v7901_v25 }
 0x529   : > { %7520 = vmatpush3.bf16.msra.mxu1 %v7517_v22 }
 0x52a   : > { %7019 = vmatmul.mubr.msk.f32.gmra.mrb[46].mxu1 %vm1230_vm0, %v1800_v8  ;;  %7522 = vmatprep.subr.bf16.mxu1 %v7521_v54  ;;  %v7529_v51 = vpack.c.bf16 %v7888_v0, %v7887_v29  ;;  %v9601_v5 = vpack.c.bf16 %v7903_v1, %v7902_v20  ;;  %v12097_v20 = vld [vmem:[#allocation18_spill] sm:$0xff] }
 0x52b   : > { %v7891_v50 = vpop.permute.xlu1 %7890 }
 0x52c   : > { %v7893_v7 = vunpack.i.h.bf16 %v7891_v50  ;;  %v7892_v43 = vunpack.i.l.bf16 %v7891_v50 }
 0x52d   : > { %7524 = vmatpush3.bf16.msra.mxu1 %v7521_v54 }
 0x52e   : > { %7526 = vmatprep.subr.bf16.mxu1 %v7525_v6  ;;  %v7533_v10 = vpack.c.bf16 %v7893_v7, %v7892_v43 }
 0x52f   : > { %v7896_v52 = vpop.permute.xlu1 %7895 }
 0x530   : > { %v7898_v38 = vunpack.i.h.bf16 %v7896_v52  ;;  %v7897_v26 = vunpack.i.l.bf16 %v7896_v52  ;;  %v12095_v52 = vld [vmem:[#allocation16_spill] sm:$0xff] }
 0x531   : > { %7528 = vmatpush3.bf16.msra.mxu1 %v7525_v6 }
 0x532   : > { %7530 = vmatprep.subr.bf16.mxu1 %v7529_v51  ;;  %v7537_v16 = vpack.c.bf16 %v7898_v38, %v7897_v26  ;;  %v12096_v26 = vld [vmem:[#allocation17_spill] sm:$0xff] }
 0x535   : > { %7532 = vmatpush3.bf16.msra.mxu1 %v7529_v51 }
 0x536   : > { %7534 = vmatprep.subr.bf16.mxu1 %v7533_v10 }
 0x539   : > { %7536 = vmatpush3.bf16.msra.mxu1 %v7533_v10 }
 0x53a   : > { %7538 = vmatprep.subr.bf16.mxu1 %v7537_v16 }
 0x53d   : > { %7540 = vmatpush3.bf16.msra.mxu1 %v7537_v16 }
 0x53e   : > { %7543 = vmatprep.subr.msk.bf16.mxu1 %vm8995_vm1, %v9601_v5 }
 0x58c   : > { %v9606_v8 = vpop.f32.mrb[16].mxu1 }
 0x58d   : > { %12079 = vst [vmem:[#allocation11_spill] sm:$0xff] %v9606_v8  ;;  %v9608_v4 = vpop.f32.mrb[17].mxu1 }
 0x58e   : > { %12080 = vst [vmem:[#allocation12_spill] sm:$0xff] %v9608_v4 }
 0x5c0   : > { %v9612_v47 = vpop.f32.mrb[18].mxu1 }
 0x5c1   : > { %12081 = vst [vmem:[#allocation8_spill] sm:$0xff] %v9612_v47  ;;  %v9614_v2 = vpop.f32.mrb[19].mxu1 }
 0x5c2   : > { %12082 = vst [vmem:[#allocation7_spill] sm:$0xff] %v9614_v2 }
 0x5c5   : > { %v9618_v34 = vpop.f32.mrb[20].mxu1 }
 0x5c6   : > { %12083 = vst [vmem:[#allocation35_spill] sm:$0xff] %v9618_v34  ;;  %v9620_v59 = vpop.f32.mrb[21].mxu1 }
 0x5c7   : > { %12084 = vst [vmem:[#allocation9_spill] sm:$0xff] %v9620_v59 }
 0x5c9   : > { %v9624_v58 = vpop.f32.mrb[22].mxu1 }
 0x5ca   : > { %12085 = vst [vmem:[#allocation34_spill] sm:$0xff] %v9624_v58  ;;  %v9626_v21 = vpop.f32.mrb[23].mxu1 }
 0x5cb   : > { %12086 = vst [vmem:[#allocation33_spill] sm:$0xff] %v9626_v21 }
 0x5d1   : > { %v9630_v49 = vpop.f32.mrb[24].mxu1 }
 0x5d2   : > { %12087 = vst [vmem:[#allocation15_spill] sm:$0xff] %v9630_v49  ;;  %v9632_v17 = vpop.f32.mrb[25].mxu1  ;;  %v12106_v49 = vld [vmem:[#allocation29_spill] sm:$0xff] }
 0x5d3   : > { %12088 = vst [vmem:[#allocation5_spill] sm:$0xff] %v9632_v17 }
 0x5d5   : > { %v9636_v22 = vpop.f32.mrb[26].mxu1 }
 0x5d6   : > { %12089 = vst [vmem:[#allocation32_spill] sm:$0xff] %v9636_v22  ;;  %v9638_v46 = vpop.f32.mrb[27].mxu1 }
 0x5d7   : > { %12090 = vst [vmem:[#allocation36_spill] sm:$0xff] %v9638_v46  ;;  %v12104_v46 = vld [vmem:[#allocation27_spill] sm:$0xff] }
 0x5d9   : > { %v9642_v6 = vpop.f32.mrb[28].mxu1 }
 0x5da   : > { %12091 = vst [vmem:[#allocation44_spill] sm:$0xff] %v9642_v6  ;;  %v9644_v50 = vpop.f32.mrb[29].mxu1 }
 0x5db   : > { %12092 = vst [vmem:[#allocation45_spill] sm:$0xff] %v9644_v50 }
 0x5dd   : > { %v9648_v29 = vpop.f32.mrb[30].mxu1 }
 0x5de   : > { %12093 = vst [vmem:[#allocation46_spill] sm:$0xff] %v9648_v29  ;;  %v9650_v7 = vpop.f32.mrb[31].mxu1 }
 0x5df   : > { %12094 = vst [vmem:[#allocation47_spill] sm:$0xff] %v9650_v7 }
 0x5e1   : > { %v6999_v51 = vpop.f32.mrb[32].mxu1 }
 0x5e2   : > { %v1969_v10 = vadd.f32 %v6999_v51, %v12095_v52  ;;  %v1963_v38 = vpop.f32.mrb[33].mxu1 }
 0x5e3   : > { %v1964_v25 = vadd.f32 %v1963_v38, %v12096_v26  ;;  %v12100_v38 = vld [vmem:[#allocation23_spill] sm:$0xff] }
 0x5e4   : > { %2044 = vmax.xlane.f32.xlu1 %v1969_v10 }
 0x5e5   : > { %v7002_v1 = vpop.f32.mrb[34].mxu1  ;;  %2042 = vmax.xlane.f32.xlu0 %v1964_v25 }
 0x5e6   : > { %v1979_v16 = vadd.f32 %v7002_v1, %v12097_v20  ;;  %v1973_v54 = vpop.f32.mrb[35].mxu1 }
 0x5e7   : > { %v9661_v43 = vadd.f32 %v1973_v54, %v12099_v24  ;;  %v12103_v54 = vld [vmem:[#allocation22_spill] sm:$0xff] }
 0x5e9   : > { %v7005_v0 = vpop.f32.mrb[36].mxu1  ;;  %2048 = vmax.xlane.f32.xlu0 %v1979_v16 }
 0x5ea   : > { %v9658_v48 = vadd.f32 %v7005_v0, %v12098_v13  ;;  %v1983_v18 = vpop.f32.mrb[37].mxu1  ;;  %v12102_v0 = vld [vmem:[#allocation25_spill] sm:$0xff] }
 0x5eb   : > { %v9667_v1 = vadd.f32 %v1983_v18, %v12101_v40 }
 0x5ec   : > { %2052 = vmax.xlane.f32.xlu1 %v9658_v48 }
 0x5ed   : > { %v7008_v51 = vpop.f32.mrb[38].mxu1  ;;  %2046 = vmax.xlane.f32.xlu0 %v9661_v43 }
 0x5ee   : > { %v1999_v23 = vadd.f32 %v7008_v51, %v12100_v38  ;;  %v1993_v15 = vpop.f32.mrb[39].mxu1  ;;  %v12105_v38 = vld [vmem:[#allocation24_spill] sm:$0xff] }
 0x5ef   : > { %v1994_v50 = vadd.f32 %v1993_v15, %v12103_v54 }
 0x5f0   : > { %2056 = vmax.xlane.f32.xlu1 %v1999_v23 }
 0x5f1   : > { %v7011_v44 = vpop.f32.mrb[40].mxu1  ;;  %2050 = vmax.xlane.f32.xlu0 %v9667_v1 }
 0x5f2   : > { %v2009_v7 = vadd.f32 %v7011_v44, %v12102_v0  ;;  %v2003_v29 = vpop.f32.mrb[41].mxu1  ;;  %v12107_v0 = vld [vmem:[#allocation26_spill] sm:$0xff] }
 0x5f3   : > { %v2004_v17 = vadd.f32 %v2003_v29, %v12105_v38  ;;  %v12109_v38 = vld [vmem:[#allocation28_spill] sm:$0xff] }
 0x5f4   : > { %2060 = vmax.xlane.f32.xlu1 %v2009_v7 }
 0x5f5   : > { %v7014_v6 = vpop.f32.mrb[42].mxu1  ;;  %2054 = vmax.xlane.f32.xlu0 %v1994_v50 }
 0x5f6   : > { %v9673_v22 = vadd.f32 %v7014_v6, %v12104_v46  ;;  %v2013_v51 = vpop.f32.mrb[43].mxu1  ;;  %v12108_v6 = vld [vmem:[#allocation31_spill] sm:$0xff] }
 0x5f7   : > { %v9681_v58 = vadd.f32 %v2013_v51, %v12107_v0  ;;  %v12111_v51 = vld [vmem:[#allocation13_spill] sm:$0xff]  ;;  %v12112_v0 = vld [vmem:[#allocation10_spill] sm:$0xff] }
 0x5f8   : > { %2064 = vmax.xlane.f32.xlu1 %v9673_v22 }
 0x5f9   : > { %v7017_v18 = vpop.f32.mrb[44].mxu1  ;;  %2058 = vmax.xlane.f32.xlu0 %v2004_v17 }
 0x5fa   : > { %v9678_v21 = vadd.f32 %v7017_v18, %v12106_v49  ;;  %v2023_v44 = vpop.f32.mrb[45].mxu1  ;;  %v12110_v18 = vld [vmem:[#allocation30_spill] sm:$0xff] }
 0x5fb   : > { %v9689_v40 = vadd.f32 %v2023_v44, %v12109_v38  ;;  %v9705_v44 = vpop.permute.xlu0 %7910 }
 0x5fc   : > { %2068 = vmax.xlane.f32.xlu1 %v9678_v21 }
 0x5fd   : > { %v7020_v15 = vpop.f32.mrb[46].mxu1  ;;  %2062 = vmax.xlane.f32.xlu0 %v9681_v58 }
 0x5fe   : > { %v9686_v46 = vadd.f32 %v7020_v15, %v12108_v6  ;;  %v2033_v29 = vpop.f32.mrb[47].mxu1  ;;  %v9701_v15 = vpop.permute.xlu1 %7905 }
 0x5ff   : > { %v9694_v49 = vadd.f32 %v2033_v29, %v12110_v18 }
 0x600   : > { %2072 = vmax.xlane.f32.xlu1 %v9686_v46 }
 0x601   : > { %2066 = vmax.xlane.f32.xlu0 %v9689_v40 }
 0x602   : > { %v9703_v6 = vpop.permute.xlu1 %7915 }
 0x605   : > { %2070 = vmax.xlane.f32.xlu0 %v9694_v49 }
 0x611   : > { %7925 = vrot.lane.b32.xlu1 %v12111_v51, %s8661_s12 }
 0x61b   : > { %7920 = vrot.lane.b32.xlu0 %v12112_v0, %s8661_s12 }
 0x671   : > { %v2045_v38 = vpop.xlane.xlu1 %2044 }
 0x672   : > { %v2075_v54 = vsub.f32 %v1969_v10, %v2045_v38  ;;  %v2043_v24 = vpop.xlane.xlu0 %2042 }
 0x673   : > { %v2074_v59 = vsub.f32 %v1964_v25, %v2043_v24 }
 0x674   : > { %v2092_v29 = vmul.f32 1.442695, %v2075_v54 }
 0x675   : > { %v2090_v18 = vmul.f32 1.442695, %v2074_v59 }
 0x676   : > { %8203 = vpow2.f32 %v2092_v29  ;;  %v2049_v34 = vpop.xlane.xlu0 %2048 }
 0x677   : > { %8205 = vpow2.f32 %v2090_v18  ;;  %v2077_v13 = vsub.f32 %v1979_v16, %v2049_v34 }
 0x679   : > { %v2096_v2 = vmul.f32 1.442695, %v2077_v13  ;;  %v2053_v47 = vpop.xlane.xlu1 %2052 }
 0x67a   : > { %v2047_v20 = vpop.xlane.xlu0 %2046 }
 0x67b   : > { %8207 = vpow2.f32 %v2096_v2  ;;  %v2076_v29 = vsub.f32 %v9661_v43, %v2047_v20 }
 0x67d   : > { %v2057_v26 = vpop.xlane.xlu1 %2056 }
 0x67e   : > { %v2081_v4 = vsub.f32 %v1999_v23, %v2057_v26  ;;  %v2051_v8 = vpop.xlane.xlu0 %2050 }
 0x680   : > { %v9707_v52 = vpop.eup %8203  ;;  %v2104_v41 = vmul.f32 1.442695, %v2081_v4 }
 0x681   : > { %v9709_v28 = vpop.eup %8205  ;;  %v2061_v10 = vpop.xlane.xlu1 %2060  ;;  %2124 = vadd.xlane.f32.xlu0 %v9707_v52 }
 0x682   : > { %8209 = vpow2.f32 %v2104_v41  ;;  %2122 = vadd.xlane.f32.xlu1 %v9709_v28  ;;  %v2055_v24 = vpop.xlane.xlu0 %2054  ;;  %v2083_v34 = vsub.f32 %v2009_v7, %v2061_v10  ;;  %v2079_v10 = vsub.f32 %v9658_v48, %v2053_v47 }
 0x683   : > { %v2080_v59 = vsub.f32 %v1994_v50, %v2055_v24  ;;  %v2094_v24 = vmul.f32 1.442695, %v2076_v29 }
 0x684   : > { %v2108_v26 = vmul.f32 1.442695, %v2083_v34  ;;  %v2100_v34 = vmul.f32 1.442695, %v2079_v10 }
 0x685   : > { %v9713_v13 = vpop.eup %8207  ;;  %v2102_v2 = vmul.f32 1.442695, %v2080_v59  ;;  %v2065_v25 = vpop.xlane.xlu1 %2064  ;;  %v2078_v59 = vsub.f32 %v9667_v1, %v2051_v8 }
 0x686   : > { %2128 = vadd.xlane.f32.xlu1 %v9713_v13  ;;  %v2059_v23 = vpop.xlane.xlu0 %2058  ;;  %v2085_v16 = vsub.f32 %v9673_v22, %v2065_v25 }
 0x687   : > { %8211 = vpow2.f32 %v2102_v2  ;;  %v2082_v4 = vsub.f32 %v2004_v17, %v2059_v23  ;;  %v12113_v17 = vld [vmem:[#allocation14_spill] sm:$0xff]  ;;  %v2098_v23 = vmul.f32 1.442695, %v2078_v59 }
 0x688   : > { %8213 = vpow2.f32 %v2108_v26  ;;  %v2112_v7 = vmul.f32 1.442695, %v2085_v16 }
 0x689   : > { %v2106_v38 = vmul.f32 1.442695, %v2082_v4  ;;  %v2069_v4 = vpop.xlane.xlu1 %2068 }
 0x68a   : > { %v2063_v2 = vpop.xlane.xlu0 %2062  ;;  %v2087_v25 = vsub.f32 %v9678_v21, %v2069_v4 }
 0x68b   : > { %8215 = vpow2.f32 %v2106_v38  ;;  %v2084_v26 = vsub.f32 %v9681_v58, %v2063_v2 }
 0x68c   : > { %v9717_v41 = vpop.eup %8209  ;;  %8217 = vpow2.f32 %v2112_v7  ;;  %v2116_v48 = vmul.f32 1.442695, %v2087_v25 }
 0x68d   : > { %2136 = vadd.xlane.f32.xlu1 %v9717_v41  ;;  %8219 = vpow2.f32 %v2094_v24  ;;  %v2110_v43 = vmul.f32 1.442695, %v2084_v26  ;;  %v2073_v38 = vpop.xlane.xlu1 %2072 }
 0x68e   : > { %8221 = vpow2.f32 %v2100_v34  ;;  %v2067_v20 = vpop.xlane.xlu0 %2066  ;;  %v2089_v21 = vsub.f32 %v9686_v46, %v2073_v38 }
 0x68f   : > { %8223 = vpow2.f32 %v2098_v23  ;;  %v2086_v8 = vsub.f32 %v9689_v40, %v2067_v20 }
 0x690   : > { %8225 = vpow2.f32 %v2110_v43  ;;  %v2120_v40 = vmul.f32 1.442695, %v2089_v21 }
 0x691   : > { %v9720_v50 = vpop.eup %8211  ;;  %8227 = vpow2.f32 %v2116_v48  ;;  %v2114_v58 = vmul.f32 1.442695, %v2086_v8  ;;  %v7926_v23 = vpop.permute.xlu1 %7925 }
 0x692   : > { %2134 = vadd.xlane.f32.xlu1 %v9720_v50  ;;  %v9723_v54 = vpop.eup %8213  ;;  %v2071_v29 = vpop.xlane.xlu0 %2070 }
 0x693   : > { %8229 = vpow2.f32 %v2114_v58  ;;  %v2088_v10 = vsub.f32 %v9694_v49, %v2071_v29 }
 0x694   : > { %8231 = vpow2.f32 %v2120_v40 }
 0x695   : > { %v9728_v22 = vpop.eup %8215  ;;  %v2118_v34 = vmul.f32 1.442695, %v2088_v10 }
 0x696   : > { %2140 = vadd.xlane.f32.xlu1 %v9723_v54  ;;  %v9731_v18 = vpop.eup %8217  ;;  %v7921_v49 = vpop.permute.xlu0 %7920 }
 0x697   : > { %7930 = vrot.lane.b32.xlu0 %v12113_v17, %s8661_s12  ;;  %v9741_v47 = vpop.eup %8219  ;;  %8233 = vpow2.f32 %v2118_v34 }
 0x698   : > { %v9745_v1 = vpop.eup %8221 }
 0x699   : > { %v9748_v16 = vpop.eup %8223 }
 0x69a   : > { %2138 = vadd.xlane.f32.xlu1 %v9728_v22  ;;  %v9752_v7 = vpop.eup %8225 }
 0x69b   : > { %v9756_v24 = vpop.eup %8227 }
 0x69d   : > { %v9759_v59 = vpop.eup %8229 }
 0x69e   : > { %2144 = vadd.xlane.f32.xlu1 %v9731_v18  ;;  %v9762_v46 = vpop.eup %8231 }
 0x6a1   : > { %v9765_v2 = vpop.eup %8233 }
 0x6af   : > { %2671 = vrot.lane.b32.xlu1 %v8987_v60, %s8661_s12 }
 0x6b6   : > { %2126 = vadd.xlane.f32.xlu0 %v9741_v47 }
 0x6ba   : > { %2132 = vadd.xlane.f32.xlu0 %v9745_v1 }
 0x6be   : > { %2130 = vadd.xlane.f32.xlu0 %v9748_v16 }
 0x6c2   : > { %2142 = vadd.xlane.f32.xlu0 %v9752_v7 }
 0x6c6   : > { %2148 = vadd.xlane.f32.xlu0 %v9756_v24 }
 0x6ca   : > { %2146 = vadd.xlane.f32.xlu0 %v9759_v59 }
 0x6d3   : > { %2152 = vadd.xlane.f32.xlu1 %v9762_v46 }
 0x6d7   : > { %2150 = vadd.xlane.f32.xlu1 %v9765_v2 }
 0x6e0   : > { %7935 = vrot.lane.b32.xlu0 %v9172_v57, %s8661_s12 }
 0x6e4   : > { %2669 = vrot.lane.b32.xlu0 %v8981_v9, %s8661_s12 }
 0x6e8   : > { %2673 = vrot.lane.b32.xlu0 %v9006_v19, %s8661_s12  ;;  %2675 = vrot.lane.b32.xlu1 %v9011_v42, %s8661_s12 }
 0x6ec   : > { %2677 = vrot.lane.b32.xlu0 %v9025_v30, %s8661_s12  ;;  %2679 = vrot.lane.b32.xlu1 %v9033_v37, %s8661_s12 }
 0x6f0   : > { %2681 = vrot.lane.b32.xlu0 %v9057_v55, %s8661_s12  ;;  %2683 = vrot.lane.b32.xlu1 %v9065_v62, %s8661_s12 }
 0x6f4   : > { %2685 = vrot.lane.b32.xlu0 %v9089_v27, %s8661_s12  ;;  %2687 = vrot.lane.b32.xlu1 %v9097_v12, %s8661_s12 }
 0x6f8   : > { %2689 = vrot.lane.b32.xlu0 %v9119_v45, %s8661_s12  ;;  %2691 = vrot.lane.b32.xlu1 %v9127_v56, %s8661_s12 }
 0x6fc   : > { %2693 = vrot.lane.b32.xlu0 %v9149_v3, %s8661_s12  ;;  %2695 = vrot.lane.b32.xlu1 %v9154_v14, %s8661_s12 }
 0x700   : > { %2697 = vrot.lane.b32.xlu0 %v9163_v32, %s8661_s12  ;;  %2699 = vrot.lane.b32.xlu1 %v9168_v36, %s8661_s12 }
 0x704   : > { %7940 = vrot.lane.b32.xlu0 %v12065_v63, %s8662_s11  ;;  %7945 = vrot.lane.b32.xlu1 %v12070_v53, %s8662_s11 }
 0x708   : > { %7950 = vrot.lane.b32.xlu0 %v12069_v31, %s8662_s11  ;;  %7955 = vrot.lane.b32.xlu1 %v12072_v61, %s8662_s11  ;;  %v7908_v61 = vunpack.i.h.bf16 %v9701_v15 }
 0x70c   : > { %7960 = vrot.lane.b32.xlu0 %v12112_v0, %s8662_s11  ;;  %7965 = vrot.lane.b32.xlu1 %v12111_v51, %s8662_s11  ;;  %v7907_v0 = vunpack.i.l.bf16 %v9701_v15 }
 0x70e   : > { %v2125_v26 = vpop.xlane.xlu0 %2124 }
 0x70f   : > { %8235 = vrcp.f32 %v2125_v26  ;;  %v2123_v63 = vpop.xlane.xlu1 %2122 }
 0x710   : > { %8237 = vrcp.f32 %v2123_v63  ;;  %7970 = vrot.lane.b32.xlu0 %v12113_v17, %s8662_s11  ;;  %7975 = vrot.lane.b32.xlu1 %v9172_v57, %s8662_s11 }
 0x714   : > { %3436 = vrot.lane.b32.xlu0 %v8981_v9, %s8662_s11  ;;  %3438 = vrot.lane.b32.xlu1 %v8987_v60, %s8662_s11  ;;  %v7547_v60 = vpack.c.bf16 %v7908_v61, %v7907_v0 }
 0x718   : > { %3440 = vrot.lane.b32.xlu0 %v9006_v19, %s8662_s11  ;;  %3442 = vrot.lane.b32.xlu1 %v9011_v42, %s8662_s11  ;;  %v7913_v19 = vunpack.i.h.bf16 %v9705_v44  ;;  %v7912_v42 = vunpack.i.l.bf16 %v9705_v44 }
 0x719   : > { %v8236_v31 = vpop.eup %8235 }
 0x71a   : > { %v8238_v53 = vpop.eup %8237  ;;  %v2171_v9 = vmul.f32 %v8236_v31, %v9707_v52  ;;  %v7931_v52 = vpop.permute.xlu0 %7930 }
 0x71b   : > { %v2170_v57 = vmul.f32 %v8238_v53, %v9709_v28  ;;  %v12115_v28 = vld [vmem:[#allocation39_spill] sm:$0xff]  ;;  %v7933_v51 = vunpack.i.h.bf16 %v7931_v52  ;;  %v7932_v15 = vunpack.i.l.bf16 %v7931_v52 }
 0x71c   : > { %3444 = vrot.lane.b32.xlu0 %v9025_v30, %s8662_s11  ;;  %3446 = vrot.lane.b32.xlu1 %v9033_v37, %s8662_s11  ;;  %v7553_v30 = vpack.c.bf16 %v7913_v19, %v7912_v42  ;;  %v7918_v37 = vunpack.i.h.bf16 %v9703_v6 }
 0x71d   : > { %7053 = vmatprep.mubr.f32.mxu1 %v2170_v57  ;;  %v7577_v17 = vpack.c.bf16 %v7933_v51, %v7932_v15 }
 0x71e   : > { %7054 = vmatmul.mubr.f32.vlgmr.msra.gmra.mrb[48].mxu1 %v2171_v9 }
 0x71f   : > { %7546 = vmatpush3.bf16.xpose.msk.msra.mxu1 %vm8995_vm1, %v9601_v5 }
 0x720   : > { %7549 = vmatprep.subr.msk.bf16.mxu1 %vm8995_vm1, %v7547_v60  ;;  %3448 = vrot.lane.b32.xlu0 %v9057_v55, %s8662_s11  ;;  %v7917_v55 = vunpack.i.l.bf16 %v9703_v6 }
 0x721   : > { %3450 = vrot.lane.b32.xlu1 %v9065_v62, %s8662_s11 }
 0x722   : > { %v7559_v62 = vpack.c.bf16 %v7918_v37, %v7917_v55 }
 0x724   : > { %3452 = vrot.lane.b32.xlu0 %v9089_v27, %s8662_s11  ;;  %v7923_v27 = vunpack.i.h.bf16 %v7921_v49 }
 0x725   : > { %3454 = vrot.lane.b32.xlu1 %v9097_v12, %s8662_s11  ;;  %v7922_v12 = vunpack.i.l.bf16 %v7921_v49 }
 0x727   : > { %7552 = vmatpush3.bf16.xpose.msk.msra.mxu1 %vm8995_vm1, %v7547_v60 }
 0x728   : > { %7555 = vmatprep.subr.msk.bf16.mxu1 %vm8995_vm1, %v7553_v30  ;;  %3456 = vrot.lane.b32.xlu0 %v9119_v45, %s8662_s11  ;;  %v7565_v45 = vpack.c.bf16 %v7923_v27, %v7922_v12 }
 0x729   : > { %3458 = vrot.lane.b32.xlu1 %v9127_v56, %s8662_s11  ;;  %v2129_v56 = vpop.xlane.xlu1 %2128 }
 0x72a   : > { %8239 = vrcp.f32 %v2129_v56 }
 0x72c   : > { %3460 = vrot.lane.b32.xlu0 %v9149_v3, %s8662_s11  ;;  %v12114_v3 = vld [vmem:[#allocation38_spill] sm:$0xff] }
 0x72d   : > { %3462 = vrot.lane.b32.xlu1 %v9154_v14, %s8662_s11  ;;  %v7928_v14 = vunpack.i.h.bf16 %v7926_v23 }
 0x72f   : > { %7558 = vmatpush3.bf16.xpose.msk.msra.mxu1 %vm8995_vm1, %v7553_v30 }
 0x730   : > { %7561 = vmatprep.subr.msk.bf16.mxu1 %vm8995_vm1, %v7559_v62  ;;  %3464 = vrot.lane.b32.xlu0 %v9163_v32, %s8662_s11  ;;  %v7927_v32 = vunpack.i.l.bf16 %v7926_v23 }
 0x731   : > { %3466 = vrot.lane.b32.xlu1 %v9168_v36, %s8662_s11  ;;  %v2137_v36 = vpop.xlane.xlu1 %2136 }
 0x732   : > { %v7571_v5 = vpack.c.bf16 %v7928_v14, %v7927_v32 }
 0x734   : > { %7990 = vrot.lane.b32.xlu0 %v9494_v33, %s8661_s12  ;;  %v8240_v20 = vpop.eup %8239 }
 0x735   : > { %7980 = vrot.lane.b32.xlu1 %v9476_v11, %s8661_s12  ;;  %v2135_v6 = vpop.xlane.xlu1 %2134  ;;  %v2173_v21 = vmul.f32 %v8240_v20, %v9713_v13 }
 0x737   : > { %7564 = vmatpush3.bf16.xpose.msk.msra.mxu1 %vm8995_vm1, %v7559_v62 }
 0x738   : > { %7567 = vmatprep.subr.msk.bf16.mxu1 %vm8995_vm1, %v7565_v45  ;;  %8000 = vrot.lane.b32.xlu0 %v9500_v39, %s8661_s12 }
 0x739   : > { %7985 = vrot.lane.b32.xlu1 %v12114_v3, %s8661_s12  ;;  %v2141_v4 = vpop.xlane.xlu1 %2140 }
 0x73d   : > { %7995 = vrot.lane.b32.xlu1 %v12115_v28, %s8661_s12  ;;  %v2139_v48 = vpop.xlane.xlu1 %2138 }
 0x73f   : > { %7570 = vmatpush3.bf16.xpose.msk.msra.mxu1 %vm8995_vm1, %v7565_v45 }
 0x740   : > { %7573 = vmatprep.subr.msk.bf16.mxu1 %vm8995_vm1, %v7571_v5 }
 0x741   : > { %v2145_v10 = vpop.xlane.xlu1 %2144 }
 0x743   : > { %v2127_v44 = vpop.xlane.xlu0 %2126 }
 0x744   : > { %8241 = vrcp.f32 %v2127_v44  ;;  %v8091_v44 = vld [vmem:[%s8733_s15 + $0x10] sm:$0xff]  }
 0x745   : > { %8243 = vrcp.f32 %v2135_v6  ;;  %v2672_v61 = vpop.permute.xlu1 %2671  ;;  %7077 = vmatprep.subr.bf16.mxu0 %v8091_v44 }
 0x746   : > { %7078 = vmatpush3.bf16.msra.mxu0 %v8091_v44 }
 0x747   : > { %7576 = vmatpush3.bf16.xpose.msk.msra.mxu1 %vm8995_vm1, %v7571_v5  ;;  %v2133_v25 = vpop.xlane.xlu0 %2132 }
 0x748   : > { %7579 = vmatprep.subr.msk.bf16.mxu1 %vm8995_vm1, %v7577_v17  ;;  %8245 = vrcp.f32 %v2133_v25 }
 0x74b   : > { %v2131_v43 = vpop.xlane.xlu0 %2130 }
 0x74c   : > { %8247 = vrcp.f32 %v2131_v43 }
 0x74d   : > { %8249 = vrcp.f32 %v2137_v36 }
 0x74e   : > { %v8242_v8 = vpop.eup %8241  ;;  %8251 = vrcp.f32 %v2139_v48 }
 0x74f   : > { %7582 = vmatpush3.bf16.xpose.msk.msra.mxu1 %vm8995_vm1, %v7577_v17  ;;  %v2143_v58 = vpop.xlane.xlu0 %2142  ;;  %v2172_v38 = vmul.f32 %v8242_v8, %v9741_v47  ;;  %8253 = vrcp.f32 %v2141_v4  ;;  %v8244_v40 = vpop.eup %8243 }
 0x750   : > { %8255 = vrcp.f32 %v2143_v58  ;;  %v2176_v13 = vmul.f32 %v8244_v40, %v9720_v50 }
 0x751   : > { %7056 = vmatprep.mubr.f32.mxu1 %v2172_v38  ;;  %8257 = vrcp.f32 %v2145_v10 }
 0x752   : > { %7057 = vmatmul.mubr.f32.gmra.mrb[50].mxu1 %v2173_v21  ;;  %v8246_v34 = vpop.eup %8245 }
 0x753   : > { %v2149_v29 = vpop.xlane.xlu0 %2148  ;;  %v2175_v63 = vmul.f32 %v8246_v34, %v9745_v1 }
 0x756   : > { %v8248_v49 = vpop.eup %8247 }
 0x757   : > { %v2147_v23 = vpop.xlane.xlu0 %2146  ;;  %v2174_v26 = vmul.f32 %v8248_v49, %v9748_v16  ;;  %v8250_v47 = vpop.eup %8249 }
 0x758   : > { %8259 = vrcp.f32 %v2147_v23  ;;  %v8252_v31 = vpop.eup %8251  ;;  %v2177_v9 = vmul.f32 %v8250_v47, %v9717_v41 }
 0x759   : > { %7059 = vmatprep.mubr.f32.mxu1 %v2174_v26  ;;  %8261 = vrcp.f32 %v2149_v29  ;;  %v8254_v60 = vpop.eup %8253  ;;  %v2178_v16 = vmul.f32 %v8252_v31, %v9728_v22 }
 0x75a   : > { %7060 = vmatmul.mubr.f32.gmra.mrb[52].mxu1 %v2175_v63  ;;  %v8256_v19 = vpop.eup %8255  ;;  %v2179_v50 = vmul.f32 %v8254_v60, %v9723_v54 }
 0x75b   : > { %7062 = vmatprep.mubr.f32.mxu1 %v2176_v13  ;;  %v7936_v53 = vpop.permute.xlu0 %7935  ;;  %v8258_v37 = vpop.eup %8257  ;;  %v2180_v41 = vmul.f32 %v8256_v19, %v9752_v7 }
 0x75c   : > { %v7938_v0 = vunpack.i.h.bf16 %v7936_v53  ;;  %v7937_v57 = vunpack.i.l.bf16 %v7936_v53  ;;  %v2181_v27 = vmul.f32 %v8258_v37, %v9731_v18 }
 0x75e   : > { %v7583_v42 = vpack.c.bf16 %v7938_v0, %v7937_v57  ;;  %7063 = vmatmul.mubr.f32.gmra.mrb[54].mxu1 %v2177_v9 }
 0x75f   : > { %7065 = vmatprep.mubr.f32.mxu1 %v2178_v16  ;;  %v2670_v1 = vpop.permute.xlu0 %2669 }
 0x760   : > { %v2153_v30 = vpop.xlane.xlu1 %2152  ;;  %7585 = vmatprep.subr.msk.bf16.mxu1 %vm8995_vm1, %v7583_v42 }
 0x761   : > { %7588 = vmatpush3.bf16.xpose.msk.msra.mxu1 %vm8995_vm1, %v7583_v42  ;;  %8263 = vrcp.f32 %v2153_v30  ;;  %v8093_v42 = vld [vmem:[%s8733_s15] sm:$0xff]  }
 0x762   : > { %v8260_v55 = vpop.eup %8259  ;;  %7066 = vmatmul.mubr.f32.gmra.mrb[56].mxu1 %v2179_v50 }
 0x763   : > { %7068 = vmatprep.mubr.f32.mxu1 %v2180_v41  ;;  %v2674_v22 = vpop.permute.xlu0 %2673  ;;  %v8262_v12 = vpop.eup %8261  ;;  %v2182_v45 = vmul.f32 %v8260_v55, %v9759_v59 }
 0x764   : > { %v2151_v62 = vpop.xlane.xlu1 %2150  ;;  %v2183_v14 = vmul.f32 %v8262_v12, %v9756_v24  ;;  %v8092_v24 = vld [vmem:[%s8733_s15 + $0x18] sm:$0xff]  }
 0x765   : > { %8265 = vrcp.f32 %v2151_v62  ;;  %7079 = vmatprep.subr.bf16.mxu0 %v8092_v24 }
 0x766   : > { %7069 = vmatmul.mubr.f32.gmra.mrb[58].mxu1 %v2181_v27  ;;  %7080 = vmatpush3.bf16.msra.mxu0 %v8092_v24 }
 0x767   : > { %7071 = vmatprep.mubr.f32.mxu1 %v2182_v45  ;;  %v2678_v54 = vpop.permute.xlu0 %2677  ;;  %7097 = vmatprep.subr.bf16.mxu0 %v8093_v42 }
 0x768   : > { %v2676_v56 = vpop.permute.xlu1 %2675 }
 0x76a   : > { %7072 = vmatmul.mubr.f32.gmra.mrb[60].mxu1 %v2183_v14 }
 0x76b   : > { %v2682_v7 = vpop.permute.xlu0 %2681  ;;  %v8264_v36 = vpop.eup %8263 }
 0x76c   : > { %v2680_v32 = vpop.permute.xlu1 %2679  ;;  %v2185_v51 = vmul.f32 %v8264_v36, %v9762_v46 }
 0x76f   : > { %v8266_v5 = vpop.eup %8265  ;;  %v2686_v52 = vpop.permute.xlu0 %2685 }
 0x770   : > { %v2684_v6 = vpop.permute.xlu1 %2683  ;;  %v2184_v18 = vmul.f32 %v8266_v5, %v9765_v2 }
 0x772   : > { %7074 = vmatprep.mubr.f32.mxu1 %v2184_v18 }
 0x773   : > { %7075 = vmatmul.mubr.f32.gmra.mrb[62].mxu1 %v2185_v51  ;;  %v2690_v59 = vpop.permute.xlu0 %2689  ;;  %v12116_v51 = vmov 0  }
 0x774   : > { %v2688_v15 = vpop.permute.xlu1 %2687  ;;  %7149 = vmatprep.mubr.msk.f32.mxu1 %vm1230_vm0, %v2670_v1 }
 0x777   : > { %v2694_v17 = vpop.permute.xlu0 %2693  ;;  %7150 = vmatmul.mubr.msk.f32.vlgmr.msra.gmra.mrb[64].mxu1 %vm1230_vm0, %v2672_v61 }
 0x778   : > { %v2692_v4 = vpop.permute.xlu1 %2691  ;;  %7152 = vmatprep.mubr.msk.f32.mxu1 %vm1230_vm0, %v2674_v22 }
 0x77b   : > { %v2698_v2 = vpop.permute.xlu0 %2697  ;;  %7153 = vmatmul.mubr.msk.f32.gmra.mrb[66].mxu1 %vm1230_vm0, %v2676_v56 }
 0x77c   : > { %v2696_v46 = vpop.permute.xlu1 %2695  ;;  %7155 = vmatprep.mubr.msk.f32.mxu1 %vm1230_vm0, %v2678_v54 }
 0x77f   : > { %v7941_v25 = vpop.permute.xlu0 %7940  ;;  %7156 = vmatmul.mubr.msk.f32.gmra.mrb[68].mxu1 %vm1230_vm0, %v2680_v32 }
 0x780   : > { %v7943_v43 = vunpack.i.h.bf16 %v7941_v25  ;;  %v7942_v20 = vunpack.i.l.bf16 %v7941_v25  ;;  %v2700_v48 = vpop.permute.xlu1 %2699  ;;  %7158 = vmatprep.mubr.msk.f32.mxu1 %vm1230_vm0, %v2682_v7 }
 0x782   : > { %v7621_v8 = vpack.c.bf16 %v7943_v43, %v7942_v20 }
 0x783   : > { %v7951_v58 = vpop.permute.xlu0 %7950  ;;  %7159 = vmatmul.mubr.msk.f32.gmra.mrb[70].mxu1 %vm1230_vm0, %v2684_v6 }
 0x784   : > { %v7946_v38 = vpop.permute.xlu1 %7945  ;;  %7161 = vmatprep.mubr.msk.f32.mxu1 %vm1230_vm0, %v2686_v52  ;;  %7623 = vmatprep.subr.msk.bf16.mxu1 %vm8995_vm1, %v7621_v8  ;;  %v7953_v34 = vunpack.i.h.bf16 %v7951_v58  ;;  %v7952_v49 = vunpack.i.l.bf16 %v7951_v58 }
 0x785   : > { %v7948_v21 = vunpack.i.h.bf16 %v7946_v38  ;;  %v7947_v29 = vunpack.i.l.bf16 %v7946_v38  ;;  %7626 = vmatpush3.bf16.xpose.msk.msra.mxu1 %vm8995_vm1, %v7621_v8 }
 0x786   : > { %v7633_v23 = vpack.c.bf16 %v7953_v34, %v7952_v49 }
 0x787   : > { %v7627_v40 = vpack.c.bf16 %v7948_v21, %v7947_v29  ;;  %v7961_v10 = vpop.permute.xlu0 %7960  ;;  %7162 = vmatmul.mubr.msk.f32.gmra.mrb[72].mxu1 %vm1230_vm0, %v2688_v15 }
 0x788   : > { %7164 = vmatprep.mubr.msk.f32.mxu1 %vm1230_vm0, %v2690_v59  ;;  %v7956_v26 = vpop.permute.xlu1 %7955  ;;  %v7963_v61 = vunpack.i.h.bf16 %v7961_v10  ;;  %v7962_v0 = vunpack.i.l.bf16 %v7961_v10 }
 0x789   : > { %7629 = vmatprep.subr.msk.bf16.mxu1 %vm8995_vm1, %v7627_v40  ;;  %v7958_v47 = vunpack.i.h.bf16 %v7956_v26  ;;  %v7957_v13 = vunpack.i.l.bf16 %v7956_v26 }
 0x78a   : > { %v7645_v57 = vpack.c.bf16 %v7963_v61, %v7962_v0 }
 0x78b   : > { %7165 = vmatmul.mubr.msk.f32.gmra.mrb[74].mxu1 %vm1230_vm0, %v2692_v4  ;;  %v7971_v63 = vpop.permute.xlu0 %7970  ;;  %v7639_v53 = vpack.c.bf16 %v7958_v47, %v7957_v13 }
 0x78c   : > { %7167 = vmatprep.mubr.msk.f32.mxu1 %vm1230_vm0, %v2694_v17  ;;  %v7966_v9 = vpop.permute.xlu1 %7965  ;;  %v7973_v1 = vunpack.i.h.bf16 %v7971_v63  ;;  %v7972_v30 = vunpack.i.l.bf16 %v7971_v63 }
 0x78d   : > { %7632 = vmatpush3.bf16.xpose.msk.msra.mxu1 %vm8995_vm1, %v7627_v40  ;;  %v7968_v60 = vunpack.i.h.bf16 %v7966_v9  ;;  %v7967_v16 = vunpack.i.l.bf16 %v7966_v9  ;;  %v12117_v9 = vld [vmem:[#allocation16_spill] sm:$0xff] }
 0x78e   : > { %7635 = vmatprep.subr.msk.bf16.mxu1 %vm8995_vm1, %v7633_v23  ;;  %v7657_v50 = vpack.c.bf16 %v7973_v1, %v7972_v30  ;;  %v12121_v30 = vld [vmem:[#allocation17_spill] sm:$0xff] }
 0x78f   : > { %7168 = vmatmul.mubr.msk.f32.gmra.mrb[76].mxu1 %vm1230_vm0, %v2696_v46  ;;  %v3437_v31 = vpop.permute.xlu0 %3436  ;;  %v7651_v19 = vpack.c.bf16 %v7968_v60, %v7967_v16  ;;  %v8094_v46 = vld [vmem:[%s8733_s15 + $0x8] sm:$0xff]   ;;  %v12118_v16 = vld [vmem:[#allocation11_spill] sm:$0xff] }
 0x790   : > { %7170 = vmatprep.mubr.msk.f32.mxu1 %vm1230_vm0, %v2698_v2  ;;  %v7976_v37 = vpop.permute.xlu1 %7975 }
 0x791   : > { %v7978_v41 = vunpack.i.h.bf16 %v7976_v37  ;;  %v7977_v55 = vunpack.i.l.bf16 %v7976_v37 }
 0x793   : > { %7171 = vmatmul.mubr.msk.f32.gmra.mrb[78].mxu1 %vm1230_vm0, %v2700_v48  ;;  %v7663_v22 = vpack.c.bf16 %v7978_v41, %v7977_v55  ;;  %v3441_v27 = vpop.permute.xlu0 %3440 }
 0x794   : > { %7281 = vmatprep.mubr.msk.f32.mxu1 %vm1230_vm0, %v3437_v31  ;;  %v3439_v62 = vpop.permute.xlu1 %3438 }
 0x795   : > { %7638 = vmatpush3.bf16.xpose.msk.msra.mxu1 %vm8995_vm1, %v7633_v23 }
 0x796   : > { %7641 = vmatprep.subr.msk.bf16.mxu1 %vm8995_vm1, %v7639_v53 }
 0x797   : > { %v3445_v45 = vpop.permute.xlu0 %3444 }
 0x798   : > { %v3443_v12 = vpop.permute.xlu1 %3442 }
 0x79b   : > { %v3449_v56 = vpop.permute.xlu0 %3448 }
 0x79c   : > { %v3447_v54 = vpop.permute.xlu1 %3446 }
 0x79d   : > { %7644 = vmatpush3.bf16.xpose.msk.msra.mxu1 %vm8995_vm1, %v7639_v53 }
 0x79e   : > { %7647 = vmatprep.subr.msk.bf16.mxu1 %vm8995_vm1, %v7645_v57 }
 0x79f   : > { %v3453_v7 = vpop.permute.xlu0 %3452 }
 0x7a0   : > { %v3451_v14 = vpop.permute.xlu1 %3450 }
 0x7a3   : > { %v3457_v35 = vpop.permute.xlu0 %3456 }
 0x7a4   : > { %v3455_v32 = vpop.permute.xlu1 %3454 }
 0x7a5   : > { %7650 = vmatpush3.bf16.xpose.msk.msra.mxu1 %vm8995_vm1, %v7645_v57 }
 0x7a6   : > { %7653 = vmatprep.subr.msk.bf16.mxu1 %vm8995_vm1, %v7651_v19 }
 0x7a7   : > { %v3461_v5 = vpop.permute.xlu0 %3460 }
 0x7a8   : > { %v3459_v36 = vpop.permute.xlu1 %3458 }
 0x7ab   : > { %v3465_v6 = vpop.permute.xlu0 %3464 }
 0x7ac   : > { %v3463_v52 = vpop.permute.xlu1 %3462 }
 0x7ad   : > { %7656 = vmatpush3.bf16.xpose.msk.msra.mxu1 %vm8995_vm1, %v7651_v19  ;;  %v12119_v19 = vld [vmem:[#allocation12_spill] sm:$0xff] }
 0x7ae   : > { %7659 = vmatprep.subr.msk.bf16.mxu1 %vm8995_vm1, %v7657_v50 }
 0x7b0   : > { %v3467_v18 = vpop.permute.xlu1 %3466 }
 0x7b4   : > { %v7981_v17 = vpop.permute.xlu1 %7980 }
 0x7b5   : > { %7662 = vmatpush3.bf16.xpose.msk.msra.mxu1 %vm8995_vm1, %v7657_v50  ;;  %v7983_v25 = vunpack.i.h.bf16 %v7981_v17  ;;  %v7982_v43 = vunpack.i.l.bf16 %v7981_v17 }
 0x7b6   : > { %7665 = vmatprep.subr.msk.bf16.mxu1 %vm8995_vm1, %v7663_v22 }
 0x7b7   : > { %v7589_v48 = vpack.c.bf16 %v7983_v25, %v7982_v43 }
 0x7b8   : > { %v7986_v57 = vpop.permute.xlu1 %7985 }
 0x7b9   : > { %v7988_v37 = vunpack.i.h.bf16 %v7986_v57  ;;  %v7987_v41 = vunpack.i.l.bf16 %v7986_v57 }
 0x7bd   : > { %7668 = vmatpush3.bf16.xpose.msk.msra.mxu1 %vm8995_vm1, %v7663_v22  ;;  %v7991_v22 = vpop.permute.xlu0 %7990 }
 0x7c1   : > { %v8001_v25 = vpop.permute.xlu0 %8000 }
 0x7c4   : > { %7282 = vmatmul.mubr.msk.f32.vlgmr.msra.gmra.mrb[80].mxu1 %vm1230_vm0, %v3439_v62  ;;  %v12122_v62 = vld [vmem:[#allocation18_spill] sm:$0xff] }
 0x7c5   : > { %7284 = vmatprep.mubr.msk.f32.mxu1 %vm1230_vm0, %v3441_v27 }
 0x7c8   : > { %7285 = vmatmul.mubr.msk.f32.gmra.mrb[82].mxu1 %vm1230_vm0, %v3443_v12 }
 0x7c9   : > { %7287 = vmatprep.mubr.msk.f32.mxu1 %vm1230_vm0, %v3445_v45  ;;  %v7993_v45 = vunpack.i.h.bf16 %v7991_v22 }
 0x7cc   : > { %7288 = vmatmul.mubr.msk.f32.gmra.mrb[84].mxu1 %vm1230_vm0, %v3447_v54  ;;  %v7992_v54 = vunpack.i.l.bf16 %v7991_v22 }
 0x7cd   : > { %7290 = vmatprep.mubr.msk.f32.mxu1 %vm1230_vm0, %v3449_v56  ;;  %v12123_v56 = vld [vmem:[#allocation8_spill] sm:$0xff] }
 0x7d0   : > { %7291 = vmatmul.mubr.msk.f32.gmra.mrb[86].mxu1 %vm1230_vm0, %v3451_v14  ;;  %v12124_v14 = vld [vmem:[#allocation7_spill] sm:$0xff] }
 0x7d1   : > { %7293 = vmatprep.mubr.msk.f32.mxu1 %vm1230_vm0, %v3453_v7  ;;  %v12125_v7 = vpack.c.bf16 %v12123_v56, %v12124_v14  ;;  %v12147_v14 = vld [vmem:[#allocation44_spill] sm:$0xff] }
 0x7d4   : > { %7294 = vmatmul.mubr.msk.f32.gmra.mrb[88].mxu1 %vm1230_vm0, %v3455_v32 }
 0x7d5   : > { %7296 = vmatprep.mubr.msk.f32.mxu1 %vm1230_vm0, %v3457_v35  ;;  %v7593_v35 = vpack.c.bf16 %v7988_v37, %v7987_v41  ;;  %v12143_v41 = vld [vmem:[#allocation32_spill] sm:$0xff] }
 0x7d8   : > { %7297 = vmatmul.mubr.msk.f32.gmra.mrb[90].mxu1 %vm1230_vm0, %v3459_v36  ;;  %v7996_v36 = vpop.permute.xlu1 %7995 }
 0x7d9   : > { %7299 = vmatprep.mubr.msk.f32.mxu1 %vm1230_vm0, %v3461_v5  ;;  %v12126_v5 = vld [vmem:[#allocation21_spill] sm:$0xff]  ;;  %v7998_v17 = vunpack.i.h.bf16 %v7996_v36 }
 0x7dc   : > { %7300 = vmatmul.mubr.msk.f32.gmra.mrb[92].mxu1 %vm1230_vm0, %v3463_v52 }
 0x7dd   : > { %7302 = vmatprep.mubr.msk.f32.mxu1 %vm1230_vm0, %v3465_v6  ;;  %v12127_v6 = vld [vmem:[#allocation35_spill] sm:$0xff] }
 0x7e0   : > { %7303 = vmatmul.mubr.msk.f32.gmra.mrb[94].mxu1 %vm1230_vm0, %v3467_v18  ;;  %v12128_v18 = vld [vmem:[#allocation9_spill] sm:$0xff] }
 0x7e1   : > { %4605 = vmatprep.mubr.bf16.mxu1 %v12116_v51 }
 0x7f1   : > { %v7055_v59 = vpop.f32.mrb[48].mxu1 }
 0x7f2   : > { %v2316_v15 = vpop.f32.mrb[49].mxu1 }
 0x7f3   : > { %v2395_v44 = vpack.c.bf16 %v7055_v59, %v2316_v15  ;;  %v12129_v59 = vpack.c.bf16 %v12127_v6, %v12128_v18 }
 0x7f5   : > { %7081 = vmatprep.mubr.msk.bf16.mxu0 %vm1230_vm0, %v2395_v44  ;;  %v12130_v44 = vld [vmem:[#allocation19_spill] sm:$0xff] }
 0x825   : > { %v7058_v24 = vpop.f32.mrb[50].mxu1 }
 0x826   : > { %v2326_v4 = vpop.f32.mrb[51].mxu1 }
 0x827   : > { %v2396_v2 = vpack.c.bf16 %v7058_v24, %v2326_v4  ;;  %v7997_v4 = vunpack.i.l.bf16 %v7996_v36 }
 0x829   : > { %7082 = vmatmul.mubr.msk.bf16.vlgmr.msra.gmra.mrb[48].mxu0 %vm1230_vm0, %v2396_v2 }
 0x82a   : > { %7098 = vmatpush3.bf16.msra.mxu0 %v8093_v42  ;;  %v12120_v42 = vpack.c.bf16 %v12118_v16, %v12119_v19  ;;  %v12141_v16 = vld [vmem:[#allocation27_spill] sm:$0xff] }
 0x82b   : > { %7099 = vmatprep.subr.bf16.mxu0 %v8094_v46 }
 0x82d   : > { %v7061_v20 = vpop.f32.mrb[52].mxu1 }
 0x82e   : > { %7100 = vmatpush3.bf16.msra.mxu0 %v8094_v46  ;;  %v2336_v8 = vpop.f32.mrb[53].mxu1  ;;  %v7597_v46 = vpack.c.bf16 %v7993_v45, %v7992_v54  ;;  %v12146_v45 = vld [vmem:[#allocation29_spill] sm:$0xff] }
 0x82f   : > { %v2397_v58 = vpack.c.bf16 %v7061_v20, %v2336_v8  ;;  %7590 = vmatprep.subr.bf16.mxu0 %v7589_v48  ;;  %v12131_v20 = vld [vmem:[#allocation22_spill] sm:$0xff]  ;;  %v12132_v8 = vld [vmem:[#allocation20_spill] sm:$0xff] }
 0x831   : > { %v7064_v38 = vpop.f32.mrb[54].mxu1  ;;  %7085 = vmatprep.mubr.msk.bf16.mxu0 %vm1230_vm0, %v2397_v58 }
 0x832   : > { %v2346_v21 = vpop.f32.mrb[55].mxu1 }
 0x833   : > { %v2398_v29 = vpack.c.bf16 %v7064_v38, %v2346_v21  ;;  %v8003_v38 = vunpack.i.h.bf16 %v8001_v25  ;;  %v8002_v21 = vunpack.i.l.bf16 %v8001_v25 }
 0x835   : > { %v7067_v40 = vpop.f32.mrb[56].mxu1  ;;  %7086 = vmatmul.mubr.msk.bf16.gmra.mrb[52].mxu0 %vm1230_vm0, %v2398_v29  ;;  %v12133_v29 = vld [vmem:[#allocation34_spill] sm:$0xff]  ;;  %v7605_v57 = vpack.c.bf16 %v8003_v38, %v8002_v21  ;;  %v12157_v21 = vld [vmem:[#allocation43_spill] sm:$0xff] }
 0x836   : > { %v2356_v10 = vpop.f32.mrb[57].mxu1 }
 0x837   : > { %v2399_v34 = vpack.c.bf16 %v7067_v40, %v2356_v10  ;;  %v12134_v40 = vld [vmem:[#allocation33_spill] sm:$0xff] }
 0x838   : > { %v12135_v10 = vpack.c.bf16 %v12133_v29, %v12134_v40  ;;  %v12158_v29 = vld [vmem:[#allocation42_spill] sm:$0xff] }
 0x839   : > { %v7070_v49 = vpop.f32.mrb[58].mxu1  ;;  %7089 = vmatprep.mubr.msk.bf16.mxu0 %vm1230_vm0, %v2399_v34 }
 0x83a   : > { %v2366_v23 = vpop.f32.mrb[59].mxu1 }
 0x83b   : > { %v2400_v26 = vpack.c.bf16 %v7070_v49, %v2366_v23  ;;  %v7601_v49 = vpack.c.bf16 %v7998_v17, %v7997_v4  ;;  %v12152_v17 = vld [vmem:[#allocation28_spill] sm:$0xff] }
 0x83d   : > { %v7073_v63 = vpop.f32.mrb[60].mxu1  ;;  %7090 = vmatmul.mubr.msk.bf16.gmra.mrb[56].mxu0 %vm1230_vm0, %v2400_v26  ;;  %v12136_v26 = vld [vmem:[#allocation15_spill] sm:$0xff] }
 0x83e   : > { %v2376_v47 = vpop.f32.mrb[61].mxu1 }
 0x83f   : > { %v2401_v13 = vpack.c.bf16 %v7073_v63, %v2376_v47  ;;  %v12137_v63 = vld [vmem:[#allocation5_spill] sm:$0xff] }
 0x840   : > { %v12138_v47 = vpack.c.bf16 %v12136_v26, %v12137_v63 }
 0x841   : > { %7093 = vmatprep.mubr.msk.bf16.mxu0 %vm1230_vm0, %v2401_v13  ;;  %v12139_v13 = vld [vmem:[#allocation24_spill] sm:$0xff] }
 0x846   : > { %v7076_v31 = vpop.f32.mrb[62].mxu1 }
 0x847   : > { %v2386_v53 = vpop.f32.mrb[63].mxu1 }
 0x848   : > { %v2402_v61 = vpack.c.bf16 %v7076_v31, %v2386_v53  ;;  %v12140_v53 = vld [vmem:[#allocation23_spill] sm:$0xff] }
 0x84a   : > { %7094 = vmatmul.mubr.msk.bf16.gmra.mrb[60].mxu0 %vm1230_vm0, %v2402_v61  ;;  %v7151_v0 = vpop.f32.mrb[64].mxu1 }
 0x84b   : > { %v9989_v60 = vadd.f32 %v7151_v0, %v12117_v9  ;;  %7101 = vmatprep.mubr.msk.bf16.mxu0 %vm1230_vm0, %v12120_v42  ;;  %v2863_v1 = vpop.f32.mrb[65].mxu1 }
 0x84c   : > { %v9996_v50 = vadd.f32 %v2863_v1, %v12121_v30  ;;  %v12142_v1 = vld [vmem:[#allocation25_spill] sm:$0xff] }
 0x84d   : > { %2944 = vmax.xlane.f32.xlu1 %v9989_v60 }
 0x84e   : > { %v7154_v55 = vpop.f32.mrb[66].mxu1  ;;  %2942 = vmax.xlane.f32.xlu0 %v9996_v50 }
 0x84f   : > { %v10001_v27 = vadd.f32 %v7154_v55, %v12122_v62  ;;  %v2873_v12 = vpop.f32.mrb[67].mxu1  ;;  %v12144_v55 = vld [vmem:[#allocation36_spill] sm:$0xff] }
 0x850   : > { %v10016_v24 = vadd.f32 %v2873_v12, %v12130_v44  ;;  %v12145_v22 = vpack.c.bf16 %v12143_v41, %v12144_v55 }
 0x852   : > { %7102 = vmatmul.mubr.msk.bf16.vlgmr.msra.gmra.mrb[48].mxu0 %vm1230_vm0, %v12125_v7  ;;  %v7157_v32 = vpop.f32.mrb[68].mxu1  ;;  %2948 = vmax.xlane.f32.xlu0 %v10001_v27  ;;  %v12148_v7 = vld [vmem:[#allocation45_spill] sm:$0xff] }
 0x853   : > { %v10009_v52 = vadd.f32 %v7157_v32, %v12126_v5  ;;  %7592 = vmatpush3.bf16.msra.mxu0 %v7589_v48  ;;  %7105 = vmatprep.mubr.msk.bf16.mxu0 %vm1230_vm0, %v12129_v59  ;;  %v2883_v15 = vpop.f32.mrb[69].mxu1  ;;  %v12149_v32 = vpack.c.bf16 %v12147_v14, %v12148_v7  ;;  %v12151_v59 = vld [vmem:[#allocation30_spill] sm:$0xff] }
 0x854   : > { %7594 = vmatprep.subr.bf16.mxu0 %v7593_v35  ;;  %v10024_v58 = vadd.f32 %v2883_v15, %v12132_v8 }
 0x855   : > { %2952 = vmax.xlane.f32.xlu1 %v10009_v52 }
 0x856   : > { %v7160_v2 = vpop.f32.mrb[70].mxu1  ;;  %2946 = vmax.xlane.f32.xlu0 %v10016_v24 }
 0x857   : > { %7596 = vmatpush3.bf16.msra.mxu0 %v7593_v35  ;;  %v2893_v43 = vpop.f32.mrb[71].mxu1  ;;  %v10040_v61 = vadd.f32 %v7160_v2, %v12140_v53  ;;  %v12150_v35 = vld [vmem:[#allocation26_spill] sm:$0xff] }
 0x858   : > { %v10021_v48 = vadd.f32 %v2893_v43, %v12131_v20  ;;  %7598 = vmatprep.subr.bf16.mxu0 %v7597_v46  ;;  %v12153_v2 = vld [vmem:[#allocation46_spill] sm:$0xff]  ;;  %v12156_v43 = vld [vmem:[#allocation31_spill] sm:$0xff] }
 0x85a   : > { %7106 = vmatmul.mubr.msk.bf16.gmra.mrb[52].mxu0 %vm1230_vm0, %v12135_v10  ;;  %v7163_v34 = vpop.f32.mrb[72].mxu1  ;;  %2954 = vmax.xlane.f32.xlu1 %v10021_v48 }
 0x85b   : > { %7600 = vmatpush3.bf16.msra.mxu0 %v7597_v46  ;;  %2950 = vmax.xlane.f32.xlu0 %v10024_v58  ;;  %v2903_v23 = vpop.f32.mrb[73].mxu1  ;;  %v10048_v37 = vadd.f32 %v7163_v34, %v12142_v1  ;;  %v12154_v46 = vld [vmem:[#allocation47_spill] sm:$0xff] }
 0x85c   : > { %7109 = vmatprep.mubr.msk.bf16.mxu0 %vm1230_vm0, %v12138_v47  ;;  %v10037_v31 = vadd.f32 %v2903_v23, %v12139_v13  ;;  %7602 = vmatprep.subr.bf16.mxu0 %v7601_v49  ;;  %v12155_v25 = vpack.c.bf16 %v12153_v2, %v12154_v46 }
 0x85e   : > { %v7166_v0 = vpop.f32.mrb[74].mxu1  ;;  %2958 = vmax.xlane.f32.xlu1 %v10037_v31 }
 0x85f   : > { %v10044_v19 = vadd.f32 %v7166_v0, %v12141_v16  ;;  %7604 = vmatpush3.bf16.msra.mxu0 %v7601_v49  ;;  %2956 = vmax.xlane.f32.xlu0 %v10040_v61  ;;  %v2913_v42 = vpop.f32.mrb[75].mxu1 }
 0x860   : > { %7606 = vmatprep.subr.bf16.mxu0 %v7605_v57  ;;  %v10064_v36 = vadd.f32 %v2913_v42, %v12150_v35 }
 0x862   : > { %7110 = vmatmul.mubr.msk.bf16.gmra.mrb[56].mxu0 %vm1230_vm0, %v12145_v22  ;;  %v7169_v12 = vpop.f32.mrb[76].mxu1  ;;  %2964 = vmax.xlane.f32.xlu1 %v10044_v19 }
 0x863   : > { %v10056_v54 = vadd.f32 %v7169_v12, %v12146_v45  ;;  %7608 = vmatpush3.bf16.msra.mxu0 %v7605_v57  ;;  %2960 = vmax.xlane.f32.xlu0 %v10048_v37  ;;  %v2923_v56 = vpop.f32.mrb[77].mxu1 }
 0x864   : > { %7113 = vmatprep.mubr.msk.bf16.mxu0 %vm1230_vm0, %v12149_v32  ;;  %v10072_v4 = vadd.f32 %v2923_v56, %v12152_v17 }
 0x866   : > { %v7172_v6 = vpop.f32.mrb[78].mxu1  ;;  %2968 = vmax.xlane.f32.xlu1 %v10056_v54 }
 0x867   : > { %2962 = vmax.xlane.f32.xlu0 %v10064_v36  ;;  %v2933_v18 = vpop.f32.mrb[79].mxu1  ;;  %v10081_v38 = vadd.f32 %v7172_v6, %v12156_v43 }
 0x868   : > { %v10069_v15 = vadd.f32 %v2933_v18, %v12151_v59 }
 0x86a   : > { %7114 = vmatmul.mubr.msk.bf16.gmra.mrb[60].mxu0 %vm1230_vm0, %v12155_v25  ;;  %2970 = vmax.xlane.f32.xlu1 %v10069_v15 }
 0x86b   : > { %2966 = vmax.xlane.f32.xlu0 %v10072_v4 }
 0x86f   : > { %2972 = vmax.xlane.f32.xlu0 %v10081_v38 }
 0x87b   : > { %8010 = vrot.lane.b32.xlu1 %v12157_v21, %s8661_s12 }
 0x885   : > { %8005 = vrot.lane.b32.xlu0 %v12158_v29, %s8661_s12 }
 0x897   : > { %v10088_v40 = vpop.f32.mrb[80].mxu1 }
 0x898   : > { %v10090_v10 = vpop.f32.mrb[81].mxu1 }
 0x89b   : > { %v10092_v34 = vpop.f32.mrb[82].mxu1 }
 0x89c   : > { %v10094_v49 = vpop.f32.mrb[83].mxu1 }
 0x89f   : > { %v10096_v23 = vpop.f32.mrb[84].mxu1 }
 0x8a0   : > { %v10098_v26 = vpop.f32.mrb[85].mxu1 }
 0x8a3   : > { %v10100_v63 = vpop.f32.mrb[86].mxu1 }
 0x8a4   : > { %v10102_v47 = vpop.f32.mrb[87].mxu1 }
 0x8a7   : > { %v10104_v0 = vpop.f32.mrb[88].mxu1 }
 0x8a8   : > { %v10106_v57 = vpop.f32.mrb[89].mxu1 }
 0x8ab   : > { %v10108_v42 = vpop.f32.mrb[90].mxu1 }
 0x8ac   : > { %v10110_v41 = vpop.f32.mrb[91].mxu1 }
 0x8af   : > { %v10112_v55 = vpop.f32.mrb[92].mxu1 }
 0x8b0   : > { %v10114_v22 = vpop.f32.mrb[93].mxu1 }
 0x8b3   : > { %v10116_v12 = vpop.f32.mrb[94].mxu1 }
 0x8b4   : > { %v10118_v56 = vpop.f32.mrb[95].mxu1 }
 0x8da   : > { %v2945_v14 = vpop.xlane.xlu1 %2944 }
 0x8db   : > { %v2975_v7 = vsub.f32 %v9989_v60, %v2945_v14  ;;  %v2943_v32 = vpop.xlane.xlu0 %2942 }
 0x8dc   : > { %v2974_v6 = vsub.f32 %v9996_v50, %v2943_v32 }
 0x8dd   : > { %v2992_v18 = vmul.f32 1.442695, %v2975_v7 }
 0x8de   : > { %v2990_v2 = vmul.f32 1.442695, %v2974_v6 }
 0x8df   : > { %8267 = vpow2.f32 %v2992_v18  ;;  %v2949_v46 = vpop.xlane.xlu0 %2948 }
 0x8e0   : > { %8269 = vpow2.f32 %v2990_v2  ;;  %v2977_v25 = vsub.f32 %v10001_v27, %v2949_v46 }
 0x8e2   : > { %v2996_v51 = vmul.f32 1.442695, %v2977_v25  ;;  %v2953_v21 = vpop.xlane.xlu1 %2952 }
 0x8e3   : > { %v2947_v29 = vpop.xlane.xlu0 %2946  ;;  %v2979_v39 = vsub.f32 %v10009_v52, %v2953_v21 }
 0x8e4   : > { %8271 = vpow2.f32 %v2996_v51  ;;  %v2976_v33 = vsub.f32 %v10016_v24, %v2947_v29 }
 0x8e5   : > { %v3000_v14 = vmul.f32 1.442695, %v2979_v39 }
 0x8e6   : > { %v2994_v11 = vmul.f32 1.442695, %v2976_v33 }
 0x8e7   : > { %v2955_v60 = vpop.xlane.xlu1 %2954 }
 0x8e8   : > { %8273 = vpow2.f32 %v2994_v11  ;;  %v2951_v50 = vpop.xlane.xlu0 %2950  ;;  %v2980_v33 = vsub.f32 %v10021_v48, %v2955_v60 }
 0x8e9   : > { %v10125_v7 = vpop.eup %8267  ;;  %v2978_v32 = vsub.f32 %v10024_v58, %v2951_v50  ;;  %8275 = vpow2.f32 %v3000_v14 }
 0x8ea   : > { %v10128_v6 = vpop.eup %8269  ;;  %3024 = vadd.xlane.f32.xlu1 %v10125_v7  ;;  %v3002_v21 = vmul.f32 1.442695, %v2980_v33 }
 0x8eb   : > { %v2998_v27 = vmul.f32 1.442695, %v2978_v32  ;;  %v2959_v18 = vpop.xlane.xlu1 %2958  ;;  %3022 = vadd.xlane.f32.xlu0 %v10128_v6 }
 0x8ec   : > { %v2957_v51 = vpop.xlane.xlu0 %2956  ;;  %v2982_v29 = vsub.f32 %v10037_v31, %v2959_v18 }
 0x8ed   : > { %8277 = vpow2.f32 %v2998_v27  ;;  %v2981_v11 = vsub.f32 %v10040_v61, %v2957_v51 }
 0x8ee   : > { %v10134_v39 = vpop.eup %8271  ;;  %v3006_v61 = vmul.f32 1.442695, %v2982_v29 }
 0x8ef   : > { %v3004_v52 = vmul.f32 1.442695, %v2981_v11  ;;  %v10136_v24 = vpop.xlane.xlu1 %2964  ;;  %3028 = vadd.xlane.f32.xlu1 %v10134_v39 }
 0x8f0   : > { %v10139_v58 = vpop.xlane.xlu0 %2960 }
 0x8f1   : > { %8279 = vpow2.f32 %v3004_v52 }
 0x8f2   : > { %v10142_v2 = vpop.eup %8273  ;;  %8281 = vpow2.f32 %v3002_v21 }
 0x8f3   : > { %v10144_v46 = vpop.xlane.xlu1 %2968  ;;  %3026 = vadd.xlane.f32.xlu1 %v10142_v2  ;;  %v10148_v60 = vpop.eup %8275  ;;  %8283 = vpow2.f32 %v3006_v61 }
 0x8f4   : > { %v2963_v48 = vpop.xlane.xlu0 %2962 }
 0x8f5   : > { %v2984_v25 = vsub.f32 %v10064_v36, %v2963_v48 }
 0x8f7   : > { %v10150_v14 = vpop.eup %8277  ;;  %v2971_v50 = vpop.xlane.xlu1 %2970  ;;  %3032 = vadd.xlane.f32.xlu1 %v10148_v60  ;;  %v3010_v32 = vmul.f32 1.442695, %v2984_v25 }
 0x8f8   : > { %3030 = vadd.xlane.f32.xlu0 %v10150_v14  ;;  %v2967_v31 = vpop.xlane.xlu0 %2966  ;;  %v2988_v51 = vsub.f32 %v10069_v15, %v2971_v50 }
 0x8f9   : > { %v2986_v27 = vsub.f32 %v10072_v4, %v2967_v31  ;;  %8285 = vpow2.f32 %v3010_v32 }
 0x8fa   : > { %v3018_v21 = vmul.f32 1.442695, %v2988_v51 }
 0x8fb   : > { %v10155_v18 = vpop.eup %8279  ;;  %v3014_v33 = vmul.f32 1.442695, %v2986_v27  ;;  %v8011_v11 = vpop.permute.xlu1 %8010 }
 0x8fc   : > { %3036 = vadd.xlane.f32.xlu1 %v10155_v18  ;;  %v2973_v36 = vpop.xlane.xlu0 %2972  ;;  %v10159_v52 = vpop.eup %8281  ;;  %v8013_v29 = vunpack.i.h.bf16 %v8011_v11  ;;  %v8012_v48 = vunpack.i.l.bf16 %v8011_v11 }
 0x8fd   : > { %8287 = vpow2.f32 %v3014_v33  ;;  %v2989_v4 = vsub.f32 %v10081_v38, %v2973_v36  ;;  %v10163_v15 = vpop.eup %8283  ;;  %v12159_v36 = vld [vmem:[#allocation6_spill] sm:$0xff] }
 0x8fe   : > { %8289 = vpow2.f32 %v3018_v21  ;;  %v7613_v27 = vpack.c.bf16 %v8013_v29, %v8012_v48  ;;  %v10182_v21 = vadd.f32 %v10090_v10, %v12121_v30  ;;  %v10187_v29 = vadd.f32 %v10088_v40, %v12117_v9 }
 0x8ff   : > { %v3020_v32 = vmul.f32 1.442695, %v2989_v4  ;;  %v2983_v48 = vsub.f32 %v10048_v37, %v10139_v58  ;;  %v2985_v4 = vsub.f32 %v10044_v19, %v10136_v24  ;;  %v10201_v10 = vadd.f32 %v10092_v34, %v12122_v62  ;;  %v8095_v24 = vld [vmem:[%s8733_s15 + $0x20] sm:$0xff]  }
 0x900   : > { %3034 = vadd.xlane.f32.xlu1 %v10159_v52  ;;  %v8006_v61 = vpop.permute.xlu0 %8005  ;;  %v2987_v37 = vsub.f32 %v10056_v54, %v10144_v46  ;;  %v10213_v40 = vadd.f32 %v10096_v23, %v12126_v5  ;;  %v10221_v54 = vadd.f32 %v10100_v63, %v12140_v53  ;;  %v10229_v5 = vadd.f32 %v10104_v0, %v12142_v1 }
 0x901   : > { %v8008_v25 = vunpack.i.h.bf16 %v8006_v61  ;;  %v8007_v31 = vunpack.i.l.bf16 %v8006_v61  ;;  %8291 = vpow2.f32 %v3020_v32  ;;  %v10194_v61 = vadd.f32 %v10094_v49, %v12130_v44 }
 0x902   : > { %v3008_v30 = vmul.f32 1.442695, %v2983_v48  ;;  %v3012_v9 = vmul.f32 1.442695, %v2985_v4  ;;  %v10208_v44 = vadd.f32 %v10098_v26, %v12132_v8  ;;  %v3016_v19 = vmul.f32 1.442695, %v2987_v37 }
 0x903   : > { %v7609_v50 = vpack.c.bf16 %v8008_v25, %v8007_v31  ;;  %v10166_v51 = vpop.eup %8285  ;;  %v10237_v53 = vadd.f32 %v10108_v42, %v12141_v16  ;;  %v10241_v49 = vadd.f32 %v10102_v47, %v12131_v20  ;;  %v10247_v1 = vadd.f32 %v10112_v55, %v12146_v45  ;;  %v8096_v31 = vld [vmem:[%s8733_s15 + $0x28] sm:$0xff]  }
 0x904   : > { %3038 = vadd.xlane.f32.xlu1 %v10163_v15  ;;  %8293 = vpow2.f32 %v3008_v30  ;;  %v10251_v23 = vadd.f32 %v10106_v57, %v12139_v13  ;;  %v10257_v20 = vadd.f32 %v10116_v12, %v12156_v43  ;;  %v10261_v16 = vadd.f32 %v10110_v41, %v12150_v35  ;;  %v12160_v35 = vld [vmem:[#allocation37_spill] sm:$0xff] }
 0x905   : > { %7610 = vmatprep.subr.bf16.mxu0 %v7609_v50  ;;  %8295 = vpow2.f32 %v3012_v9  ;;  %v10267_v13 = vadd.f32 %v10114_v22, %v12152_v17  ;;  %v10272_v45 = vadd.f32 %v10118_v56, %v12151_v59  ;;  %v12161_v17 = vld [vmem:[#allocation40_spill] sm:$0xff]  ;;  %v12162_v43 = vld [vmem:[#allocation41_spill] sm:$0xff]  ;;  %v12163_v59 = vld [vmem:[#allocation42_spill] sm:$0xff] }
 0x906   : > { %7612 = vmatpush3.bf16.msra.mxu0 %v7609_v50  ;;  %8297 = vpow2.f32 %v3016_v19 }
 0x907   : > { %7614 = vmatprep.subr.bf16.mxu0 %v7613_v27  ;;  %v10169_v38 = vpop.eup %8287 }
 0x908   : > { %3042 = vadd.xlane.f32.xlu1 %v10166_v51  ;;  %v10174_v33 = vpop.eup %8289 }
 0x90a   : > { %7616 = vmatpush3.bf16.msra.mxu0 %v7613_v27 }
 0x90b   : > { %v10177_v11 = vpop.eup %8291 }
 0x90c   : > { %3046 = vadd.xlane.f32.xlu1 %v10169_v38 }
 0x90e   : > { %8015 = vrot.lane.b32.xlu0 %v12159_v36, %s8661_s12  ;;  %v10215_v62 = vpop.eup %8293 }
 0x90f   : > { %v10223_v8 = vpop.eup %8295 }
 0x910   : > { %3050 = vadd.xlane.f32.xlu1 %v10174_v33  ;;  %v10231_v34 = vpop.eup %8297 }
 0x914   : > { %3052 = vadd.xlane.f32.xlu1 %v10177_v11 }
 0x918   : > { %3709 = vmax.xlane.f32.xlu1 %v10182_v21 }
 0x91c   : > { %3711 = vmax.xlane.f32.xlu1 %v10187_v29 }
 0x920   : > { %3713 = vmax.xlane.f32.xlu1 %v10194_v61 }
 0x924   : > { %3715 = vmax.xlane.f32.xlu1 %v10201_v10 }
 0x928   : > { %3717 = vmax.xlane.f32.xlu1 %v10208_v44 }
 0x92c   : > { %3719 = vmax.xlane.f32.xlu1 %v10213_v40 }
 0x92d   : > { %3040 = vadd.xlane.f32.xlu0 %v10215_v62 }
 0x930   : > { %3723 = vmax.xlane.f32.xlu1 %v10221_v54 }
 0x931   : > { %3044 = vadd.xlane.f32.xlu0 %v10223_v8 }
 0x934   : > { %3727 = vmax.xlane.f32.xlu1 %v10229_v5 }
 0x935   : > { %3048 = vadd.xlane.f32.xlu0 %v10231_v34 }
 0x938   : > { %3731 = vmax.xlane.f32.xlu1 %v10237_v53 }
 0x939   : > { %3721 = vmax.xlane.f32.xlu0 %v10241_v49 }
 0x93c   : > { %3735 = vmax.xlane.f32.xlu1 %v10247_v1 }
 0x93d   : > { %3725 = vmax.xlane.f32.xlu0 %v10251_v23 }
 0x940   : > { %3739 = vmax.xlane.f32.xlu1 %v10257_v20 }
 0x941   : > { %3729 = vmax.xlane.f32.xlu0 %v10261_v16 }
 0x945   : > { %3733 = vmax.xlane.f32.xlu0 %v10267_v13 }
 0x949   : > { %3737 = vmax.xlane.f32.xlu0 %v10272_v45 }
 0x951   : > { %8025 = vrot.lane.b32.xlu1 %v12114_v3, %s8662_s11 }
 0x955   : > { %8035 = vrot.lane.b32.xlu1 %v12115_v28, %s8662_s11 }
 0x95f   : > { %8020 = vrot.lane.b32.xlu0 %v12160_v35, %s8662_s11 }
 0x963   : > { %8030 = vrot.lane.b32.xlu0 %v12161_v17, %s8662_s11 }
 0x967   : > { %8040 = vrot.lane.b32.xlu0 %v12162_v43, %s8662_s11 }
 0x96b   : > { %8045 = vrot.lane.b32.xlu0 %v12163_v59, %s8662_s11 }
 0x977   : > { %v3025_v26 = vpop.xlane.xlu1 %3024 }
 0x978   : > { %v3023_v63 = vpop.xlane.xlu0 %3022 }
 0x979   : > { %8299 = vrcp.f32 %v3023_v63 }
 0x97a   : > { %8301 = vrcp.f32 %v3025_v26 }
 0x97c   : > { %v3029_v47 = vpop.xlane.xlu1 %3028 }
 0x980   : > { %v3027_v3 = vpop.xlane.xlu1 %3026 }
 0x981   : > { %8303 = vrcp.f32 %v3027_v3 }
 0x982   : > { %8305 = vrcp.f32 %v3029_v47 }
 0x983   : > { %v8300_v0 = vpop.eup %8299 }
 0x984   : > { %v3033_v28 = vpop.xlane.xlu1 %3032  ;;  %v3070_v57 = vmul.f32 %v8300_v0, %v10128_v6  ;;  %v8302_v58 = vpop.eup %8301 }
 0x985   : > { %v3031_v42 = vpop.xlane.xlu0 %3030  ;;  %v3071_v6 = vmul.f32 %v8302_v58, %v10125_v7 }
 0x986   : > { %7205 = vmatprep.mubr.f32.mxu0 %v3070_v57  ;;  %8307 = vrcp.f32 %v3031_v42 }
 0x987   : > { %8309 = vrcp.f32 %v3033_v28 }
 0x989   : > { %v3037_v41 = vpop.xlane.xlu1 %3036  ;;  %v8016_v55 = vpop.permute.xlu0 %8015 }
 0x98a   : > { %v8018_v22 = vunpack.i.h.bf16 %v8016_v55  ;;  %v8017_v12 = vunpack.i.l.bf16 %v8016_v55 }
 0x98b   : > { %v8304_v25 = vpop.eup %8303 }
 0x98c   : > { %v7617_v56 = vpack.c.bf16 %v8018_v22, %v8017_v12  ;;  %v8306_v50 = vpop.eup %8305  ;;  %v3072_v27 = vmul.f32 %v8304_v25, %v10142_v2 }
 0x98d   : > { %v3035_v46 = vpop.xlane.xlu1 %3034  ;;  %v3073_v4 = vmul.f32 %v8306_v50, %v10134_v39 }
 0x98e   : > { %8311 = vrcp.f32 %v3035_v46  ;;  %7618 = vmatprep.subr.bf16.mxu0 %v7617_v56 }
 0x98f   : > { %8313 = vrcp.f32 %v3037_v41  ;;  %7620 = vmatpush3.bf16.msra.mxu0 %v7617_v56 }
 0x990   : > { %7229 = vmatprep.subr.bf16.mxu0 %v8095_v24  ;;  %v8308_v48 = vpop.eup %8307 }
 0x991   : > { %v3039_v32 = vpop.xlane.xlu1 %3038  ;;  %v8310_v30 = vpop.eup %8309  ;;  %v3074_v37 = vmul.f32 %v8308_v48, %v10150_v14 }
 0x992   : > { %8315 = vrcp.f32 %v3039_v32  ;;  %7206 = vmatmul.mubr.f32.vlgmr.msra.gmra.mrb[64].mxu0 %v3071_v6  ;;  %v3075_v19 = vmul.f32 %v8310_v30, %v10148_v60 }
 0x993   : > { %7208 = vmatprep.mubr.f32.mxu0 %v3072_v27  ;;  %7230 = vmatpush3.bf16.msra.mxu0 %v8095_v24 }
 0x994   : > { %7231 = vmatprep.subr.bf16.mxu0 %v8096_v31 }
 0x995   : > { %v3043_v9 = vpop.xlane.xlu1 %3042 }
 0x996   : > { %7209 = vmatmul.mubr.f32.gmra.mrb[66].mxu0 %v3073_v4 }
 0x997   : > { %7211 = vmatprep.mubr.f32.mxu0 %v3074_v37  ;;  %7232 = vmatpush3.bf16.msra.mxu0 %v8096_v31 }
 0x998   : > { %v8312_v7 = vpop.eup %8311 }
 0x999   : > { %v8314_v35 = vpop.eup %8313  ;;  %v3047_v2 = vpop.xlane.xlu1 %3046  ;;  %v3076_v17 = vmul.f32 %v8312_v7, %v10159_v52 }
 0x99a   : > { %7212 = vmatmul.mubr.f32.gmra.mrb[68].mxu0 %v3075_v19  ;;  %v3077_v39 = vmul.f32 %v8314_v35, %v10155_v18 }
 0x99b   : > { %7214 = vmatprep.mubr.f32.mxu0 %v3076_v17 }
 0x99c   : > { %v8316_v43 = vpop.eup %8315 }
 0x99d   : > { %v3051_v59 = vpop.xlane.xlu1 %3050  ;;  %v3078_v26 = vmul.f32 %v8316_v43, %v10163_v15 }
 0x99e   : > { %7215 = vmatmul.mubr.f32.gmra.mrb[70].mxu0 %v3077_v39 }
 0x99f   : > { %7217 = vmatprep.mubr.f32.mxu0 %v3078_v26 }
 0x9a1   : > { %v3053_v14 = vpop.xlane.xlu1 %3052 }
 0x9a5   : > { %v3710_v63 = vpop.xlane.xlu1 %3709 }
 0x9a6   : > { %v3741_v47 = vsub.f32 %v10182_v21, %v3710_v63 }
 0x9a8   : > { %v3757_v3 = vmul.f32 1.442695, %v3741_v47 }
 0x9a9   : > { %v3712_v60 = vpop.xlane.xlu1 %3711 }
 0x9aa   : > { %8317 = vpow2.f32 %v3757_v3  ;;  %v3742_v0 = vsub.f32 %v10187_v29, %v3712_v60 }
 0x9ac   : > { %v3759_v52 = vmul.f32 1.442695, %v3742_v0 }
 0x9ad   : > { %v3714_v28 = vpop.xlane.xlu1 %3713 }
 0x9ae   : > { %8319 = vpow2.f32 %v3759_v52  ;;  %v3743_v18 = vsub.f32 %v10194_v61, %v3714_v28 }
 0x9b0   : > { %v3761_v21 = vmul.f32 1.442695, %v3743_v18 }
 0x9b1   : > { %v3716_v57 = vpop.xlane.xlu1 %3715 }
 0x9b2   : > { %v3744_v42 = vsub.f32 %v10201_v10, %v3716_v57 }
 0x9b4   : > { %v10302_v15 = vpop.eup %8317  ;;  %v3763_v41 = vmul.f32 1.442695, %v3744_v42 }
 0x9b5   : > { %3789 = vadd.xlane.f32.xlu1 %v10302_v15  ;;  %v3718_v55 = vpop.xlane.xlu1 %3717 }
 0x9b6   : > { %8321 = vpow2.f32 %v3763_v41  ;;  %v3745_v22 = vsub.f32 %v10208_v44, %v3718_v55 }
 0x9b7   : > { %8323 = vrcp.f32 %v3043_v9 }
 0x9b8   : > { %v10306_v12 = vpop.eup %8319  ;;  %v3765_v29 = vmul.f32 1.442695, %v3745_v22  ;;  %8325 = vpow2.f32 %v3761_v21 }
 0x9b9   : > { %3791 = vadd.xlane.f32.xlu0 %v10306_v12  ;;  %v3720_v56 = vpop.xlane.xlu1 %3719 }
 0x9ba   : > { %v3746_v61 = vsub.f32 %v10213_v40, %v3720_v56  ;;  %v3041_v10 = vpop.xlane.xlu0 %3040 }
 0x9bb   : > { %8327 = vrcp.f32 %v3041_v10 }
 0x9bc   : > { %8329 = vrcp.f32 %v3047_v2  ;;  %v3767_v24 = vmul.f32 1.442695, %v3746_v61 }
 0x9bd   : > { %8331 = vpow2.f32 %v3765_v29  ;;  %v3724_v58 = vpop.xlane.xlu1 %3723 }
 0x9be   : > { %8333 = vpow2.f32 %v3767_v24  ;;  %v3748_v46 = vsub.f32 %v10221_v54, %v3724_v58  ;;  %v3045_v44 = vpop.xlane.xlu0 %3044 }
 0x9bf   : > { %8335 = vrcp.f32 %v3045_v44 }
 0x9c0   : > { %v10311_v25 = vpop.eup %8321  ;;  %v3771_v6 = vmul.f32 1.442695, %v3748_v46  ;;  %8337 = vrcp.f32 %v3051_v59 }
 0x9c1   : > { %3795 = vadd.xlane.f32.xlu1 %v10311_v25  ;;  %v8324_v40 = vpop.eup %8323 }
 0x9c2   : > { %8339 = vpow2.f32 %v3771_v6  ;;  %v3049_v31 = vpop.xlane.xlu0 %3048  ;;  %v10314_v50 = vpop.eup %8325  ;;  %v3080_v37 = vmul.f32 %v8324_v40, %v10166_v51 }
 0x9c3   : > { %8341 = vrcp.f32 %v3049_v31 }
 0x9c4   : > { %8343 = vrcp.f32 %v3053_v14 }
 0x9c5   : > { %v8328_v32 = vpop.eup %8327  ;;  %3793 = vadd.xlane.f32.xlu1 %v10314_v50 }
 0x9c6   : > { %v8330_v27 = vpop.eup %8329  ;;  %v3722_v54 = vpop.xlane.xlu0 %3721  ;;  %v3079_v48 = vmul.f32 %v8328_v32, %v10215_v62 }
 0x9c7   : > { %v10318_v4 = vpop.eup %8331  ;;  %v3747_v30 = vsub.f32 %v10241_v49, %v3722_v54  ;;  %v3082_v17 = vmul.f32 %v8330_v27, %v10169_v38 }
 0x9c8   : > { %v10321_v9 = vpop.eup %8333  ;;  %7218 = vmatmul.mubr.f32.gmra.mrb[72].mxu0 %v3079_v48 }
 0x9c9   : > { %v8336_v7 = vpop.eup %8335  ;;  %v3769_v19 = vmul.f32 1.442695, %v3747_v30  ;;  %3797 = vadd.xlane.f32.xlu1 %v10318_v4  ;;  %3799 = vadd.xlane.f32.xlu0 %v10321_v9 }
 0x9ca   : > { %7220 = vmatprep.mubr.f32.mxu0 %v3080_v37  ;;  %v3726_v35 = vpop.xlane.xlu0 %3725  ;;  %v3081_v2 = vmul.f32 %v8336_v7, %v10223_v8  ;;  %v8338_v62 = vpop.eup %8337 }
 0x9cb   : > { %8345 = vpow2.f32 %v3769_v19  ;;  %v3084_v26 = vmul.f32 %v8338_v62, %v10174_v33  ;;  %v3728_v33 = vpop.xlane.xlu1 %3727 }
 0x9cc   : > { %v10328_v49 = vpop.eup %8339  ;;  %7221 = vmatmul.mubr.f32.gmra.mrb[74].mxu0 %v3081_v2  ;;  %v3750_v22 = vsub.f32 %v10229_v5, %v3728_v33 }
 0x9cd   : > { %v8342_v43 = vpop.eup %8341  ;;  %3803 = vadd.xlane.f32.xlu1 %v10328_v49  ;;  %7223 = vmatprep.mubr.f32.mxu0 %v3082_v17 }
 0x9ce   : > { %v3730_v51 = vpop.xlane.xlu0 %3729  ;;  %v3083_v39 = vmul.f32 %v8342_v43, %v10231_v34  ;;  %v8344_v59 = vpop.eup %8343  ;;  %v12164_v34 = vld [vmem:[#allocation43_spill] sm:$0xff] }
 0x9cf   : > { %v3085_v14 = vmul.f32 %v8344_v59, %v10177_v11  ;;  %v3749_v11 = vsub.f32 %v10251_v23, %v3726_v35  ;;  %v3751_v28 = vsub.f32 %v10261_v16, %v3730_v51  ;;  %v3732_v57 = vpop.xlane.xlu1 %3731  ;;  %v3775_v23 = vmul.f32 1.442695, %v3750_v22 }
 0x9d0   : > { %7224 = vmatmul.mubr.f32.gmra.mrb[76].mxu0 %v3083_v39  ;;  %v3752_v18 = vsub.f32 %v10237_v53, %v3732_v57 }
 0x9d1   : > { %7226 = vmatprep.mubr.f32.mxu0 %v3084_v26  ;;  %v3773_v52 = vmul.f32 1.442695, %v3749_v11  ;;  %v3777_v42 = vmul.f32 1.442695, %v3751_v28 }
 0x9d2   : > { %v3734_v8 = vpop.xlane.xlu0 %3733  ;;  %v3779_v41 = vmul.f32 1.442695, %v3752_v18 }
 0x9d3   : > { %8347 = vpow2.f32 %v3773_v52  ;;  %v3736_v55 = vpop.xlane.xlu1 %3735  ;;  %v3753_v21 = vsub.f32 %v10267_v13, %v3734_v8 }
 0x9d4   : > { %7227 = vmatmul.mubr.f32.gmra.mrb[78].mxu0 %v3085_v14  ;;  %8349 = vpow2.f32 %v3777_v42  ;;  %v3754_v56 = vsub.f32 %v10247_v1, %v3736_v55 }
 0x9d5   : > { %v10334_v38 = vpop.eup %8345  ;;  %8351 = vpow2.f32 %v3779_v41 }
 0x9d6   : > { %3801 = vadd.xlane.f32.xlu1 %v10334_v38  ;;  %v3738_v63 = vpop.xlane.xlu0 %3737  ;;  %v3783_v10 = vmul.f32 1.442695, %v3754_v56 }
 0x9d7   : > { %v3755_v29 = vsub.f32 %v10272_v45, %v3738_v63  ;;  %v3740_v61 = vpop.xlane.xlu1 %3739 }
 0x9d8   : > { %v3756_v13 = vsub.f32 %v10257_v20, %v3740_v61 }
 0x9d9   : > { %v3785_v53 = vmul.f32 1.442695, %v3755_v29 }
 0x9da   : > { %v8021_v47 = vpop.permute.xlu0 %8020  ;;  %v3787_v5 = vmul.f32 1.442695, %v3756_v13 }
 0x9db   : > { %v8023_v3 = vunpack.i.h.bf16 %v8021_v47  ;;  %v8022_v60 = vunpack.i.l.bf16 %v8021_v47  ;;  %v8026_v6 = vpop.permute.xlu1 %8025 }
 0x9dc   : > { %v8028_v19 = vunpack.i.h.bf16 %v8026_v6  ;;  %v8027_v35 = vunpack.i.l.bf16 %v8026_v6  ;;  %v8097_v6 = vld [vmem:[%s8733_s15 + $0x30] sm:$0xff]  }
 0x9dd   : > { %v10337_v0 = vpack.c.bf16 %v8023_v3, %v8022_v60  ;;  %v10351_v16 = vpop.eup %8347 }
 0x9de   : > { %v10355_v24 = vpop.eup %8349  ;;  %v8031_v32 = vpop.permute.xlu0 %8030  ;;  %v7673_v51 = vpack.c.bf16 %v8028_v19, %v8027_v35 }
 0x9df   : > { %8050 = vrot.lane.b32.xlu0 %v12164_v34, %s8662_s11  ;;  %7670 = vmatprep.subr.bf16.mxu0 %v10337_v0  ;;  %v10358_v45 = vpop.eup %8351  ;;  %v8036_v31 = vpop.permute.xlu1 %8035  ;;  %v8033_v39 = vunpack.i.h.bf16 %v8031_v32  ;;  %v8032_v59 = vunpack.i.l.bf16 %v8031_v32 }
 0x9e0   : > { %v8038_v3 = vunpack.i.h.bf16 %v8036_v31  ;;  %v8037_v60 = vunpack.i.l.bf16 %v8036_v31 }
 0x9e1   : > { %v7677_v34 = vpack.c.bf16 %v8033_v39, %v8032_v59 }
 0x9e2   : > { %v8041_v48 = vpop.permute.xlu0 %8040  ;;  %v7681_v18 = vpack.c.bf16 %v8038_v3, %v8037_v60 }
 0x9e3   : > { %v8043_v42 = vunpack.i.h.bf16 %v8041_v48  ;;  %v8042_v41 = vunpack.i.l.bf16 %v8041_v48 }
 0x9e5   : > { %v7685_v55 = vpack.c.bf16 %v8043_v42, %v8042_v41 }
 0x9e6   : > { %v8046_v43 = vpop.permute.xlu0 %8045 }
 0x9e7   : > { %8055 = vrot.lane.b32.xlu1 %v12159_v36, %s8662_s11  ;;  %v3781_v36 = vmul.f32 1.442695, %v3753_v21  ;;  %v8048_v21 = vunpack.i.h.bf16 %v8046_v43  ;;  %v8047_v22 = vunpack.i.l.bf16 %v8046_v43 }
 0x9e9   : > { %8353 = vpow2.f32 %v3781_v36  ;;  %v7689_v29 = vpack.c.bf16 %v8048_v21, %v8047_v22 }
 0x9ea   : > { %8355 = vpow2.f32 %v3775_v23 }
 0x9eb   : > { %8357 = vpow2.f32 %v3785_v53 }
 0x9ec   : > { %8359 = vpow2.f32 %v3783_v10 }
 0x9ed   : > { %8361 = vpow2.f32 %v3787_v5 }
 0x9f3   : > { %v10361_v1 = vpop.eup %8353 }
 0x9f4   : > { %v10363_v58 = vpop.eup %8355 }
 0x9f5   : > { %v10367_v20 = vpop.eup %8357 }
 0x9f6   : > { %v10369_v46 = vpop.eup %8359 }
 0x9f7   : > { %v10373_v44 = vpop.eup %8361 }
 0x9fe   : > { %3805 = vadd.xlane.f32.xlu0 %v10351_v16 }
 0xa02   : > { %3809 = vadd.xlane.f32.xlu0 %v10355_v24 }
 0xa06   : > { %3811 = vadd.xlane.f32.xlu0 %v10358_v45 }
 0xa0a   : > { %3813 = vadd.xlane.f32.xlu0 %v10361_v1 }
 0xa0b   : > { %3807 = vadd.xlane.f32.xlu1 %v10363_v58 }
 0xa0e   : > { %3817 = vadd.xlane.f32.xlu0 %v10367_v20 }
 0xa0f   : > { %3815 = vadd.xlane.f32.xlu1 %v10369_v46 }
 0xa13   : > { %3819 = vadd.xlane.f32.xlu1 %v10373_v44 }
 0xa42   : > { %v10376_v40 = vpop.xlane.xlu1 %3789 }
 0xa43   : > { %8363 = vrcp.f32 %v10376_v40 }
 0xa46   : > { %v3792_v47 = vpop.xlane.xlu0 %3791 }
 0xa47   : > { %8365 = vrcp.f32 %v3792_v47  ;;  %v8098_v47 = vld [vmem:[%s8733_s15 + $0x38] sm:$0xff]   ;;  %s8663_s15 = smov [#allocation2]  }
 0xa4e   : > { %v10378_v27 = vpop.xlane.xlu1 %3795 }
 0xa52   : > { %v10380_v7 = vpop.xlane.xlu1 %3793 }
 0xa53   : > { %8367 = vrcp.f32 %v10380_v7 }
 0xa54   : > { %8369 = vrcp.f32 %v10378_v27 }
 0xa56   : > { %v10384_v8 = vpop.xlane.xlu1 %3797  ;;  %v3800_v28 = vpop.xlane.xlu0 %3799 }
 0xa57   : > { %8371 = vrcp.f32 %v10384_v8 }
 0xa58   : > { %8373 = vrcp.f32 %v3800_v28 }
 0xa5a   : > { %v3804_v57 = vpop.xlane.xlu1 %3803  ;;  %v8051_v36 = vpop.permute.xlu0 %8050 }
 0xa5b   : > { %v8053_v23 = vunpack.i.h.bf16 %v8051_v36  ;;  %v8052_v56 = vunpack.i.l.bf16 %v8051_v36 }
 0xa5d   : > { %v7693_v53 = vpack.c.bf16 %v8053_v23, %v8052_v56 }
 0xa65   : > { %v7207_v54 = vpop.f32.mrb[64].mxu0 }
 0xa66   : > { %v3200_v30 = vpop.f32.mrb[65].mxu0 }
 0xa67   : > { %v3279_v37 = vpack.c.bf16 %v7207_v54, %v3200_v30 }
 0xa69   : > { %v7210_v2 = vpop.f32.mrb[66].mxu0  ;;  %7233 = vmatprep.mubr.msk.bf16.mxu0 %vm1230_vm0, %v3279_v37 }
 0xa6a   : > { %v3210_v62 = vpop.f32.mrb[67].mxu0 }
 0xa6b   : > { %v3280_v17 = vpack.c.bf16 %v7210_v2, %v3210_v62 }
 0xa6d   : > { %v7213_v26 = vpop.f32.mrb[68].mxu0  ;;  %7234 = vmatmul.mubr.msk.bf16.vlgmr.msra.gmra.mrb[48].mxu0 %vm1230_vm0, %v3280_v17  ;;  %v8364_v17 = vpop.eup %8363 }
 0xa6e   : > { %7672 = vmatpush3.bf16.msra.mxu0 %v10337_v0  ;;  %v3220_v14 = vpop.f32.mrb[69].mxu0  ;;  %v3802_v0 = vpop.xlane.xlu1 %3801  ;;  %v3837_v59 = vmul.f32 %v8364_v17, %v10302_v15 }
 0xa6f   : > { %v3281_v63 = vpack.c.bf16 %v7213_v26, %v3220_v14  ;;  %7674 = vmatprep.subr.bf16.mxu0 %v7673_v51  ;;  %8375 = vrcp.f32 %v3802_v0  ;;  %v8366_v7 = vpop.eup %8365 }
 0xa70   : > { %v8368_v14 = vpop.eup %8367  ;;  %8377 = vrcp.f32 %v3804_v57 }
 0xa71   : > { %v7216_v33 = vpop.f32.mrb[70].mxu0  ;;  %7237 = vmatprep.mubr.msk.bf16.mxu0 %vm1230_vm0, %v3281_v63  ;;  %v3838_v63 = vmul.f32 %v8366_v7, %v10306_v12  ;;  %v8370_v3 = vpop.eup %8369  ;;  %v3839_v8 = vmul.f32 %v8368_v14, %v10314_v50 }
 0xa72   : > { %7676 = vmatpush3.bf16.msra.mxu0 %v7673_v51  ;;  %v3230_v11 = vpop.f32.mrb[71].mxu0  ;;  %v8056_v61 = vpop.permute.xlu1 %8055 }
 0xa73   : > { %v3282_v52 = vpack.c.bf16 %v7216_v33, %v3230_v11  ;;  %7678 = vmatprep.subr.bf16.mxu0 %v7677_v34  ;;  %v8058_v10 = vunpack.i.h.bf16 %v8056_v61  ;;  %v8057_v13 = vunpack.i.l.bf16 %v8056_v61  ;;  %v8372_v60 = vpop.eup %8371 }
 0xa74   : > { %v8374_v33 = vpop.eup %8373  ;;  %v3841_v11 = vmul.f32 %v8372_v60, %v10318_v4  ;;  %v8588_v60 = vld [vmem:[#allocation2 + $0x8] sm:$0xff] }
 0xa75   : > { %7238 = vmatmul.mubr.msk.bf16.gmra.mrb[52].mxu0 %vm1230_vm0, %v3282_v52  ;;  %v7697_v5 = vpack.c.bf16 %v8058_v10, %v8057_v13  ;;  %v3842_v50 = vmul.f32 %v8374_v33, %v10321_v9 }
 0xa76   : > { %7680 = vmatpush3.bf16.msra.mxu0 %v7677_v34  ;;  %v3840_v34 = vmul.f32 %v8370_v3, %v10311_v25 }
 0xa77   : > { %7682 = vmatprep.subr.bf16.mxu0 %v7681_v18 }
 0xa79   : > { %v8376_v12 = vpop.eup %8375 }
 0xa7a   : > { %7684 = vmatpush3.bf16.msra.mxu0 %v7681_v18  ;;  %v8378_v28 = vpop.eup %8377  ;;  %v3843_v18 = vmul.f32 %v8376_v12, %v10334_v38 }
 0xa7b   : > { %7686 = vmatprep.subr.bf16.mxu0 %v7685_v55  ;;  %v3844_v4 = vmul.f32 %v8378_v28, %v10328_v49 }
 0xa7e   : > { %7688 = vmatpush3.bf16.msra.mxu0 %v7685_v55 }
 0xa7f   : > { %7690 = vmatprep.subr.bf16.mxu0 %v7689_v29 }
 0xa82   : > { %7692 = vmatpush3.bf16.msra.mxu0 %v7689_v29 }
 0xa83   : > { %7694 = vmatprep.subr.bf16.mxu0 %v7693_v53 }
 0xa86   : > { %7696 = vmatpush3.bf16.msra.mxu0 %v7693_v53 }
 0xa87   : > { %7698 = vmatprep.subr.bf16.mxu0 %v7697_v5 }
 0xa8a   : > { %7700 = vmatpush3.bf16.msra.mxu0 %v7697_v5 }
 0xa8b   : > { %7361 = vmatprep.subr.bf16.mxu0 %v8097_v6  ;;  %v3806_v19 = vpop.xlane.xlu0 %3805 }
 0xa8c   : > { %8379 = vrcp.f32 %v3806_v19 }
 0xa8f   : > { %v3810_v40 = vpop.xlane.xlu0 %3809 }
 0xa93   : > { %v3812_v26 = vpop.xlane.xlu0 %3811 }
 0xa96   : > { %v8380_v42 = vpop.eup %8379 }
 0xa97   : > { %v3814_v15 = vpop.xlane.xlu0 %3813  ;;  %v3845_v0 = vmul.f32 %v8380_v42, %v10351_v16 }
 0xa98   : > { %v3808_v27 = vpop.xlane.xlu1 %3807 }
 0xa99   : > { %8381 = vrcp.f32 %v3808_v27  ;;  %v8587_v27 = vld [vmem:[#allocation2] sm:$0xff] }
 0xa9a   : > { %8383 = vrcp.f32 %v3810_v40 }
 0xa9b   : > { %v7219_v31 = vpop.f32.mrb[72].mxu0  ;;  %8385 = vrcp.f32 %v3812_v26  ;;  %v3818_v57 = vpop.xlane.xlu0 %3817 }
 0xa9c   : > { %v3240_v32 = vpop.f32.mrb[73].mxu0  ;;  %v3816_v52 = vpop.xlane.xlu1 %3815  ;;  %8387 = vrcp.f32 %v3814_v15 }
 0xa9d   : > { %v3283_v54 = vpack.c.bf16 %v7219_v31, %v3240_v32  ;;  %8389 = vrcp.f32 %v3816_v52  ;;  %v8590_v52 = vld [vmem:[#allocation2 + $0x18] sm:$0xff] }
 0xa9e   : > { %8391 = vrcp.f32 %v3818_v57 }
 0xa9f   : > { %v7222_v48 = vpop.f32.mrb[74].mxu0  ;;  %7241 = vmatprep.mubr.msk.bf16.mxu0 %vm1230_vm0, %v3283_v54 }
 0xaa0   : > { %v3250_v30 = vpop.f32.mrb[75].mxu0  ;;  %v3820_v25 = vpop.xlane.xlu1 %3819 }
 0xaa1   : > { %v3284_v37 = vpack.c.bf16 %v7222_v48, %v3250_v30  ;;  %8393 = vrcp.f32 %v3820_v25  ;;  %v8591_v25 = vld [vmem:[#allocation2 + $0x20] sm:$0xff] }
 0xaa3   : > { %v7225_v35 = vpop.f32.mrb[76].mxu0  ;;  %7242 = vmatmul.mubr.msk.bf16.gmra.mrb[56].mxu0 %vm1230_vm0, %v3284_v37  ;;  %v8382_v41 = vpop.eup %8381 }
 0xaa4   : > { %v3260_v2 = vpop.f32.mrb[77].mxu0  ;;  %v8384_v55 = vpop.eup %8383  ;;  %v3846_v9 = vmul.f32 %v8382_v41, %v10363_v58 }
 0xaa5   : > { %v3285_v62 = vpack.c.bf16 %v7225_v35, %v3260_v2  ;;  %v8386_v21 = vpop.eup %8385  ;;  %v3847_v38 = vmul.f32 %v8384_v55, %v10355_v24  ;;  %v8592_v55 = vld [vmem:[#allocation2 + $0x28] sm:$0xff] }
 0xaa6   : > { %v8388_v22 = vpop.eup %8387  ;;  %v3848_v36 = vmul.f32 %v8386_v21, %v10358_v45  ;;  %v8593_v21 = vld [vmem:[#allocation2 + $0x30] sm:$0xff] }
 0xaa7   : > { %v7228_v43 = vpop.f32.mrb[78].mxu0  ;;  %7245 = vmatprep.mubr.msk.bf16.mxu0 %vm1230_vm0, %v3285_v62  ;;  %v8390_v29 = vpop.eup %8389  ;;  %v3849_v49 = vmul.f32 %v8388_v22, %v10361_v1 }
 0xaa8   : > { %v3270_v51 = vpop.f32.mrb[79].mxu0  ;;  %v8392_v23 = vpop.eup %8391  ;;  %v3850_v16 = vmul.f32 %v8390_v29, %v10369_v46  ;;  %v8594_v29 = vld [vmem:[#allocation2 + $0x38] sm:$0xff] }
 0xaa9   : > { %v3286_v39 = vpack.c.bf16 %v7228_v43, %v3270_v51  ;;  %v3851_v61 = vmul.f32 %v8392_v23, %v10367_v20  ;;  %v10424_v51 = vld [vmem:[%s8753_s14 + $0x3] ss:$0 sm:$0xff] }
 0xaab   : > { %7246 = vmatmul.mubr.msk.bf16.gmra.mrb[60].mxu0 %vm1230_vm0, %v3286_v39  ;;  %v8394_v56 = vpop.eup %8393 }
 0xaac   : > { %7337 = vmatprep.mubr.f32.mxu0 %v3837_v59  ;;  %v3852_v24 = vmul.f32 %v8394_v56, %v10373_v44 }
 0xab3   : > { %7338 = vmatmul.mubr.f32.vlgmr.msra.gmra.mrb[80].mxu0 %v3838_v63 }
 0xab4   : > { %7340 = vmatprep.mubr.f32.mxu0 %v3839_v8  ;;  %7362 = vmatpush3.bf16.msra.mxu0 %v8097_v6 }
 0xab5   : > { %7363 = vmatprep.subr.bf16.mxu0 %v8098_v47 }
 0xab7   : > { %7341 = vmatmul.mubr.f32.gmra.mrb[82].mxu0 %v3840_v34  ;;  %v8589_v34 = vld [vmem:[#allocation2 + $0x10] sm:$0xff] }
 0xab8   : > { %7343 = vmatprep.mubr.f32.mxu0 %v3841_v11  ;;  %7364 = vmatpush3.bf16.msra.mxu0 %v8098_v47 }
 0xabb   : > { %7344 = vmatmul.mubr.f32.gmra.mrb[84].mxu0 %v3842_v50 }
 0xabc   : > { %7346 = vmatprep.mubr.f32.mxu0 %v3843_v18 }
 0xabf   : > { %7347 = vmatmul.mubr.f32.gmra.mrb[86].mxu0 %v3844_v4 }
 0xac0   : > { %7349 = vmatprep.mubr.f32.mxu0 %v3845_v0 }
 0xac3   : > { %7350 = vmatmul.mubr.f32.gmra.mrb[88].mxu0 %v3846_v9 }
 0xac4   : > { %7352 = vmatprep.mubr.f32.mxu0 %v3847_v38 }
 0xac7   : > { %7353 = vmatmul.mubr.f32.gmra.mrb[90].mxu0 %v3848_v36 }
 0xac8   : > { %7355 = vmatprep.mubr.f32.mxu0 %v3849_v49 }
 0xacb   : > { %7356 = vmatmul.mubr.f32.gmra.mrb[92].mxu0 %v3850_v16 }
 0xacc   : > { %7358 = vmatprep.mubr.f32.mxu0 %v3851_v61 }
 0xacf   : > { %7359 = vmatmul.mubr.f32.gmra.mrb[94].mxu0 %v3852_v24  ;;  %v8595_v24 = vld [vmem:[#allocation2 + $0x40] sm:$0xff] }
 0xb86   : > { %v7339_v58 = vpop.f32.mrb[80].mxu0 }
 0xb87   : > { %v3967_v53 = vpop.f32.mrb[81].mxu0 }
 0xb88   : > { %v4046_v10 = vpack.c.bf16 %v7339_v58, %v3967_v53 }
 0xb8a   : > { %v7342_v45 = vpop.f32.mrb[82].mxu0  ;;  %7365 = vmatprep.mubr.msk.bf16.mxu0 %vm1230_vm0, %v4046_v10 }
 0xb8b   : > { %v3977_v1 = vpop.f32.mrb[83].mxu0 }
 0xb8c   : > { %v4047_v13 = vpack.c.bf16 %v7342_v45, %v3977_v1  ;;  %v8596_v45 = vld [vmem:[#allocation2 + $0x48] sm:$0xff] }
 0xb8e   : > { %v7345_v5 = vpop.f32.mrb[84].mxu0  ;;  %7366 = vmatmul.mubr.msk.bf16.vlgmr.msra.gmra.mrb[48].mxu0 %vm1230_vm0, %v4047_v13  ;;  %v8597_v13 = vld [vmem:[#allocation2 + $0x50] sm:$0xff] }
 0xb8f   : > { %v3987_v46 = vpop.f32.mrb[85].mxu0 }
 0xb90   : > { %v4048_v6 = vpack.c.bf16 %v7345_v5, %v3987_v46 }
 0xb92   : > { %v7348_v31 = vpop.f32.mrb[86].mxu0  ;;  %7369 = vmatprep.mubr.msk.bf16.mxu0 %vm1230_vm0, %v4048_v6 }
 0xb93   : > { %v3997_v20 = vpop.f32.mrb[87].mxu0 }
 0xb94   : > { %v4049_v32 = vpack.c.bf16 %v7348_v31, %v3997_v20  ;;  %v8598_v31 = vld [vmem:[#allocation2 + $0x58] sm:$0xff] }
 0xb96   : > { %v7351_v44 = vpop.f32.mrb[88].mxu0  ;;  %7370 = vmatmul.mubr.msk.bf16.gmra.mrb[52].mxu0 %vm1230_vm0, %v4049_v32 }
 0xb97   : > { %v4007_v54 = vpop.f32.mrb[89].mxu0 }
 0xb98   : > { %v4050_v48 = vpack.c.bf16 %v7351_v44, %v4007_v54 }
 0xb9a   : > { %v7354_v30 = vpop.f32.mrb[90].mxu0  ;;  %7373 = vmatprep.mubr.msk.bf16.mxu0 %vm1230_vm0, %v4050_v48 }
 0xb9b   : > { %v4017_v37 = vpop.f32.mrb[91].mxu0 }
 0xb9c   : > { %v4051_v19 = vpack.c.bf16 %v7354_v30, %v4017_v37  ;;  %v8599_v30 = vld [vmem:[#allocation2 + $0x60] sm:$0xff] }
 0xb9e   : > { %v7357_v35 = vpop.f32.mrb[92].mxu0  ;;  %7374 = vmatmul.mubr.msk.bf16.gmra.mrb[56].mxu0 %vm1230_vm0, %v4051_v19 }
 0xb9f   : > { %v4027_v2 = vpop.f32.mrb[93].mxu0 }
 0xba0   : > { %v4052_v62 = vpack.c.bf16 %v7357_v35, %v4027_v2  ;;  %v8600_v2 = vld [vmem:[#allocation2 + $0x68] sm:$0xff] }
 0xba2   : > { %v7360_v17 = vpop.f32.mrb[94].mxu0  ;;  %7377 = vmatprep.mubr.msk.bf16.mxu0 %vm1230_vm0, %v4052_v62 }
 0xba3   : > { %v4037_v43 = vpop.f32.mrb[95].mxu0 }
 0xba4   : > { %v4053_v40 = vpack.c.bf16 %v7360_v17, %v4037_v43  ;;  %v8601_v17 = vld [vmem:[#allocation2 + $0x70] sm:$0xff] }
 0xba6   : > { %7378 = vmatmul.mubr.msk.bf16.gmra.mrb[60].mxu0 %vm1230_vm0, %v4053_v40  ;;  %v8602_v40 = vld [vmem:[#allocation2 + $0x78] sm:$0xff] }
 0xc61   : > { %v7367_v39 = vpop.f32.mrb[48].mxu0 }
 0xc62   : > { %v4124_v59 = vpop.f32.mrb[49].mxu0  ;;  %v4210_v63 = vadd.f32 %v7367_v39, %v10424_v51 }
 0xc63   : > { %v4208_v7 = vadd.f32 %v10424_v51, %v4124_v59  ;;  %v7368_v26 = vpop.f32.mrb[50].mxu0  ;;  %v8099_v59 = vld [vmem:[%s8743_s22] ss:$8 sps:$4 sm:$0xff]  }
 0xc64   : > { %v4127_v14 = vpop.f32.mrb[51].mxu0  ;;  %v4211_v8 = vadd.f32 %v7368_v26, %v10424_v51  ;;  %v10435_v33 = vadd.f32 %v8589_v34, %v4210_v63  ;;  %v8102_v26 = vld [vmem:[%s8743_s22 + $0x10] ss:$8 sps:$4 sm:$0xff]  }
 0xc65   : > { %v10428_v47 = vadd.f32 %v8587_v27, %v4208_v7  ;;  %v4209_v3 = vadd.f32 %v10424_v51, %v4127_v14  ;;  %v8104_v7 = vld [vmem:[%s8743_s22 + $0x14] ss:$8 sps:$4 sm:$0xff]  }
 0xc66   : > { %v10438_v50 = vadd.f32 %v8590_v52, %v4211_v8 }
 0xc67   : > { %v10432_v15 = vadd.f32 %v8588_v60, %v4209_v3  ;;  %4242 = vadd.xlane.f32.xlu0 %v10428_v47 }
 0xc69   : > { %4244 = vadd.xlane.f32.xlu1 %v10432_v15  ;;  %v7371_v11 = vpop.f32.mrb[52].mxu0 }
 0xc6a   : > { %v4140_v12 = vpop.f32.mrb[53].mxu0  ;;  %v4214_v42 = vadd.f32 %v7371_v11, %v10424_v51 }
 0xc6b   : > { %v4212_v28 = vadd.f32 %v10424_v51, %v4140_v12  ;;  %4246 = vadd.xlane.f32.xlu0 %v10435_v33  ;;  %v7372_v57 = vpop.f32.mrb[54].mxu0 }
 0xc6c   : > { %v4143_v18 = vpop.f32.mrb[55].mxu0  ;;  %v4215_v0 = vadd.f32 %v7372_v57, %v10424_v51  ;;  %v10451_v38 = vadd.f32 %v8593_v21, %v4214_v42 }
 0xc6d   : > { %v10443_v4 = vadd.f32 %v8591_v25, %v4212_v28  ;;  %v4213_v41 = vadd.f32 %v10424_v51, %v4143_v18  ;;  %4248 = vadd.xlane.f32.xlu1 %v10438_v50 }
 0xc6e   : > { %v10454_v49 = vadd.f32 %v8594_v29, %v4215_v0 }
 0xc6f   : > { %v10448_v9 = vadd.f32 %v8592_v55, %v4213_v41  ;;  %4250 = vadd.xlane.f32.xlu0 %v10443_v4 }
 0xc71   : > { %4252 = vadd.xlane.f32.xlu1 %v10448_v9  ;;  %v7375_v22 = vpop.f32.mrb[56].mxu0 }
 0xc72   : > { %v4156_v36 = vpop.f32.mrb[57].mxu0  ;;  %v4218_v61 = vadd.f32 %v7375_v22, %v10424_v51 }
 0xc73   : > { %v4216_v23 = vadd.f32 %v10424_v51, %v4156_v36  ;;  %4254 = vadd.xlane.f32.xlu0 %v10451_v38  ;;  %v7376_v16 = vpop.f32.mrb[58].mxu0 }
 0xc74   : > { %v4159_v56 = vpop.f32.mrb[59].mxu0  ;;  %v4219_v10 = vadd.f32 %v7376_v16, %v10424_v51  ;;  %v10467_v5 = vadd.f32 %v8597_v13, %v4218_v61 }
 0xc75   : > { %v10459_v58 = vadd.f32 %v8595_v24, %v4216_v23  ;;  %v4217_v53 = vadd.f32 %v10424_v51, %v4159_v56  ;;  %4256 = vadd.xlane.f32.xlu1 %v10454_v49 }
 0xc76   : > { %v10470_v20 = vadd.f32 %v8598_v31, %v4219_v10  ;;  %v8107_v31 = vld [vmem:[%s8743_s22 + $0x24] ss:$8 sps:$4 sm:$0xff]  }
 0xc77   : > { %v10464_v1 = vadd.f32 %v8596_v45, %v4217_v53  ;;  %4258 = vadd.xlane.f32.xlu0 %v10459_v58 }
 0xc79   : > { %4260 = vadd.xlane.f32.xlu1 %v10464_v1  ;;  %v7379_v46 = vpop.f32.mrb[60].mxu0 }
 0xc7a   : > { %v4172_v6 = vpop.f32.mrb[61].mxu0  ;;  %v4222_v48 = vadd.f32 %v7379_v46, %v10424_v51 }
 0xc7b   : > { %v4220_v32 = vadd.f32 %v10424_v51, %v4172_v6  ;;  %4262 = vadd.xlane.f32.xlu0 %v10467_v5  ;;  %v7380_v44 = vpop.f32.mrb[62].mxu0 }
 0xc7c   : > { %v4175_v54 = vpop.f32.mrb[63].mxu0  ;;  %v4223_v35 = vadd.f32 %v7380_v44, %v10424_v51  ;;  %v10483_v43 = vadd.f32 %v8601_v17, %v4222_v48  ;;  %v8108_v17 = vld [vmem:[%s8743_s22 + $0x30] ss:$8 sps:$4 sm:$0xff]  }
 0xc7d   : > { %v10475_v37 = vadd.f32 %v8599_v30, %v4220_v32  ;;  %v4221_v19 = vadd.f32 %v10424_v51, %v4175_v54  ;;  %4264 = vadd.xlane.f32.xlu1 %v10470_v20  ;;  %v8101_v51 = vld [vmem:[%s8743_s22 + $0x4] ss:$8 sps:$4 sm:$0xff]  }
 0xc7e   : > { %v10486_v39 = vadd.f32 %v8602_v40, %v4223_v35  ;;  %4573 = vmatprep.subr.bf16.mxu1 %v8101_v51 }
 0xc7f   : > { %v10480_v62 = vadd.f32 %v8600_v2, %v4221_v19  ;;  %4266 = vadd.xlane.f32.xlu0 %v10475_v37  ;;  %4574 = vmatpush1.bf16.msra.mxu1 %v8099_v59  ;;  %v8110_v2 = vld [vmem:[%s8743_s22 + $0x34] ss:$8 sps:$4 sm:$0xff]  }
 0xc80   : > { %4575 = vmatprep.subr.bf16.mxu1 %v8104_v7 }
 0xc81   : > { %4268 = vadd.xlane.f32.xlu1 %v10480_v62 }
 0xc83   : > { %4270 = vadd.xlane.f32.xlu0 %v10483_v43  ;;  %4576 = vmatpush1.bf16.msra.mxu1 %v8102_v26 }
 0xc84   : > { %4577 = vmatprep.subr.bf16.mxu1 %v8107_v31 }
 0xc85   : > { %4272 = vadd.xlane.f32.xlu1 %v10486_v39 }
 0xcf4   : > { %v4243_v14 = vpop.xlane.xlu0 %4242 }
 0xcf5   : > { %v4275_v63 = vmul.f32 0.0078125, %v4243_v14 }
 0xcf6   : > { %v4245_v27 = vpop.xlane.xlu1 %4244 }
 0xcf7   : > { %v10495_v3 = vsub.f32 %v10428_v47, %v4275_v63  ;;  %v4276_v8 = vmul.f32 0.0078125, %v4245_v27  ;;  %v8111_v27 = vld [vmem:[%s8743_s22 + $0x40] ss:$8 sps:$4 sm:$0xff]  }
 0xcf8   : > { %v4247_v60 = vpop.xlane.xlu0 %4246 }
 0xcf9   : > { %v10498_v34 = vsub.f32 %v10432_v15, %v4276_v8  ;;  %v4277_v11 = vmul.f32 0.0078125, %v4247_v60  ;;  %v4307_v12 = vmul.f32 %v10495_v3, %v10495_v3 }
 0xcfa   : > { %v4249_v52 = vpop.xlane.xlu1 %4248 }
 0xcfb   : > { %v10503_v28 = vsub.f32 %v10435_v33, %v4277_v11  ;;  %v4278_v57 = vmul.f32 0.0078125, %v4249_v52  ;;  %4323 = vadd.xlane.f32.xlu0 %v4307_v12  ;;  %v4308_v18 = vmul.f32 %v10498_v34, %v10498_v34  ;;  %v8114_v52 = vld [vmem:[%s8743_s22 + $0x50] ss:$8 sps:$4 sm:$0xff]  }
 0xcfc   : > { %v4251_v47 = vpop.xlane.xlu0 %4250 }
 0xcfd   : > { %v10508_v42 = vsub.f32 %v10438_v50, %v4278_v57  ;;  %v4279_v25 = vmul.f32 0.0078125, %v4251_v47  ;;  %4325 = vadd.xlane.f32.xlu1 %v4308_v18  ;;  %v4309_v15 = vmul.f32 %v10503_v28, %v10503_v28  ;;  %v8119_v18 = vld [vmem:[%s8743_s22 + $0x64] ss:$8 sps:$4 sm:$0xff]   ;;  %v8117_v47 = vld [vmem:[%s8743_s22 + $0x60] ss:$8 sps:$4 sm:$0xff]  }
 0xcfe   : > { %v4253_v41 = vpop.xlane.xlu1 %4252 }
 0xcff   : > { %v10513_v0 = vsub.f32 %v10443_v4, %v4279_v25  ;;  %v4280_v33 = vmul.f32 0.0078125, %v4253_v41  ;;  %4327 = vadd.xlane.f32.xlu0 %v4309_v15  ;;  %v4310_v55 = vmul.f32 %v10508_v42, %v10508_v42  ;;  %v8122_v25 = vld [vmem:[%s8743_s22 + $0x74] ss:$8 sps:$4 sm:$0xff]  }
 0xd00   : > { %v4255_v21 = vpop.xlane.xlu0 %4254 }
 0xd01   : > { %v10518_v22 = vsub.f32 %v10448_v9, %v4280_v33  ;;  %v4281_v50 = vmul.f32 0.0078125, %v4255_v21  ;;  %4329 = vadd.xlane.f32.xlu1 %v4310_v55  ;;  %v4311_v36 = vmul.f32 %v10513_v0, %v10513_v0 }
 0xd02   : > { %v4257_v29 = vpop.xlane.xlu1 %4256 }
 0xd03   : > { %v10523_v23 = vsub.f32 %v10451_v38, %v4281_v50  ;;  %v4282_v4 = vmul.f32 0.0078125, %v4257_v29  ;;  %4331 = vadd.xlane.f32.xlu0 %v4311_v36  ;;  %v4312_v16 = vmul.f32 %v10518_v22, %v10518_v22 }
 0xd04   : > { %v4259_v56 = vpop.xlane.xlu0 %4258 }
 0xd05   : > { %v10528_v61 = vsub.f32 %v10454_v49, %v4282_v4  ;;  %v4283_v9 = vmul.f32 0.0078125, %v4259_v56  ;;  %4333 = vadd.xlane.f32.xlu1 %v4312_v16  ;;  %v4313_v24 = vmul.f32 %v10523_v23, %v10523_v23 }
 0xd06   : > { %v4261_v53 = vpop.xlane.xlu1 %4260 }
 0xd07   : > { %v10533_v38 = vsub.f32 %v10459_v58, %v4283_v9  ;;  %v4284_v10 = vmul.f32 0.0078125, %v4261_v53  ;;  %4335 = vadd.xlane.f32.xlu0 %v4313_v24  ;;  %v4314_v45 = vmul.f32 %v10528_v61, %v10528_v61  ;;  %v8105_v58 = vld [vmem:[%s8743_s22 + $0x20] ss:$8 sps:$4 sm:$0xff]  }
 0xd08   : > { %v4263_v13 = vpop.xlane.xlu0 %4262  ;;  %4578 = vmatpush1.bf16.msra.mxu1 %v8105_v58  ;;  %v10587_v58 = vld [vmem:[%s8753_s14 + $0x4] ss:$0 sm:$0xff] }
 0xd09   : > { %v10538_v46 = vsub.f32 %v10464_v1, %v4284_v10  ;;  %v4285_v49 = vmul.f32 0.0078125, %v4263_v13  ;;  %4337 = vadd.xlane.f32.xlu1 %v4314_v45  ;;  %v4315_v6 = vmul.f32 %v10533_v38, %v10533_v38  ;;  %4579 = vmatprep.subr.bf16.mxu1 %v8110_v2 }
 0xd0a   : > { %v4265_v32 = vpop.xlane.xlu1 %4264 }
 0xd0b   : > { %v10545_v44 = vsub.f32 %v10467_v5, %v4285_v49  ;;  %v4286_v54 = vmul.f32 0.0078125, %v4265_v32  ;;  %4339 = vadd.xlane.f32.xlu0 %v4315_v6  ;;  %v4316_v48 = vmul.f32 %v10538_v46, %v10538_v46 }
 0xd0c   : > { %v4267_v1 = vpop.xlane.xlu0 %4266  ;;  %4580 = vmatpush1.bf16.msra.mxu1 %v8108_v17 }
 0xd0d   : > { %v10550_v30 = vsub.f32 %v10470_v20, %v4286_v54  ;;  %v4287_v19 = vmul.f32 0.0078125, %v4267_v1  ;;  %4341 = vadd.xlane.f32.xlu1 %v4316_v48  ;;  %v4317_v35 = vmul.f32 %v10545_v44, %v10545_v44 }
 0xd0e   : > { %v4269_v5 = vpop.xlane.xlu1 %4268 }
 0xd0f   : > { %v10557_v40 = vsub.f32 %v10475_v37, %v4287_v19  ;;  %v4288_v59 = vmul.f32 0.0078125, %v4269_v5  ;;  %4343 = vadd.xlane.f32.xlu0 %v4317_v35  ;;  %v4318_v51 = vmul.f32 %v10550_v30, %v10550_v30  ;;  %v8113_v37 = vld [vmem:[%s8743_s22 + $0x44] ss:$8 sps:$4 sm:$0xff]  }
 0xd10   : > { %v4271_v20 = vpop.xlane.xlu0 %4270  ;;  %4581 = vmatprep.subr.bf16.mxu1 %v8113_v37 }
 0xd11   : > { %v10562_v7 = vsub.f32 %v10480_v62, %v4288_v59  ;;  %v4289_v26 = vmul.f32 0.0078125, %v4271_v20  ;;  %4345 = vadd.xlane.f32.xlu1 %v4318_v51  ;;  %v4319_v14 = vmul.f32 %v10557_v40, %v10557_v40  ;;  %4582 = vmatpush1.bf16.msra.mxu1 %v8111_v27  ;;  %v10593_v59 = vld [vmem:[%s8753_s14 + $0x5] ss:$0 sm:$0xff] }
 0xd12   : > { %v4273_v63 = vpop.xlane.xlu1 %4272 }
 0xd13   : > { %v10569_v8 = vsub.f32 %v10483_v43, %v4289_v26  ;;  %v4290_v60 = vmul.f32 0.0078125, %v4273_v63  ;;  %4347 = vadd.xlane.f32.xlu0 %v4319_v14  ;;  %v4320_v62 = vmul.f32 %v10562_v7, %v10562_v7  ;;  %v8116_v43 = vld [vmem:[%s8743_s22 + $0x54] ss:$8 sps:$4 sm:$0xff]  }
 0xd14   : > { %4583 = vmatprep.subr.bf16.mxu1 %v8116_v43 }
 0xd15   : > { %v10574_v11 = vsub.f32 %v10486_v39, %v4290_v60  ;;  %4349 = vadd.xlane.f32.xlu1 %v4320_v62  ;;  %v4321_v12 = vmul.f32 %v10569_v8, %v10569_v8  ;;  %4584 = vmatpush1.bf16.msra.mxu1 %v8114_v52  ;;  %v8120_v39 = vld [vmem:[%s8743_s22 + $0x70] ss:$8 sps:$4 sm:$0xff]   ;;  %s6055_s22 = sshll.u32 %s8663_s15, 4  ;;  %s6056_s22 = int_to_ptr.vmem [resolvable:$true] %s6055_s22 }
 0xd16   : > { %4585 = vmatprep.subr.bf16.mxu1 %v8119_v18  ;;  %p8612_p10 = scmp.lt.s32.totalorder %s6056_s22, %s6056_s22 }
 0xd17   : > { %4351 = vadd.xlane.f32.xlu0 %v4321_v12  ;;  %v4322_v57 = vmul.f32 %v10574_v11, %v10574_v11 }
 0xd19   : > { %4353 = vadd.xlane.f32.xlu1 %v4322_v57  ;;  %4586 = vmatpush1.bf16.msra.mxu1 %v8117_v47 }
 0xd1a   : > { %4587 = vmatprep.subr.bf16.mxu1 %v8122_v25  ;;  %v12167_v25 = vmov 0  }
 0xd1d   : > { %4588 = vmatpush1.bf16.msra.mxu1 %v8120_v39 }
 0xd88   : > { %v4324_v15 = vpop.xlane.xlu0 %4323 }
 0xd89   : > { %v4355_v41 = vmul.f32 0.0078125, %v4324_v15 }
 0xd8a   : > { %v4326_v33 = vpop.xlane.xlu1 %4325 }
 0xd8b   : > { %v4371_v55 = vadd.f32 1e-12, %v4355_v41  ;;  %v4356_v21 = vmul.f32 0.0078125, %v4326_v33 }
 0xd8c   : > { %v4328_v50 = vpop.xlane.xlu0 %4327 }
 0xd8d   : > { %8395 = vrsqrt.f32 %v4371_v55  ;;  %v4372_v36 = vadd.f32 1e-12, %v4356_v21  ;;  %v4357_v29 = vmul.f32 0.0078125, %v4328_v50 }
 0xd8e   : > { %v4330_v4 = vpop.xlane.xlu1 %4329 }
 0xd8f   : > { %8397 = vrsqrt.f32 %v4372_v36  ;;  %v4373_v16 = vadd.f32 1e-12, %v4357_v29  ;;  %v4358_v56 = vmul.f32 0.0078125, %v4330_v4 }
 0xd90   : > { %v4332_v9 = vpop.xlane.xlu0 %4331 }
 0xd91   : > { %8399 = vrsqrt.f32 %v4373_v16  ;;  %v4374_v24 = vadd.f32 1e-12, %v4358_v56  ;;  %v4359_v53 = vmul.f32 0.0078125, %v4332_v9 }
 0xd92   : > { %v4334_v10 = vpop.xlane.xlu1 %4333 }
 0xd93   : > { %8401 = vrsqrt.f32 %v4374_v24  ;;  %v4360_v45 = vmul.f32 0.0078125, %v4334_v10  ;;  %v4375_v13 = vadd.f32 1e-12, %v4359_v53 }
 0xd94   : > { %v4336_v6 = vpop.xlane.xlu0 %4335 }
 0xd95   : > { %v4376_v49 = vadd.f32 1e-12, %v4360_v45  ;;  %v4361_v19 = vmul.f32 0.0078125, %v4336_v6 }
 0xd96   : > { %v4338_v31 = vpop.xlane.xlu1 %4337 }
 0xd97   : > { %v8396_v32 = vpop.eup %8395  ;;  %8403 = vrsqrt.f32 %v4376_v49  ;;  %v4362_v54 = vmul.f32 0.0078125, %v4338_v31  ;;  %v4377_v14 = vadd.f32 1e-12, %v4361_v19 }
 0xd98   : > { %v4403_v48 = vmul.f32 %v8396_v32, %v10495_v3  ;;  %8405 = vrsqrt.f32 %v4375_v13  ;;  %v4340_v37 = vpop.xlane.xlu0 %4339 }
 0xd99   : > { %v8398_v1 = vpop.eup %8397  ;;  %v4378_v17 = vadd.f32 1e-12, %v4362_v54  ;;  %v4363_v52 = vmul.f32 0.0078125, %v4340_v37 }
 0xd9a   : > { %v4423_v35 = vmul.f32 %v10587_v58, %v4403_v48  ;;  %v4404_v2 = vmul.f32 %v8398_v1, %v10498_v34  ;;  %v4342_v20 = vpop.xlane.xlu1 %4341 }
 0xd9b   : > { %v8400_v5 = vpop.eup %8399  ;;  %8407 = vrsqrt.f32 %v4378_v17  ;;  %v4364_v60 = vmul.f32 0.0078125, %v4342_v20  ;;  %v4379_v15 = vadd.f32 1e-12, %v4363_v52 }
 0xd9c   : > { %v4424_v51 = vmul.f32 %v10587_v58, %v4404_v2  ;;  %v10597_v63 = vadd.f32 %v10593_v59, %v4423_v35  ;;  %v4405_v27 = vmul.f32 %v8400_v5, %v10503_v28  ;;  %8409 = vrsqrt.f32 %v4377_v14  ;;  %v4344_v41 = vpop.xlane.xlu0 %4343 }
 0xd9d   : > { %v8402_v26 = vpop.eup %8401  ;;  %v4380_v47 = vadd.f32 1e-12, %v4364_v60  ;;  %v4365_v4 = vmul.f32 0.0078125, %v4344_v41 }
 0xd9e   : > { %12165 = vst [vmem:[#allocation13_spill] sm:$0xff] %v10597_v63  ;;  %v10600_v3 = vadd.f32 %v10593_v59, %v4424_v51  ;;  %v4406_v34 = vmul.f32 %v8402_v26, %v10508_v42  ;;  %v4425_v57 = vmul.f32 %v10587_v58, %v4405_v27  ;;  %v4346_v28 = vpop.xlane.xlu1 %4345 }
 0xd9f   : > { %8411 = vrsqrt.f32 %v4380_v47  ;;  %v4366_v21 = vmul.f32 0.0078125, %v4346_v28  ;;  %v4381_v53 = vadd.f32 1e-12, %v4365_v4 }
 0xda0   : > { %12166 = vst [vmem:[#allocation10_spill] sm:$0xff] %v10600_v3  ;;  %v4461_v62 = vpack.c.bf16 %v10600_v3, %v10597_v63  ;;  %v4426_v12 = vmul.f32 %v10587_v58, %v4406_v34  ;;  %v10614_v33 = vadd.f32 %v10593_v59, %v4425_v57  ;;  %8413 = vrsqrt.f32 %v4379_v15  ;;  %v4348_v10 = vpop.xlane.xlu0 %4347 }
 0xda1   : > { %v8404_v43 = vpop.eup %8403  ;;  %v4382_v56 = vadd.f32 1e-12, %v4366_v21  ;;  %v4367_v54 = vmul.f32 0.0078125, %v4348_v10  ;;  %v8126_v10 = vld [vmem:[%s8748_s25 + $0x8] sm:$0xff]  }
 0xda2   : > { %4606 = vmatmul.mubr.bf16.vlgmr.msra.gmra.mrb[96].mxu1 %v4461_v62  ;;  %v8406_v18 = vpop.eup %8405  ;;  %v10610_v42 = vadd.f32 %v10593_v59, %v4426_v12  ;;  %v4408_v39 = vmul.f32 %v8404_v43, %v10518_v22  ;;  %12169 = vst [vmem:[#allocation38_spill] sm:$0xff] %v10614_v33  ;;  %v4350_v9 = vpop.xlane.xlu1 %4349 }
 0xda3   : > { %4615 = vmatprep.mubr.bf16.mxu1 %v12167_v25  ;;  %v4407_v55 = vmul.f32 %v8406_v18, %v10513_v0  ;;  %8415 = vrsqrt.f32 %v4382_v56  ;;  %v4368_v49 = vmul.f32 0.0078125, %v4350_v9  ;;  %v4383_v2 = vadd.f32 1e-12, %v4367_v54  ;;  %v10708_v54 = vld [vmem:[%s8753_s14 + $0xa] ss:$0 sm:$0xff] }
 0xda4   : > { %12168 = vst [vmem:[#allocation14_spill] sm:$0xff] %v10610_v42  ;;  %v4462_v50 = vpack.c.bf16 %v10610_v42, %v10614_v33  ;;  %v4428_v36 = vmul.f32 %v10587_v58, %v4408_v39  ;;  %8417 = vrsqrt.f32 %v4381_v53  ;;  %v4352_v5 = vpop.xlane.xlu0 %4351  ;;  %v8123_v53 = vld [vmem:[%s8748_s25 + $0x40] sm:$0xff]  }
 0xda5   : > { %v8408_v29 = vpop.eup %8407  ;;  %v4427_v22 = vmul.f32 %v10587_v58, %v4407_v55  ;;  %v4384_v1 = vadd.f32 1e-12, %v4368_v49  ;;  %v4369_v27 = vmul.f32 0.0078125, %v4352_v5  ;;  %6757 = vmatprep.subr.bf16.mxu0 %v8123_v53  ;;  %v8129_v49 = vld [vmem:[%s8748_s25 + $0x58] sm:$0xff]  }
 0xda6   : > { %v8410_v16 = vpop.eup %8409  ;;  %v10623_v0 = vadd.f32 %v10593_v59, %v4428_v36  ;;  %v4410_v24 = vmul.f32 %v8408_v29, %v10528_v61  ;;  %v4354_v19 = vpop.xlane.xlu1 %4353 }
 0xda7   : > { %v10627_v45 = vadd.f32 %v10593_v59, %v4427_v22  ;;  %v4409_v13 = vmul.f32 %v8410_v16, %v10523_v23  ;;  %8419 = vrsqrt.f32 %v4384_v1  ;;  %v4370_v20 = vmul.f32 0.0078125, %v4354_v19 }
 0xda8   : > { %12170 = vst [vmem:[#allocation39_spill] sm:$0xff] %v10623_v0  ;;  %v4430_v31 = vmul.f32 %v10587_v58, %v4410_v24  ;;  %8421 = vrsqrt.f32 %v4383_v2  ;;  %v4385_v12 = vadd.f32 1e-12, %v4369_v27 }
 0xda9   : > { %12171 = vst [vmem:[#allocation16_spill] sm:$0xff] %v10627_v45  ;;  %v4463_v6 = vpack.c.bf16 %v10623_v0, %v10627_v45  ;;  %v8412_v32 = vpop.eup %8411  ;;  %v4429_v61 = vmul.f32 %v10587_v58, %v4409_v13  ;;  %v4386_v60 = vadd.f32 1e-12, %v4370_v20  ;;  %v8127_v13 = vld [vmem:[%s8748_s25 + $0x50] sm:$0xff]  }
 0xdaa   : > { %4616 = vmatmul.mubr.bf16.gmra.mrb[100].mxu1 %v4462_v50  ;;  %v8414_v48 = vpop.eup %8413  ;;  %v10636_v23 = vadd.f32 %v10593_v59, %v4430_v31  ;;  %v4412_v35 = vmul.f32 %v8412_v32, %v10538_v46  ;;  %v8131_v31 = vld [vmem:[%s8748_s25 + $0x60] sm:$0xff]   ;;  %v10705_v32 = vld [vmem:[%s8753_s14 + $0x9] ss:$0 sm:$0xff] }
 0xdab   : > { %4625 = vmatprep.mubr.bf16.mxu1 %v12167_v25  ;;  %v10640_v17 = vadd.f32 %v10593_v59, %v4429_v61  ;;  %v4411_v51 = vmul.f32 %v8414_v48, %v10533_v38  ;;  %8423 = vrsqrt.f32 %v4386_v60  ;;  %v8132_v48 = vld [vmem:[%s8748_s25 + $0x20] sm:$0xff]  }
 0xdac   : > { %12172 = vst [vmem:[#allocation11_spill] sm:$0xff] %v10636_v23  ;;  %v4432_v14 = vmul.f32 %v10587_v58, %v4412_v35  ;;  %8425 = vrsqrt.f32 %v4385_v12 }
 0xdad   : > { %12173 = vst [vmem:[#allocation12_spill] sm:$0xff] %v10640_v17  ;;  %v4464_v26 = vpack.c.bf16 %v10636_v23, %v10640_v17  ;;  %v8416_v37 = vpop.eup %8415  ;;  %v4431_v46 = vmul.f32 %v10587_v58, %v4411_v51 }
 0xdae   : > { %v8418_v34 = vpop.eup %8417  ;;  %v10649_v62 = vadd.f32 %v10593_v59, %v4432_v14  ;;  %v4414_v38 = vmul.f32 %v8416_v37, %v10550_v30 }
 0xdaf   : > { %v10653_v43 = vadd.f32 %v10593_v59, %v4431_v46  ;;  %v4413_v52 = vmul.f32 %v8418_v34, %v10545_v44 }
 0xdb0   : > { %12174 = vst [vmem:[#allocation17_spill] sm:$0xff] %v10649_v62  ;;  %v4434_v18 = vmul.f32 %v10587_v58, %v4414_v38 }
 0xdb1   : > { %12175 = vst [vmem:[#allocation18_spill] sm:$0xff] %v10653_v43  ;;  %v4465_v57 = vpack.c.bf16 %v10649_v62, %v10653_v43  ;;  %v8420_v47 = vpop.eup %8419  ;;  %v4433_v28 = vmul.f32 %v10587_v58, %v4413_v52 }
 0xdb2   : > { %4626 = vmatmul.mubr.bf16.gmra.mrb[104].mxu1 %v4463_v6  ;;  %v8422_v39 = vpop.eup %8421  ;;  %v10662_v30 = vadd.f32 %v10593_v59, %v4434_v18  ;;  %v4416_v15 = vmul.f32 %v8420_v47, %v10562_v7  ;;  %v8130_v6 = vld [vmem:[%s8748_s25 + $0x18] sm:$0xff]  }
 0xdb3   : > { %4635 = vmatprep.mubr.bf16.mxu1 %v12167_v25  ;;  %v10666_v44 = vadd.f32 %v10593_v59, %v4433_v28  ;;  %v4415_v41 = vmul.f32 %v8422_v39, %v10557_v40  ;;  %v8133_v28 = vld [vmem:[%s8748_s25 + $0x68] sm:$0xff]  }
 0xdb4   : > { %12176 = vst [vmem:[#allocation8_spill] sm:$0xff] %v10662_v30  ;;  %v4436_v21 = vmul.f32 %v10587_v58, %v4416_v15 }
 0xdb5   : > { %12177 = vst [vmem:[#allocation7_spill] sm:$0xff] %v10666_v44  ;;  %v4466_v55 = vpack.c.bf16 %v10662_v30, %v10666_v44  ;;  %v8424_v50 = vpop.eup %8423  ;;  %v4435_v36 = vmul.f32 %v10587_v58, %v4415_v41 }
 0xdb6   : > { %v8426_v29 = vpop.eup %8425  ;;  %v10675_v7 = vadd.f32 %v10593_v59, %v4436_v21  ;;  %v4418_v4 = vmul.f32 %v8424_v50, %v10574_v11 }
 0xdb7   : > { %v10679_v40 = vadd.f32 %v10593_v59, %v4435_v36  ;;  %v4417_v22 = vmul.f32 %v8426_v29, %v10569_v8 }
 0xdb8   : > { %12178 = vst [vmem:[#allocation21_spill] sm:$0xff] %v10675_v7  ;;  %v4438_v56 = vmul.f32 %v10587_v58, %v4418_v4 }
 0xdb9   : > { %12179 = vst [vmem:[#allocation35_spill] sm:$0xff] %v10679_v40  ;;  %v4467_v16 = vpack.c.bf16 %v10675_v7, %v10679_v40  ;;  %v4437_v9 = vmul.f32 %v10587_v58, %v4417_v22  ;;  %v8124_v58 = vld [vmem:[%s8748_s25] sm:$0xff]  }
 0xdba   : > { %4636 = vmatmul.mubr.bf16.gmra.mrb[108].mxu1 %v4464_v26  ;;  %v10688_v11 = vadd.f32 %v10593_v59, %v4438_v56  ;;  %6758 = vmatpush3.bf16.msra.mxu0 %v8124_v58 }
 0xdbb   : > { %4645 = vmatprep.mubr.bf16.mxu1 %v12167_v25  ;;  %v10691_v24 = vadd.f32 %v10593_v59, %v4437_v9  ;;  %v8128_v59 = vld [vmem:[%s8748_s25 + $0x10] sm:$0xff]  }
 0xdbc   : > { %12180 = vst [vmem:[#allocation9_spill] sm:$0xff] %v10688_v11 }
 0xdbd   : > { %12181 = vst [vmem:[#allocation19_spill] sm:$0xff] %v10691_v24  ;;  %v4468_v8 = vpack.c.bf16 %v10688_v11, %v10691_v24 }
 0xdc2   : > { %4646 = vmatmul.mubr.bf16.gmra.mrb[112].mxu1 %v4465_v57 }
 0xdc3   : > { %4655 = vmatprep.mubr.bf16.mxu1 %v12167_v25 }
 0xdca   : > { %4656 = vmatmul.mubr.bf16.gmra.mrb[116].mxu1 %v4466_v55  ;;  %v8134_v55 = vld [vmem:[%s8748_s25 + $0x28] sm:$0xff]  }
 0xdcb   : > { %4665 = vmatprep.mubr.bf16.mxu1 %v12167_v25 }
 0xdd2   : > { %4666 = vmatmul.mubr.bf16.gmra.mrb[120].mxu1 %v4467_v16 }
 0xdd3   : > { %4675 = vmatprep.mubr.bf16.mxu1 %v12167_v25  ;;  %v8125_v25 = vld [vmem:[%s8748_s25 + $0x48] sm:$0xff]  }
 0xdd4   : > { %6759 = vmatprep.subr.bf16.mxu0 %v8125_v25 }
 0xdd5   : > { %6760 = vmatpush3.bf16.msra.mxu0 %v8126_v10 }
 0xdd6   : > { %6761 = vmatprep.subr.bf16.mxu0 %v8127_v13 }
 0xdd9   : > { %6762 = vmatpush3.bf16.msra.mxu0 %v8128_v59 }
 0xdda   : > { %4676 = vmatmul.mubr.bf16.gmra.mrb[124].mxu1 %v4468_v8  ;;  %6763 = vmatprep.subr.bf16.mxu0 %v8129_v49 }
 0xddd   : > { %6764 = vmatpush3.bf16.msra.mxu0 %v8130_v6 }
 0xdde   : > { %6765 = vmatprep.subr.bf16.mxu0 %v8131_v31 }
 0xde1   : > { %6766 = vmatpush3.bf16.msra.mxu0 %v8132_v48 }
 0xde2   : > { %6767 = vmatprep.subr.bf16.mxu0 %v8133_v28 }
 0xde5   : > { %6768 = vmatpush3.bf16.msra.mxu0 %v8134_v55 }
 0xe75   : > { %v4607_v61 = vpop.f32.mrb[96].mxu1 }
 0xe76   : > { %v10712_v1 = vadd.f32 %v10705_v32, %v4607_v61  ;;  %v4609_v19 = vpop.f32.mrb[97].mxu1 }
 0xe77   : > { %v10715_v35 = vadd.f32 %v10708_v54, %v4609_v19  ;;  %v4611_v2 = vpop.f32.mrb[98].mxu1 }
 0xe78   : > { %v10718_v5 = vmul.f32 0.70710677, %v10712_v1  ;;  %v10721_v51 = vadd.f32 %v10705_v32, %v4611_v2  ;;  %v4613_v20 = vpop.f32.mrb[99].mxu1 }
 0xe79   : > { %v10724_v26 = vmul.f32 0.70710677, %v10715_v35  ;;  %v10727_v14 = vadd.f32 %v10708_v54, %v4613_v20 }
 0xe7a   : > { %v4750_v37 = vand.u32 2147483647, %v10718_v5  ;;  %v10731_v27 = vmul.f32 0.70710677, %v10721_v51  ;;  %vm5390_vm0 = vcmp.ge.f32.partialorder %v10718_v5, 0.0 }
 0xe7b   : > { %v10734_v46 = vand.u32 2147483647, %v10724_v26  ;;  %v10737_v34 = vmul.f32 0.70710677, %v10727_v14  ;;  %vm5391_vm4 = vcmp.ge.f32.partialorder %v10724_v26, 0.0 }
 0xe7c   : > { %v4782_v60 = vmul.f32 0.3275911, %v4750_v37  ;;  %v4752_v38 = vand.u32 2147483647, %v10731_v27  ;;  %v5198_v8 = vsub.f32 0.0, %v4750_v37  ;;  %vm5392_vm1 = vcmp.ge.f32.partialorder %v10731_v27, 0.0 }
 0xe7d   : > { %v4783_v12 = vmul.f32 0.3275911, %v10734_v46  ;;  %v10742_v52 = vand.u32 2147483647, %v10737_v34  ;;  %v4617_v47 = vpop.f32.mrb[100].mxu1  ;;  %vm5393_vm5 = vcmp.ge.f32.partialorder %v10737_v34, 0.0 }
 0xe7e   : > { %v4814_v57 = vadd.f32 1.0, %v4782_v60  ;;  %v4784_v18 = vmul.f32 0.3275911, %v4752_v38  ;;  %v4619_v41 = vpop.f32.mrb[101].mxu1  ;;  %v10748_v4 = vadd.f32 %v10705_v32, %v4617_v47  ;;  %v5230_v48 = vmul.f32 %v5198_v8, %v4750_v37  ;;  %v8135_v47 = vld [vmem:[%s8748_s25 + $0x70] sm:$0xff]  }
 0xe7f   : > { %v4815_v39 = vadd.f32 1.0, %v4783_v12  ;;  %v4785_v15 = vmul.f32 0.3275911, %v10742_v52  ;;  %v4621_v50 = vpop.f32.mrb[102].mxu1  ;;  %v10751_v22 = vadd.f32 %v10708_v54, %v4619_v41  ;;  %v5200_v60 = vsub.f32 0.0, %v4752_v38  ;;  %6769 = vmatprep.subr.bf16.mxu0 %v8135_v47 }
 0xe80   : > { %8427 = vrcp.f32 %v4814_v57  ;;  %v4816_v21 = vadd.f32 1.0, %v4784_v18  ;;  %v4623_v36 = vpop.f32.mrb[103].mxu1  ;;  %v10754_v16 = vadd.f32 %v10705_v32, %v4621_v50  ;;  %v10757_v56 = vmul.f32 0.70710677, %v10748_v4 }
 0xe81   : > { %8429 = vrcp.f32 %v4815_v39  ;;  %v4817_v29 = vadd.f32 1.0, %v4785_v15  ;;  %v10760_v9 = vadd.f32 %v10708_v54, %v4623_v36  ;;  %v10763_v53 = vmul.f32 0.70710677, %v10751_v22 }
 0xe82   : > { %8431 = vrcp.f32 %v4816_v21  ;;  %v10766_v58 = vmul.f32 0.70710677, %v10754_v16  ;;  %v10769_v10 = vand.u32 2147483647, %v10757_v56  ;;  %v5199_v41 = vsub.f32 0.0, %v10734_v46 }
 0xe83   : > { %8433 = vrcp.f32 %v4817_v29  ;;  %v10774_v59 = vand.u32 2147483647, %v10763_v53  ;;  %v10783_v61 = vmul.f32 0.70710677, %v10760_v9  ;;  %v5262_v50 = vmul.f32 1.442695, %v5230_v48 }
 0xe84   : > { %v10777_v49 = vand.u32 2147483647, %v10766_v58  ;;  %v4786_v31 = vmul.f32 0.3275911, %v10769_v10  ;;  %v5201_v11 = vsub.f32 0.0, %v10742_v52  ;;  %v5202_v33 = vsub.f32 0.0, %v10769_v10 }
 0xe85   : > { %v4627_v25 = vpop.f32.mrb[104].mxu1  ;;  %v4787_v19 = vmul.f32 0.3275911, %v10774_v59  ;;  %v10790_v57 = vand.u32 2147483647, %v10783_v61  ;;  %vm5394_vm6 = vcmp.ge.f32.partialorder %v10757_v56, 0.0 }
 0xe86   : > { %v10771_v13 = vpop.f32.mrb[105].mxu1  ;;  %v4788_v2 = vmul.f32 0.3275911, %v10777_v49  ;;  %v4818_v12 = vadd.f32 1.0, %v4786_v31  ;;  %v5232_v31 = vmul.f32 %v5200_v60, %v4752_v38  ;;  %v10815_v38 = vadd.f32 %v10705_v32, %v4627_v25 }
 0xe87   : > { %v10779_v6 = vpop.f32.mrb[106].mxu1  ;;  %v4819_v15 = vadd.f32 1.0, %v4787_v19  ;;  %v4789_v36 = vmul.f32 0.3275911, %v10790_v57  ;;  %v5233_v30 = vmul.f32 %v5201_v11, %v10742_v52  ;;  %vm5395_vm7 = vcmp.ge.f32.partialorder %v10763_v53, 0.0 }
 0xe88   : > { %v10792_v18 = vpop.f32.mrb[107].mxu1  ;;  %8435 = vrcp.f32 %v4818_v12  ;;  %v4820_v55 = vadd.f32 1.0, %v4788_v2  ;;  %v5266_v40 = vmul.f32 1.442695, %v5232_v31  ;;  %vm5396_vm8 = vcmp.ge.f32.partialorder %v10766_v58, 0.0 }
 0xe89   : > { %8437 = vrcp.f32 %v4819_v15  ;;  %v4821_v12 = vadd.f32 1.0, %v4789_v36  ;;  %vm5397_vm9 = vcmp.ge.f32.partialorder %v10783_v61, 0.0 }
 0xe8a   : > { %v10787_v20 = vpop.eup %8427  ;;  %8439 = vrcp.f32 %v4820_v55  ;;  %v10826_v55 = vmul.f32 0.70710677, %v10815_v38 }
 0xe8b   : > { %v10795_v28 = vpop.eup %8429  ;;  %v4910_v39 = vmul.f32 1.0614054, %v10787_v20  ;;  %8441 = vpow2.f32 %v5262_v50 }
 0xe8c   : > { %v4911_v37 = vmul.f32 1.0614054, %v10795_v28  ;;  %v10801_v29 = vpop.eup %8431  ;;  %8443 = vrcp.f32 %v4821_v12  ;;  %12182 = vst [vmem:[#allocation22_spill] sm:$0xff] %v10826_v55  ;;  %v10831_v31 = vand.u32 2147483647, %v10826_v55 }
 0xe8d   : > { %v4942_v21 = vadd.f32 -1.4531521, %v4910_v39  ;;  %v10804_v24 = vpop.f32.mrb[108].mxu1  ;;  %v4912_v7 = vmul.f32 1.0614054, %v10801_v29  ;;  %v10810_v47 = vpop.eup %8433  ;;  %v5231_v39 = vmul.f32 %v5199_v41, %v10734_v46  ;;  %8445 = vpow2.f32 %v5266_v40 }
 0xe8e   : > { %v4943_v8 = vadd.f32 -1.4531521, %v4911_v37  ;;  %v10808_v2 = vpop.f32.mrb[109].mxu1  ;;  %v4790_v62 = vmul.f32 0.3275911, %v10831_v31 }
 0xe8f   : > { %v4974_v19 = vmul.f32 %v10787_v20, %v4942_v21  ;;  %v10817_v60 = vpop.f32.mrb[110].mxu1  ;;  %v4944_v37 = vadd.f32 -1.4531521, %v4912_v7  ;;  %v4913_v21 = vmul.f32 1.0614054, %v10810_v47  ;;  %v10999_v34 = vadd.f32 %v10708_v54, %v10808_v2 }
 0xe90   : > { %v4975_v48 = vmul.f32 %v10795_v28, %v4943_v8  ;;  %v10821_v8 = vpop.f32.mrb[111].mxu1  ;;  %v5264_v12 = vmul.f32 1.442695, %v5231_v39 }
 0xe91   : > { %v5006_v15 = vadd.f32 1.4214138, %v4974_v19  ;;  %v4976_v41 = vmul.f32 %v10801_v29, %v4944_v37  ;;  %v4945_v25 = vadd.f32 -1.4531521, %v4913_v21  ;;  %v8136_v19 = vld [vmem:[%s8748_s25 + $0x30] sm:$0xff]  }
 0xe92   : > { %v5007_v36 = vadd.f32 1.4214138, %v4975_v48  ;;  %6770 = vmatpush3.bf16.msra.mxu0 %v8136_v19  ;;  %v10833_v11 = vpop.eup %8435  ;;  %v5268_v48 = vmul.f32 1.442695, %v5233_v30  ;;  %8447 = vpow2.f32 %v5264_v12 }
 0xe93   : > { %v5038_v46 = vmul.f32 %v10787_v20, %v5006_v15  ;;  %v5008_v7 = vadd.f32 1.4214138, %v4976_v41  ;;  %v4977_v44 = vmul.f32 %v10810_v47, %v4945_v25  ;;  %v10836_v15 = vpop.eup %8437  ;;  %v4914_v41 = vmul.f32 1.0614054, %v10833_v11 }
 0xe94   : > { %v5039_v52 = vmul.f32 %v10795_v28, %v5007_v36  ;;  %v4915_v19 = vmul.f32 1.0614054, %v10836_v15  ;;  %v10848_v23 = vpop.eup %8439 }
 0xe95   : > { %v5070_v50 = vadd.f32 -0.28449672, %v5038_v46  ;;  %v5040_v21 = vmul.f32 %v10801_v29, %v5008_v7  ;;  %v5009_v46 = vadd.f32 1.4214138, %v4977_v44  ;;  %v10841_v25 = vpop.f32.mrb[112].mxu1  ;;  %v8442_v17 = vpop.eup %8441 }
 0xe96   : > { %v10845_v43 = vpop.f32.mrb[113].mxu1  ;;  %v4946_v36 = vadd.f32 -1.4531521, %v4914_v41  ;;  %v5071_v44 = vadd.f32 -0.28449672, %v5039_v52 }
 0xe97   : > { %v5102_v37 = vmul.f32 %v10787_v20, %v5070_v50  ;;  %12183 = vst [vmem:[#allocation20_spill] sm:$0xff] %v10845_v43  ;;  %v5072_v40 = vadd.f32 -0.28449672, %v5040_v21  ;;  %v5041_v30 = vmul.f32 %v10810_v47, %v5009_v46  ;;  %v4947_v50 = vadd.f32 -1.4531521, %v4915_v19  ;;  %v10851_v7 = vpop.f32.mrb[114].mxu1  ;;  %v10858_v46 = vpop.eup %8443 }
 0xe98   : > { %12184 = vst [vmem:[#allocation34_spill] sm:$0xff] %v10851_v7  ;;  %v4822_v21 = vadd.f32 1.0, %v4790_v62  ;;  %v10856_v42 = vpop.f32.mrb[115].mxu1  ;;  %v4916_v12 = vmul.f32 1.0614054, %v10848_v23  ;;  %v5103_v62 = vmul.f32 %v10795_v28, %v5071_v44 }
 0xe99   : > { %v5134_v39 = vadd.f32 0.2548296, %v5102_v37  ;;  %v5104_v45 = vmul.f32 %v10801_v29, %v5072_v40  ;;  %v4978_v37 = vmul.f32 %v10833_v11, %v4946_v36  ;;  %12185 = vst [vmem:[#allocation33_spill] sm:$0xff] %v10856_v42  ;;  %v5073_v41 = vadd.f32 -0.28449672, %v5041_v30 }
 0xe9a   : > { %v4979_v52 = vmul.f32 %v10836_v15, %v4947_v50  ;;  %v5203_v40 = vsub.f32 0.0, %v10774_v59  ;;  %v4948_v63 = vadd.f32 -1.4531521, %v4916_v12  ;;  %v4917_v30 = vmul.f32 1.0614054, %v10858_v46 }
 0xe9b   : > { %v5166_v0 = vmul.f32 %v10787_v20, %v5134_v39  ;;  %v5136_v20 = vadd.f32 0.2548296, %v5104_v45  ;;  %v5010_v39 = vadd.f32 1.4214138, %v4978_v37  ;;  %8449 = vrcp.f32 %v4822_v21  ;;  %v8138_v45 = vld [vmem:[%s8748_s25 + $0x38] sm:$0xff]  }
 0xe9c   : > { %v5011_v3 = vadd.f32 1.4214138, %v4979_v52  ;;  %v5105_v37 = vmul.f32 %v10810_v47, %v5073_v41  ;;  %v4980_v44 = vmul.f32 %v10848_v23, %v4948_v63  ;;  %v4949_v52 = vadd.f32 -1.4531521, %v4917_v30 }
 0xe9d   : > { %v5326_v19 = vmul.f32 %v8442_v17, %v5166_v0  ;;  %v10864_v36 = vpop.f32.mrb[116].mxu1  ;;  %v5168_v50 = vmul.f32 %v10801_v29, %v5136_v20  ;;  %v5042_v7 = vmul.f32 %v10833_v11, %v5010_v39  ;;  %v8137_v0 = vld [vmem:[%s8748_s25 + $0x78] sm:$0xff]   ;;  %v8446_v17 = vpop.eup %8445  ;;  %8451 = vpow2.f32 %v5268_v48 }
 0xe9e   : > { %12186 = vst [vmem:[#allocation15_spill] sm:$0xff] %v10864_v36  ;;  %v10870_v55 = vpop.f32.mrb[117].mxu1  ;;  %v5234_v36 = vmul.f32 %v5202_v33, %v10769_v10  ;;  %v5043_v29 = vmul.f32 %v10836_v15, %v5011_v3  ;;  %6771 = vmatprep.subr.bf16.mxu0 %v8137_v0  ;;  %v5135_v20 = vadd.f32 0.2548296, %v5103_v62  ;;  %v5235_v39 = vmul.f32 %v5203_v40, %v10774_v59  ;;  %v8448_v48 = vpop.eup %8447 }
 0xe9f   : > { %v5358_v42 = vsub.f32 1.0, %v5326_v19  ;;  %12187 = vst [vmem:[#allocation5_spill] sm:$0xff] %v10870_v55  ;;  %v10877_v12 = vpop.f32.mrb[118].mxu1  ;;  %v5328_v43 = vmul.f32 %v8446_v17, %v5168_v50  ;;  %v5012_v55 = vadd.f32 1.4214138, %v4980_v44  ;;  %v5204_v41 = vsub.f32 0.0, %v10777_v49  ;;  %6772 = vmatpush3.bf16.msra.mxu0 %v8138_v45 }
 0xea0   : > { %v10880_v21 = vpop.f32.mrb[119].mxu1  ;;  %v5074_v10 = vadd.f32 -0.28449672, %v5042_v7  ;;  %v4981_v30 = vmul.f32 %v10858_v46, %v4949_v52  ;;  %v4686_v3 = vmul.f32 0.5, %v10712_v1  ;;  %v4688_v50 = vmul.f32 0.5, %v10721_v51 }
 0xea1   : > { %v5422_v19 = vsub.f32 0.0, %v5358_v42  ;;  %v5360_v33 = vsub.f32 1.0, %v5328_v43  ;;  %v5137_v0 = vadd.f32 0.2548296, %v5105_v37  ;;  %v5270_v62 = vmul.f32 1.442695, %v5234_v36 }
 0xea2   : > { %v5075_v59 = vadd.f32 -0.28449672, %v5043_v29  ;;  %v5044_v40 = vmul.f32 %v10848_v23, %v5012_v55  ;;  %v10892_v45 = vadd.f32 %v10708_v54, %v10771_v13  ;;  %v5272_v5 = vmul.f32 1.442695, %v5235_v39 }
 0xea3   : > { %v5454_v63 = vsel %vm5390_vm0, %v5358_v42, %v5422_v19  ;;  %v5424_v17 = vsub.f32 0.0, %v5360_v33  ;;  %v5236_v1 = vmul.f32 %v5204_v41, %v10777_v49  ;;  %v5167_v51 = vmul.f32 %v10795_v28, %v5135_v20 }
 0xea4   : > { %v5486_v43 = vadd.f32 1.0, %v5454_v63  ;;  %v5106_v36 = vmul.f32 %v10833_v11, %v5074_v10  ;;  %v5013_v37 = vadd.f32 1.4214138, %v4981_v30  ;;  %v5169_v13 = vmul.f32 %v10810_v47, %v5137_v0 }
 0xea5   : > { %v10894_v42 = vpop.f32.mrb[120].mxu1  ;;  %v5456_v7 = vsel %vm5392_vm1, %v5360_v33, %v5424_v17  ;;  %8453 = vpow2.f32 %v5270_v62  ;;  %v5205_v52 = vsub.f32 0.0, %v10790_v57  ;;  %v10906_v27 = vpop.eup %8449  ;;  %v5107_v49 = vmul.f32 %v10836_v15, %v5075_v59 }
 0xea6   : > { %v10900_v44 = vpop.f32.mrb[121].mxu1  ;;  %v5488_v55 = vadd.f32 1.0, %v5456_v7  ;;  %v5076_v29 = vadd.f32 -0.28449672, %v5044_v40  ;;  %v10910_v28 = vmul.f32 0.70710677, %v10892_v45  ;;  %v10914_v39 = vmul.f32 %v5486_v43, %v4686_v3 }
 0xea7   : > { %v10904_v19 = vpop.f32.mrb[122].mxu1  ;;  %8455 = vpow2.f32 %v5272_v5  ;;  %v5274_v47 = vmul.f32 1.442695, %v5236_v1  ;;  %v8452_v63 = vpop.eup %8451  ;;  %v5327_v33 = vmul.f32 %v8448_v48, %v5167_v51  ;;  %v5138_v10 = vadd.f32 0.2548296, %v5106_v36 }
 0xea8   : > { %v10912_v20 = vpop.f32.mrb[123].mxu1  ;;  %12188 = vst [vmem:[#allocation24_spill] sm:$0xff] %v10914_v39  ;;  %v10916_v41 = vmul.f32 %v5488_v55, %v4688_v50  ;;  %v5045_v30 = vmul.f32 %v10858_v46, %v5013_v37  ;;  %v5329_v62 = vmul.f32 %v8452_v63, %v5169_v13  ;;  %v5237_v17 = vmul.f32 %v5205_v52, %v10790_v57 }
 0xea9   : > { %v4918_v59 = vmul.f32 1.0614054, %v10906_v27  ;;  %v10924_v3 = vmul.f32 0.5, %v10715_v35  ;;  %v5139_v50 = vadd.f32 0.2548296, %v5107_v49  ;;  %v5108_v40 = vmul.f32 %v10848_v23, %v5076_v29 }
 0xeaa   : > { %12189 = vst [vmem:[#allocation23_spill] sm:$0xff] %v10916_v41  ;;  %v10928_v43 = vand.u32 2147483647, %v10910_v28  ;;  %v10934_v5 = vmul.f32 0.5, %v10727_v14  ;;  %8457 = vpow2.f32 %v5274_v47  ;;  %v10938_v57 = vadd.f32 %v10705_v32, %v10779_v6 }
 0xeab   : > { %v5359_v35 = vsub.f32 1.0, %v5327_v33  ;;  %v5170_v1 = vmul.f32 %v10833_v11, %v5138_v10  ;;  %v5077_v51 = vadd.f32 -0.28449672, %v5045_v30  ;;  %v5361_v36 = vsub.f32 1.0, %v5329_v62 }
 0xeac   : > { %v4791_v7 = vmul.f32 0.3275911, %v10928_v43  ;;  %v5276_v37 = vmul.f32 1.442695, %v5237_v17  ;;  %v4950_v55 = vadd.f32 -1.4531521, %v4918_v59  ;;  %v5171_v52 = vmul.f32 %v10836_v15, %v5139_v50 }
 0xead   : > { %v10930_v48 = vpop.f32.mrb[124].mxu1  ;;  %v5140_v14 = vadd.f32 0.2548296, %v5108_v40  ;;  %v5206_v49 = vsub.f32 0.0, %v10831_v31  ;;  %v10950_v11 = vmul.f32 0.5, %v10748_v4  ;;  %v10953_v63 = vmul.f32 0.5, %v10751_v22 }
 0xeae   : > { %12190 = vst [vmem:[#allocation27_spill] sm:$0xff] %v10930_v48  ;;  %v10942_v13 = vpop.f32.mrb[125].mxu1  ;;  %v4823_v29 = vadd.f32 1.0, %v4791_v7  ;;  %v10956_v33 = vmul.f32 0.70710677, %v10938_v57  ;;  %v5423_v15 = vsub.f32 0.0, %v5359_v35  ;;  %v5109_v62 = vmul.f32 %v10858_v46, %v5077_v51 }
 0xeaf   : > { %12191 = vst [vmem:[#allocation25_spill] sm:$0xff] %v10942_v13  ;;  %v10946_v47 = vpop.f32.mrb[126].mxu1  ;;  %v8454_v6 = vpop.eup %8453  ;;  %v5425_v59 = vsub.f32 0.0, %v5361_v36  ;;  %v4982_v50 = vmul.f32 %v10906_v27, %v4950_v55  ;;  %v5172_v40 = vmul.f32 %v10848_v23, %v5140_v14  ;;  %v5238_v7 = vmul.f32 %v5206_v49, %v10831_v31 }
 0xeb0   : > { %12192 = vst [vmem:[#allocation32_spill] sm:$0xff] %v10946_v47  ;;  %v10958_v10 = vpop.f32.mrb[127].mxu1  ;;  %v5330_v30 = vmul.f32 %v8454_v6, %v5170_v1  ;;  %8459 = vrcp.f32 %v4823_v29  ;;  %v10963_v4 = vand.u32 2147483647, %v10956_v33  ;;  %v10969_v0 = vadd.f32 %v10708_v54, %v10792_v18 }
 0xeb1   : > { %12193 = vst [vmem:[#allocation36_spill] sm:$0xff] %v10958_v10  ;;  %v8456_v17 = vpop.eup %8455  ;;  %8461 = vpow2.f32 %v5276_v37  ;;  %v10973_v1 = vmul.f32 0.5, %v10754_v16  ;;  %v10978_v37 = vadd.f32 %v10705_v32, %v10804_v24  ;;  %v5455_v23 = vsel %vm5391_vm4, %v5359_v35, %v5423_v15 }
 0xeb2   : > { %v5331_v22 = vmul.f32 %v8456_v17, %v5171_v52  ;;  %v4792_v51 = vmul.f32 0.3275911, %v10963_v4  ;;  %v5362_v55 = vsub.f32 1.0, %v5330_v30  ;;  %v10983_v31 = vmul.f32 0.5, %v10760_v9 }
 0xeb3   : > { %v5141_v18 = vadd.f32 0.2548296, %v5109_v62  ;;  %v5457_v14 = vsel %vm5393_vm5, %v5361_v36, %v5425_v59  ;;  %v5014_v16 = vadd.f32 1.4214138, %v4982_v50  ;;  %v10988_v29 = vmul.f32 0.70710677, %v10969_v0 }
 0xeb4   : > { %v8458_v52 = vpop.eup %8457  ;;  %v4824_v49 = vadd.f32 1.0, %v4792_v51  ;;  %v5363_v6 = vsub.f32 1.0, %v5331_v22  ;;  %v5278_v17 = vmul.f32 1.442695, %v5238_v7  ;;  %v10991_v26 = vmul.f32 0.70710677, %v10978_v37 }
 0xeb5   : > { %v5332_v24 = vmul.f32 %v8458_v52, %v5172_v40  ;;  %v10995_v9 = vand.u32 2147483647, %v10988_v29  ;;  %v5426_v35 = vsub.f32 0.0, %v5362_v55  ;;  %v5173_v36 = vmul.f32 %v10858_v46, %v5141_v18 }
 0xeb6   : > { %8463 = vrcp.f32 %v4824_v49  ;;  %v11003_v15 = vmul.f32 0.5, %v10815_v38  ;;  %v11006_v30 = vand.u32 2147483647, %v10991_v26  ;;  %v5487_v62 = vadd.f32 1.0, %v5455_v23 }
 0xeb7   : > { %v5489_v59 = vadd.f32 1.0, %v5457_v14  ;;  %v5046_v50 = vmul.f32 %v10906_v27, %v5014_v16  ;;  %v4793_v22 = vmul.f32 0.3275911, %v10995_v9  ;;  %v5427_v2 = vsub.f32 0.0, %v5363_v6 }
 0xeb8   : > { %v5364_v7 = vsub.f32 1.0, %v5332_v24  ;;  %8465 = vpow2.f32 %v5278_v17  ;;  %v4794_v46 = vmul.f32 0.3275911, %v11006_v30  ;;  %v5207_v18 = vsub.f32 0.0, %v10928_v43 }
 0xeb9   : > { %v4825_v23 = vadd.f32 1.0, %v4793_v22  ;;  %v11017_v52 = vmul.f32 0.70710677, %v10999_v34  ;;  %v5458_v14 = vsel %vm5394_vm6, %v5362_v55, %v5426_v35  ;;  %v11023_v24 = vadd.f32 %v10705_v32, %v10817_v60 }
 0xeba   : > { %v11011_v40 = vpop.eup %8459  ;;  %v4826_v49 = vadd.f32 1.0, %v4794_v46  ;;  %v5078_v17 = vadd.f32 -0.28449672, %v5046_v50  ;;  %v11029_v22 = vmul.f32 %v5487_v62, %v10924_v3  ;;  %v5428_v39 = vsub.f32 0.0, %v5364_v7 }
 0xebb   : > { %v8462_v38 = vpop.eup %8461  ;;  %v4919_v51 = vmul.f32 1.0614054, %v11011_v40  ;;  %8467 = vrcp.f32 %v4825_v23  ;;  %v11026_v47 = vand.u32 2147483647, %v11017_v52  ;;  %v11032_v41 = vmul.f32 0.5, %v10892_v45 }
 0xebc   : > { %v5333_v16 = vmul.f32 %v8462_v38, %v5173_v36  ;;  %12194 = vst [vmem:[#allocation29_spill] sm:$0xff] %v11029_v22  ;;  %8469 = vrcp.f32 %v4826_v49  ;;  %v5459_v56 = vsel %vm5395_vm7, %v5363_v6, %v5427_v2  ;;  %v5239_v55 = vmul.f32 %v5207_v18, %v10928_v43 }
 0xebd   : > { %v4951_v10 = vadd.f32 -1.4531521, %v4919_v51  ;;  %v4795_v35 = vmul.f32 0.3275911, %v11026_v47  ;;  %v11040_v36 = vmul.f32 %v5489_v59, %v10934_v5  ;;  %v5490_v50 = vadd.f32 1.0, %v5458_v14 }
 0xebe   : > { %v5365_v3 = vsub.f32 1.0, %v5333_v16  ;;  %v11044_v45 = vmul.f32 0.70710677, %v11023_v24  ;;  %v5110_v53 = vmul.f32 %v10906_v27, %v5078_v17  ;;  %v11051_v43 = vadd.f32 %v10708_v54, %v10821_v8 }
 0xebf   : > { %v4983_v60 = vmul.f32 %v11011_v40, %v4951_v10  ;;  %12195 = vst [vmem:[#allocation44_spill] sm:$0xff] %v11040_v36  ;;  %v4827_v10 = vadd.f32 1.0, %v4795_v35  ;;  %v5491_v2 = vadd.f32 1.0, %v5459_v56  ;;  %v5460_v5 = vsel %vm5396_vm8, %v5364_v7, %v5428_v39 }
 0xec0   : > { %v11046_v62 = vpop.eup %8463  ;;  %v11057_v46 = vand.u32 2147483647, %v11044_v45  ;;  %v5280_v51 = vmul.f32 1.442695, %v5239_v55  ;;  %v11061_v18 = vmul.f32 0.70710677, %v11051_v43  ;;  %v11069_v39 = vadd.f32 %v10705_v32, %v10841_v25 }
 0xec1   : > { %v5015_v6 = vadd.f32 1.4214138, %v4983_v60  ;;  %v4920_v59 = vmul.f32 1.0614054, %v11046_v62  ;;  %8471 = vrcp.f32 %v4827_v10  ;;  %v11064_v8 = vmul.f32 0.5, %v10938_v57 }
 0xec2   : > { %v8466_v23 = vpop.eup %8465  ;;  %v4796_v58 = vmul.f32 0.3275911, %v11057_v46  ;;  %v5492_v7 = vadd.f32 1.0, %v5460_v5  ;;  %v5429_v16 = vsub.f32 0.0, %v5365_v3  ;;  %v5142_v49 = vadd.f32 0.2548296, %v5110_v53 }
 0xec3   : > { %v5047_v38 = vmul.f32 %v11011_v40, %v5015_v6  ;;  %v4952_v14 = vadd.f32 -1.4531521, %v4920_v59  ;;  %v11072_v17 = vand.u32 2147483647, %v11061_v18  ;;  %v11075_v56 = vmul.f32 %v5490_v50, %v10950_v11 }
 0xec4   : > { %v11078_v60 = vmul.f32 %v5491_v2, %v10953_v63  ;;  %v4828_v55 = vadd.f32 1.0, %v4796_v58  ;;  %8473 = vpow2.f32 %v5280_v51  ;;  %v5208_v25 = vsub.f32 0.0, %v10963_v4 }
 0xec5   : > { %12196 = vst [vmem:[#allocation45_spill] sm:$0xff] %v11075_v56  ;;  %v4984_v57 = vmul.f32 %v11046_v62, %v4952_v14  ;;  %v11081_v35 = vpop.eup %8467  ;;  %v5079_v6 = vadd.f32 -0.28449672, %v5047_v38  ;;  %v4797_v53 = vmul.f32 0.3275911, %v11072_v17  ;;  %v11092_v50 = vmul.f32 %v5492_v7, %v10973_v1 }
 0xec6   : > { %12197 = vst [vmem:[#allocation26_spill] sm:$0xff] %v11078_v60  ;;  %v11085_v10 = vpop.eup %8469  ;;  %v4921_v11 = vmul.f32 1.0614054, %v11081_v35  ;;  %8475 = vrcp.f32 %v4828_v55  ;;  %v11089_v63 = vmul.f32 0.70710677, %v11069_v39  ;;  %v5461_v2 = vsel %vm5397_vm9, %v5365_v3, %v5429_v16 }
 0xec7   : > { %v5016_v5 = vadd.f32 1.4214138, %v4984_v57  ;;  %12198 = vst [vmem:[#allocation30_spill] sm:$0xff] %v11092_v50  ;;  %v5174_v59 = vmul.f32 %v10906_v27, %v5142_v49  ;;  %v4922_v38 = vmul.f32 1.0614054, %v11085_v10  ;;  %v5209_v14 = vsub.f32 0.0, %v10995_v9 }
 0xec8   : > { %v4953_v51 = vadd.f32 -1.4531521, %v4921_v11  ;;  %v4829_v58 = vadd.f32 1.0, %v4797_v53  ;;  %v11100_v57 = vand.u32 2147483647, %v11089_v63  ;;  %v5111_v55 = vmul.f32 %v11011_v40, %v5079_v6 }
 0xec9   : > { %v11104_v56 = vmul.f32 0.5, %v10969_v0  ;;  %v4954_v1 = vadd.f32 -1.4531521, %v4922_v38  ;;  %v5210_v61 = vsub.f32 0.0, %v11006_v30  ;;  %v5048_v3 = vmul.f32 %v11046_v62, %v5016_v5 }
 0xeca   : > { %v4985_v27 = vmul.f32 %v11081_v35, %v4953_v51  ;;  %8477 = vrcp.f32 %v4829_v58  ;;  %v4798_v7 = vmul.f32 0.3275911, %v11100_v57  ;;  %v5493_v49 = vadd.f32 1.0, %v5461_v2 }
 0xecb   : > { %v11110_v16 = vpop.eup %8471  ;;  %v11112_v53 = vmul.f32 %v8466_v23, %v5174_v59  ;;  %v5240_v6 = vmul.f32 %v5208_v25, %v10963_v4  ;;  %v4986_v0 = vmul.f32 %v11085_v10, %v4954_v1  ;;  %v5241_v38 = vmul.f32 %v5209_v14, %v10995_v9  ;;  %v12199_v14 = vld [vmem:[#allocation20_spill] sm:$0xff] }
 0xecc   : > { %v5017_v11 = vadd.f32 1.4214138, %v4985_v27  ;;  %v4923_v50 = vmul.f32 1.0614054, %v11110_v16  ;;  %v4830_v5 = vadd.f32 1.0, %v4798_v7  ;;  %v5242_v58 = vmul.f32 %v5210_v61, %v11006_v30 }
 0xecd   : > { %v5143_v60 = vadd.f32 0.2548296, %v5111_v55  ;;  %v5018_v51 = vadd.f32 1.4214138, %v4986_v0  ;;  %v5211_v13 = vsub.f32 0.0, %v11026_v47  ;;  %v11122_v59 = vmul.f32 0.5, %v10978_v37 }
 0xece   : > { %v5080_v36 = vadd.f32 -0.28449672, %v5048_v3  ;;  %v5049_v23 = vmul.f32 %v11081_v35, %v5017_v11  ;;  %v4955_v2 = vadd.f32 -1.4531521, %v4923_v50  ;;  %8479 = vrcp.f32 %v4830_v5  ;;  %v8474_v4 = vpop.eup %8473  ;;  %v12201_v0 = vld [vmem:[#allocation22_spill] sm:$0xff] }
 0xecf   : > { %v5282_v25 = vmul.f32 1.442695, %v5240_v6  ;;  %v5050_v9 = vmul.f32 %v11085_v10, %v5018_v51  ;;  %v11127_v55 = vadd.f32 %v10708_v54, %v12199_v14  ;;  %v5284_v61 = vmul.f32 1.442695, %v5241_v38 }
 0xed0   : > { %v11129_v1 = vpop.eup %8475  ;;  %v5081_v30 = vadd.f32 -0.28449672, %v5049_v23  ;;  %v4987_v3 = vmul.f32 %v11110_v16, %v4955_v2  ;;  %v5212_v50 = vsub.f32 0.0, %v11057_v46  ;;  %v11134_v27 = vmul.f32 %v5493_v49, %v10983_v31 }
 0xed1   : > { %v5366_v37 = vsub.f32 1.0, %v11112_v53  ;;  %v5286_v7 = vmul.f32 1.442695, %v5242_v58  ;;  %v4924_v6 = vmul.f32 1.0614054, %v11129_v1  ;;  %vm5398_vm10 = vcmp.ge.f32.partialorder %v12201_v0, 0.0 }
 0xed2   : > { %12200 = vst [vmem:[#allocation28_spill] sm:$0xff] %v11134_v27  ;;  %v5175_v11 = vmul.f32 %v11011_v40, %v5143_v60  ;;  %v5112_v5 = vmul.f32 %v11046_v62, %v5080_v36  ;;  %v5019_v51 = vadd.f32 1.4214138, %v4987_v3  ;;  %v5243_v38 = vmul.f32 %v5211_v13, %v11026_v47 }
 0xed3   : > { %8481 = vpow2.f32 %v5282_v25  ;;  %v5082_v23 = vadd.f32 -0.28449672, %v5050_v9  ;;  %v4956_v2 = vadd.f32 -1.4531521, %v4924_v6  ;;  %v11143_v31 = vmul.f32 0.70710677, %v11127_v55 }
 0xed4   : > { %v11145_v49 = vpop.eup %8477  ;;  %v5113_v53 = vmul.f32 %v11081_v35, %v5081_v30  ;;  %8483 = vpow2.f32 %v5284_v61  ;;  %v5051_v58 = vmul.f32 %v11110_v16, %v5019_v51  ;;  %v5244_v40 = vmul.f32 %v5212_v50, %v11057_v46 }
 0xed5   : > { %v4988_v36 = vmul.f32 %v11129_v1, %v4956_v2  ;;  %v4925_v60 = vmul.f32 1.0614054, %v11145_v49  ;;  %v5213_v13 = vsub.f32 0.0, %v11072_v17  ;;  %v11154_v47 = vand.u32 2147483647, %v11143_v31 }
 0xed6   : > { %v5430_v25 = vsub.f32 0.0, %v5366_v37  ;;  %v5335_v9 = vmul.f32 %v8474_v4, %v5175_v11  ;;  %v5144_v14 = vadd.f32 0.2548296, %v5112_v5  ;;  %v5288_v3 = vmul.f32 1.442695, %v5243_v38 }
 0xed7   : > { %v5114_v30 = vmul.f32 %v11085_v10, %v5082_v23  ;;  %v5020_v61 = vadd.f32 1.4214138, %v4988_v36  ;;  %v4957_v6 = vadd.f32 -1.4531521, %v4925_v60  ;;  %v4799_v51 = vmul.f32 0.3275911, %v11154_v47 }
 0xed8   : > { %v11158_v46 = vpop.eup %8479  ;;  %v5145_v50 = vadd.f32 0.2548296, %v5113_v53  ;;  %8485 = vpow2.f32 %v5286_v7  ;;  %v5083_v2 = vadd.f32 -0.28449672, %v5051_v58  ;;  %v5290_v27 = vmul.f32 1.442695, %v5244_v40 }
 0xed9   : > { %v5052_v22 = vmul.f32 %v11129_v1, %v5020_v61  ;;  %v4989_v48 = vmul.f32 %v11145_v49, %v4957_v6  ;;  %v5245_v4 = vmul.f32 %v5213_v13, %v11072_v17  ;;  %v5214_v11 = vsub.f32 0.0, %v11100_v57 }
 0xeda   : > { %v5367_v5 = vsub.f32 1.0, %v5335_v9  ;;  %vm5399_vm11 = vcmp.ge.f32.partialorder %v10910_v28, 0.0  ;;  %v5176_v38 = vmul.f32 %v11046_v62, %v5144_v14  ;;  %v4926_v23 = vmul.f32 1.0614054, %v11158_v46  ;;  %v12202_v14 = vld [vmem:[#allocation34_spill] sm:$0xff] }
 0xedb   : > { %v4831_v36 = vadd.f32 1.0, %v4799_v51  ;;  %v5462_v7 = vsel %vm5398_vm10, %v5366_v37, %v5430_v25  ;;  %v5146_v53 = vadd.f32 0.2548296, %v5114_v30  ;;  %v5084_v58 = vadd.f32 -0.28449672, %v5052_v22 }
 0xedc   : > { %v5021_v40 = vadd.f32 1.4214138, %v4989_v48  ;;  %v5177_v60 = vmul.f32 %v11081_v35, %v5145_v50  ;;  %v5115_v17 = vmul.f32 %v11110_v16, %v5083_v2  ;;  %v4958_v13 = vadd.f32 -1.4531521, %v4926_v23 }
 0xedd   : > { %8487 = vrcp.f32 %v4831_v36  ;;  %v8482_v9 = vpop.eup %8481  ;;  %v5116_v61 = vmul.f32 %v11129_v1, %v5084_v58  ;;  %v11175_v6 = vadd.f32 %v10705_v32, %v12202_v14  ;;  %v5292_v48 = vmul.f32 1.442695, %v5245_v4 }
 0xede   : > { %8489 = vpow2.f32 %v5288_v3  ;;  %v5053_v62 = vmul.f32 %v11145_v49, %v5021_v40  ;;  %v8484_v37 = vpop.eup %8483  ;;  %v5336_v0 = vmul.f32 %v8482_v9, %v5176_v38  ;;  %v4990_v22 = vmul.f32 %v11158_v46, %v4958_v13  ;;  %v12203_v13 = vld [vmem:[#allocation33_spill] sm:$0xff] }
 0xedf   : > { %8491 = vpow2.f32 %v5290_v27  ;;  %v5431_v35 = vsub.f32 0.0, %v5367_v5  ;;  %v5178_v25 = vmul.f32 %v11085_v10, %v5146_v53  ;;  %v5246_v3 = vmul.f32 %v5214_v11, %v11100_v57 }
 0xee0   : > { %v5085_v30 = vadd.f32 -0.28449672, %v5053_v62  ;;  %v5337_v51 = vmul.f32 %v8484_v37, %v5177_v60  ;;  %v11181_v50 = vmul.f32 0.5, %v10999_v34  ;;  %v5147_v2 = vadd.f32 0.2548296, %v5115_v17 }
 0xee1   : > { %v5022_v23 = vadd.f32 1.4214138, %v4990_v22  ;;  %v5494_v32 = vadd.f32 1.0, %v5462_v7  ;;  %vm5400_vm12 = vcmp.ge.f32.partialorder %v10956_v33, 0.0  ;;  %v5148_v38 = vadd.f32 0.2548296, %v5116_v61 }
 0xee2   : > { %v5117_v27 = vmul.f32 %v11145_v49, %v5085_v30  ;;  %v11186_v4 = vmul.f32 0.70710677, %v11175_v6  ;;  %v8486_v36 = vpop.eup %8485  ;;  %v5368_v10 = vsub.f32 1.0, %v5336_v0  ;;  %v11189_v53 = vmul.f32 0.5, %v11023_v24 }
 0xee3   : > { %8493 = vpow2.f32 %v5292_v48  ;;  %v5054_v34 = vmul.f32 %v11158_v46, %v5022_v23  ;;  %v5463_v57 = vsel %vm5399_vm11, %v5367_v5, %v5431_v35  ;;  %vm5401_vm13 = vcmp.ge.f32.partialorder %v10988_v29, 0.0  ;;  %v12205_v29 = vld [vmem:[#allocation5_spill] sm:$0xff] }
 0xee4   : > { %v5338_v11 = vmul.f32 %v8486_v36, %v5178_v25  ;;  %v5294_v7 = vmul.f32 1.442695, %v5246_v3  ;;  %v11196_v58 = vand.u32 2147483647, %v11186_v4  ;;  %v5369_v40 = vsub.f32 1.0, %v5337_v51  ;;  %v12204_v36 = vld [vmem:[#allocation15_spill] sm:$0xff] }
 0xee5   : > { %v5179_v60 = vmul.f32 %v11110_v16, %v5147_v2  ;;  %v5086_v17 = vadd.f32 -0.28449672, %v5054_v34  ;;  %v11201_v24 = vadd.f32 %v10708_v54, %v12203_v13  ;;  %v11204_v9 = vmul.f32 %v5494_v32, %v11003_v15 }
 0xee6   : > { %v5180_v28 = vmul.f32 %v11129_v1, %v5148_v38  ;;  %v5149_v5 = vadd.f32 0.2548296, %v5117_v27  ;;  %v4800_v61 = vmul.f32 0.3275911, %v11196_v58  ;;  %v5432_v14 = vsub.f32 0.0, %v5368_v10 }
 0xee7   : > { %v11208_v62 = vpop.eup %8487  ;;  %vm5402_vm14 = vcmp.ge.f32.partialorder %v10991_v26, 0.0  ;;  %v11212_v16 = vmul.f32 0.5, %v11051_v43  ;;  %v5118_v37 = vmul.f32 %v11158_v46, %v5086_v17  ;;  %v11216_v54 = vmul.f32 0.70710677, %v11201_v24  ;;  %v11229_v27 = vld [vmem:[%s8753_s14 + $0x9] ss:$0 sm:$0xff] }
 0xee8   : > { %v8490_v15 = vpop.eup %8489  ;;  %v5495_v0 = vadd.f32 1.0, %v5463_v57  ;;  %v5370_v1 = vsub.f32 1.0, %v5338_v11  ;;  %8495 = vpow2.f32 %v5294_v7  ;;  %v4927_v48 = vmul.f32 1.0614054, %v11208_v62 }
 0xee9   : > { %v8492_v22 = vpop.eup %8491  ;;  %v5433_v35 = vsub.f32 0.0, %v5369_v40  ;;  %v5339_v25 = vmul.f32 %v8490_v15, %v5179_v60  ;;  %v4832_v30 = vadd.f32 1.0, %v4800_v61  ;;  %v11220_v3 = vand.u32 2147483647, %v11216_v54 }
 0xeea   : > { %v5340_v43 = vmul.f32 %v8492_v22, %v5180_v28  ;;  %v5181_v51 = vmul.f32 %v11145_v49, %v5149_v5  ;;  %v11224_v2 = vmul.f32 0.5, %v11069_v39  ;;  %v4959_v23 = vadd.f32 -1.4531521, %v4927_v48 }
 0xeeb   : > { %v5464_v32 = vsel %vm5400_vm12, %v5368_v10, %v5432_v14  ;;  %v5150_v38 = vadd.f32 0.2548296, %v5118_v37  ;;  %8497 = vrcp.f32 %v4832_v30  ;;  %v11233_v34 = vadd.f32 %v11229_v27, %v12204_v36 }
 0xeec   : > { %v5434_v57 = vsub.f32 0.0, %v5370_v1  ;;  %vm5403_vm15 = vcmp.ge.f32.partialorder %v11017_v52, 0.0  ;;  %v4991_v49 = vmul.f32 %v11208_v62, %v4959_v23  ;;  %v5215_v39 = vsub.f32 0.0, %v11154_v47 }
 0xeed   : > { %v4801_v11 = vmul.f32 0.3275911, %v11220_v3  ;;  %v8494_v33 = vpop.eup %8493  ;;  %v11240_v10 = vmul.f32 %v5495_v0, %v11032_v41  ;;  %v5465_v7 = vsel %vm5401_vm13, %v5369_v40, %v5433_v35  ;;  %v5371_v60 = vsub.f32 1.0, %v5339_v25  ;;  %v11253_v41 = vld [vmem:[%s8753_s14 + $0xa] ss:$0 sm:$0xff] }
 0xeee   : > { %vm5404_vm2 = vcmp.ge.f32.partialorder %v11044_v45, 0.0  ;;  %v11246_v17 = vmul.f32 0.5, %v11127_v55  ;;  %v5496_v13 = vadd.f32 1.0, %v5464_v32  ;;  %v5372_v28 = vsub.f32 1.0, %v5340_v43 }
 0xeef   : > { %v5341_v5 = vmul.f32 %v8494_v33, %v5181_v51  ;;  %v4833_v61 = vadd.f32 1.0, %v4801_v11  ;;  %v5182_v14 = vmul.f32 %v11158_v46, %v5150_v38  ;;  %v5023_v37 = vadd.f32 1.4214138, %v4991_v49 }
 0xef0   : > { %v11250_v15 = vmul.f32 0.70710677, %v11233_v34  ;;  %v11257_v40 = vadd.f32 %v11253_v41, %v12205_v29  ;;  %v5497_v0 = vadd.f32 1.0, %v5465_v7  ;;  %v5466_v55 = vsel %vm5402_vm14, %v5370_v1, %v5434_v57 }
 0xef1   : > { %v5247_v48 = vmul.f32 %v5215_v39, %v11154_v47  ;;  %8499 = vrcp.f32 %v4833_v61  ;;  %v5435_v22 = vsub.f32 0.0, %v5371_v60  ;;  %vm5405_vm3 = vcmp.ge.f32.partialorder %v11061_v18, 0.0 }
 0xef2   : > { %v5216_v46 = vsub.f32 0.0, %v11196_v58  ;;  %v11265_v35 = vand.u32 2147483647, %v11250_v15  ;;  %v11269_v25 = vadd.f32 %v11229_v27, %v10877_v12  ;;  %v8496_v30 = vpop.eup %8495  ;;  %v11272_v43 = vmul.f32 %v5496_v13, %v11064_v8 }
 0xef3   : > { %v5436_v26 = vsub.f32 0.0, %v5372_v28  ;;  %v5373_v1 = vsub.f32 1.0, %v5341_v5  ;;  %v11275_v47 = vmul.f32 0.70710677, %v11257_v40  ;;  %v5342_v51 = vmul.f32 %v8496_v30, %v5182_v14 }
 0xef4   : > { %v5055_v23 = vmul.f32 %v11208_v62, %v5023_v37  ;;  %v11279_v32 = vmul.f32 0.5, %v11175_v6  ;;  %v4802_v38 = vmul.f32 0.3275911, %v11265_v35  ;;  %v11283_v12 = vmul.f32 %v5497_v0, %v11104_v56 }
 0xef5   : > { %v5498_v36 = vadd.f32 1.0, %v5466_v55  ;;  %v5296_v57 = vmul.f32 1.442695, %v5247_v48  ;;  %v11286_v8 = vand.u32 2147483647, %v11275_v47  ;;  %v11288_v49 = vpop.eup %8497  ;;  %v5467_v39 = vsel %vm5403_vm15, %v5371_v60, %v5435_v22 }
 0xef6   : > { %v5248_v11 = vmul.f32 %v5216_v46, %v11196_v58  ;;  %v4834_v33 = vadd.f32 1.0, %v4802_v38  ;;  %v11294_v6 = vmul.f32 0.70710677, %v11269_v25  ;;  %v5468_v56 = vsel %vm5404_vm2, %v5372_v28, %v5436_v26 }
 0xef7   : > { %v5437_v7 = vsub.f32 0.0, %v5373_v1  ;;  %vm5406_vm0 = vcmp.ge.f32.partialorder %v11089_v63, 0.0  ;;  %v4928_v13 = vmul.f32 1.0614054, %v11288_v49  ;;  %v4803_v5 = vmul.f32 0.3275911, %v11286_v8 }
 0xef8   : > { %v5374_v61 = vsub.f32 1.0, %v5342_v51  ;;  %v5087_v14 = vadd.f32 -0.28449672, %v5055_v23  ;;  %8501 = vrcp.f32 %v4834_v33  ;;  %v11302_v52 = vand.u32 2147483647, %v11294_v6 }
 0xef9   : > { %v11305_v58 = vmul.f32 %v5498_v36, %v11122_v59  ;;  %v4960_v60 = vadd.f32 -1.4531521, %v4928_v13  ;;  %v4835_v37 = vadd.f32 1.0, %v4803_v5  ;;  %v11309_v45 = vadd.f32 %v11253_v41, %v10880_v21 }
 0xefa   : > { %v5499_v28 = vadd.f32 1.0, %v5467_v39  ;;  %v5500_v29 = vadd.f32 1.0, %v5468_v56  ;;  %v5217_v0 = vsub.f32 0.0, %v11220_v3  ;;  %v4804_v55 = vmul.f32 0.3275911, %v11302_v52 }
 0xefb   : > { %v11313_v48 = vpop.eup %8499  ;;  %v5469_v22 = vsel %vm5405_vm3, %v5373_v1, %v5437_v7  ;;  %v4992_v59 = vmul.f32 %v11288_v49, %v4960_v60  ;;  %v5298_v46 = vmul.f32 1.442695, %v5248_v11  ;;  %8503 = vrcp.f32 %v4835_v37 }
 0xefc   : > { %v5438_v30 = vsub.f32 0.0, %v5374_v61  ;;  %v5119_v26 = vmul.f32 %v11208_v62, %v5087_v14  ;;  %v4929_v21 = vmul.f32 1.0614054, %v11313_v48  ;;  %v4836_v51 = vadd.f32 1.0, %v4804_v55 }
 0xefd   : > { %8505 = vpow2.f32 %v5296_v57  ;;  %v5024_v23 = vadd.f32 1.4214138, %v4992_v59  ;;  %v11321_v38 = vmul.f32 0.5, %v11201_v24  ;;  %v11324_v36 = vmul.f32 0.70710677, %v11309_v45 }
 0xefe   : > { %v5501_v18 = vadd.f32 1.0, %v5469_v22  ;;  %v4961_v1 = vadd.f32 -1.4531521, %v4929_v21  ;;  %v5249_v39 = vmul.f32 %v5217_v0, %v11220_v3  ;;  %v11329_v11 = vadd.f32 %v11229_v27, %v10894_v42 }
 0xeff   : > { %v11332_v33 = vmul.f32 %v5499_v28, %v11181_v50  ;;  %v11335_v57 = vmul.f32 %v5500_v29, %v11189_v53  ;;  %8507 = vrcp.f32 %v4836_v51  ;;  %v11338_v24 = vand.u32 2147483647, %v11324_v36 }
 0xf00   : > { %v5470_v56 = vsel %vm5406_vm0, %v5374_v61, %v5438_v30  ;;  %v5151_v7 = vadd.f32 0.2548296, %v5119_v26  ;;  %8509 = vpow2.f32 %v5298_v46  ;;  %v4993_v3 = vmul.f32 %v11313_v48, %v4961_v1 }
 0xf01   : > { %v5056_v42 = vmul.f32 %v11288_v49, %v5024_v23  ;;  %v11345_v13 = vmul.f32 0.5, %v11233_v34  ;;  %v5218_v50 = vsub.f32 0.0, %v11265_v35  ;;  %v4805_v53 = vmul.f32 0.3275911, %v11338_v24 }
 0xf02   : > { %v11349_v5 = vpop.eup %8501  ;;  %v11352_v14 = vmul.f32 %v5501_v18, %v11212_v16  ;;  %v5025_v63 = vadd.f32 1.4214138, %v4993_v3  ;;  %v5300_v61 = vmul.f32 1.442695, %v5249_v39  ;;  %v11355_v60 = vmul.f32 0.70710677, %v11329_v11 }
 0xf03   : > { %v5502_v37 = vadd.f32 1.0, %v5470_v56  ;;  %v4930_v28 = vmul.f32 1.0614054, %v11349_v5  ;;  %v11359_v34 = vmul.f32 0.5, %v11257_v40  ;;  %v4837_v29 = vadd.f32 1.0, %v4805_v53 }
 0xf04   : > { %v5183_v0 = vmul.f32 %v11208_v62, %v5151_v7  ;;  %v5057_v55 = vmul.f32 %v11313_v48, %v5025_v63  ;;  %v11364_v22 = vand.u32 2147483647, %v11355_v60  ;;  %v11368_v16 = vadd.f32 %v11253_v41, %v10900_v44 }
 0xf05   : > { %v11370_v59 = vpop.eup %8503  ;;  %v5088_v46 = vadd.f32 -0.28449672, %v5056_v42  ;;  %v4962_v30 = vadd.f32 -1.4531521, %v4930_v28  ;;  %v5250_v26 = vmul.f32 %v5218_v50, %v11265_v35  ;;  %8511 = vrcp.f32 %v4837_v29 }
 0xf06   : > { %12206 = vst [vmem:[#allocation46_spill] sm:$0xff] %v11368_v16  ;;  %v5089_v40 = vadd.f32 -0.28449672, %v5057_v55  ;;  %8513 = vpow2.f32 %v5300_v61  ;;  %v4931_v62 = vmul.f32 1.0614054, %v11370_v59  ;;  %v11376_v23 = vmul.f32 %v5502_v37, %v11224_v2 }
 0xf07   : > { %v4806_v21 = vmul.f32 0.3275911, %v11364_v22  ;;  %v8506_v51 = vpop.eup %8505  ;;  %v4994_v44 = vmul.f32 %v11349_v5, %v4962_v30  ;;  %v5219_v18 = vsub.f32 0.0, %v11286_v8  ;;  %v11381_v1 = vmul.f32 0.5, %v11269_v25 }
 0xf08   : > { %v5343_v39 = vmul.f32 %v8506_v51, %v5183_v0  ;;  %v4963_v35 = vadd.f32 -1.4531521, %v4931_v62  ;;  %v11384_v7 = vmul.f32 0.70710677, %v11368_v16  ;;  %v5120_v42 = vmul.f32 %v11288_v49, %v5088_v46 }
 0xf09   : > { %v4838_v56 = vadd.f32 1.0, %v4806_v21  ;;  %v11386_v3 = vpop.eup %8507  ;;  %v5026_v50 = vadd.f32 1.4214138, %v4994_v44  ;;  %v5302_v2 = vmul.f32 1.442695, %v5250_v26  ;;  %v5220_v53 = vsub.f32 0.0, %v11302_v52 }
 0xf0a   : > { %v8510_v63 = vpop.eup %8509  ;;  %v5121_v61 = vmul.f32 %v11313_v48, %v5089_v40  ;;  %v4995_v25 = vmul.f32 %v11370_v59, %v4963_v35  ;;  %v4932_v37 = vmul.f32 1.0614054, %v11386_v3  ;;  %vm5407_vm1 = vcmp.ge.f32.partialorder %v11143_v31, 0.0 }
 0xf0b   : > { %8515 = vrcp.f32 %v4838_v56  ;;  %v5058_v28 = vmul.f32 %v11349_v5, %v5026_v50  ;;  %v5251_v29 = vmul.f32 %v5219_v18, %v11286_v8  ;;  %v11397_v0 = vand.u32 2147483647, %v11384_v7 }
 0xf0c   : > { %v11401_v55 = vadd.f32 %v11229_v27, %v10904_v19  ;;  %v5375_v46 = vsub.f32 1.0, %v5343_v39  ;;  %v5027_v30 = vadd.f32 1.4214138, %v4995_v25  ;;  %v4964_v26 = vadd.f32 -1.4531521, %v4932_v37 }
 0xf0d   : > { %v5221_v40 = vsub.f32 0.0, %v11338_v24  ;;  %v5152_v62 = vadd.f32 0.2548296, %v5120_v42  ;;  %v5090_v21 = vadd.f32 -0.28449672, %v5058_v28  ;;  %v5252_v51 = vmul.f32 %v5220_v53, %v11302_v52 }
 0xf0e   : > { %v4807_v44 = vmul.f32 0.3275911, %v11397_v0  ;;  %v5153_v35 = vadd.f32 0.2548296, %v5121_v61  ;;  %8517 = vpow2.f32 %v5302_v2  ;;  %v5059_v8 = vmul.f32 %v11370_v59, %v5027_v30 }
 0xf0f   : > { %v4996_v18 = vmul.f32 %v11386_v3, %v4964_v26  ;;  %v11408_v56 = vpop.eup %8511  ;;  %v5122_v19 = vmul.f32 %v11349_v5, %v5090_v21  ;;  %v5304_v39 = vmul.f32 1.442695, %v5251_v29  ;;  %v11412_v25 = vmul.f32 0.70710677, %v11401_v55 }
 0xf10   : > { %v4839_v50 = vadd.f32 1.0, %v4807_v44  ;;  %v8514_v42 = vpop.eup %8513  ;;  %v5439_v37 = vsub.f32 0.0, %v5375_v46  ;;  %v5091_v52 = vadd.f32 -0.28449672, %v5059_v8  ;;  %v5253_v61 = vmul.f32 %v5221_v40, %v11338_v24 }
 0xf11   : > { %v5028_v53 = vadd.f32 1.4214138, %v4996_v18  ;;  %v5184_v2 = vmul.f32 %v11288_v49, %v5152_v62  ;;  %v5306_v28 = vmul.f32 1.442695, %v5252_v51  ;;  %v4933_v30 = vmul.f32 1.0614054, %v11408_v56 }
 0xf12   : > { %8519 = vrcp.f32 %v4839_v50  ;;  %v5185_v26 = vmul.f32 %v11313_v48, %v5153_v35  ;;  %v11420_v21 = vmul.f32 0.5, %v11309_v45  ;;  %v5222_v44 = vsub.f32 0.0, %v11364_v22 }
 0xf13   : > { %v5060_v29 = vmul.f32 %v11386_v3, %v5028_v53  ;;  %v5154_v16 = vadd.f32 0.2548296, %v5122_v19  ;;  %8521 = vpow2.f32 %v5304_v39  ;;  %v4965_v8 = vadd.f32 -1.4531521, %v4933_v30 }
 0xf14   : > { %v11424_v24 = vand.u32 2147483647, %v11412_v25  ;;  %v5471_v40 = vsel %vm5407_vm1, %v5375_v46, %v5439_v37  ;;  %v5123_v48 = vmul.f32 %v11370_v59, %v5091_v52  ;;  %v5308_v51 = vmul.f32 1.442695, %v5253_v61 }
 0xf15   : > { %v11426_v49 = vpop.eup %8515  ;;  %v5092_v62 = vadd.f32 -0.28449672, %v5060_v29  ;;  %v5344_v35 = vmul.f32 %v8510_v63, %v5184_v2  ;;  %8523 = vpow2.f32 %v5306_v28  ;;  %v4997_v45 = vmul.f32 %v11408_v56, %v4965_v8 }
 0xf16   : > { %v4934_v18 = vmul.f32 1.0614054, %v11426_v49  ;;  %v5345_v19 = vmul.f32 %v8514_v42, %v5185_v26  ;;  %v5254_v50 = vmul.f32 %v5222_v44, %v11364_v22  ;;  %v4808_v53 = vmul.f32 0.3275911, %v11424_v24 }
 0xf17   : > { %v5124_v39 = vmul.f32 %v11386_v3, %v5092_v62  ;;  %v5503_v30 = vadd.f32 1.0, %v5471_v40  ;;  %v5186_v31 = vmul.f32 %v11349_v5, %v5154_v16  ;;  %v5029_v46 = vadd.f32 1.4214138, %v4997_v45 }
 0xf18   : > { %v4966_v37 = vadd.f32 -1.4531521, %v4934_v18  ;;  %v8518_v52 = vpop.eup %8517  ;;  %v5155_v61 = vadd.f32 0.2548296, %v5123_v48  ;;  %8525 = vpow2.f32 %v5308_v51  ;;  %v5223_v63 = vsub.f32 0.0, %v11397_v0 }
 0xf19   : > { %v4840_v2 = vadd.f32 1.0, %v4808_v53  ;;  %vm5408_vm4 = vcmp.ge.f32.partialorder %v11186_v4, 0.0  ;;  %v5156_v42 = vadd.f32 0.2548296, %v5124_v39  ;;  %v5061_v28 = vmul.f32 %v11408_v56, %v5029_v46 }
 0xf1a   : > { %v4998_v22 = vmul.f32 %v11426_v49, %v4966_v37  ;;  %v11443_v26 = vadd.f32 %v11253_v41, %v10912_v20  ;;  %v5376_v5 = vsub.f32 1.0, %v5344_v35  ;;  %v5377_v16 = vsub.f32 1.0, %v5345_v19 }
 0xf1b   : > { %vm5409_vm5 = vcmp.ge.f32.partialorder %v11216_v54, 0.0  ;;  %v5310_v29 = vmul.f32 1.442695, %v5254_v50  ;;  %8527 = vrcp.f32 %v4840_v2  ;;  %v5346_v8 = vmul.f32 %v8518_v52, %v5186_v31 }
 0xf1c   : > { %v11446_v44 = vpop.eup %8519  ;;  %v5093_v40 = vadd.f32 -0.28449672, %v5061_v28  ;;  %v11449_v48 = vmul.f32 0.5, %v11329_v11  ;;  %v5030_v62 = vadd.f32 1.4214138, %v4998_v22  ;;  %v11452_v51 = vmul.f32 %v5503_v30, %v11246_v17  ;;  %v12207_v22 = vld [vmem:[#allocation27_spill] sm:$0xff] }
 0xf1d   : > { %v5187_v20 = vmul.f32 %v11370_v59, %v5155_v61  ;;  %v4935_v35 = vmul.f32 1.0614054, %v11446_v44  ;;  %v5255_v45 = vmul.f32 %v5223_v63, %v11397_v0  ;;  %v8522_v18 = vpop.eup %8521  ;;  %v5188_v19 = vmul.f32 %v11386_v3, %v5156_v42 }
 0xf1e   : > { %v5125_v39 = vmul.f32 %v11408_v56, %v5093_v40  ;;  %v5062_v50 = vmul.f32 %v11426_v49, %v5030_v62  ;;  %v11461_v11 = vmul.f32 0.70710677, %v11443_v26  ;;  %v5440_v53 = vsub.f32 0.0, %v5376_v5 }
 0xf1f   : > { %v5441_v31 = vsub.f32 0.0, %v5377_v16  ;;  %vm5410_vm6 = vcmp.ge.f32.partialorder %v11250_v15, 0.0  ;;  %8529 = vpow2.f32 %v5310_v29  ;;  %v4967_v17 = vadd.f32 -1.4531521, %v4935_v35  ;;  %v8524_v59 = vpop.eup %8523  ;;  %v12209_v15 = vld [vmem:[#allocation44_spill] sm:$0xff] }
 0xf20   : > { %v5378_v30 = vsub.f32 1.0, %v5346_v8  ;;  %v5157_v46 = vadd.f32 0.2548296, %v5125_v39  ;;  %v5094_v0 = vadd.f32 -0.28449672, %v5062_v50  ;;  %v5224_v37 = vsub.f32 0.0, %v11424_v24 }
 0xf21   : > { %v5347_v3 = vmul.f32 %v8522_v18, %v5187_v20  ;;  %v4999_v52 = vmul.f32 %v11446_v44, %v4967_v17  ;;  %v5312_v61 = vmul.f32 1.442695, %v5255_v45  ;;  %v11467_v63 = vand.u32 2147483647, %v11461_v11 }
 0xf22   : > { %v5348_v2 = vmul.f32 %v8524_v59, %v5188_v19  ;;  %v5189_v42 = vmul.f32 %v11408_v56, %v5157_v46  ;;  %v5126_v28 = vmul.f32 %v11426_v49, %v5094_v0  ;;  %v11473_v29 = vadd.f32 %v11229_v27, %v12207_v22  ;;  %v8526_v8 = vpop.eup %8525 }
 0xf23   : > { %v5472_v40 = vsel %vm5408_vm4, %v5376_v5, %v5440_v53  ;;  %v5031_v62 = vadd.f32 1.4214138, %v4999_v52  ;;  %v11478_v20 = vmul.f32 0.5, %v11401_v55  ;;  %v4809_v35 = vmul.f32 0.3275911, %v11467_v63 }
 0xf24   : > { %v5473_v45 = vsel %vm5409_vm5, %v5377_v16, %v5441_v31  ;;  %v5442_v56 = vsub.f32 0.0, %v5378_v30  ;;  %vm5411_vm7 = vcmp.ge.f32.partialorder %v11275_v47, 0.0  ;;  %v5158_v18 = vadd.f32 0.2548296, %v5126_v28 }
 0xf25   : > { %v5256_v19 = vmul.f32 %v5224_v37, %v11424_v24  ;;  %v11485_v39 = vpop.eup %8527  ;;  %v5379_v50 = vsub.f32 1.0, %v5347_v3  ;;  %vm5412_vm8 = vcmp.ge.f32.partialorder %v11294_v6, 0.0  ;;  %v5063_v4 = vmul.f32 %v11446_v44, %v5031_v62 }
 0xf26   : > { %v4841_v55 = vadd.f32 1.0, %v4809_v35  ;;  %v11490_v5 = vmul.f32 0.70710677, %v11473_v29  ;;  %v5380_v53 = vsub.f32 1.0, %v5348_v2  ;;  %v5349_v54 = vmul.f32 %v8526_v8, %v5189_v42 }
 0xf27   : > { %8531 = vpow2.f32 %v5312_v61  ;;  %v4936_v16 = vmul.f32 1.0614054, %v11485_v39  ;;  %v5504_v31 = vadd.f32 1.0, %v5472_v40  ;;  %v5095_v17 = vadd.f32 -0.28449672, %v5063_v4  ;;  %v12208_v40 = vld [vmem:[#allocation29_spill] sm:$0xff] }
 0xf28   : > { %8533 = vrcp.f32 %v4841_v55  ;;  %v11494_v24 = vand.u32 2147483647, %v11490_v5  ;;  %v5474_v59 = vsel %vm5410_vm6, %v5378_v30, %v5442_v56  ;;  %v5190_v46 = vmul.f32 %v11426_v49, %v5158_v18 }
 0xf29   : > { %v4968_v0 = vadd.f32 -1.4531521, %v4936_v16  ;;  %v5314_v37 = vmul.f32 1.442695, %v5256_v19  ;;  %v8530_v3 = vpop.eup %8529  ;;  %v5505_v52 = vadd.f32 1.0, %v5473_v45  ;;  %v5443_v2 = vsub.f32 0.0, %v5379_v50 }
 0xf2a   : > { %vm5413_vm9 = vcmp.ge.f32.partialorder %v11324_v36, 0.0  ;;  %v5127_v61 = vmul.f32 %v11446_v44, %v5095_v17  ;;  %v4810_v42 = vmul.f32 0.3275911, %v11494_v24  ;;  %v5444_v28 = vsub.f32 0.0, %v5380_v53  ;;  %v12210_v19 = vld [vmem:[#allocation25_spill] sm:$0xff]  ;;  %v12211_v16 = vld [vmem:[#allocation23_spill] sm:$0xff] }
 0xf2b   : > { %v5381_v22 = vsub.f32 1.0, %v5349_v54  ;;  %v5000_v8 = vmul.f32 %v11485_v39, %v4968_v0  ;;  %v5551_v30 = vpack.c.bf16 %v12209_v15, %v12208_v40  ;;  %v5506_v62 = vadd.f32 1.0, %v5474_v59  ;;  %v12212_v17 = vld [vmem:[#allocation24_spill] sm:$0xff]  ;;  %v12216_v15 = vld [vmem:[#allocation26_spill] sm:$0xff] }
 0xf2c   : > { %v5159_v49 = vadd.f32 0.2548296, %v5127_v61  ;;  %v5225_v35 = vsub.f32 0.0, %v11467_v63  ;;  %v4842_v56 = vadd.f32 1.0, %v4810_v42  ;;  %v5350_v45 = vmul.f32 %v8530_v3, %v5190_v46  ;;  %v12214_v0 = vld [vmem:[#allocation32_spill] sm:$0xff] }
 0xf2d   : > { %v5032_v18 = vadd.f32 1.4214138, %v5000_v8  ;;  %8535 = vpow2.f32 %v5314_v37  ;;  %5731 = vmatprep.mubr.bf16.mxu0 %v5551_v30  ;;  %v11508_v4 = vadd.f32 %v11253_v41, %v12210_v19  ;;  %v11511_v55 = vmul.f32 %v5504_v31, %v11279_v32 }
 0xf2e   : > { %v5475_v54 = vsel %vm5411_vm7, %v5379_v50, %v5443_v2  ;;  %8537 = vrcp.f32 %v4842_v56  ;;  %v12213_v59 = vpack.c.bf16 %v12211_v16, %v12212_v17  ;;  %v11520_v46 = vadd.f32 %v11229_v27, %v12214_v0 }
 0xf2f   : > { %v5476_v37 = vsel %vm5412_vm8, %v5380_v53, %v5444_v28  ;;  %v5445_v3 = vsub.f32 0.0, %v5381_v22  ;;  %v5064_v61 = vmul.f32 %v11485_v39, %v5032_v18  ;;  %v11526_v32 = vmul.f32 0.70710677, %v11508_v4 }
 0xf30   : > { %5732 = vmatmul.mubr.bf16.vlgmr.msra.gmra.mrb[96].mxu0 %v12213_v59  ;;  %v11529_v47 = vmul.f32 %v5505_v52, %v11321_v38  ;;  %v11532_v50 = vmul.f32 %v5506_v62, %v11345_v13  ;;  %vm5414_vm10 = vcmp.ge.f32.partialorder %v11355_v60, 0.0  ;;  %v5191_v27 = vmul.f32 %v11446_v44, %v5159_v49  ;;  %v12215_v13 = vld [vmem:[#allocation36_spill] sm:$0xff] }
 0xf31   : > { %v5257_v31 = vmul.f32 %v5225_v35, %v11467_v63  ;;  %v8532_v6 = vpop.eup %8531  ;;  %v5507_v53 = vadd.f32 1.0, %v5475_v54  ;;  %v5382_v2 = vsub.f32 1.0, %v5350_v45  ;;  %v5096_v42 = vadd.f32 -0.28449672, %v5064_v61  ;;  %v12217_v44 = vld [vmem:[#allocation28_spill] sm:$0xff] }
 0xf32   : > { %v4779_v28 = vand.u32 2147483647, %v11526_v32  ;;  %v11538_v8 = vpop.eup %8533  ;;  %v5508_v40 = vadd.f32 1.0, %v5476_v37  ;;  %v11541_v38 = vmul.f32 0.70710677, %v11520_v46  ;;  %v11545_v52 = vadd.f32 %v11253_v41, %v12215_v13 }
 0xf33   : > { %v5553_v30 = vpack.c.bf16 %v12217_v44, %v12216_v15  ;;  %v5477_v63 = vsel %vm5413_vm9, %v5381_v22, %v5445_v3  ;;  %v5128_v62 = vmul.f32 %v11485_v39, %v5096_v42  ;;  %v4937_v49 = vmul.f32 1.0614054, %v11538_v8 }
 0xf34   : > { %v4811_v35 = vmul.f32 0.3275911, %v4779_v28  ;;  %v11553_v56 = vmul.f32 %v8532_v6, %v5191_v27  ;;  %v5316_v45 = vmul.f32 1.442695, %v5257_v31  ;;  %v5226_v18 = vsub.f32 0.0, %v11494_v24 }
 0xf35   : > { %v11557_v19 = vand.u32 2147483647, %v11541_v38  ;;  %5739 = vmatprep.mubr.bf16.mxu0 %v5553_v30  ;;  %v5446_v41 = vsub.f32 0.0, %v5382_v2  ;;  %v5160_v54 = vadd.f32 0.2548296, %v5128_v62  ;;  %v11560_v36 = vmul.f32 %v5507_v53, %v11359_v34 }
 0xf36   : > { %v4969_v16 = vadd.f32 -1.4531521, %v4937_v49  ;;  %v4843_v17 = vadd.f32 1.0, %v4811_v35  ;;  %v5509_v22 = vadd.f32 1.0, %v5477_v63  ;;  %vm5416_vm11 = vcmp.ge.f32.partialorder %v11412_v25, 0.0 }
 0xf37   : > { %v4812_v59 = vmul.f32 0.3275911, %v11557_v19  ;;  %v11565_v0 = vmul.f32 0.70710677, %v11545_v52  ;;  %v8536_v37 = vpop.eup %8535  ;;  %v11568_v3 = vmul.f32 %v5508_v40, %v11381_v1  ;;  %v5192_v61 = vmul.f32 %v11485_v39, %v5160_v54  ;;  %v12219_v54 = vld [vmem:[#allocation30_spill] sm:$0xff] }
 0xf38   : > { %v5001_v27 = vmul.f32 %v11538_v8, %v4969_v16  ;;  %8539 = vrcp.f32 %v4843_v17  ;;  %v11572_v31 = vpop.eup %8537  ;;  %v5383_v34 = vsub.f32 1.0, %v11553_v56  ;;  %v5258_v6 = vmul.f32 %v5226_v18, %v11494_v24 }
 0xf39   : > { %v4844_v53 = vadd.f32 1.0, %v4812_v59  ;;  %v4781_v42 = vand.u32 2147483647, %v11565_v0  ;;  %v5478_v13 = vsel %vm5414_vm10, %v5382_v2, %v5446_v41  ;;  %v5352_v15 = vmul.f32 %v8536_v37, %v5192_v61 }
 0xf3a   : > { %v5033_v1 = vadd.f32 1.4214138, %v5001_v27  ;;  %v4938_v40 = vmul.f32 1.0614054, %v11572_v31  ;;  %v11581_v39 = vmul.f32 %v5509_v22, %v11420_v21  ;;  %8541 = vpow2.f32 %v5316_v45  ;;  %v12218_v21 = vld [vmem:[#allocation45_spill] sm:$0xff] }
 0xf3b   : > { %v5227_v44 = vsub.f32 0.0, %v4779_v28  ;;  %v4813_v30 = vmul.f32 0.3275911, %v4781_v42  ;;  %vm5415_vm12 = vcmp.ge.f32.partialorder %v11384_v7, 0.0  ;;  %v5384_v63 = vsub.f32 1.0, %v5352_v15 }
 0xf3c   : > { %v5065_v24 = vmul.f32 %v11538_v8, %v5033_v1  ;;  %v4970_v62 = vadd.f32 -1.4531521, %v4938_v40  ;;  %8543 = vrcp.f32 %v4844_v53  ;;  %v5510_v49 = vadd.f32 1.0, %v5478_v13 }
 0xf3d   : > { %v5447_v60 = vsub.f32 0.0, %v5383_v34  ;;  %v5318_v2 = vmul.f32 1.442695, %v5258_v6  ;;  %v4845_v35 = vadd.f32 1.0, %v4813_v30  ;;  %v5448_v56 = vsub.f32 0.0, %v5384_v63 }
 0xf3e   : > { %v5097_v18 = vadd.f32 -0.28449672, %v5065_v24  ;;  %v5002_v41 = vmul.f32 %v11572_v31, %v4970_v62  ;;  %v5552_v45 = vpack.c.bf16 %v12219_v54, %v12218_v21  ;;  %v5259_v16 = vmul.f32 %v5227_v44, %v4779_v28 }
 0xf3f   : > { %8545 = vrcp.f32 %v4845_v35  ;;  %v5555_v17 = vpack.c.bf16 %v11283_v12, %v11240_v10  ;;  %v5554_v22 = vpack.c.bf16 %v11272_v43, %v11204_v9  ;;  %v5480_v59 = vsel %vm5416_vm11, %v5384_v63, %v5448_v56 }
 0xf40   : > { %v5129_v37 = vmul.f32 %v11538_v8, %v5097_v18  ;;  %v5034_v61 = vadd.f32 1.4214138, %v5002_v41  ;;  %5740 = vmatmul.mubr.bf16.gmra.mrb[100].mxu0 %v5552_v45  ;;  %v5557_v27 = vpack.c.bf16 %v11352_v14, %v11332_v33  ;;  %v5512_v6 = vadd.f32 1.0, %v5480_v59 }
 0xf41   : > { %v5228_v28 = vsub.f32 0.0, %v11557_v19  ;;  %5747 = vmatprep.mubr.bf16.mxu0 %v5555_v17  ;;  %v5556_v10 = vpack.c.bf16 %v11335_v57, %v11305_v58  ;;  %v5559_v9 = vpack.c.bf16 %v11529_v47, %v11452_v51  ;;  %v5558_v53 = vpack.c.bf16 %v11511_v55, %v11376_v23  ;;  %v12220_v17 = vld [vmem:[#allocation46_spill] sm:$0xff] }
 0xf42   : > { %v11602_v43 = vpop.eup %8539  ;;  %v5161_v12 = vadd.f32 0.2548296, %v5129_v37  ;;  %v5066_v25 = vmul.f32 %v11572_v31, %v5034_v61  ;;  %v5561_v33 = vpack.c.bf16 %v11581_v39, %v11560_v36  ;;  %v11610_v14 = vmul.f32 %v5510_v49, %v11449_v48 }
 0xf43   : > { %v11613_v13 = vmul.f32 %v5512_v6, %v11478_v20  ;;  %v4939_v58 = vmul.f32 1.0614054, %v11602_v43  ;;  %v5560_v57 = vpack.c.bf16 %v11568_v3, %v11532_v50  ;;  %8547 = vpow2.f32 %v5318_v2 }
 0xf44   : > { %v5193_v51 = vmul.f32 %v11538_v8, %v5161_v12  ;;  %v5098_v47 = vadd.f32 -0.28449672, %v5066_v25  ;;  %v5229_v15 = vsub.f32 0.0, %v4781_v42  ;;  %v8542_v1 = vpop.eup %8541  ;;  %v5479_v40 = vsel %vm5415_vm12, %v5383_v34, %v5447_v60 }
 0xf45   : > { %v4971_v44 = vadd.f32 -1.4531521, %v4939_v58  ;;  %v5562_v48 = vpack.c.bf16 %v11613_v13, %v11610_v14  ;;  %v5320_v24 = vmul.f32 1.442695, %v5259_v16  ;;  %v5260_v62 = vmul.f32 %v5228_v28, %v11557_v19  ;;  %v12222_v14 = vld [vmem:[#allocation10_spill] sm:$0xff] }
 0xf46   : > { %v8544_v20 = vpop.eup %8543  ;;  %v5353_v30 = vmul.f32 %v8542_v1, %v5193_v51  ;;  %v5130_v63 = vmul.f32 %v11572_v31, %v5098_v47  ;;  %v5261_v56 = vmul.f32 %v5229_v15, %v4781_v42  ;;  %v5511_v34 = vadd.f32 1.0, %v5479_v40 }
 0xf47   : > { %v5003_v8 = vmul.f32 %v11602_v43, %v4971_v44  ;;  %v4940_v49 = vmul.f32 1.0614054, %v8544_v20  ;;  %8549 = vpow2.f32 %v5320_v24  ;;  %v5322_v21 = vmul.f32 1.442695, %v5260_v62 }
 0xf48   : > { %v5385_v2 = vsub.f32 1.0, %v5353_v30  ;;  %v5162_v35 = vadd.f32 0.2548296, %v5130_v63  ;;  %5748 = vmatmul.mubr.bf16.gmra.mrb[104].mxu0 %v5554_v22  ;;  %vm5417_vm13 = vcmp.ge.f32.partialorder %v11461_v11, 0.0  ;;  %v4711_v59 = vmul.f32 0.5, %v12220_v17 }
 0xf49   : > { %v8546_v7 = vpop.eup %8545  ;;  %v5035_v60 = vadd.f32 1.4214138, %v5003_v8  ;;  %v4972_v18 = vadd.f32 -1.4531521, %v4940_v49  ;;  %5755 = vmatprep.mubr.bf16.mxu0 %v5557_v27  ;;  %v5324_v37 = vmul.f32 1.442695, %v5261_v56  ;;  %8551 = vpow2.f32 %v5322_v21 }
 0xf4a   : > { %v5449_v41 = vsub.f32 0.0, %v5385_v2  ;;  %v4941_v54 = vmul.f32 1.0614054, %v8546_v7  ;;  %v5194_v19 = vmul.f32 %v11572_v31, %v5162_v35  ;;  %v4713_v61 = vmul.f32 0.5, %v11443_v26 }
 0xf4b   : > { %v5067_v45 = vmul.f32 %v11602_v43, %v5035_v60  ;;  %v5004_v16 = vmul.f32 %v8544_v20, %v4972_v18  ;;  %v5543_v25 = vmul.f32 %v5511_v34, %v4711_v59  ;;  %8553 = vpow2.f32 %v5324_v37 }
 0xf4c   : > { %v5481_v42 = vsel %vm5417_vm13, %v5385_v2, %v5449_v41  ;;  %v4973_v22 = vadd.f32 -1.4531521, %v4941_v54  ;;  %vm5418_vm14 = vcmp.ge.f32.partialorder %v11490_v5, 0.0  ;;  %vm5419_vm15 = vcmp.ge.f32.partialorder %v11526_v32, 0.0 }
 0xf4d   : > { %v5513_v6 = vadd.f32 1.0, %v5481_v42  ;;  %v5099_v27 = vadd.f32 -0.28449672, %v5067_v45  ;;  %v5036_v28 = vadd.f32 1.4214138, %v5004_v16  ;;  %v8548_v12 = vpop.eup %8547  ;;  %vm5420_vm2 = vcmp.ge.f32.partialorder %v11541_v38, 0.0 }
 0xf4e   : > { %v5005_v58 = vmul.f32 %v8546_v7, %v4973_v22  ;;  %v5354_v51 = vmul.f32 %v8548_v12, %v5194_v19  ;;  %v4714_v36 = vmul.f32 0.5, %v11473_v29  ;;  %v4716_v39 = vmul.f32 0.5, %v11520_v46  ;;  %v12221_v12 = vld [vmem:[#allocation13_spill] sm:$0xff] }
 0xf4f   : > { %v5545_v11 = vmul.f32 %v5513_v6, %v4713_v61  ;;  %v5131_v31 = vmul.f32 %v11602_v43, %v5099_v27  ;;  %v5068_v47 = vmul.f32 %v8544_v20, %v5036_v28  ;;  %vm5421_vm3 = vcmp.ge.f32.partialorder %v11565_v0, 0.0  ;;  %v11654_v0 = vld [vmem:[%s8753_s14 + $0x6] ss:$0 sm:$0xff] }
 0xf50   : > { %v5037_v15 = vadd.f32 1.4214138, %v5005_v58  ;;  %5756 = vmatmul.mubr.bf16.gmra.mrb[108].mxu0 %v5556_v10  ;;  %v5386_v30 = vsub.f32 1.0, %v5354_v51  ;;  %v4715_v59 = vmul.f32 0.5, %v11508_v4  ;;  %v4717_v29 = vmul.f32 0.5, %v11545_v52 }
 0xf51   : > { %v5163_v1 = vadd.f32 0.2548296, %v5131_v31  ;;  %v5100_v40 = vadd.f32 -0.28449672, %v5068_v47  ;;  %5763 = vmatprep.mubr.bf16.mxu0 %v5559_v9  ;;  %v5563_v44 = vpack.c.bf16 %v5545_v11, %v5543_v25  ;;  %v8550_v62 = vpop.eup %8549 }
 0xf52   : > { %v5069_v26 = vmul.f32 %v8546_v7, %v5037_v15  ;;  %v5450_v56 = vsub.f32 0.0, %v5386_v30 }
 0xf53   : > { %v5195_v63 = vmul.f32 %v11602_v43, %v5163_v1  ;;  %v5132_v24 = vmul.f32 %v8544_v20, %v5100_v40  ;;  %v8552_v18 = vpop.eup %8551  ;;  %v12223_v40 = vld [vmem:[#allocation38_spill] sm:$0xff] }
 0xf54   : > { %v5101_v8 = vadd.f32 -0.28449672, %v5069_v26  ;;  %v5482_v54 = vsel %vm5418_vm14, %v5386_v30, %v5450_v56  ;;  %v12224_v30 = vld [vmem:[#allocation14_spill] sm:$0xff] }
 0xf55   : > { %v5355_v49 = vmul.f32 %v8550_v62, %v5195_v63  ;;  %v5164_v2 = vadd.f32 0.2548296, %v5132_v24  ;;  %v8554_v21 = vpop.eup %8553  ;;  %v5514_v16 = vadd.f32 1.0, %v5482_v54 }
 0xf56   : > { %v5133_v35 = vmul.f32 %v8546_v7, %v5101_v8 }
 0xf57   : > { %v5387_v34 = vsub.f32 1.0, %v5355_v49  ;;  %v5196_v60 = vmul.f32 %v8544_v20, %v5164_v2  ;;  %v5546_v32 = vmul.f32 %v5514_v16, %v4714_v36  ;;  %v12227_v16 = vld [vmem:[#allocation12_spill] sm:$0xff] }
 0xf58   : > { %v5165_v10 = vadd.f32 0.2548296, %v5133_v35  ;;  %5764 = vmatmul.mubr.bf16.gmra.mrb[112].mxu0 %v5558_v53 }
 0xf59   : > { %v5356_v9 = vmul.f32 %v8552_v18, %v5196_v60  ;;  %5771 = vmatprep.mubr.bf16.mxu0 %v5561_v33  ;;  %v5451_v43 = vsub.f32 0.0, %v5387_v34 }
 0xf5a   : > { %v5197_v41 = vmul.f32 %v8546_v7, %v5165_v10  ;;  %v12226_v10 = vld [vmem:[#allocation39_spill] sm:$0xff] }
 0xf5b   : > { %v5388_v19 = vsub.f32 1.0, %v5356_v9  ;;  %v5483_v17 = vsel %vm5419_vm15, %v5387_v34, %v5451_v43  ;;  %v12225_v34 = vld [vmem:[#allocation16_spill] sm:$0xff] }
 0xf5c   : > { %v5357_v45 = vmul.f32 %v8554_v21, %v5197_v41  ;;  %v5515_v33 = vadd.f32 1.0, %v5483_v17 }
 0xf5d   : > { %v5452_v20 = vsub.f32 0.0, %v5388_v19 }
 0xf5e   : > { %v5389_v23 = vsub.f32 1.0, %v5357_v45  ;;  %v5547_v22 = vmul.f32 %v5515_v33, %v4715_v59  ;;  %v12229_v59 = vld [vmem:[#allocation18_spill] sm:$0xff] }
 0xf5f   : > { %v5484_v55 = vsel %vm5420_vm2, %v5388_v19, %v5452_v20 }
 0xf60   : > { %v5516_v5 = vadd.f32 1.0, %v5484_v55  ;;  %v5453_v53 = vsub.f32 0.0, %v5389_v23  ;;  %5772 = vmatmul.mubr.bf16.gmra.mrb[116].mxu0 %v5560_v57  ;;  %v12228_v55 = vld [vmem:[#allocation11_spill] sm:$0xff] }
 0xf61   : > { %5779 = vmatprep.mubr.bf16.mxu0 %v5563_v44 }
 0xf62   : > { %v5548_v7 = vmul.f32 %v5516_v5, %v4716_v39  ;;  %v5485_v38 = vsel %vm5421_vm3, %v5389_v23, %v5453_v53 }
 0xf63   : > { %v5517_v42 = vadd.f32 1.0, %v5485_v38 }
 0xf64   : > { %v5564_v46 = vpack.c.bf16 %v5548_v7, %v5546_v32 }
 0xf65   : > { %v5549_v37 = vmul.f32 %v5517_v42, %v4717_v29 }
 0xf67   : > { %v5565_v61 = vpack.c.bf16 %v5549_v37, %v5547_v22 }
 0xf68   : > { %5780 = vmatmul.mubr.bf16.gmra.mrb[120].mxu0 %v5562_v48 }
 0xf69   : > { %5787 = vmatprep.mubr.bf16.mxu0 %v5565_v61 }
 0xf70   : > { %5788 = vmatmul.mubr.bf16.gmra.mrb[124].mxu0 %v5564_v46  ;;  %v12230_v46 = vld [vmem:[#allocation17_spill] sm:$0xff] }
0x1003   : > { %v6773_v50 = vpop.f32.mrb[96].mxu0 }
0x1004   : > { %v6774_v3 = vpop.f32.mrb[97].mxu0 }
0x1005   : > { %v6775_v57 = vadd.f32 %v6774_v3, %v6773_v50  ;;  %v6776_v6 = vpop.f32.mrb[98].mxu0 }
0x1006   : > { %v6777_v4 = vpop.f32.mrb[99].mxu0 }
0x1007   : > { %v5734_v52 = vadd.f32 %v6775_v57, %v11654_v0  ;;  %v6778_v27 = vadd.f32 %v6777_v4, %v6776_v6 }
0x1009   : > { %v5737_v28 = vadd.f32 %v6778_v27, %v11654_v0  ;;  %v11659_v25 = vadd.f32 %v5734_v52, %v12221_v12  ;;  %v12231_v52 = vld [vmem:[#allocation7_spill] sm:$0xff]  ;;  %v12232_v12 = vld [vmem:[#allocation8_spill] sm:$0xff] }
0x100b   : > { %5814 = vadd.xlane.f32.xlu0 %v11659_v25  ;;  %v11663_v13 = vadd.f32 %v5737_v28, %v12222_v14 }
0x100d   : > { %5816 = vadd.xlane.f32.xlu1 %v11663_v13 }
0x1013   : > { %v6779_v48 = vpop.f32.mrb[100].mxu0 }
0x1014   : > { %v6780_v58 = vpop.f32.mrb[101].mxu0 }
0x1015   : > { %v6781_v11 = vadd.f32 %v6780_v58, %v6779_v48  ;;  %v6782_v51 = vpop.f32.mrb[102].mxu0 }
0x1016   : > { %v6783_v31 = vpop.f32.mrb[103].mxu0 }
0x1017   : > { %v5742_v47 = vadd.f32 %v6781_v11, %v11654_v0  ;;  %v6784_v15 = vadd.f32 %v6783_v31, %v6782_v51 }
0x1019   : > { %v5745_v1 = vadd.f32 %v6784_v15, %v11654_v0  ;;  %v11669_v44 = vadd.f32 %v5742_v47, %v12223_v40 }
0x101b   : > { %5818 = vadd.xlane.f32.xlu0 %v11669_v44  ;;  %v6785_v26 = vpop.f32.mrb[104].mxu0  ;;  %v11673_v63 = vadd.f32 %v5745_v1, %v12224_v30  ;;  %v12233_v1 = vld [vmem:[#allocation35_spill] sm:$0xff]  ;;  %v12234_v30 = vld [vmem:[#allocation21_spill] sm:$0xff] }
0x101c   : > { %v6786_v24 = vpop.f32.mrb[105].mxu0 }
0x101d   : > { %v6787_v62 = vadd.f32 %v6786_v24, %v6785_v26  ;;  %5820 = vadd.xlane.f32.xlu1 %v11673_v63  ;;  %v6788_v8 = vpop.f32.mrb[106].mxu0 }
0x101e   : > { %v6789_v49 = vpop.f32.mrb[107].mxu0 }
0x101f   : > { %v5750_v2 = vadd.f32 %v6787_v62, %v11654_v0  ;;  %v6790_v35 = vadd.f32 %v6789_v49, %v6788_v8 }
0x1021   : > { %v5753_v56 = vadd.f32 %v6790_v35, %v11654_v0  ;;  %v11679_v60 = vadd.f32 %v5750_v2, %v12225_v34 }
0x1023   : > { %5822 = vadd.xlane.f32.xlu0 %v11679_v60  ;;  %v6791_v18 = vpop.f32.mrb[108].mxu0  ;;  %v11683_v9 = vadd.f32 %v5753_v56, %v12226_v10 }
0x1024   : > { %v6792_v43 = vpop.f32.mrb[109].mxu0 }
0x1025   : > { %v6793_v41 = vadd.f32 %v6792_v43, %v6791_v18  ;;  %5824 = vadd.xlane.f32.xlu1 %v11683_v9  ;;  %v6794_v21 = vpop.f32.mrb[110].mxu0  ;;  %v12235_v18 = vld [vmem:[#allocation19_spill] sm:$0xff]  ;;  %v12236_v43 = vld [vmem:[#allocation9_spill] sm:$0xff] }
0x1026   : > { %v6795_v54 = vpop.f32.mrb[111].mxu0 }
0x1027   : > { %v5758_v19 = vadd.f32 %v6793_v41, %v11654_v0  ;;  %v6796_v45 = vadd.f32 %v6795_v54, %v6794_v21 }
0x1029   : > { %v5761_v20 = vadd.f32 %v6796_v45, %v11654_v0  ;;  %v11689_v17 = vadd.f32 %v5758_v19, %v12227_v16 }
0x102b   : > { %5826 = vadd.xlane.f32.xlu0 %v11689_v17  ;;  %v6797_v23 = vpop.f32.mrb[112].mxu0  ;;  %v11693_v36 = vadd.f32 %v5761_v20, %v12228_v55 }
0x102c   : > { %v6798_v39 = vpop.f32.mrb[113].mxu0 }
0x102d   : > { %v6799_v5 = vadd.f32 %v6798_v39, %v6797_v23  ;;  %5828 = vadd.xlane.f32.xlu1 %v11693_v36  ;;  %v6800_v53 = vpop.f32.mrb[114].mxu0 }
0x102e   : > { %v6801_v33 = vpop.f32.mrb[115].mxu0 }
0x102f   : > { %v5766_v32 = vadd.f32 %v6799_v5, %v11654_v0  ;;  %v6802_v7 = vadd.f32 %v6801_v33, %v6800_v53 }
0x1031   : > { %v5769_v38 = vadd.f32 %v6802_v7, %v11654_v0  ;;  %v11699_v29 = vadd.f32 %v5766_v32, %v12229_v59 }
0x1033   : > { %5830 = vadd.xlane.f32.xlu0 %v11699_v29  ;;  %v6803_v42 = vpop.f32.mrb[116].mxu0  ;;  %v11703_v22 = vadd.f32 %v5769_v38, %v12230_v46 }
0x1034   : > { %v6804_v37 = vpop.f32.mrb[117].mxu0 }
0x1035   : > { %v6805_v61 = vadd.f32 %v6804_v37, %v6803_v42  ;;  %5832 = vadd.xlane.f32.xlu1 %v11703_v22  ;;  %v6806_v50 = vpop.f32.mrb[118].mxu0 }
0x1036   : > { %v6807_v3 = vpop.f32.mrb[119].mxu0 }
0x1037   : > { %v5774_v57 = vadd.f32 %v6805_v61, %v11654_v0  ;;  %v6808_v6 = vadd.f32 %v6807_v3, %v6806_v50 }
0x1039   : > { %v5777_v4 = vadd.f32 %v6808_v6, %v11654_v0  ;;  %v11709_v27 = vadd.f32 %v5774_v57, %v12231_v52 }
0x103b   : > { %5834 = vadd.xlane.f32.xlu0 %v11709_v27  ;;  %v6809_v28 = vpop.f32.mrb[120].mxu0  ;;  %v11713_v14 = vadd.f32 %v5777_v4, %v12232_v12 }
0x103c   : > { %v6810_v48 = vpop.f32.mrb[121].mxu0 }
0x103d   : > { %v6811_v58 = vadd.f32 %v6810_v48, %v6809_v28  ;;  %5836 = vadd.xlane.f32.xlu1 %v11713_v14  ;;  %v6812_v11 = vpop.f32.mrb[122].mxu0 }
0x103e   : > { %v6813_v51 = vpop.f32.mrb[123].mxu0 }
0x103f   : > { %v5782_v31 = vadd.f32 %v6811_v58, %v11654_v0  ;;  %v6814_v47 = vadd.f32 %v6813_v51, %v6812_v11 }
0x1041   : > { %v5785_v15 = vadd.f32 %v6814_v47, %v11654_v0  ;;  %v11719_v40 = vadd.f32 %v5782_v31, %v12233_v1 }
0x1043   : > { %5838 = vadd.xlane.f32.xlu0 %v11719_v40  ;;  %v6815_v26 = vpop.f32.mrb[124].mxu0  ;;  %v11723_v24 = vadd.f32 %v5785_v15, %v12234_v30 }
0x1044   : > { %v6816_v62 = vpop.f32.mrb[125].mxu0 }
0x1045   : > { %v6817_v8 = vadd.f32 %v6816_v62, %v6815_v26  ;;  %5840 = vadd.xlane.f32.xlu1 %v11723_v24  ;;  %v6818_v49 = vpop.f32.mrb[126].mxu0 }
0x1046   : > { %v6819_v2 = vpop.f32.mrb[127].mxu0 }
0x1047   : > { %v5790_v35 = vadd.f32 %v6817_v8, %v11654_v0  ;;  %v6820_v56 = vadd.f32 %v6819_v2, %v6818_v49 }
0x1049   : > { %v5793_v34 = vadd.f32 %v6820_v56, %v11654_v0  ;;  %v11729_v10 = vadd.f32 %v5790_v35, %v12235_v18 }
0x104b   : > { %5842 = vadd.xlane.f32.xlu0 %v11729_v10  ;;  %v11733_v41 = vadd.f32 %v5793_v34, %v12236_v43 }
0x104d   : > { %5844 = vadd.xlane.f32.xlu1 %v11733_v41 }
0x1098   : > { %v5815_v21 = vpop.xlane.xlu0 %5814 }
0x1099   : > { %v5846_v54 = vmul.f32 0.0078125, %v5815_v21 }
0x109a   : > { %v5817_v19 = vpop.xlane.xlu1 %5816 }
0x109b   : > { %v11737_v45 = vsub.f32 %v11659_v25, %v5846_v54  ;;  %v5847_v20 = vmul.f32 0.0078125, %v5817_v19 }
0x109d   : > { %v11740_v16 = vsub.f32 %v11663_v13, %v5847_v20  ;;  %v5878_v0 = vmul.f32 %v11737_v45, %v11737_v45 }
0x109f   : > { %5894 = vadd.xlane.f32.xlu0 %v5878_v0  ;;  %v5879_v23 = vmul.f32 %v11740_v16, %v11740_v16 }
0x10a1   : > { %5896 = vadd.xlane.f32.xlu1 %v5879_v23 }
0x10a8   : > { %v5819_v55 = vpop.xlane.xlu0 %5818 }
0x10a9   : > { %v5848_v39 = vmul.f32 0.0078125, %v5819_v55 }
0x10aa   : > { %v5821_v5 = vpop.xlane.xlu1 %5820 }
0x10ab   : > { %v11747_v53 = vsub.f32 %v11669_v44, %v5848_v39  ;;  %v5849_v25 = vmul.f32 0.0078125, %v5821_v5 }
0x10ad   : > { %v11750_v33 = vsub.f32 %v11673_v63, %v5849_v25  ;;  %v5880_v13 = vmul.f32 %v11747_v53, %v11747_v53 }
0x10af   : > { %5898 = vadd.xlane.f32.xlu0 %v5880_v13  ;;  %v5881_v32 = vmul.f32 %v11750_v33, %v11750_v33  ;;  %v11821_v13 = vld [vmem:[%s8753_s14 + $0x8] ss:$0 sm:$0xff] }
0x10b0   : > { %v5823_v7 = vpop.xlane.xlu0 %5822 }
0x10b1   : > { %v5850_v38 = vmul.f32 0.0078125, %v5823_v7  ;;  %5900 = vadd.xlane.f32.xlu1 %v5881_v32 }
0x10b2   : > { %v5825_v59 = vpop.xlane.xlu1 %5824 }
0x10b3   : > { %v11757_v42 = vsub.f32 %v11679_v60, %v5850_v38  ;;  %v5851_v44 = vmul.f32 0.0078125, %v5825_v59 }
0x10b5   : > { %v11760_v46 = vsub.f32 %v11683_v9, %v5851_v44  ;;  %v5882_v63 = vmul.f32 %v11757_v42, %v11757_v42 }
0x10b7   : > { %5902 = vadd.xlane.f32.xlu0 %v5882_v63  ;;  %v5883_v37 = vmul.f32 %v11760_v46, %v11760_v46 }
0x10b8   : > { %v5827_v61 = vpop.xlane.xlu0 %5826 }
0x10b9   : > { %v5852_v50 = vmul.f32 0.0078125, %v5827_v61  ;;  %5904 = vadd.xlane.f32.xlu1 %v5883_v37 }
0x10ba   : > { %v5829_v3 = vpop.xlane.xlu1 %5828 }
0x10bb   : > { %v11767_v57 = vsub.f32 %v11689_v17, %v5852_v50  ;;  %v5853_v60 = vmul.f32 0.0078125, %v5829_v3 }
0x10bd   : > { %v11770_v6 = vsub.f32 %v11693_v36, %v5853_v60  ;;  %v5884_v9 = vmul.f32 %v11767_v57, %v11767_v57 }
0x10bf   : > { %5906 = vadd.xlane.f32.xlu0 %v5884_v9  ;;  %v5885_v4 = vmul.f32 %v11770_v6, %v11770_v6 }
0x10c0   : > { %v5831_v52 = vpop.xlane.xlu0 %5830 }
0x10c1   : > { %v5854_v28 = vmul.f32 0.0078125, %v5831_v52  ;;  %5908 = vadd.xlane.f32.xlu1 %v5885_v4 }
0x10c2   : > { %v5833_v12 = vpop.xlane.xlu1 %5832 }
0x10c3   : > { %v11777_v48 = vsub.f32 %v11699_v29, %v5854_v28  ;;  %v5855_v17 = vmul.f32 0.0078125, %v5833_v12 }
0x10c5   : > { %v11780_v58 = vsub.f32 %v11703_v22, %v5855_v17  ;;  %v5886_v36 = vmul.f32 %v11777_v48, %v11777_v48 }
0x10c7   : > { %5910 = vadd.xlane.f32.xlu0 %v5886_v36  ;;  %v5887_v11 = vmul.f32 %v11780_v58, %v11780_v58 }
0x10c8   : > { %v5835_v51 = vpop.xlane.xlu0 %5834 }
0x10c9   : > { %v5856_v31 = vmul.f32 0.0078125, %v5835_v51  ;;  %5912 = vadd.xlane.f32.xlu1 %v5887_v11 }
0x10ca   : > { %v5837_v47 = vpop.xlane.xlu1 %5836 }
0x10cb   : > { %v11787_v15 = vsub.f32 %v11709_v27, %v5856_v31  ;;  %v5857_v29 = vmul.f32 0.0078125, %v5837_v47 }
0x10cd   : > { %v11790_v1 = vsub.f32 %v11713_v14, %v5857_v29  ;;  %v5888_v22 = vmul.f32 %v11787_v15, %v11787_v15 }
0x10cf   : > { %5914 = vadd.xlane.f32.xlu0 %v5888_v22  ;;  %v5889_v26 = vmul.f32 %v11790_v1, %v11790_v1 }
0x10d0   : > { %v5839_v30 = vpop.xlane.xlu0 %5838 }
0x10d1   : > { %v5858_v62 = vmul.f32 0.0078125, %v5839_v30  ;;  %5916 = vadd.xlane.f32.xlu1 %v5889_v26 }
0x10d2   : > { %v5841_v8 = vpop.xlane.xlu1 %5840 }
0x10d3   : > { %v11797_v49 = vsub.f32 %v11719_v40, %v5858_v62  ;;  %v5859_v27 = vmul.f32 0.0078125, %v5841_v8 }
0x10d5   : > { %v11800_v2 = vsub.f32 %v11723_v24, %v5859_v27  ;;  %v5890_v14 = vmul.f32 %v11797_v49, %v11797_v49 }
0x10d7   : > { %5918 = vadd.xlane.f32.xlu0 %v5890_v14  ;;  %v5891_v35 = vmul.f32 %v11800_v2, %v11800_v2 }
0x10d8   : > { %v5843_v56 = vpop.xlane.xlu0 %5842 }
0x10d9   : > { %v5860_v34 = vmul.f32 0.0078125, %v5843_v56  ;;  %5920 = vadd.xlane.f32.xlu1 %v5891_v35 }
0x10da   : > { %v5845_v18 = vpop.xlane.xlu1 %5844 }
0x10db   : > { %v11807_v43 = vsub.f32 %v11729_v10, %v5860_v34  ;;  %v5861_v40 = vmul.f32 0.0078125, %v5845_v18 }
0x10dd   : > { %v11810_v21 = vsub.f32 %v11733_v41, %v5861_v40  ;;  %v5892_v24 = vmul.f32 %v11807_v43, %v11807_v43  ;;  %v11817_v41 = vld [vmem:[%s8753_s14 + $0x7] ss:$0 sm:$0xff]  ;;  %s8605_s14 = scalar_lea.vmem %s6056_s22, 2048 }
0x10de   : > { %p8606_p7 = scmp.ne.s32.totalorder %s6056_s22, %s8605_s14  ;;  %p8613_p11 = scmp.lt.s32.totalorder %s8605_s14, %s8605_s14 }
0x10df   : > { %5922 = vadd.xlane.f32.xlu0 %v5892_v24  ;;  %v5893_v54 = vmul.f32 %v11810_v21, %v11810_v21 }
0x10e0   : > { %p8607_p8 = pnand %p8606_p7, %p11871_p6  ;;  %p8614_p12 = por %p8613_p11, %p8612_p10 }
0x10e1   : > { %5924 = vadd.xlane.f32.xlu1 %v5893_v54 }
0x10e2   : > { %p8608_p9 = pneg %p8607_p8 }
0x10e4   : > { %p8615_p13 = pnand %p8614_p12, %p8608_p9 }
0x112c   : > { %v5895_v19 = vpop.xlane.xlu0 %5894 }
0x112d   : > { %v5926_v20 = vmul.f32 0.0078125, %v5895_v19 }
0x112e   : > { %v5897_v0 = vpop.xlane.xlu1 %5896 }
0x112f   : > { %v5942_v23 = vadd.f32 1e-12, %v5926_v20  ;;  %v5927_v10 = vmul.f32 0.0078125, %v5897_v0 }
0x1131   : > { %8555 = vrsqrt.f32 %v5942_v23  ;;  %v5943_v55 = vadd.f32 1e-12, %v5927_v10 }
0x1133   : > { %8557 = vrsqrt.f32 %v5943_v55 }
0x113b   : > { %v8556_v39 = vpop.eup %8555 }
0x113c   : > { %v5974_v5 = vmul.f32 %v8556_v39, %v11737_v45  ;;  %v5899_v32 = vpop.xlane.xlu0 %5898 }
0x113d   : > { %v8558_v25 = vpop.eup %8557  ;;  %v5928_v59 = vmul.f32 0.0078125, %v5899_v32 }
0x113e   : > { %v5994_v7 = vmul.f32 %v11817_v41, %v5974_v5  ;;  %v5975_v38 = vmul.f32 %v8558_v25, %v11740_v16  ;;  %v5901_v44 = vpop.xlane.xlu1 %5900 }
0x113f   : > { %v5944_v61 = vadd.f32 1e-12, %v5928_v59  ;;  %v5929_v50 = vmul.f32 0.0078125, %v5901_v44 }
0x1140   : > { %v6014_v63 = vadd.f32 %v11821_v13, %v5994_v7  ;;  %v5995_v37 = vmul.f32 %v11817_v41, %v5975_v38 }
0x1141   : > { %8559 = vrsqrt.f32 %v5944_v61  ;;  %v5945_v45 = vadd.f32 1e-12, %v5929_v50 }
0x1142   : > { %6030 = vst [vmem:[#allocation2] sm:$0xff] %v6014_v63  ;;  %v6015_v3 = vadd.f32 %v11821_v13, %v5995_v37 }
0x1143   : > { %8561 = vrsqrt.f32 %v5945_v45 }
0x1144   : > { %6031 = vst [vmem:[#allocation2 + $0x8] sm:$0xff] %v6015_v3  ;;  %v5903_v60 = vpop.xlane.xlu0 %5902 }
0x1145   : > { %v5930_v9 = vmul.f32 0.0078125, %v5903_v60 }
0x1146   : > { %v5905_v4 = vpop.xlane.xlu1 %5904 }
0x1147   : > { %v5946_v52 = vadd.f32 1e-12, %v5930_v9  ;;  %v5931_v16 = vmul.f32 0.0078125, %v5905_v4 }
0x1149   : > { %8563 = vrsqrt.f32 %v5946_v52  ;;  %v5947_v28 = vadd.f32 1e-12, %v5931_v16 }
0x114b   : > { %v8560_v12 = vpop.eup %8559  ;;  %8565 = vrsqrt.f32 %v5947_v28 }
0x114c   : > { %v5976_v17 = vmul.f32 %v8560_v12, %v11747_v53  ;;  %v5907_v36 = vpop.xlane.xlu0 %5906 }
0x114d   : > { %v8562_v11 = vpop.eup %8561  ;;  %v5932_v51 = vmul.f32 0.0078125, %v5907_v36 }
0x114e   : > { %v5996_v31 = vmul.f32 %v11817_v41, %v5976_v17  ;;  %v5977_v47 = vmul.f32 %v8562_v11, %v11750_v33  ;;  %v5909_v29 = vpop.xlane.xlu1 %5908 }
0x114f   : > { %v5948_v22 = vadd.f32 1e-12, %v5932_v51  ;;  %v5933_v26 = vmul.f32 0.0078125, %v5909_v29 }
0x1150   : > { %v6016_v30 = vadd.f32 %v11821_v13, %v5996_v31  ;;  %v5997_v62 = vmul.f32 %v11817_v41, %v5977_v47 }
0x1151   : > { %8567 = vrsqrt.f32 %v5948_v22  ;;  %v5949_v8 = vadd.f32 1e-12, %v5933_v26 }
0x1152   : > { %6032 = vst [vmem:[#allocation2 + $0x10] sm:$0xff] %v6016_v30  ;;  %v6017_v27 = vadd.f32 %v11821_v13, %v5997_v62 }
0x1153   : > { %v8564_v53 = vpop.eup %8563  ;;  %8569 = vrsqrt.f32 %v5949_v8 }
0x1154   : > { %6033 = vst [vmem:[#allocation2 + $0x18] sm:$0xff] %v6017_v27  ;;  %v5978_v14 = vmul.f32 %v8564_v53, %v11757_v42  ;;  %v5911_v35 = vpop.xlane.xlu0 %5910 }
0x1155   : > { %v8566_v56 = vpop.eup %8565  ;;  %v5934_v33 = vmul.f32 0.0078125, %v5911_v35 }
0x1156   : > { %v5998_v34 = vmul.f32 %v11817_v41, %v5978_v14  ;;  %v5979_v18 = vmul.f32 %v8566_v56, %v11760_v46  ;;  %v5913_v40 = vpop.xlane.xlu1 %5912 }
0x1157   : > { %v5950_v24 = vadd.f32 1e-12, %v5934_v33  ;;  %v5935_v54 = vmul.f32 0.0078125, %v5913_v40 }
0x1158   : > { %v6018_v19 = vadd.f32 %v11821_v13, %v5998_v34  ;;  %v5999_v20 = vmul.f32 %v11817_v41, %v5979_v18 }
0x1159   : > { %8571 = vrsqrt.f32 %v5950_v24  ;;  %v5951_v0 = vadd.f32 1e-12, %v5935_v54 }
0x115a   : > { %6034 = vst [vmem:[#allocation2 + $0x20] sm:$0xff] %v6018_v19  ;;  %v6019_v23 = vadd.f32 %v11821_v13, %v5999_v20 }
0x115b   : > { %v8568_v42 = vpop.eup %8567  ;;  %8573 = vrsqrt.f32 %v5951_v0 }
0x115c   : > { %6035 = vst [vmem:[#allocation2 + $0x28] sm:$0xff] %v6019_v23  ;;  %v5980_v10 = vmul.f32 %v8568_v42, %v11767_v57  ;;  %v5915_v55 = vpop.xlane.xlu0 %5914 }
0x115d   : > { %v8570_v39 = vpop.eup %8569  ;;  %v5936_v46 = vmul.f32 0.0078125, %v5915_v55 }
0x115e   : > { %v6000_v5 = vmul.f32 %v11817_v41, %v5980_v10  ;;  %v5981_v25 = vmul.f32 %v8570_v39, %v11770_v6  ;;  %v5917_v32 = vpop.xlane.xlu1 %5916 }
0x115f   : > { %v5952_v7 = vadd.f32 1e-12, %v5936_v46  ;;  %v5937_v38 = vmul.f32 0.0078125, %v5917_v32 }
0x1160   : > { %v6020_v59 = vadd.f32 %v11821_v13, %v6000_v5  ;;  %v6001_v44 = vmul.f32 %v11817_v41, %v5981_v25 }
0x1161   : > { %8575 = vrsqrt.f32 %v5952_v7  ;;  %v5953_v63 = vadd.f32 1e-12, %v5937_v38 }
0x1162   : > { %6036 = vst [vmem:[#allocation2 + $0x30] sm:$0xff] %v6020_v59  ;;  %v6021_v37 = vadd.f32 %v11821_v13, %v6001_v44 }
0x1163   : > { %v8572_v57 = vpop.eup %8571  ;;  %8577 = vrsqrt.f32 %v5953_v63 }
0x1164   : > { %6037 = vst [vmem:[#allocation2 + $0x38] sm:$0xff] %v6021_v37  ;;  %v5982_v61 = vmul.f32 %v8572_v57, %v11777_v48  ;;  %v5919_v50 = vpop.xlane.xlu0 %5918 }
0x1165   : > { %v8574_v3 = vpop.eup %8573  ;;  %v5938_v6 = vmul.f32 0.0078125, %v5919_v50 }
0x1166   : > { %v6002_v45 = vmul.f32 %v11817_v41, %v5982_v61  ;;  %v5983_v60 = vmul.f32 %v8574_v3, %v11780_v58  ;;  %v5921_v9 = vpop.xlane.xlu1 %5920 }
0x1167   : > { %v5954_v4 = vadd.f32 1e-12, %v5938_v6  ;;  %v5939_v52 = vmul.f32 0.0078125, %v5921_v9 }
0x1168   : > { %v6022_v16 = vadd.f32 %v11821_v13, %v6002_v45  ;;  %v6003_v28 = vmul.f32 %v11817_v41, %v5983_v60 }
0x1169   : > { %8579 = vrsqrt.f32 %v5954_v4  ;;  %v5955_v12 = vadd.f32 1e-12, %v5939_v52 }
0x116a   : > { %6038 = vst [vmem:[#allocation2 + $0x40] sm:$0xff] %v6022_v16  ;;  %v6023_v17 = vadd.f32 %v11821_v13, %v6003_v28 }
0x116b   : > { %v8576_v48 = vpop.eup %8575  ;;  %8581 = vrsqrt.f32 %v5955_v12 }
0x116c   : > { %6039 = vst [vmem:[#allocation2 + $0x48] sm:$0xff] %v6023_v17  ;;  %v5984_v36 = vmul.f32 %v8576_v48, %v11787_v15  ;;  %v5923_v11 = vpop.xlane.xlu0 %5922 }
0x116d   : > { %v8578_v51 = vpop.eup %8577  ;;  %v5940_v58 = vmul.f32 0.0078125, %v5923_v11 }
0x116e   : > { %v6004_v31 = vmul.f32 %v11817_v41, %v5984_v36  ;;  %v5985_v47 = vmul.f32 %v8578_v51, %v11790_v1  ;;  %v5925_v29 = vpop.xlane.xlu1 %5924 }
0x116f   : > { %v5956_v22 = vadd.f32 1e-12, %v5940_v58  ;;  %v5941_v26 = vmul.f32 0.0078125, %v5925_v29 }
0x1170   : > { %v6024_v30 = vadd.f32 %v11821_v13, %v6004_v31  ;;  %v6005_v62 = vmul.f32 %v11817_v41, %v5985_v47 }
0x1171   : > { %8583 = vrsqrt.f32 %v5956_v22  ;;  %v5957_v8 = vadd.f32 1e-12, %v5941_v26 }
0x1172   : > { %6040 = vst [vmem:[#allocation2 + $0x50] sm:$0xff] %v6024_v30  ;;  %v6025_v27 = vadd.f32 %v11821_v13, %v6005_v62 }
0x1173   : > { %v8580_v15 = vpop.eup %8579  ;;  %8585 = vrsqrt.f32 %v5957_v8 }
0x1174   : > { %6041 = vst [vmem:[#allocation2 + $0x58] sm:$0xff] %v6025_v27  ;;  %v5986_v53 = vmul.f32 %v8580_v15, %v11797_v49 }
0x1175   : > { %v8582_v14 = vpop.eup %8581 }
0x1176   : > { %v6006_v1 = vmul.f32 %v11817_v41, %v5986_v53  ;;  %v5987_v35 = vmul.f32 %v8582_v14, %v11800_v2 }
0x1178   : > { %v6026_v56 = vadd.f32 %v11821_v13, %v6006_v1  ;;  %v6007_v33 = vmul.f32 %v11817_v41, %v5987_v35 }
0x117a   : > { %6042 = vst [vmem:[#allocation2 + $0x60] sm:$0xff] %v6026_v56  ;;  %v6027_v34 = vadd.f32 %v11821_v13, %v6007_v33 }
0x117b   : > { %v8584_v18 = vpop.eup %8583 }
0x117c   : > { %6043 = vst [vmem:[#allocation2 + $0x68] sm:$0xff] %v6027_v34  ;;  %v5988_v40 = vmul.f32 %v8584_v18, %v11807_v43 }
0x117d   : > { %v8586_v24 = vpop.eup %8585 }
0x117e   : > { %v6008_v49 = vmul.f32 %v11817_v41, %v5988_v40  ;;  %v5989_v54 = vmul.f32 %v8586_v24, %v11810_v21 }
0x1180   : > { %v6028_v2 = vadd.f32 %v11821_v13, %v6008_v49  ;;  %v6009_v19 = vmul.f32 %v11817_v41, %v5989_v54 }
0x1182   : > { %6044 = vst [vmem:[#allocation2 + $0x70] sm:$0xff] %v6028_v2  ;;  %v6029_v43 = vadd.f32 %v11821_v13, %v6009_v19 }
0x1184   : > { %6045 = vst [vmem:[#allocation2 + $0x78] sm:$0xff] %v6029_v43 }
0x1185   : > { %8618 = shalt.err (!%p8615_p13)
}
0x1186   : > { %s8619_s18 = scalar_lea.hbm %s11915_s8, 2048 }
0x1187   : > { %p8620_p0 = scmp.ne.s32.totalorder %s11915_s8, %s8619_s18  ;;  %p8625_p3 = scmp.lt.u32.totalorder %s8619_s18, %s11915_s8 }
0x1189   : > { %p8621_p1 = pnand %p8620_p0, %p11871_p6 }
0x118b   : > { %p8622_p2 = pneg %p8621_p1 }
0x118d   : > { %p8627_p4 = pnand %p8625_p3, %p8622_p2 }
0x118f   : > { %8630 = shalt.err (!%p8627_p4)
}
0x1190   : > { %s8664_s23 = smov 128   ;;  %s8665_s27 = smov 8  }
0x1191   : > { %7751 = dma.vmem_to_hbm [thread:$0]  (%p11871_p6), %s6056_s22, 2048, %s11915_s8, [#allocation3], %s8664_s23, %s8664_s23, %s8665_s27  }
0x1192   : > { %8644 = dma.done.wait (%p11871_p6), [#allocation3], 2048  }
0x1193   : > { %8646 = vsyncadd (%p11871_p6), [#allocation3], 4294965248 }
0x1194 PF: > { %s19_s29 = sadd.s32 1, %s8657_s29   ;;  %s12238_s27 = smov %s8653_s28 }
0x1195   : > { %p16_p5 = scmp.ge.s32.totalorder %s19_s29, 4   ;;  %s12239_s28 = smov %s12241_s9 }
0x1197   :  { %18 = sbr.rel (!%p16_p5) target bundleno = 2 (0x2), region = 102 }
0x119e   :  { %6071 = vsyncpa [#allocation3], 1 }
0x119f   :  { %6073 = vsyncpa [#allocation3 + $0x1], 1 }

</bundles_post_ra>
